<compile_context>
chip_gen: v7x
topology: tpu7x:2x2x1
jax: 0.10.0
libtpu: 0.0.40
codegen_flags: <defaults>
</compile_context>

<pallas_src>
import jax
import jax.numpy as jnp
from jax import lax
from jax.experimental import pallas as pl
from jax.experimental.pallas import tpu as pltpu


def _round_up(x, m):
    return (x + m - 1) // m * m


def _cdiv(a, b):
    return -(-a // b)


_UNROLL_T = 32          # fully unroll the step loop up to this many steps
_VMEM_FRACTION = 0.75   # fraction of physical VMEM budgeted for this kernel


def _vmem_capacity_bytes():
    """Chip VMEM capacity, with a conservative v7x (64 MiB per-TC) fallback."""
    try:
        info = pltpu.get_tpu_info()
        cap = getattr(info, "vmem_capacity_bytes", None)
        if cap:
            return int(cap)
    except Exception:
        pass
    return 64 * 1024 * 1024


def _pick_tile_b(B):
    """Batch tile.

    Guarantees >= 2 grid tiles whenever the (16-padded) batch is >= 256 so the
    "parallel" batch axis can shard across v7x's 2 TensorCores; on 1-TC v5e/v6e
    the extra grid iteration costs only ~0.35 us (noise).  Tiles are multiples
    of 16 so the kernel can split each tile into two 8-aligned halves (two
    independent carries that let MXU and VPU work overlap).
    """
    B16 = _round_up(B, 16)
    if B16 <= 240:
        return B16                          # too small to split productively
    n_tiles = max(2, _cdiv(B16, 256))       # keep per-tile M <= ~256
    return _round_up(_cdiv(B16, n_tiles), 16)


def _sampler_kernel_folded(x1_ref, weff_ref, bs_ref, x0_ref):
    """Full reverse loop with the per-step scalars folded into the weights.

    x1_ref  : VMEM (TB, D)        -- x_1 tile
    weff_ref: VMEM (T, D, D) bf16 -- W_eff[i] = c_x0[i]*W + c_xt[i]*I
    bs_ref  : VMEM (T, D)  f32    -- bs[i]   = c_x0[i]*b
    x0_ref  : VMEM (TB, D)        -- x_0 tile

    Step:  x <- x.bf16 @ W_eff[i] + bs[i]   (one MXU op + one VPU add/cast)
    """
    num_steps = weff_ref.shape[0]
    half = x1_ref.shape[0] // 2

    def step(i, x):
        y = jnp.dot(x.astype(jnp.bfloat16), weff_ref[i],
                    preferred_element_type=jnp.float32)
        return y + bs_ref[pl.ds(i, 1), :]

    # Two independent carries per tile: the VPU add/cast of one half overlaps
    # the MXU matmul of the other half (a single carry serializes MXU and VPU).
    x_a = x1_ref[:half, :].astype(jnp.float32)
    x_b = x1_ref[half:, :].astype(jnp.float32)

    if num_steps <= _UNROLL_T:
        for i in range(num_steps):        # static unroll: LLO sees the chain
            x_a = step(i, x_a)
            x_b = step(i, x_b)
    else:
        def body(i, carry):
            xa, xb = carry
            return step(i, xa), step(i, xb)
        x_a, x_b = lax.fori_loop(0, num_steps, body, (x_a, x_b), unroll=2)

    x0_ref[:half, :] = x_a.astype(x0_ref.dtype)
    x0_ref[half:, :] = x_b.astype(x0_ref.dtype)


def _sampler_kernel_affine(coefs_ref, x1_ref, w_ref, b_ref, x0_ref):
    """Fallback when the (T, D, D) W_eff table does not fit the VMEM budget.

    coefs_ref: SMEM (2, T) f32  -- row 0: c_xt, row 1: c_x0 (long axis last)
    w_ref    : VMEM (D, D) bf16 -- resident denoiser weight
    b_ref    : VMEM (1, D) f32  -- denoiser bias

    Step:  x <- c_xt*x + c_x0*(x.bf16 @ W + b)   (elementwise math in f32)
    """
    num_steps = coefs_ref.shape[1]
    half = x1_ref.shape[0] // 2

    def step(i, x):
        # w_ref referenced directly (not hoisted): the pipeline buffer is
        # already VMEM-resident; no extra live (D, D) value across the loop.
        x0m = jnp.dot(x.astype(jnp.bfloat16), w_ref[...],
                      preferred_element_type=jnp.float32)
        return coefs_ref[0, i] * x + coefs_ref[1, i] * (x0m + b_ref[...])

    x_a = x1_ref[:half, :].astype(jnp.float32)
    x_b = x1_ref[half:, :].astype(jnp.float32)

    if num_steps <= _UNROLL_T:
        for i in range(num_steps):
            x_a = step(i, x_a)
            x_b = step(i, x_b)
    else:
        def body(i, carry):
            xa, xb = carry
            return step(i, xa), step(i, xb)
        x_a, x_b = lax.fori_loop(0, num_steps, body, (x_a, x_b), unroll=2)

    x0_ref[:half, :] = x_a.astype(x0_ref.dtype)
    x0_ref[half:, :] = x_b.astype(x0_ref.dtype)


def _run_pallas(x_in, coefs, w_bf16, b_f32, w_eff, b_scaled, *,
                tile_b, use_folded, single_buffer_consts, vmem_limit, cost):
    B_pad, D = x_in.shape
    grid = (B_pad // tile_b,)

    const_kw = {}
    if single_buffer_consts:
        # Constant-index blocks never change across the grid: a single pipeline
        # buffer halves their VMEM footprint (matters on v7x's 64 MiB VMEM).
        const_kw = dict(pipeline_mode=pl.Buffered(1))

    x_spec = pl.BlockSpec((tile_b, D), lambda i: (i, 0))

    if use_folded:
        T = w_eff.shape[0]
        in_specs = [
            x_spec,                                                    # x_1 tile
            pl.BlockSpec((T, D, D), lambda i: (0, 0, 0), **const_kw),  # W_eff table
            pl.BlockSpec((T, D), lambda i: (0, 0), **const_kw),        # c_x0*b table
        ]
        kernel = _sampler_kernel_folded
        args = (x_in, w_eff, b_scaled)
    else:
        in_specs = [
            pl.BlockSpec(memory_space=pltpu.SMEM),                     # coefs (2, T)
            x_spec,                                                    # x_1 tile
            pl.BlockSpec((D, D), lambda i: (0, 0), **const_kw),        # W (resident)
            pl.BlockSpec((1, D), lambda i: (0, 0), **const_kw),        # b
        ]
        kernel = _sampler_kernel_affine
        args = (coefs, x_in, w_bf16, b_f32)

    return pl.pallas_call(
        kernel,
        out_shape=jax.ShapeDtypeStruct((B_pad, D), x_in.dtype),
        grid=grid,
        in_specs=in_specs,
        out_specs=pl.BlockSpec((tile_b, D), lambda i: (i, 0)),
        compiler_params=pltpu.CompilerParams(
            dimension_semantics=("parallel",),
            vmem_limit_bytes=vmem_limit,
        ),
        cost_estimate=cost,
    )(*args)


def sampler_forward(x_1, w, b, coefs, *, tile_b=None):
    """Simulates the reverse process from t=1 to t=0 with a Pallas TPU kernel.

    x_1  : (B, D) initial noisy vectors
    w, b : linear Gaussian denoiser parameters, x0_hat = x @ w + b
    coefs: (2, T) per-step DDIM coefficients (c_xt, c_x0)
    """
    B, D = x_1.shape
    T = coefs.shape[1]

    if tile_b is None:
        tile_b = _pick_tile_b(B)
    tile_b = _round_up(min(tile_b, _round_up(B, 16)), 16)

    # Pad the batch so no trailing rows are dropped; sliced off at the end.
    B_pad = _round_up(B, tile_b)
    x_in = x_1 if B_pad == B else jnp.pad(x_1, ((0, B_pad - B), (0, 0)))

    coefs = coefs.astype(jnp.float32)
    w_f32 = w.astype(jnp.float32)
    b_row = b.reshape(1, D).astype(jnp.float32)

    # Fold the per-step scalar affine into the matmul:
    #   x_s = c_xt*x + c_x0*(x@W + b) = x @ (c_x0*W + c_xt*I) + c_x0*b
    # so the in-kernel step is a single MXU op + one VPU add (the kernel is
    # VALU-bound at these shapes, not MXU-bound).
    eye = jnp.eye(D, dtype=jnp.float32)
    w_eff = (coefs[1][:, None, None] * w_f32[None] +
             coefs[0][:, None, None] * eye[None]).astype(jnp.bfloat16)   # (T, D, D)
    b_scaled = (coefs[1][:, None] * b_row).astype(jnp.float32)           # (T, D)
    w_bf16 = w_f32.astype(jnp.bfloat16)                                  # fallback path

    out_isz = jnp.dtype(x_1.dtype).itemsize
    x_tiles_bytes = 2 * tile_b * D * 4 + 2 * tile_b * D * out_isz  # dbl-buffered in/out
    carry_slack = 4 * tile_b * D * 4                               # carries + bf16 casts

    def _need(folded, wbuf):
        tab = (T * D * D * 2 + T * D * 4) if folded else (D * D * 2 + D * 4)
        return x_tiles_bytes + wbuf * tab + carry_slack

    usable = int(_vmem_capacity_bytes() * _VMEM_FRACTION)
    use_folded = _need(True, 1) <= usable
    # TODO(synk): for D so large that even a resident (D, D) weight cannot fit
    # VMEM, a K-tiled matmul with W kept in HBM (pl.ANY + emit_pipeline) would
    # be needed; not implemented here.

    cost = pl.CostEstimate(
        flops=2 * T * B_pad * D * D,
        transcendentals=0,
        bytes_accessed=int(2 * B_pad * D * out_isz
                           + ((T * D * D * 2 + T * D * 4) if use_folded
                              else (D * D * 2 + D * 4))
                           + 2 * T * 4),
    )

    def attempt(single_buffer):
        wbuf = 1 if single_buffer else 2
        limit = int(min(max(_need(use_folded, wbuf) + (4 << 20), 16 << 20), usable))
        return _run_pallas(
            x_in, coefs, w_bf16, b_row, w_eff, b_scaled,
            tile_b=tile_b, use_folded=use_folded,
            single_buffer_consts=single_buffer,
            vmem_limit=limit, cost=cost)

    try:
        out = attempt(True)
    except Exception:
        # pipeline_mode=pl.Buffered(1) not supported on this jax/libtpu combo:
        # retry with default double-buffering of the constant blocks.
        out = attempt(False)

    return out if B_pad == B else out[:B]


def make_coefs(steps):
    """(2, T) per-step (c_xt, c_x0) for the linear schedule alpha_t=1-t, sigma_t=t.

    DDIM step: x_s = (sigma_s/sigma_t)*x_t + (alpha_s - (sigma_s/sigma_t)*alpha_t)*x0_hat
    """
    timesteps = jnp.linspace(1.0, 0.0, steps + 1)     # == torch.linspace(1, 0, T+1)
    t, s = timesteps[:-1], timesteps[1:]
    alpha_t, sigma_t = 1.0 - t, t
    alpha_s, sigma_s = 1.0 - s, s
    r = sigma_s / sigma_t                             # sigma_t > 0 for all pairs
    return jnp.stack([r, alpha_s - r * alpha_t], axis=0).astype(jnp.float32)


def reference_forward(x_1, w, b, coefs, matmul_dtype=jnp.float32):
    """Pure-JAX reference of the same reverse loop (unfolded form)."""
    x = x_1.astype(jnp.float32)
    for i in range(coefs.shape[1]):
        x0_hat = jnp.dot(x.astype(matmul_dtype), w.astype(matmul_dtype),
                         preferred_element_type=jnp.float32) + b.reshape(1, -1)
        x = coefs[0, i] * x + coefs[1, i] * x0_hat
    return x


def reference_forward_folded(x_1, w, b, coefs):
    """Reference mirroring the kernel's folded bf16 math exactly."""
    B, D = x_1.shape
    eye = jnp.eye(D, dtype=jnp.float32)
    w_eff = (coefs[1][:, None, None] * w.astype(jnp.float32)[None] +
             coefs[0][:, None, None] * eye[None]).astype(jnp.bfloat16)
    b_scaled = (coefs[1][:, None] * b.reshape(1, D)).astype(jnp.float32)
    x = x_1.astype(jnp.float32)
    for i in range(coefs.shape[1]):
        x = jnp.dot(x.astype(jnp.bfloat16), w_eff[i],
                    preferred_element_type=jnp.float32) + b_scaled[i]
    return x


if __name__ == "__main__":
    key = jax.random.PRNGKey(0)
    k_x, k_w, k_b = jax.random.split(key, 3)

    # Small but MXU-friendly demo sizes: D a multiple of 256, B large enough
    # for two batch tiles of 256 (so the parallel axis can shard on v7x).
    B, D, STEPS = 512, 256, 8

    # Deterministic synthetic "denoiser" parameters (linear Gaussian denoiser).
    w = jax.random.normal(k_w, (D, D), dtype=jnp.float32) * 0.05
    b = jax.random.normal(k_b, (1, D), dtype=jnp.float32) * 0.1

    # Initial noisy vector x_1 (Sampler.init draws N(0, I) under this schedule
    # since alpha_1 = 0, sigma_1 = 1); left to plain JAX outside the kernel.
    x_1 = jax.random.normal(k_x, (B, D), dtype=jnp.float32)

    coefs = make_coefs(STEPS)

    x_0 = sampler_forward(x_1, w, b, coefs)
    x_0 = jax.block_until_ready(x_0)

    # Tight check against a reference performing the same folded bf16 math.
    x_ref_fold = reference_forward_folded(x_1, w, b, coefs)
    assert jnp.allclose(x_0, x_ref_fold, atol=2e-3, rtol=2e-3), \
        "mismatch vs folded bf16 reference"
    # Loose drift bound against the full-f32 reference (bf16 rounding over T steps).
    x_ref_f32 = reference_forward(x_1, w, b, coefs, matmul_dtype=jnp.float32)
    assert jnp.allclose(x_0, x_ref_f32, atol=1e-1, rtol=1e-1), \
        "excessive drift vs f32 reference"

    # TODO(synk): Sampler.step / denoiser are abstract in the source; a DDIM step
    # with a linear Gaussian denoiser is the concrete instantiation here, and
    # Sampler.init's Gaussian draw is left to plain JAX outside the kernel.
    print("KERNEL_OK")
</pallas_src>

<mosaic_0001>
module attributes {stable_mosaic.version = 11 : i64} {
  func.func @_sampler_kernel_folded(%arg0: i32, %arg1: memref<256x256xf32, #tpu.memory_space<vmem>>, %arg2: memref<8x256x256xbf16, #tpu.memory_space<vmem>>, %arg3: memref<8x256xf32, #tpu.memory_space<vmem>>, %arg4: memref<256x256xf32, #tpu.memory_space<vmem>>) attributes {dimension_semantics = [#tpu.dimension_semantics<parallel>], iteration_bounds = array<i64: 2>, scalar_prefetch = 0 : i64, scratch_operands = 0 : i64, tpu.core_type = #tpu.core_type<tc>, window_params = [{transform_indices = @transform_0, window_bounds = array<i64: 256, 256>}, {pipeline_mode = #tpu.pipeline_mode<synchronous>, transform_indices = @transform_1, window_bounds = array<i64: 8, 256, 256>}, {pipeline_mode = #tpu.pipeline_mode<synchronous>, transform_indices = @transform_2, window_bounds = array<i64: 8, 256>}, {transform_indices = @transform_3, window_bounds = array<i64: 256, 256>}]} {
    %c0 = arith.constant 0 : index
    %c0_0 = arith.constant 0 : index
    %0 = vector.load %arg1[%c0, %c0_0] : memref<256x256xf32, #tpu.memory_space<vmem>>, vector<128x256xf32>
    %c128 = arith.constant 128 : index
    %c0_1 = arith.constant 0 : index
    %1 = vector.load %arg1[%c128, %c0_1] : memref<256x256xf32, #tpu.memory_space<vmem>>, vector<128x256xf32>
    %2 = arith.truncf %0 : vector<128x256xf32> to vector<128x256xbf16>
    %c0_2 = arith.constant 0 : index
    %c0_3 = arith.constant 0 : index
    %c0_4 = arith.constant 0 : index
    %3 = vector.load %arg2[%c0_2, %c0_3, %c0_4] : memref<8x256x256xbf16, #tpu.memory_space<vmem>>, vector<1x256x256xbf16>
    %4 = vector.shape_cast %3 : vector<1x256x256xbf16> to vector<256x256xbf16>
    %cst = arith.constant dense<0.000000e+00> : vector<128x256xf32>
    %5 = tpu.matmul %2, %4, %cst {dimension_numbers = #tpu.dot_dimension_numbers<[1], [0], [0], [1], [0, 0, 1, 1], [], []>} : vector<128x256xbf16>, vector<256x256xbf16>, vector<128x256xf32> -> vector<128x256xf32>
    %c0_5 = arith.constant 0 : index
    %c0_6 = arith.constant 0 : index
    %6 = vector.load %arg3[%c0_5, %c0_6] : memref<8x256xf32, #tpu.memory_space<vmem>>, vector<1x256xf32>
    %7 = vector.broadcast %6 : vector<1x256xf32> to vector<128x256xf32>
    %8 = arith.addf %5, %7 : vector<128x256xf32>
    %9 = arith.truncf %1 : vector<128x256xf32> to vector<128x256xbf16>
    %c0_7 = arith.constant 0 : index
    %c0_8 = arith.constant 0 : index
    %c0_9 = arith.constant 0 : index
    %10 = vector.load %arg2[%c0_7, %c0_8, %c0_9] : memref<8x256x256xbf16, #tpu.memory_space<vmem>>, vector<1x256x256xbf16>
    %11 = vector.shape_cast %10 : vector<1x256x256xbf16> to vector<256x256xbf16>
    %cst_10 = arith.constant dense<0.000000e+00> : vector<128x256xf32>
    %12 = tpu.matmul %9, %11, %cst_10 {dimension_numbers = #tpu.dot_dimension_numbers<[1], [0], [0], [1], [0, 0, 1, 1], [], []>} : vector<128x256xbf16>, vector<256x256xbf16>, vector<128x256xf32> -> vector<128x256xf32>
    %c0_11 = arith.constant 0 : index
    %c0_12 = arith.constant 0 : index
    %13 = vector.load %arg3[%c0_11, %c0_12] : memref<8x256xf32, #tpu.memory_space<vmem>>, vector<1x256xf32>
    %14 = vector.broadcast %13 : vector<1x256xf32> to vector<128x256xf32>
    %15 = arith.addf %12, %14 : vector<128x256xf32>
    %16 = arith.truncf %8 : vector<128x256xf32> to vector<128x256xbf16>
    %c1 = arith.constant 1 : index
    %c0_13 = arith.constant 0 : index
    %c0_14 = arith.constant 0 : index
    %17 = vector.load %arg2[%c1, %c0_13, %c0_14] : memref<8x256x256xbf16, #tpu.memory_space<vmem>>, vector<1x256x256xbf16>
    %18 = vector.shape_cast %17 : vector<1x256x256xbf16> to vector<256x256xbf16>
    %cst_15 = arith.constant dense<0.000000e+00> : vector<128x256xf32>
    %19 = tpu.matmul %16, %18, %cst_15 {dimension_numbers = #tpu.dot_dimension_numbers<[1], [0], [0], [1], [0, 0, 1, 1], [], []>} : vector<128x256xbf16>, vector<256x256xbf16>, vector<128x256xf32> -> vector<128x256xf32>
    %c1_16 = arith.constant 1 : index
    %c0_17 = arith.constant 0 : index
    %20 = vector.load %arg3[%c1_16, %c0_17] : memref<8x256xf32, #tpu.memory_space<vmem>>, vector<1x256xf32>
    %21 = vector.broadcast %20 : vector<1x256xf32> to vector<128x256xf32>
    %22 = arith.addf %19, %21 : vector<128x256xf32>
    %23 = arith.truncf %15 : vector<128x256xf32> to vector<128x256xbf16>
    %c1_18 = arith.constant 1 : index
    %c0_19 = arith.constant 0 : index
    %c0_20 = arith.constant 0 : index
    %24 = vector.load %arg2[%c1_18, %c0_19, %c0_20] : memref<8x256x256xbf16, #tpu.memory_space<vmem>>, vector<1x256x256xbf16>
    %25 = vector.shape_cast %24 : vector<1x256x256xbf16> to vector<256x256xbf16>
    %cst_21 = arith.constant dense<0.000000e+00> : vector<128x256xf32>
    %26 = tpu.matmul %23, %25, %cst_21 {dimension_numbers = #tpu.dot_dimension_numbers<[1], [0], [0], [1], [0, 0, 1, 1], [], []>} : vector<128x256xbf16>, vector<256x256xbf16>, vector<128x256xf32> -> vector<128x256xf32>
    %c1_22 = arith.constant 1 : index
    %c0_23 = arith.constant 0 : index
    %27 = vector.load %arg3[%c1_22, %c0_23] : memref<8x256xf32, #tpu.memory_space<vmem>>, vector<1x256xf32>
    %28 = vector.broadcast %27 : vector<1x256xf32> to vector<128x256xf32>
    %29 = arith.addf %26, %28 : vector<128x256xf32>
    %30 = arith.truncf %22 : vector<128x256xf32> to vector<128x256xbf16>
    %c2 = arith.constant 2 : index
    %c0_24 = arith.constant 0 : index
    %c0_25 = arith.constant 0 : index
    %31 = vector.load %arg2[%c2, %c0_24, %c0_25] : memref<8x256x256xbf16, #tpu.memory_space<vmem>>, vector<1x256x256xbf16>
    %32 = vector.shape_cast %31 : vector<1x256x256xbf16> to vector<256x256xbf16>
    %cst_26 = arith.constant dense<0.000000e+00> : vector<128x256xf32>
    %33 = tpu.matmul %30, %32, %cst_26 {dimension_numbers = #tpu.dot_dimension_numbers<[1], [0], [0], [1], [0, 0, 1, 1], [], []>} : vector<128x256xbf16>, vector<256x256xbf16>, vector<128x256xf32> -> vector<128x256xf32>
    %c2_27 = arith.constant 2 : index
    %c0_28 = arith.constant 0 : index
    %34 = vector.load %arg3[%c2_27, %c0_28] : memref<8x256xf32, #tpu.memory_space<vmem>>, vector<1x256xf32>
    %35 = vector.broadcast %34 : vector<1x256xf32> to vector<128x256xf32>
    %36 = arith.addf %33, %35 : vector<128x256xf32>
    %37 = arith.truncf %29 : vector<128x256xf32> to vector<128x256xbf16>
    %c2_29 = arith.constant 2 : index
    %c0_30 = arith.constant 0 : index
    %c0_31 = arith.constant 0 : index
    %38 = vector.load %arg2[%c2_29, %c0_30, %c0_31] : memref<8x256x256xbf16, #tpu.memory_space<vmem>>, vector<1x256x256xbf16>
    %39 = vector.shape_cast %38 : vector<1x256x256xbf16> to vector<256x256xbf16>
    %cst_32 = arith.constant dense<0.000000e+00> : vector<128x256xf32>
    %40 = tpu.matmul %37, %39, %cst_32 {dimension_numbers = #tpu.dot_dimension_numbers<[1], [0], [0], [1], [0, 0, 1, 1], [], []>} : vector<128x256xbf16>, vector<256x256xbf16>, vector<128x256xf32> -> vector<128x256xf32>
    %c2_33 = arith.constant 2 : index
    %c0_34 = arith.constant 0 : index
    %41 = vector.load %arg3[%c2_33, %c0_34] : memref<8x256xf32, #tpu.memory_space<vmem>>, vector<1x256xf32>
    %42 = vector.broadcast %41 : vector<1x256xf32> to vector<128x256xf32>
    %43 = arith.addf %40, %42 : vector<128x256xf32>
    %44 = arith.truncf %36 : vector<128x256xf32> to vector<128x256xbf16>
    %c3 = arith.constant 3 : index
    %c0_35 = arith.constant 0 : index
    %c0_36 = arith.constant 0 : index
    %45 = vector.load %arg2[%c3, %c0_35, %c0_36] : memref<8x256x256xbf16, #tpu.memory_space<vmem>>, vector<1x256x256xbf16>
    %46 = vector.shape_cast %45 : vector<1x256x256xbf16> to vector<256x256xbf16>
    %cst_37 = arith.constant dense<0.000000e+00> : vector<128x256xf32>
    %47 = tpu.matmul %44, %46, %cst_37 {dimension_numbers = #tpu.dot_dimension_numbers<[1], [0], [0], [1], [0, 0, 1, 1], [], []>} : vector<128x256xbf16>, vector<256x256xbf16>, vector<128x256xf32> -> vector<128x256xf32>
    %c3_38 = arith.constant 3 : index
    %c0_39 = arith.constant 0 : index
    %48 = vector.load %arg3[%c3_38, %c0_39] : memref<8x256xf32, #tpu.memory_space<vmem>>, vector<1x256xf32>
    %49 = vector.broadcast %48 : vector<1x256xf32> to vector<128x256xf32>
    %50 = arith.addf %47, %49 : vector<128x256xf32>
    %51 = arith.truncf %43 : vector<128x256xf32> to vector<128x256xbf16>
    %c3_40 = arith.constant 3 : index
    %c0_41 = arith.constant 0 : index
    %c0_42 = arith.constant 0 : index
    %52 = vector.load %arg2[%c3_40, %c0_41, %c0_42] : memref<8x256x256xbf16, #tpu.memory_space<vmem>>, vector<1x256x256xbf16>
    %53 = vector.shape_cast %52 : vector<1x256x256xbf16> to vector<256x256xbf16>
    %cst_43 = arith.constant dense<0.000000e+00> : vector<128x256xf32>
    %54 = tpu.matmul %51, %53, %cst_43 {dimension_numbers = #tpu.dot_dimension_numbers<[1], [0], [0], [1], [0, 0, 1, 1], [], []>} : vector<128x256xbf16>, vector<256x256xbf16>, vector<128x256xf32> -> vector<128x256xf32>
    %c3_44 = arith.constant 3 : index
    %c0_45 = arith.constant 0 : index
    %55 = vector.load %arg3[%c3_44, %c0_45] : memref<8x256xf32, #tpu.memory_space<vmem>>, vector<1x256xf32>
    %56 = vector.broadcast %55 : vector<1x256xf32> to vector<128x256xf32>
    %57 = arith.addf %54, %56 : vector<128x256xf32>
    %58 = arith.truncf %50 : vector<128x256xf32> to vector<128x256xbf16>
    %c4 = arith.constant 4 : index
    %c0_46 = arith.constant 0 : index
    %c0_47 = arith.constant 0 : index
    %59 = vector.load %arg2[%c4, %c0_46, %c0_47] : memref<8x256x256xbf16, #tpu.memory_space<vmem>>, vector<1x256x256xbf16>
    %60 = vector.shape_cast %59 : vector<1x256x256xbf16> to vector<256x256xbf16>
    %cst_48 = arith.constant dense<0.000000e+00> : vector<128x256xf32>
    %61 = tpu.matmul %58, %60, %cst_48 {dimension_numbers = #tpu.dot_dimension_numbers<[1], [0], [0], [1], [0, 0, 1, 1], [], []>} : vector<128x256xbf16>, vector<256x256xbf16>, vector<128x256xf32> -> vector<128x256xf32>
    %c4_49 = arith.constant 4 : index
    %c0_50 = arith.constant 0 : index
    %62 = vector.load %arg3[%c4_49, %c0_50] : memref<8x256xf32, #tpu.memory_space<vmem>>, vector<1x256xf32>
    %63 = vector.broadcast %62 : vector<1x256xf32> to vector<128x256xf32>
    %64 = arith.addf %61, %63 : vector<128x256xf32>
    %65 = arith.truncf %57 : vector<128x256xf32> to vector<128x256xbf16>
    %c4_51 = arith.constant 4 : index
    %c0_52 = arith.constant 0 : index
    %c0_53 = arith.constant 0 : index
    %66 = vector.load %arg2[%c4_51, %c0_52, %c0_53] : memref<8x256x256xbf16, #tpu.memory_space<vmem>>, vector<1x256x256xbf16>
    %67 = vector.shape_cast %66 : vector<1x256x256xbf16> to vector<256x256xbf16>
    %cst_54 = arith.constant dense<0.000000e+00> : vector<128x256xf32>
    %68 = tpu.matmul %65, %67, %cst_54 {dimension_numbers = #tpu.dot_dimension_numbers<[1], [0], [0], [1], [0, 0, 1, 1], [], []>} : vector<128x256xbf16>, vector<256x256xbf16>, vector<128x256xf32> -> vector<128x256xf32>
    %c4_55 = arith.constant 4 : index
    %c0_56 = arith.constant 0 : index
    %69 = vector.load %arg3[%c4_55, %c0_56] : memref<8x256xf32, #tpu.memory_space<vmem>>, vector<1x256xf32>
    %70 = vector.broadcast %69 : vector<1x256xf32> to vector<128x256xf32>
    %71 = arith.addf %68, %70 : vector<128x256xf32>
    %72 = arith.truncf %64 : vector<128x256xf32> to vector<128x256xbf16>
    %c5 = arith.constant 5 : index
    %c0_57 = arith.constant 0 : index
    %c0_58 = arith.constant 0 : index
    %73 = vector.load %arg2[%c5, %c0_57, %c0_58] : memref<8x256x256xbf16, #tpu.memory_space<vmem>>, vector<1x256x256xbf16>
    %74 = vector.shape_cast %73 : vector<1x256x256xbf16> to vector<256x256xbf16>
    %cst_59 = arith.constant dense<0.000000e+00> : vector<128x256xf32>
    %75 = tpu.matmul %72, %74, %cst_59 {dimension_numbers = #tpu.dot_dimension_numbers<[1], [0], [0], [1], [0, 0, 1, 1], [], []>} : vector<128x256xbf16>, vector<256x256xbf16>, vector<128x256xf32> -> vector<128x256xf32>
    %c5_60 = arith.constant 5 : index
    %c0_61 = arith.constant 0 : index
    %76 = vector.load %arg3[%c5_60, %c0_61] : memref<8x256xf32, #tpu.memory_space<vmem>>, vector<1x256xf32>
    %77 = vector.broadcast %76 : vector<1x256xf32> to vector<128x256xf32>
    %78 = arith.addf %75, %77 : vector<128x256xf32>
    %79 = arith.truncf %71 : vector<128x256xf32> to vector<128x256xbf16>
    %c5_62 = arith.constant 5 : index
    %c0_63 = arith.constant 0 : index
    %c0_64 = arith.constant 0 : index
    %80 = vector.load %arg2[%c5_62, %c0_63, %c0_64] : memref<8x256x256xbf16, #tpu.memory_space<vmem>>, vector<1x256x256xbf16>
    %81 = vector.shape_cast %80 : vector<1x256x256xbf16> to vector<256x256xbf16>
    %cst_65 = arith.constant dense<0.000000e+00> : vector<128x256xf32>
    %82 = tpu.matmul %79, %81, %cst_65 {dimension_numbers = #tpu.dot_dimension_numbers<[1], [0], [0], [1], [0, 0, 1, 1], [], []>} : vector<128x256xbf16>, vector<256x256xbf16>, vector<128x256xf32> -> vector<128x256xf32>
    %c5_66 = arith.constant 5 : index
    %c0_67 = arith.constant 0 : index
    %83 = vector.load %arg3[%c5_66, %c0_67] : memref<8x256xf32, #tpu.memory_space<vmem>>, vector<1x256xf32>
    %84 = vector.broadcast %83 : vector<1x256xf32> to vector<128x256xf32>
    %85 = arith.addf %82, %84 : vector<128x256xf32>
    %86 = arith.truncf %78 : vector<128x256xf32> to vector<128x256xbf16>
    %c6 = arith.constant 6 : index
    %c0_68 = arith.constant 0 : index
    %c0_69 = arith.constant 0 : index
    %87 = vector.load %arg2[%c6, %c0_68, %c0_69] : memref<8x256x256xbf16, #tpu.memory_space<vmem>>, vector<1x256x256xbf16>
    %88 = vector.shape_cast %87 : vector<1x256x256xbf16> to vector<256x256xbf16>
    %cst_70 = arith.constant dense<0.000000e+00> : vector<128x256xf32>
    %89 = tpu.matmul %86, %88, %cst_70 {dimension_numbers = #tpu.dot_dimension_numbers<[1], [0], [0], [1], [0, 0, 1, 1], [], []>} : vector<128x256xbf16>, vector<256x256xbf16>, vector<128x256xf32> -> vector<128x256xf32>
    %c6_71 = arith.constant 6 : index
    %c0_72 = arith.constant 0 : index
    %90 = vector.load %arg3[%c6_71, %c0_72] : memref<8x256xf32, #tpu.memory_space<vmem>>, vector<1x256xf32>
    %91 = vector.broadcast %90 : vector<1x256xf32> to vector<128x256xf32>
    %92 = arith.addf %89, %91 : vector<128x256xf32>
    %93 = arith.truncf %85 : vector<128x256xf32> to vector<128x256xbf16>
    %c6_73 = arith.constant 6 : index
    %c0_74 = arith.constant 0 : index
    %c0_75 = arith.constant 0 : index
    %94 = vector.load %arg2[%c6_73, %c0_74, %c0_75] : memref<8x256x256xbf16, #tpu.memory_space<vmem>>, vector<1x256x256xbf16>
    %95 = vector.shape_cast %94 : vector<1x256x256xbf16> to vector<256x256xbf16>
    %cst_76 = arith.constant dense<0.000000e+00> : vector<128x256xf32>
    %96 = tpu.matmul %93, %95, %cst_76 {dimension_numbers = #tpu.dot_dimension_numbers<[1], [0], [0], [1], [0, 0, 1, 1], [], []>} : vector<128x256xbf16>, vector<256x256xbf16>, vector<128x256xf32> -> vector<128x256xf32>
    %c6_77 = arith.constant 6 : index
    %c0_78 = arith.constant 0 : index
    %97 = vector.load %arg3[%c6_77, %c0_78] : memref<8x256xf32, #tpu.memory_space<vmem>>, vector<1x256xf32>
    %98 = vector.broadcast %97 : vector<1x256xf32> to vector<128x256xf32>
    %99 = arith.addf %96, %98 : vector<128x256xf32>
    %100 = arith.truncf %92 : vector<128x256xf32> to vector<128x256xbf16>
    %c7 = arith.constant 7 : index
    %c0_79 = arith.constant 0 : index
    %c0_80 = arith.constant 0 : index
    %101 = vector.load %arg2[%c7, %c0_79, %c0_80] : memref<8x256x256xbf16, #tpu.memory_space<vmem>>, vector<1x256x256xbf16>
    %102 = vector.shape_cast %101 : vector<1x256x256xbf16> to vector<256x256xbf16>
    %cst_81 = arith.constant dense<0.000000e+00> : vector<128x256xf32>
    %103 = tpu.matmul %100, %102, %cst_81 {dimension_numbers = #tpu.dot_dimension_numbers<[1], [0], [0], [1], [0, 0, 1, 1], [], []>} : vector<128x256xbf16>, vector<256x256xbf16>, vector<128x256xf32> -> vector<128x256xf32>
    %c7_82 = arith.constant 7 : index
    %c0_83 = arith.constant 0 : index
    %104 = vector.load %arg3[%c7_82, %c0_83] : memref<8x256xf32, #tpu.memory_space<vmem>>, vector<1x256xf32>
    %105 = vector.broadcast %104 : vector<1x256xf32> to vector<128x256xf32>
    %106 = arith.addf %103, %105 : vector<128x256xf32>
    %107 = arith.truncf %99 : vector<128x256xf32> to vector<128x256xbf16>
    %c7_84 = arith.constant 7 : index
    %c0_85 = arith.constant 0 : index
    %c0_86 = arith.constant 0 : index
    %108 = vector.load %arg2[%c7_84, %c0_85, %c0_86] : memref<8x256x256xbf16, #tpu.memory_space<vmem>>, vector<1x256x256xbf16>
    %109 = vector.shape_cast %108 : vector<1x256x256xbf16> to vector<256x256xbf16>
    %cst_87 = arith.constant dense<0.000000e+00> : vector<128x256xf32>
    %110 = tpu.matmul %107, %109, %cst_87 {dimension_numbers = #tpu.dot_dimension_numbers<[1], [0], [0], [1], [0, 0, 1, 1], [], []>} : vector<128x256xbf16>, vector<256x256xbf16>, vector<128x256xf32> -> vector<128x256xf32>
    %c7_88 = arith.constant 7 : index
    %c0_89 = arith.constant 0 : index
    %111 = vector.load %arg3[%c7_88, %c0_89] : memref<8x256xf32, #tpu.memory_space<vmem>>, vector<1x256xf32>
    %112 = vector.broadcast %111 : vector<1x256xf32> to vector<128x256xf32>
    %113 = arith.addf %110, %112 : vector<128x256xf32>
    %c0_90 = arith.constant 0 : index
    %c0_91 = arith.constant 0 : index
    %114 = vector.load %arg4[%c0_90, %c0_91] : memref<256x256xf32, #tpu.memory_space<vmem>>, vector<128x256xf32>
    tpu.vector_store %arg4[%c0_90, %c0_91], %106 {strides = array<i32>} : memref<256x256xf32, #tpu.memory_space<vmem>>, vector<128x256xf32>,
    %c128_92 = arith.constant 128 : index
    %c0_93 = arith.constant 0 : index
    %115 = vector.load %arg4[%c128_92, %c0_93] : memref<256x256xf32, #tpu.memory_space<vmem>>, vector<128x256xf32>
    tpu.vector_store %arg4[%c128_92, %c0_93], %113 {strides = array<i32>} : memref<256x256xf32, #tpu.memory_space<vmem>>, vector<128x256xf32>,
    return
  }
  func.func @transform_0(%arg0: i32) -> (i32, i32) {
    %c0_i32 = arith.constant 0 : i32
    %c0_i32_0 = arith.constant 0 : i32
    return %arg0, %c0_i32 : i32, i32
  }
  func.func @transform_1(%arg0: i32) -> (i32, i32, i32) {
    %c0_i32 = arith.constant 0 : i32
    %c0_i32_0 = arith.constant 0 : i32
    %c0_i32_1 = arith.constant 0 : i32
    %c0_i32_2 = arith.constant 0 : i32
    return %c0_i32, %c0_i32_0, %c0_i32_1 : i32, i32, i32
  }
  func.func @transform_2(%arg0: i32) -> (i32, i32) {
    %c0_i32 = arith.constant 0 : i32
    %c0_i32_0 = arith.constant 0 : i32
    %c0_i32_1 = arith.constant 0 : i32
    return %c0_i32, %c0_i32_0 : i32, i32
  }
  func.func @transform_3(%arg0: i32) -> (i32, i32) {
    %c0_i32 = arith.constant 0 : i32
    %c0_i32_0 = arith.constant 0 : i32
    return %arg0, %c0_i32 : i32, i32
  }
}

module attributes {stable_mosaic.version = 11 : i64} {
  func.func @_sampler_kernel_folded(%arg0: i32, %arg1: memref<256x256xf32, #tpu.memory_space<vmem>>, %arg2: memref<8x256x256xbf16, #tpu.memory_space<vmem>>, %arg3: memref<8x256xf32, #tpu.memory_space<vmem>>, %arg4: memref<256x256xf32, #tpu.memory_space<vmem>>) attributes {dimension_semantics = [#tpu.dimension_semantics<parallel>], iteration_bounds = array<i64: 2>, scalar_prefetch = 0 : i64, scratch_operands = 0 : i64, tpu.core_type = #tpu.core_type<tc>, window_params = [{transform_indices = @transform_0, window_bounds = array<i64: 256, 256>}, {pipeline_mode = #tpu.pipeline_mode<synchronous>, transform_indices = @transform_1, window_bounds = array<i64: 8, 256, 256>}, {pipeline_mode = #tpu.pipeline_mode<synchronous>, transform_indices = @transform_2, window_bounds = array<i64: 8, 256>}, {transform_indices = @transform_3, window_bounds = array<i64: 256, 256>}]} {
    %c0 = arith.constant 0 : index
    %c0_0 = arith.constant 0 : index
    %0 = vector.load %arg1[%c0, %c0_0] : memref<256x256xf32, #tpu.memory_space<vmem>>, vector<128x256xf32>
    %c128 = arith.constant 128 : index
    %c0_1 = arith.constant 0 : index
    %1 = vector.load %arg1[%c128, %c0_1] : memref<256x256xf32, #tpu.memory_space<vmem>>, vector<128x256xf32>
    %2 = arith.truncf %0 : vector<128x256xf32> to vector<128x256xbf16>
    %c0_2 = arith.constant 0 : index
    %c0_3 = arith.constant 0 : index
    %c0_4 = arith.constant 0 : index
    %3 = vector.load %arg2[%c0_2, %c0_3, %c0_4] : memref<8x256x256xbf16, #tpu.memory_space<vmem>>, vector<1x256x256xbf16>
    %4 = vector.shape_cast %3 : vector<1x256x256xbf16> to vector<256x256xbf16>
    %cst = arith.constant dense<0.000000e+00> : vector<128x256xf32>
    %5 = tpu.matmul %2, %4, %cst {dimension_numbers = #tpu.dot_dimension_numbers<[1], [0], [0], [1], [0, 0, 1, 1], [], []>} : vector<128x256xbf16>, vector<256x256xbf16>, vector<128x256xf32> -> vector<128x256xf32>
    %c0_5 = arith.constant 0 : index
    %c0_6 = arith.constant 0 : index
    %6 = vector.load %arg3[%c0_5, %c0_6] : memref<8x256xf32, #tpu.memory_space<vmem>>, vector<1x256xf32>
    %7 = vector.broadcast %6 : vector<1x256xf32> to vector<128x256xf32>
    %8 = arith.addf %5, %7 : vector<128x256xf32>
    %9 = arith.truncf %1 : vector<128x256xf32> to vector<128x256xbf16>
    %c0_7 = arith.constant 0 : index
    %c0_8 = arith.constant 0 : index
    %c0_9 = arith.constant 0 : index
    %10 = vector.load %arg2[%c0_7, %c0_8, %c0_9] : memref<8x256x256xbf16, #tpu.memory_space<vmem>>, vector<1x256x256xbf16>
    %11 = vector.shape_cast %10 : vector<1x256x256xbf16> to vector<256x256xbf16>
    %cst_10 = arith.constant dense<0.000000e+00> : vector<128x256xf32>
    %12 = tpu.matmul %9, %11, %cst_10 {dimension_numbers = #tpu.dot_dimension_numbers<[1], [0], [0], [1], [0, 0, 1, 1], [], []>} : vector<128x256xbf16>, vector<256x256xbf16>, vector<128x256xf32> -> vector<128x256xf32>
    %c0_11 = arith.constant 0 : index
    %c0_12 = arith.constant 0 : index
    %13 = vector.load %arg3[%c0_11, %c0_12] : memref<8x256xf32, #tpu.memory_space<vmem>>, vector<1x256xf32>
    %14 = vector.broadcast %13 : vector<1x256xf32> to vector<128x256xf32>
    %15 = arith.addf %12, %14 : vector<128x256xf32>
    %16 = arith.truncf %8 : vector<128x256xf32> to vector<128x256xbf16>
    %c1 = arith.constant 1 : index
    %c0_13 = arith.constant 0 : index
    %c0_14 = arith.constant 0 : index
    %17 = vector.load %arg2[%c1, %c0_13, %c0_14] : memref<8x256x256xbf16, #tpu.memory_space<vmem>>, vector<1x256x256xbf16>
    %18 = vector.shape_cast %17 : vector<1x256x256xbf16> to vector<256x256xbf16>
    %cst_15 = arith.constant dense<0.000000e+00> : vector<128x256xf32>
    %19 = tpu.matmul %16, %18, %cst_15 {dimension_numbers = #tpu.dot_dimension_numbers<[1], [0], [0], [1], [0, 0, 1, 1], [], []>} : vector<128x256xbf16>, vector<256x256xbf16>, vector<128x256xf32> -> vector<128x256xf32>
    %c1_16 = arith.constant 1 : index
    %c0_17 = arith.constant 0 : index
    %20 = vector.load %arg3[%c1_16, %c0_17] : memref<8x256xf32, #tpu.memory_space<vmem>>, vector<1x256xf32>
    %21 = vector.broadcast %20 : vector<1x256xf32> to vector<128x256xf32>
    %22 = arith.addf %19, %21 : vector<128x256xf32>
    %23 = arith.truncf %15 : vector<128x256xf32> to vector<128x256xbf16>
    %c1_18 = arith.constant 1 : index
    %c0_19 = arith.constant 0 : index
    %c0_20 = arith.constant 0 : index
    %24 = vector.load %arg2[%c1_18, %c0_19, %c0_20] : memref<8x256x256xbf16, #tpu.memory_space<vmem>>, vector<1x256x256xbf16>
    %25 = vector.shape_cast %24 : vector<1x256x256xbf16> to vector<256x256xbf16>
    %cst_21 = arith.constant dense<0.000000e+00> : vector<128x256xf32>
    %26 = tpu.matmul %23, %25, %cst_21 {dimension_numbers = #tpu.dot_dimension_numbers<[1], [0], [0], [1], [0, 0, 1, 1], [], []>} : vector<128x256xbf16>, vector<256x256xbf16>, vector<128x256xf32> -> vector<128x256xf32>
    %c1_22 = arith.constant 1 : index
    %c0_23 = arith.constant 0 : index
    %27 = vector.load %arg3[%c1_22, %c0_23] : memref<8x256xf32, #tpu.memory_space<vmem>>, vector<1x256xf32>
    %28 = vector.broadcast %27 : vector<1x256xf32> to vector<128x256xf32>
    %29 = arith.addf %26, %28 : vector<128x256xf32>
    %30 = arith.truncf %22 : vector<128x256xf32> to vector<128x256xbf16>
    %c2 = arith.constant 2 : index
    %c0_24 = arith.constant 0 : index
    %c0_25 = arith.constant 0 : index
    %31 = vector.load %arg2[%c2, %c0_24, %c0_25] : memref<8x256x256xbf16, #tpu.memory_space<vmem>>, vector<1x256x256xbf16>
    %32 = vector.shape_cast %31 : vector<1x256x256xbf16> to vector<256x256xbf16>
    %cst_26 = arith.constant dense<0.000000e+00> : vector<128x256xf32>
    %33 = tpu.matmul %30, %32, %cst_26 {dimension_numbers = #tpu.dot_dimension_numbers<[1], [0], [0], [1], [0, 0, 1, 1], [], []>} : vector<128x256xbf16>, vector<256x256xbf16>, vector<128x256xf32> -> vector<128x256xf32>
    %c2_27 = arith.constant 2 : index
    %c0_28 = arith.constant 0 : index
    %34 = vector.load %arg3[%c2_27, %c0_28] : memref<8x256xf32, #tpu.memory_space<vmem>>, vector<1x256xf32>
    %35 = vector.broadcast %34 : vector<1x256xf32> to vector<128x256xf32>
    %36 = arith.addf %33, %35 : vector<128x256xf32>
    %37 = arith.truncf %29 : vector<128x256xf32> to vector<128x256xbf16>
    %c2_29 = arith.constant 2 : index
    %c0_30 = arith.constant 0 : index
    %c0_31 = arith.constant 0 : index
    %38 = vector.load %arg2[%c2_29, %c0_30, %c0_31] : memref<8x256x256xbf16, #tpu.memory_space<vmem>>, vector<1x256x256xbf16>
    %39 = vector.shape_cast %38 : vector<1x256x256xbf16> to vector<256x256xbf16>
    %cst_32 = arith.constant dense<0.000000e+00> : vector<128x256xf32>
    %40 = tpu.matmul %37, %39, %cst_32 {dimension_numbers = #tpu.dot_dimension_numbers<[1], [0], [0], [1], [0, 0, 1, 1], [], []>} : vector<128x256xbf16>, vector<256x256xbf16>, vector<128x256xf32> -> vector<128x256xf32>
    %c2_33 = arith.constant 2 : index
    %c0_34 = arith.constant 0 : index
    %41 = vector.load %arg3[%c2_33, %c0_34] : memref<8x256xf32, #tpu.memory_space<vmem>>, vector<1x256xf32>
    %42 = vector.broadcast %41 : vector<1x256xf32> to vector<128x256xf32>
    %43 = arith.addf %40, %42 : vector<128x256xf32>
    %44 = arith.truncf %36 : vector<128x256xf32> to vector<128x256xbf16>
    %c3 = arith.constant 3 : index
    %c0_35 = arith.constant 0 : index
    %c0_36 = arith.constant 0 : index
    %45 = vector.load %arg2[%c3, %c0_35, %c0_36] : memref<8x256x256xbf16, #tpu.memory_space<vmem>>, vector<1x256x256xbf16>
    %46 = vector.shape_cast %45 : vector<1x256x256xbf16> to vector<256x256xbf16>
    %cst_37 = arith.constant dense<0.000000e+00> : vector<128x256xf32>
    %47 = tpu.matmul %44, %46, %cst_37 {dimension_numbers = #tpu.dot_dimension_numbers<[1], [0], [0], [1], [0, 0, 1, 1], [], []>} : vector<128x256xbf16>, vector<256x256xbf16>, vector<128x256xf32> -> vector<128x256xf32>
    %c3_38 = arith.constant 3 : index
    %c0_39 = arith.constant 0 : index
    %48 = vector.load %arg3[%c3_38, %c0_39] : memref<8x256xf32, #tpu.memory_space<vmem>>, vector<1x256xf32>
    %49 = vector.broadcast %48 : vector<1x256xf32> to vector<128x256xf32>
    %50 = arith.addf %47, %49 : vector<128x256xf32>
    %51 = arith.truncf %43 : vector<128x256xf32> to vector<128x256xbf16>
    %c3_40 = arith.constant 3 : index
    %c0_41 = arith.constant 0 : index
    %c0_42 = arith.constant 0 : index
    %52 = vector.load %arg2[%c3_40, %c0_41, %c0_42] : memref<8x256x256xbf16, #tpu.memory_space<vmem>>, vector<1x256x256xbf16>
    %53 = vector.shape_cast %52 : vector<1x256x256xbf16> to vector<256x256xbf16>
    %cst_43 = arith.constant dense<0.000000e+00> : vector<128x256xf32>
    %54 = tpu.matmul %51, %53, %cst_43 {dimension_numbers = #tpu.dot_dimension_numbers<[1], [0], [0], [1], [0, 0, 1, 1], [], []>} : vector<128x256xbf16>, vector<256x256xbf16>, vector<128x256xf32> -> vector<128x256xf32>
    %c3_44 = arith.constant 3 : index
    %c0_45 = arith.constant 0 : index
    %55 = vector.load %arg3[%c3_44, %c0_45] : memref<8x256xf32, #tpu.memory_space<vmem>>, vector<1x256xf32>
    %56 = vector.broadcast %55 : vector<1x256xf32> to vector<128x256xf32>
    %57 = arith.addf %54, %56 : vector<128x256xf32>
    %58 = arith.truncf %50 : vector<128x256xf32> to vector<128x256xbf16>
    %c4 = arith.constant 4 : index
    %c0_46 = arith.constant 0 : index
    %c0_47 = arith.constant 0 : index
    %59 = vector.load %arg2[%c4, %c0_46, %c0_47] : memref<8x256x256xbf16, #tpu.memory_space<vmem>>, vector<1x256x256xbf16>
    %60 = vector.shape_cast %59 : vector<1x256x256xbf16> to vector<256x256xbf16>
    %cst_48 = arith.constant dense<0.000000e+00> : vector<128x256xf32>
    %61 = tpu.matmul %58, %60, %cst_48 {dimension_numbers = #tpu.dot_dimension_numbers<[1], [0], [0], [1], [0, 0, 1, 1], [], []>} : vector<128x256xbf16>, vector<256x256xbf16>, vector<128x256xf32> -> vector<128x256xf32>
    %c4_49 = arith.constant 4 : index
    %c0_50 = arith.constant 0 : index
    %62 = vector.load %arg3[%c4_49, %c0_50] : memref<8x256xf32, #tpu.memory_space<vmem>>, vector<1x256xf32>
    %63 = vector.broadcast %62 : vector<1x256xf32> to vector<128x256xf32>
    %64 = arith.addf %61, %63 : vector<128x256xf32>
    %65 = arith.truncf %57 : vector<128x256xf32> to vector<128x256xbf16>
    %c4_51 = arith.constant 4 : index
    %c0_52 = arith.constant 0 : index
    %c0_53 = arith.constant 0 : index
    %66 = vector.load %arg2[%c4_51, %c0_52, %c0_53] : memref<8x256x256xbf16, #tpu.memory_space<vmem>>, vector<1x256x256xbf16>
    %67 = vector.shape_cast %66 : vector<1x256x256xbf16> to vector<256x256xbf16>
    %cst_54 = arith.constant dense<0.000000e+00> : vector<128x256xf32>
    %68 = tpu.matmul %65, %67, %cst_54 {dimension_numbers = #tpu.dot_dimension_numbers<[1], [0], [0], [1], [0, 0, 1, 1], [], []>} : vector<128x256xbf16>, vector<256x256xbf16>, vector<128x256xf32> -> vector<128x256xf32>
    %c4_55 = arith.constant 4 : index
    %c0_56 = arith.constant 0 : index
    %69 = vector.load %arg3[%c4_55, %c0_56] : memref<8x256xf32, #tpu.memory_space<vmem>>, vector<1x256xf32>
    %70 = vector.broadcast %69 : vector<1x256xf32> to vector<128x256xf32>
    %71 = arith.addf %68, %70 : vector<128x256xf32>
    %72 = arith.truncf %64 : vector<128x256xf32> to vector<128x256xbf16>
    %c5 = arith.constant 5 : index
    %c0_57 = arith.constant 0 : index
    %c0_58 = arith.constant 0 : index
    %73 = vector.load %arg2[%c5, %c0_57, %c0_58] : memref<8x256x256xbf16, #tpu.memory_space<vmem>>, vector<1x256x256xbf16>
    %74 = vector.shape_cast %73 : vector<1x256x256xbf16> to vector<256x256xbf16>
    %cst_59 = arith.constant dense<0.000000e+00> : vector<128x256xf32>
    %75 = tpu.matmul %72, %74, %cst_59 {dimension_numbers = #tpu.dot_dimension_numbers<[1], [0], [0], [1], [0, 0, 1, 1], [], []>} : vector<128x256xbf16>, vector<256x256xbf16>, vector<128x256xf32> -> vector<128x256xf32>
    %c5_60 = arith.constant 5 : index
    %c0_61 = arith.constant 0 : index
    %76 = vector.load %arg3[%c5_60, %c0_61] : memref<8x256xf32, #tpu.memory_space<vmem>>, vector<1x256xf32>
    %77 = vector.broadcast %76 : vector<1x256xf32> to vector<128x256xf32>
    %78 = arith.addf %75, %77 : vector<128x256xf32>
    %79 = arith.truncf %71 : vector<128x256xf32> to vector<128x256xbf16>
    %c5_62 = arith.constant 5 : index
    %c0_63 = arith.constant 0 : index
    %c0_64 = arith.constant 0 : index
    %80 = vector.load %arg2[%c5_62, %c0_63, %c0_64] : memref<8x256x256xbf16, #tpu.memory_space<vmem>>, vector<1x256x256xbf16>
    %81 = vector.shape_cast %80 : vector<1x256x256xbf16> to vector<256x256xbf16>
    %cst_65 = arith.constant dense<0.000000e+00> : vector<128x256xf32>
    %82 = tpu.matmul %79, %81, %cst_65 {dimension_numbers = #tpu.dot_dimension_numbers<[1], [0], [0], [1], [0, 0, 1, 1], [], []>} : vector<128x256xbf16>, vector<256x256xbf16>, vector<128x256xf32> -> vector<128x256xf32>
    %c5_66 = arith.constant 5 : index
    %c0_67 = arith.constant 0 : index
    %83 = vector.load %arg3[%c5_66, %c0_67] : memref<8x256xf32, #tpu.memory_space<vmem>>, vector<1x256xf32>
    %84 = vector.broadcast %83 : vector<1x256xf32> to vector<128x256xf32>
    %85 = arith.addf %82, %84 : vector<128x256xf32>
    %86 = arith.truncf %78 : vector<128x256xf32> to vector<128x256xbf16>
    %c6 = arith.constant 6 : index
    %c0_68 = arith.constant 0 : index
    %c0_69 = arith.constant 0 : index
    %87 = vector.load %arg2[%c6, %c0_68, %c0_69] : memref<8x256x256xbf16, #tpu.memory_space<vmem>>, vector<1x256x256xbf16>
    %88 = vector.shape_cast %87 : vector<1x256x256xbf16> to vector<256x256xbf16>
    %cst_70 = arith.constant dense<0.000000e+00> : vector<128x256xf32>
    %89 = tpu.matmul %86, %88, %cst_70 {dimension_numbers = #tpu.dot_dimension_numbers<[1], [0], [0], [1], [0, 0, 1, 1], [], []>} : vector<128x256xbf16>, vector<256x256xbf16>, vector<128x256xf32> -> vector<128x256xf32>
    %c6_71 = arith.constant 6 : index
    %c0_72 = arith.constant 0 : index
    %90 = vector.load %arg3[%c6_71, %c0_72] : memref<8x256xf32, #tpu.memory_space<vmem>>, vector<1x256xf32>
    %91 = vector.broadcast %90 : vector<1x256xf32> to vector<128x256xf32>
    %92 = arith.addf %89, %91 : vector<128x256xf32>
    %93 = arith.truncf %85 : vector<128x256xf32> to vector<128x256xbf16>
    %c6_73 = arith.constant 6 : index
    %c0_74 = arith.constant 0 : index
    %c0_75 = arith.constant 0 : index
    %94 = vector.load %arg2[%c6_73, %c0_74, %c0_75] : memref<8x256x256xbf16, #tpu.memory_space<vmem>>, vector<1x256x256xbf16>
    %95 = vector.shape_cast %94 : vector<1x256x256xbf16> to vector<256x256xbf16>
    %cst_76 = arith.constant dense<0.000000e+00> : vector<128x256xf32>
    %96 = tpu.matmul %93, %95, %cst_76 {dimension_numbers = #tpu.dot_dimension_numbers<[1], [0], [0], [1], [0, 0, 1, 1], [], []>} : vector<128x256xbf16>, vector<256x256xbf16>, vector<128x256xf32> -> vector<128x256xf32>
    %c6_77 = arith.constant 6 : index
    %c0_78 = arith.constant 0 : index
    %97 = vector.load %arg3[%c6_77, %c0_78] : memref<8x256xf32, #tpu.memory_space<vmem>>, vector<1x256xf32>
    %98 = vector.broadcast %97 : vector<1x256xf32> to vector<128x256xf32>
    %99 = arith.addf %96, %98 : vector<128x256xf32>
    %100 = arith.truncf %92 : vector<128x256xf32> to vector<128x256xbf16>
    %c7 = arith.constant 7 : index
    %c0_79 = arith.constant 0 : index
    %c0_80 = arith.constant 0 : index
    %101 = vector.load %arg2[%c7, %c0_79, %c0_80] : memref<8x256x256xbf16, #tpu.memory_space<vmem>>, vector<1x256x256xbf16>
    %102 = vector.shape_cast %101 : vector<1x256x256xbf16> to vector<256x256xbf16>
    %cst_81 = arith.constant dense<0.000000e+00> : vector<128x256xf32>
    %103 = tpu.matmul %100, %102, %cst_81 {dimension_numbers = #tpu.dot_dimension_numbers<[1], [0], [0], [1], [0, 0, 1, 1], [], []>} : vector<128x256xbf16>, vector<256x256xbf16>, vector<128x256xf32> -> vector<128x256xf32>
    %c7_82 = arith.constant 7 : index
    %c0_83 = arith.constant 0 : index
    %104 = vector.load %arg3[%c7_82, %c0_83] : memref<8x256xf32, #tpu.memory_space<vmem>>, vector<1x256xf32>
    %105 = vector.broadcast %104 : vector<1x256xf32> to vector<128x256xf32>
    %106 = arith.addf %103, %105 : vector<128x256xf32>
    %107 = arith.truncf %99 : vector<128x256xf32> to vector<128x256xbf16>
    %c7_84 = arith.constant 7 : index
    %c0_85 = arith.constant 0 : index
    %c0_86 = arith.constant 0 : index
    %108 = vector.load %arg2[%c7_84, %c0_85, %c0_86] : memref<8x256x256xbf16, #tpu.memory_space<vmem>>, vector<1x256x256xbf16>
    %109 = vector.shape_cast %108 : vector<1x256x256xbf16> to vector<256x256xbf16>
    %cst_87 = arith.constant dense<0.000000e+00> : vector<128x256xf32>
    %110 = tpu.matmul %107, %109, %cst_87 {dimension_numbers = #tpu.dot_dimension_numbers<[1], [0], [0], [1], [0, 0, 1, 1], [], []>} : vector<128x256xbf16>, vector<256x256xbf16>, vector<128x256xf32> -> vector<128x256xf32>
    %c7_88 = arith.constant 7 : index
    %c0_89 = arith.constant 0 : index
    %111 = vector.load %arg3[%c7_88, %c0_89] : memref<8x256xf32, #tpu.memory_space<vmem>>, vector<1x256xf32>
    %112 = vector.broadcast %111 : vector<1x256xf32> to vector<128x256xf32>
    %113 = arith.addf %110, %112 : vector<128x256xf32>
    %c0_90 = arith.constant 0 : index
    %c0_91 = arith.constant 0 : index
    %114 = vector.load %arg4[%c0_90, %c0_91] : memref<256x256xf32, #tpu.memory_space<vmem>>, vector<128x256xf32>
    tpu.vector_store %arg4[%c0_90, %c0_91], %106 {strides = array<i32>} : memref<256x256xf32, #tpu.memory_space<vmem>>, vector<128x256xf32>,
    %c128_92 = arith.constant 128 : index
    %c0_93 = arith.constant 0 : index
    %115 = vector.load %arg4[%c128_92, %c0_93] : memref<256x256xf32, #tpu.memory_space<vmem>>, vector<128x256xf32>
    tpu.vector_store %arg4[%c128_92, %c0_93], %113 {strides = array<i32>} : memref<256x256xf32, #tpu.memory_space<vmem>>, vector<128x256xf32>,
    return
  }
  func.func @transform_0(%arg0: i32) -> (i32, i32) {
    %c0_i32 = arith.constant 0 : i32
    %c0_i32_0 = arith.constant 0 : i32
    return %arg0, %c0_i32 : i32, i32
  }
  func.func @transform_1(%arg0: i32) -> (i32, i32, i32) {
    %c0_i32 = arith.constant 0 : i32
    %c0_i32_0 = arith.constant 0 : i32
    %c0_i32_1 = arith.constant 0 : i32
    %c0_i32_2 = arith.constant 0 : i32
    return %c0_i32, %c0_i32_0, %c0_i32_1 : i32, i32, i32
  }
  func.func @transform_2(%arg0: i32) -> (i32, i32) {
    %c0_i32 = arith.constant 0 : i32
    %c0_i32_0 = arith.constant 0 : i32
    %c0_i32_1 = arith.constant 0 : i32
    return %c0_i32, %c0_i32_0 : i32, i32
  }
  func.func @transform_3(%arg0: i32) -> (i32, i32) {
    %c0_i32 = arith.constant 0 : i32
    %c0_i32_0 = arith.constant 0 : i32
    return %arg0, %c0_i32 : i32, i32
  }
}

</mosaic_0001>

<bundles_post_ra>
// kernel: tpu_custom_call.1
= control target key start
LH: loop header
LB: loop body
LE: loop exit
PB: predicated region body
PF: predicated region fallthrough
CT: control target
= control target key end

     0   :  { %8 = vsyncpa [#allocation3], 0  ;;  %s6024_s0 = inlined_call_operand.hbm [shape: f32[512,256], index: 0, kind: input, shape index: {}]   ;;  %s6025_s1 = inlined_call_operand.hbm [shape: bf16[8,256,256], index: 1, kind: input, shape index: {}]   ;;  %s6026_s2 = inlined_call_operand.hbm [shape: f32[8,256], index: 2, kind: input, shape index: {}]   ;;  %s6027_s3 = inlined_call_operand.hbm [shape: f32[512,256], index: 3, kind: output, shape index: {}]  }
   0x1   :  { %10 = vsyncpa [#allocation3 + $0x1], 0 }
   0x2   :  { %11 = vsyncpa [#allocation6], 0 }
   0x3   :  { %12 = vsyncpa [#allocation4], 0 }
   0x4   :  { %14 = vsyncpa [#allocation4 + $0x1], 0  ;;  %s5089_s12 = smov 0   ;;  %s5091_s13 = smov 0  }
   0x5   :  { %s5093_s14 = smov 0   ;;  %s5095_s15 = smov 0  }
   0x6 LB: > { %s5110_s16 = sadd.s32 4294967295, %s5057_s15   ;;  %s4164_s17 = sadd.s32 4294967294, %s5057_s15   ;;  %s5057_s15 = sphi %s5095_s15, %s6047_s15   ;;  %s5053_s14 = sphi %s5093_s14, %s6046_s14   ;;  %s5049_s13 = sphi %s5091_s13, %s6045_s13   ;;  %s5045_s12 = sphi %s5089_s12, %s6044_s12  }
   0x7   : > { %p40_p0 = scmp.ne.s32.totalorder %s5049_s13, %s5045_s12  ;;  %p6028_p1 = scmp.eq.s32.totalorder %s5110_s16, 0 }
   0x8   : > { %p112_p3 = scmp.eq.s32.totalorder %s4164_s17, 1  ;;  %p4165_p5 = scmp.ge.s32.totalorder %s5057_s15, 1 }
   0x9   : > { %p5119_p4 = por %p6028_p1, %p40_p0  ;;  %p119_p7 = scmp.lt.s32.totalorder %s5057_s15, 3 }
   0xa   : > { %p5124_p6 = por %p112_p3, %p40_p0  ;;  %s5059_s21 = smov [#allocation5]  }
   0xb   : > { %s6031_s18 = scalar_select %p5119_p4, 1, 0 }
   0xc   : > { %s6032_s19 = scalar_select %p5124_p6, 1, 0 }
   0xd   : > { %p5129_p8 = pnand %p4165_p5, %p119_p7  ;;  %s131_s22 = sshll.u32 %s5059_s21, 4  ;;  %s5133_s22 = int_to_ptr.vmem [resolvable:$true] %s131_s22 }
   0xe   : > { %s5060_s24 = smov [#allocation7]   ;;  %s4901_s28 = scalar_lea.hbm %s6025_s1, 32768 }
   0xf   : > { %p4456_p9 = pneg %p5129_p8  ;;  %s145_s25 = sshll.u32 %s5060_s24, 4  ;;  %s5144_s25 = int_to_ptr.vmem [resolvable:$true] %s145_s25 }
  0x10   : > { %p4902_p12 = scmp.ne.s32.totalorder %s6025_s1, %s4901_s28  ;;  %p4908_p5 = scmp.lt.u32.totalorder %s4901_s28, %s6025_s1 }
  0x11   : > { %p5140_p11 = pnand %p4456_p9, %p6028_p1 }
  0x13   : > { %p4903_p13 = pneg %p5140_p11 }
  0x15   : > { %p4904_p0 = pnand %p4903_p13, %p4902_p12 }
  0x17   : > { %p4905_p3 = pneg %p4904_p0 }
  0x19   : > { %p4910_p7 = pnand %p4908_p5, %p4905_p3 }
  0x1b   : > { %4913 = shalt.err (!%p4910_p7)
}
  0x1c   : > { %s4914_s6 = scalar_lea.vmem %s5133_s22, 32768  ;;  %p4922_p2 = scmp.lt.s32.totalorder %s5133_s22, %s5133_s22 }
  0x1d   : > { %p4915_p9 = scmp.ne.s32.totalorder %s5133_s22, %s4914_s6  ;;  %p4923_p12 = scmp.lt.s32.totalorder %s4914_s6, %s4914_s6 }
  0x1f   : > { %p4917_p10 = pnand %p4915_p9, %p4903_p13  ;;  %p4924_p0 = por %p4923_p12, %p4922_p2 }
  0x21   : > { %p4918_p1 = pneg %p4917_p10 }
  0x23   : > { %p4925_p6 = pnand %p4924_p0, %p4918_p1 }
  0x25   : > { %4928 = shalt.err (!%p4925_p6)
}
  0x26   : > { %s5061_s7 = smov 128   ;;  %s5062_s8 = smov 8  }
  0x27   : > { %4459 = dma.hbm_to_vmem [thread:$0]  (!%p5140_p11), %s6025_s1, 32768, %s5133_s22, [#allocation6], %s5061_s7, %s5061_s7, %s5062_s8  }
  0x28   : > { %s4929_s21 = scalar_lea.hbm %s6026_s2, 256 }
  0x29   : > { %p4930_p2 = scmp.ne.s32.totalorder %s6026_s2, %s4929_s21  ;;  %p4936_p10 = scmp.lt.u32.totalorder %s4929_s21, %s6026_s2 }
  0x2b   : > { %p4932_p1 = pnand %p4930_p2, %p4903_p13 }
  0x2d   : > { %p4933_p6 = pneg %p4932_p1 }
  0x2f   : > { %p4938_p3 = pnand %p4936_p10, %p4933_p6 }
  0x31   : > { %4941 = shalt.err (!%p4938_p3)
}
  0x32   : > { %s4942_s22 = scalar_lea.vmem %s5144_s25, 256  ;;  %p4950_p12 = scmp.lt.s32.totalorder %s5144_s25, %s5144_s25 }
  0x33   : > { %p4943_p5 = scmp.ne.s32.totalorder %s5144_s25, %s4942_s22  ;;  %p4951_p0 = scmp.lt.s32.totalorder %s4942_s22, %s4942_s22 }
  0x35   : > { %p4945_p7 = pnand %p4943_p5, %p4903_p13  ;;  %p4952_p2 = por %p4951_p0, %p4950_p12 }
  0x37   : > { %p4946_p9 = pneg %p4945_p7 }
  0x39   : > { %p4953_p1 = pnand %p4952_p2, %p4946_p9 }
  0x3b   : > { %4956 = shalt.err (!%p4953_p1)
}
  0x3c   : > { %4462 = dma.hbm_to_vmem [thread:$0]  (!%p5140_p11), %s6026_s2, 256, %s5144_s25, [#allocation6]  }
  0x3d   : > { %s5199_s4 = sadd.s32 1, %s5057_s15   ;;  %s27_s23 = sadd.s32 1, %s5053_s14 }
  0x3e   : > { %s24_s5 = ssub.s32 %s5057_s15, %s5199_s4  ;;  %p34_p13 = scmp.ne.s32.totalorder %s5053_s14, %s5049_s13 }
  0x3f   : > { %p25_p6 = scmp.eq.s32.totalorder %s24_s5, 0  ;;  %p35_p10 = scmp.eq.s32.totalorder %s5057_s15, 0 }
  0x40   : > { %p6035_p3 = scmp.eq.s32.totalorder %s5110_s16, 1  ;;  %p4473_p7 = scmp.lt.s32.totalorder %s5057_s15, 2 }
  0x41   : > { %s5215_s7 = scalar_select %p25_p6, %s5053_s14, %s27_s23  }
  0x42   : > { %p5209_p5 = por %p6035_p3, %p34_p13  ;;  %p36_p9 = por %p35_p10, %p34_p13 }
  0x43   : > { %s156_s8 = sand.u32 1, %s5053_s14   ;;  %s4441_s25 = sshll.u32 %s5057_s15, 13 }
  0x44   : > { %s6036_s6 = scalar_select %p5209_p5, 1, 0 }
  0x45   : > { %s4169_s9 = sshll.u32 %s156_s8, 9  ;;  %s5222_s17 = scalar_lea.hbm %s6024_s0, %s4441_s25 }
  0x46   : > { %s160_s21 = scalar_lea.vmem [#allocation2], %s4169_s9  ;;  %p5226_p11 = pnand %p4473_p7, %p36_p9 }
  0x47   : > { %s168_s24 = sshll.u32 %s160_s21, 4  ;;  %s5230_s27 = scalar_lea.sflag [#allocation3], %s156_s8  ;;  %s5224_s24 = int_to_ptr.vmem [resolvable:$true] %s168_s24 }
  0x48   : > { %s4957_s28 = scalar_lea.hbm %s5222_s17, 8192  ;;  %p4959_p0 = pneg %p5226_p11 }
  0x49   : > { %p4958_p12 = scmp.ne.s32.totalorder %s5222_s17, %s4957_s28  ;;  %s4962_s30 = scalar_lea.hbm %s6024_s0, 16384 }
  0x4a   : > { %p4963_p13 = scmp.lt.u32.totalorder %s5222_s17, %s6024_s0  ;;  %p4964_p6 = scmp.lt.u32.totalorder %s4962_s30, %s4957_s28 }
  0x4b   : > { %p4960_p2 = pnand %p4959_p0, %p4958_p12  ;;  %p4966_p3 = scmp.lt.u32.totalorder %s4957_s28, %s5222_s17 }
  0x4c   : > { %p4965_p10 = por %p4964_p6, %p4963_p13 }
  0x4d   : > { %p4961_p1 = pneg %p4960_p2 }
  0x4e   : > { %p4967_p7 = por %p4966_p3, %p4965_p10 }
  0x50   : > { %p4968_p9 = pnand %p4967_p7, %p4961_p1 }
  0x52   : > { %4971 = shalt.err (!%p4968_p9)
}
  0x53   : > { %s4972_s8 = scalar_lea.vmem %s5224_s24, 8192  ;;  %s5063_s9 = smov [#allocation2]  }
  0x54   : > { %p4973_p12 = scmp.ne.s32.totalorder %s5224_s24, %s4972_s8  ;;  %s4977_s25 = sshll.u32 %s5063_s9, 4  ;;  %s4978_s25 = int_to_ptr.vmem [resolvable:$false] %s4977_s25 }
  0x55   : > { %s4979_s10 = scalar_lea.vmem %s4978_s25, 16384  ;;  %p4980_p4 = scmp.lt.s32.totalorder %s5224_s24, %s4978_s25 }
  0x56   : > { %p4975_p2 = pnand %p4973_p12, %p4959_p0  ;;  %p4981_p13 = scmp.lt.s32.totalorder %s4979_s10, %s4972_s8 }
  0x58   : > { %p4976_p5 = pneg %p4975_p2  ;;  %p4982_p6 = por %p4981_p13, %p4980_p4 }
  0x5a   : > { %p4983_p10 = pnand %p4982_p6, %p4976_p5 }
  0x5c   : > { %4986 = shalt.err (!%p4983_p10)
}
  0x5d   : > { %s5064_s11 = smov 256   ;;  %s5065_s21 = smov 16  }
  0x5e   : > { %4466 = dma.hbm_to_vmem [thread:$0]  (!%p5226_p11), %s5222_s17, 8192, %s5224_s24, %s5230_s27, %s5064_s11, %s5064_s11, %s5065_s21  }
  0x5f   : > { %180 = sbr.rel (%p5129_p8) target bundleno = 1999 (0x7cf), region = 32  ;;  %s5261_s28 = sand.u32 (!%p5129_p8), 1, %s5049_s13  }
  0x60   : > { %s4174_s22 = sshll.u32 (!%p5129_p8), %s5261_s28, 9  ;;  %s183_s29 = scalar_lea.sflag (!%p5129_p8), [#allocation3], %s5261_s28 }
  0x61   : > { %s5267_s30 = scalar_lea.vmem (!%p5129_p8), [#allocation2], %s4174_s22  ;;  %p6038_p4 = scmp.ne.s32.totalorder (!%p5129_p8), %s6031_s18, 0 }
  0x66   : > { %5032 = dma.done.wait (%p6038_p4), %s183_s29, 8192  }
  0x67   : > { %5034 = vsyncadd (%p6038_p4), %s183_s29, 4294959104  ;;  %p6039_p5 = scmp.eq.s32.totalorder %s5110_s16, 0 }
  0x69   : > { %5036 = dma.done.wait (%p6039_p5), [#allocation6], 33024   ;;  %p6040_p8 = pmov %p6039_p5 }
  0x6a   : > { %v4517_v0 = vld [vmem:[#allocation5 + $0x4] ss:$8 sps:$4 sm:$0xff]   ;;  %v4519_v1 = vld [vmem:[#allocation5] ss:$8 sps:$4 sm:$0xff]   ;;  %v4520_v2 = vld [vmem:[#allocation5 + $0x14] ss:$8 sps:$4 sm:$0xff]  }
  0x6b   : > { %5038 = vsyncadd (%p6040_p8), [#allocation6], 4294934272  ;;  %503 = vmatprep.subr.bf16.mxu0 %v4517_v0  ;;  %632 = vmatprep.subr.bf16.mxu1 %v4517_v0  ;;  %v4522_v3 = vld [vmem:[#allocation5 + $0x10] ss:$8 sps:$4 sm:$0xff]   ;;  %v4523_v4 = vld [vmem:[#allocation5 + $0x24] ss:$8 sps:$4 sm:$0xff]  }
  0x6c   : > { %504 = vmatpush1.bf16.msra.mxu0 %v4519_v1  ;;  %633 = vmatpush1.bf16.msra.mxu1 %v4519_v1  ;;  %v4525_v5 = vld [vmem:[#allocation5 + $0x20] ss:$8 sps:$4 sm:$0xff]   ;;  %v4526_v6 = vld [vmem:[#allocation5 + $0x34] ss:$8 sps:$4 sm:$0xff]   ;;  %v4528_v7 = vld [vmem:[#allocation5 + $0x30] ss:$8 sps:$4 sm:$0xff]  }
  0x6d   : > { %505 = vmatprep.subr.bf16.mxu0 %v4520_v2  ;;  %634 = vmatprep.subr.bf16.mxu1 %v4520_v2  ;;  %v4529_v8 = vld [vmem:[#allocation5 + $0x44] ss:$8 sps:$4 sm:$0xff]   ;;  %v4531_v9 = vld [vmem:[#allocation5 + $0x40] ss:$8 sps:$4 sm:$0xff]   ;;  %v4532_v10 = vld [vmem:[#allocation5 + $0x54] ss:$8 sps:$4 sm:$0xff]  }
  0x6e   : > { %v4534_v11 = vld [vmem:[#allocation5 + $0x50] ss:$8 sps:$4 sm:$0xff]   ;;  %v4535_v12 = vld [vmem:[#allocation5 + $0x64] ss:$8 sps:$4 sm:$0xff]   ;;  %v4537_v18 = vld [vmem:[#allocation5 + $0x60] ss:$8 sps:$4 sm:$0xff]  }
  0x6f   : > { %v220_v13 = vld [vmem:[%s5267_s30 + $0x8] sm:$0xff]  ;;  %v222_v14 = vld [vmem:[%s5267_s30 + $0x18] sm:$0xff]  ;;  %v219_v38 = vld [vmem:[%s5267_s30] sm:$0xff]  ;;  %s5847_s18 = scalar_lea.vmem [#allocation8], %s4174_s22  ;;  %s4443_s20 = sshll.u32 %s5110_s16, 13 }
  0x70   : > { %506 = vmatpush1.bf16.msra.mxu0 %v4522_v3  ;;  %635 = vmatpush1.bf16.msra.mxu1 %v4522_v3  ;;  %v284_v15 = vpack.c.bf16 %v222_v14, %v220_v13  ;;  %v252_v16 = vld [vmem:[%s5267_s30 + $0x108] sm:$0xff]  ;;  %v254_v17 = vld [vmem:[%s5267_s30 + $0x118] sm:$0xff]  ;;  %v221_v39 = vld [vmem:[%s5267_s30 + $0x10] sm:$0xff]  ;;  %s4072_s17 = sshll.u32 %s5847_s18, 4  ;;  %s5970_s26 = scalar_lea.hbm %s6027_s3, %s4443_s20  ;;  %s5972_s17 = int_to_ptr.vmem [resolvable:$true] %s4072_s17 }
  0x71   : > { %507 = vmatprep.subr.bf16.mxu0 %v4523_v4  ;;  %636 = vmatprep.subr.bf16.mxu1 %v4523_v4  ;;  %v617_v19 = vpack.c.bf16 %v254_v17, %v252_v16  ;;  %v4538_v20 = vld [vmem:[#allocation5 + $0x74] ss:$8 sps:$4 sm:$0xff]   ;;  %v4540_v21 = vld [vmem:[#allocation5 + $0x70] ss:$8 sps:$4 sm:$0xff]   ;;  %v4541_v22 = vld [vmem:[#allocation5 + $0x84] ss:$8 sps:$4 sm:$0xff]   ;;  %v283_v47 = vpack.c.bf16 %v221_v39, %v219_v38 }
  0x72   : > { %535 = vmatprep.mubr.bf16.mxu0 %v284_v15  ;;  %v4543_v23 = vld [vmem:[#allocation5 + $0x80] ss:$8 sps:$4 sm:$0xff]   ;;  %v4544_v24 = vld [vmem:[#allocation5 + $0x94] ss:$8 sps:$4 sm:$0xff]   ;;  %v4546_v25 = vld [vmem:[#allocation5 + $0x90] ss:$8 sps:$4 sm:$0xff]  }
  0x73   : > { %664 = vmatprep.mubr.bf16.mxu1 %v617_v19  ;;  %v4547_v26 = vld [vmem:[#allocation5 + $0xa4] ss:$8 sps:$4 sm:$0xff]   ;;  %v4549_v27 = vld [vmem:[#allocation5 + $0xa0] ss:$8 sps:$4 sm:$0xff]   ;;  %v4550_v28 = vld [vmem:[#allocation5 + $0xb4] ss:$8 sps:$4 sm:$0xff]  }
  0x74   : > { %508 = vmatpush1.bf16.msra.mxu0 %v4525_v5  ;;  %637 = vmatpush1.bf16.msra.mxu1 %v4525_v5  ;;  %v4552_v29 = vld [vmem:[#allocation5 + $0xb0] ss:$8 sps:$4 sm:$0xff]   ;;  %v4553_v30 = vld [vmem:[#allocation5 + $0xc4] ss:$8 sps:$4 sm:$0xff]   ;;  %v4555_v31 = vld [vmem:[#allocation5 + $0xc0] ss:$8 sps:$4 sm:$0xff]  }
  0x75   : > { %509 = vmatprep.subr.bf16.mxu0 %v4526_v6  ;;  %638 = vmatprep.subr.bf16.mxu1 %v4526_v6  ;;  %v4556_v32 = vld [vmem:[#allocation5 + $0xd4] ss:$8 sps:$4 sm:$0xff]   ;;  %v4558_v33 = vld [vmem:[#allocation5 + $0xd0] ss:$8 sps:$4 sm:$0xff]   ;;  %v4559_v34 = vld [vmem:[#allocation5 + $0xe4] ss:$8 sps:$4 sm:$0xff]  }
  0x76   : > { %v4561_v35 = vld [vmem:[#allocation5 + $0xe0] ss:$8 sps:$4 sm:$0xff]   ;;  %v4562_v36 = vld [vmem:[#allocation5 + $0xf4] ss:$8 sps:$4 sm:$0xff]   ;;  %v4564_v37 = vld [vmem:[#allocation5 + $0xf0] ss:$8 sps:$4 sm:$0xff]  }
  0x77   : > { %v251_v40 = vld [vmem:[%s5267_s30 + $0x100] sm:$0xff]  ;;  %v253_v41 = vld [vmem:[%s5267_s30 + $0x110] sm:$0xff]  ;;  %v224_v42 = vld [vmem:[%s5267_s30 + $0x28] sm:$0xff]  ;;  %s4058_s27 = scalar_lea.sflag [#allocation4], %s5261_s28  ;;  %s4987_s23 = scalar_lea.vmem %s5972_s17, 8192 }
  0x78   : > { %510 = vmatpush1.bf16.msra.mxu0 %v4528_v7  ;;  %639 = vmatpush1.bf16.msra.mxu1 %v4528_v7  ;;  %v226_v43 = vld [vmem:[%s5267_s30 + $0x38] sm:$0xff]  ;;  %v256_v44 = vld [vmem:[%s5267_s30 + $0x128] sm:$0xff]  ;;  %v616_v48 = vpack.c.bf16 %v253_v41, %v251_v40  ;;  %v223_v53 = vld [vmem:[%s5267_s30 + $0x20] sm:$0xff]  ;;  %p4988_p11 = scmp.ne.s32.totalorder %s5972_s17, %s4987_s23  ;;  %p6041_p0 = scmp.ne.s32.totalorder %s6036_s6, 0 }
  0x79   : > { %511 = vmatprep.subr.bf16.mxu0 %v4529_v8  ;;  %640 = vmatprep.subr.bf16.mxu1 %v4529_v8  ;;  %v258_v45 = vld [vmem:[%s5267_s30 + $0x138] sm:$0xff]  ;;  %v4567_v46 = vld [vmem:[#allocation5 + $0x104] ss:$8 sps:$4 sm:$0xff]   ;;  %v4565_v49 = vld [vmem:[#allocation5 + $0x100] ss:$8 sps:$4 sm:$0xff]   ;;  %v286_v50 = vpack.c.bf16 %v226_v43, %v224_v42  ;;  %s5066_s5 = smov [#allocation8]  }
  0x7a   : > { %v619_v51 = vpack.c.bf16 %v258_v45, %v256_v44  ;;  %v4570_v52 = vld [vmem:[#allocation5 + $0x114] ss:$8 sps:$4 sm:$0xff]   ;;  %v255_v55 = vld [vmem:[%s5267_s30 + $0x120] sm:$0xff]  ;;  %v228_v57 = vld [vmem:[%s5267_s30 + $0x48] sm:$0xff]  ;;  %p4989_p1 = pnand %p4988_p11, %p6041_p0  ;;  %s4991_s8 = sshll.u32 %s5066_s5, 4  ;;  %s4992_s8 = int_to_ptr.vmem [resolvable:$false] %s4991_s8 }
  0x7b   : > { %v225_v54 = vld [vmem:[%s5267_s30 + $0x30] sm:$0xff]  ;;  %v230_v58 = vld [vmem:[%s5267_s30 + $0x58] sm:$0xff]  ;;  %v260_v59 = vld [vmem:[%s5267_s30 + $0x148] sm:$0xff]  ;;  %s4993_s9 = scalar_lea.vmem %s4992_s8, 16384  ;;  %p4994_p7 = scmp.lt.s32.totalorder %s5972_s17, %s4992_s8 }
  0x7c   : > { %512 = vmatpush1.bf16.msra.mxu0 %v4531_v9  ;;  %641 = vmatpush1.bf16.msra.mxu1 %v4531_v9  ;;  %v257_v56 = vld [vmem:[%s5267_s30 + $0x130] sm:$0xff]  ;;  %v262_v60 = vld [vmem:[%s5267_s30 + $0x158] sm:$0xff]  ;;  %v4573_v62 = vld [vmem:[#allocation5 + $0x124] ss:$8 sps:$4 sm:$0xff]   ;;  %v285_v63 = vpack.c.bf16 %v225_v54, %v223_v53  ;;  %v288_v2 = vpack.c.bf16 %v230_v58, %v228_v57  ;;  %p4990_p3 = pneg %p4989_p1  ;;  %p4995_p9 = scmp.lt.s32.totalorder %s4993_s9, %s4987_s23 }
  0x7d   : > { %513 = vmatprep.subr.bf16.mxu0 %v4532_v10  ;;  %642 = vmatprep.subr.bf16.mxu1 %v4532_v10  ;;  %v4568_v61 = vld [vmem:[#allocation5 + $0x110] ss:$8 sps:$4 sm:$0xff]   ;;  %v618_v0 = vpack.c.bf16 %v257_v56, %v255_v55  ;;  %v4571_v1 = vld [vmem:[#allocation5 + $0x120] ss:$8 sps:$4 sm:$0xff]   ;;  %v621_v3 = vpack.c.bf16 %v262_v60, %v260_v59  ;;  %v4576_v4 = vld [vmem:[#allocation5 + $0x134] ss:$8 sps:$4 sm:$0xff]  }
  0x7e   : > { %v227_v5 = vld [vmem:[%s5267_s30 + $0x40] sm:$0xff]  ;;  %v229_v6 = vld [vmem:[%s5267_s30 + $0x50] sm:$0xff]  ;;  %v232_v9 = vld [vmem:[%s5267_s30 + $0x68] sm:$0xff]  ;;  %p4996_p12 = por %p4995_p9, %p4994_p7 }
  0x7f   : > { %v259_v7 = vld [vmem:[%s5267_s30 + $0x140] sm:$0xff]  ;;  %v261_v8 = vld [vmem:[%s5267_s30 + $0x150] sm:$0xff]  ;;  %v234_v10 = vld [vmem:[%s5267_s30 + $0x78] sm:$0xff]  ;;  %v287_v15 = vpack.c.bf16 %v229_v6, %v227_v5 }
  0x80   : > { %514 = vmatpush1.bf16.msra.mxu0 %v4534_v11  ;;  %643 = vmatpush1.bf16.msra.mxu1 %v4534_v11  ;;  %v264_v11 = vld [vmem:[%s5267_s30 + $0x168] sm:$0xff]  ;;  %v4574_v13 = vld [vmem:[#allocation5 + $0x130] ss:$8 sps:$4 sm:$0xff]   ;;  %v620_v16 = vpack.c.bf16 %v261_v8, %v259_v7  ;;  %v267_v39 = vld [vmem:[%s5267_s30 + $0x180] sm:$0xff]  ;;  %p4997_p2 = pnand %p4996_p12, %p4990_p3 }
  0x81   : > { %515 = vmatprep.subr.bf16.mxu0 %v4535_v12  ;;  %644 = vmatprep.subr.bf16.mxu1 %v4535_v12  ;;  %v266_v12 = vld [vmem:[%s5267_s30 + $0x178] sm:$0xff]  ;;  %v4579_v14 = vld [vmem:[#allocation5 + $0x144] ss:$8 sps:$4 sm:$0xff]   ;;  %v4577_v17 = vld [vmem:[#allocation5 + $0x140] ss:$8 sps:$4 sm:$0xff]  }
  0x82   : > { %v623_v19 = vpack.c.bf16 %v266_v12, %v264_v11  ;;  %v237_v38 = vld [vmem:[%s5267_s30 + $0x90] sm:$0xff]  ;;  %v240_v41 = vld [vmem:[%s5267_s30 + $0xa8] sm:$0xff]  ;;  %v242_v42 = vld [vmem:[%s5267_s30 + $0xb8] sm:$0xff] }
  0x83   : > { %v269_v40 = vld [vmem:[%s5267_s30 + $0x190] sm:$0xff]  ;;  %v272_v43 = vld [vmem:[%s5267_s30 + $0x1a8] sm:$0xff]  ;;  %v274_v44 = vld [vmem:[%s5267_s30 + $0x1b8] sm:$0xff] }
  0x84   : > { %516 = vmatpush1.bf16.msra.mxu0 %v4537_v18  ;;  %645 = vmatpush1.bf16.msra.mxu1 %v4537_v18  ;;  %v290_v18 = vpack.c.bf16 %v234_v10, %v232_v9  ;;  %v4586_v45 = vld [vmem:[#allocation5 + $0x170] ss:$8 sps:$4 sm:$0xff]   ;;  %v239_v53 = vld [vmem:[%s5267_s30 + $0xa0] sm:$0xff]  ;;  %v244_v57 = vld [vmem:[%s5267_s30 + $0xc8] sm:$0xff] }
  0x85   : > { %517 = vmatprep.subr.bf16.mxu0 %v4538_v20  ;;  %646 = vmatprep.subr.bf16.mxu1 %v4538_v20  ;;  %v4582_v20 = vld [vmem:[#allocation5 + $0x154] ss:$8 sps:$4 sm:$0xff]   ;;  %v271_v55 = vld [vmem:[%s5267_s30 + $0x1a0] sm:$0xff]  ;;  %v276_v59 = vld [vmem:[%s5267_s30 + $0x1c8] sm:$0xff] }
  0x86   : > { %v241_v54 = vld [vmem:[%s5267_s30 + $0xb0] sm:$0xff]  ;;  %v246_v58 = vld [vmem:[%s5267_s30 + $0xd8] sm:$0xff]  ;;  %v243_v5 = vld [vmem:[%s5267_s30 + $0xc0] sm:$0xff] }
  0x87   : > { %v273_v56 = vld [vmem:[%s5267_s30 + $0x1b0] sm:$0xff]  ;;  %v278_v60 = vld [vmem:[%s5267_s30 + $0x1d8] sm:$0xff]  ;;  %v275_v7 = vld [vmem:[%s5267_s30 + $0x1c0] sm:$0xff] }
  0x88   : > { %518 = vmatpush1.bf16.msra.mxu0 %v4540_v21  ;;  %647 = vmatpush1.bf16.msra.mxu1 %v4540_v21  ;;  %v231_v21 = vld [vmem:[%s5267_s30 + $0x60] sm:$0xff]  ;;  %v245_v6 = vld [vmem:[%s5267_s30 + $0xd0] sm:$0xff]  ;;  %v248_v9 = vld [vmem:[%s5267_s30 + $0xe8] sm:$0xff] }
  0x89   : > { %519 = vmatprep.subr.bf16.mxu0 %v4541_v22  ;;  %648 = vmatprep.subr.bf16.mxu1 %v4541_v22  ;;  %v233_v22 = vld [vmem:[%s5267_s30 + $0x70] sm:$0xff]  ;;  %v250_v10 = vld [vmem:[%s5267_s30 + $0xf8] sm:$0xff]  ;;  %v280_v11 = vld [vmem:[%s5267_s30 + $0x1e8] sm:$0xff] }
  0x8a   : > { %v277_v8 = vld [vmem:[%s5267_s30 + $0x1d0] sm:$0xff]  ;;  %v282_v12 = vld [vmem:[%s5267_s30 + $0x1f8] sm:$0xff] }
  0x8c   : > { %520 = vmatpush1.bf16.msra.mxu0 %v4543_v23  ;;  %649 = vmatpush1.bf16.msra.mxu1 %v4543_v23  ;;  %v263_v23 = vld [vmem:[%s5267_s30 + $0x160] sm:$0xff] }
  0x8d   : > { %521 = vmatprep.subr.bf16.mxu0 %v4544_v24  ;;  %650 = vmatprep.subr.bf16.mxu1 %v4544_v24  ;;  %v265_v24 = vld [vmem:[%s5267_s30 + $0x170] sm:$0xff] }
  0x90   : > { %522 = vmatpush1.bf16.msra.mxu0 %v4546_v25  ;;  %651 = vmatpush1.bf16.msra.mxu1 %v4546_v25  ;;  %v236_v25 = vld [vmem:[%s5267_s30 + $0x88] sm:$0xff] }
  0x91   : > { %523 = vmatprep.subr.bf16.mxu0 %v4547_v26  ;;  %652 = vmatprep.subr.bf16.mxu1 %v4547_v26  ;;  %v238_v26 = vld [vmem:[%s5267_s30 + $0x98] sm:$0xff] }
  0x94   : > { %524 = vmatpush1.bf16.msra.mxu0 %v4549_v27  ;;  %653 = vmatpush1.bf16.msra.mxu1 %v4549_v27  ;;  %v268_v27 = vld [vmem:[%s5267_s30 + $0x188] sm:$0xff] }
  0x95   : > { %525 = vmatprep.subr.bf16.mxu0 %v4550_v28  ;;  %654 = vmatprep.subr.bf16.mxu1 %v4550_v28  ;;  %v270_v28 = vld [vmem:[%s5267_s30 + $0x198] sm:$0xff] }
  0x98   : > { %526 = vmatpush1.bf16.msra.mxu0 %v4552_v29  ;;  %655 = vmatpush1.bf16.msra.mxu1 %v4552_v29  ;;  %v4580_v29 = vld [vmem:[#allocation5 + $0x150] ss:$8 sps:$4 sm:$0xff]  }
  0x99   : > { %527 = vmatprep.subr.bf16.mxu0 %v4553_v30  ;;  %656 = vmatprep.subr.bf16.mxu1 %v4553_v30  ;;  %v4585_v30 = vld [vmem:[#allocation5 + $0x164] ss:$8 sps:$4 sm:$0xff]  }
  0x9c   : > { %528 = vmatpush1.bf16.msra.mxu0 %v4555_v31  ;;  %657 = vmatpush1.bf16.msra.mxu1 %v4555_v31  ;;  %v289_v31 = vpack.c.bf16 %v233_v22, %v231_v21  ;;  %v247_v21 = vld [vmem:[%s5267_s30 + $0xe0] sm:$0xff]  ;;  %v249_v22 = vld [vmem:[%s5267_s30 + $0xf0] sm:$0xff] }
  0x9d   : > { %529 = vmatprep.subr.bf16.mxu0 %v4556_v32  ;;  %658 = vmatprep.subr.bf16.mxu1 %v4556_v32  ;;  %v622_v32 = vpack.c.bf16 %v265_v24, %v263_v23  ;;  %v279_v23 = vld [vmem:[%s5267_s30 + $0x1e0] sm:$0xff]  ;;  %v281_v24 = vld [vmem:[%s5267_s30 + $0x1f0] sm:$0xff] }
  0xa0   : > { %530 = vmatpush1.bf16.msra.mxu0 %v4558_v33  ;;  %659 = vmatpush1.bf16.msra.mxu1 %v4558_v33  ;;  %v4583_v33 = vld [vmem:[#allocation5 + $0x160] ss:$8 sps:$4 sm:$0xff]  }
  0xa1   : > { %531 = vmatprep.subr.bf16.mxu0 %v4559_v34  ;;  %660 = vmatprep.subr.bf16.mxu1 %v4559_v34  ;;  %v292_v34 = vpack.c.bf16 %v238_v26, %v236_v25  ;;  %v4604_v25 = vld [vmem:[#allocation5 + $0x1d0] ss:$8 sps:$4 sm:$0xff]   ;;  %v297_v26 = vpack.c.bf16 %v249_v22, %v247_v21  ;;  %v4624_v21 = vld [vmem:[#allocation5 + $0x234] ss:$8 sps:$4 sm:$0xff]  }
  0xa4   : > { %532 = vmatpush1.bf16.msra.mxu0 %v4561_v35  ;;  %661 = vmatpush1.bf16.msra.mxu1 %v4561_v35  ;;  %v625_v35 = vpack.c.bf16 %v270_v28, %v268_v27  ;;  %v630_v27 = vpack.c.bf16 %v281_v24, %v279_v23  ;;  %v4609_v28 = vld [vmem:[#allocation5 + $0x1e4] ss:$8 sps:$4 sm:$0xff]  }
  0xa5   : > { %533 = vmatprep.subr.bf16.mxu0 %v4562_v36  ;;  %662 = vmatprep.subr.bf16.mxu1 %v4562_v36  ;;  %v4588_v36 = vld [vmem:[#allocation5 + $0x174] ss:$8 sps:$4 sm:$0xff]  }
  0xa8   : > { %534 = vmatpush1.bf16.msra.mxu0 %v4564_v37  ;;  %663 = vmatpush1.bf16.msra.mxu1 %v4564_v37  ;;  %v235_v37 = vld [vmem:[%s5267_s30 + $0x80] sm:$0xff] }
  0xa9   : > { %967 = vmatprep.subr.bf16.mxu0 %v4567_v46  ;;  %1096 = vmatprep.subr.bf16.mxu1 %v4567_v46  ;;  %v4591_v46 = vld [vmem:[#allocation5 + $0x184] ss:$8 sps:$4 sm:$0xff]  }
  0xab   : > { %536 = vmatmul.mubr.bf16.vlgmr.msra.gmra.mrb[0].mxu0 %v283_v47  ;;  %665 = vmatmul.mubr.bf16.vlgmr.msra.gmra.mrb[0].mxu1 %v616_v48  ;;  %v291_v47 = vpack.c.bf16 %v237_v38, %v235_v37  ;;  %v624_v48 = vpack.c.bf16 %v269_v40, %v267_v39 }
  0xac   : > { %545 = vmatprep.mubr.bf16.mxu0 %v286_v50  ;;  %674 = vmatprep.mubr.bf16.mxu1 %v619_v51  ;;  %v294_v50 = vpack.c.bf16 %v242_v42, %v240_v41  ;;  %v627_v51 = vpack.c.bf16 %v274_v44, %v272_v43 }
  0xad   : > { %968 = vmatpush1.bf16.msra.mxu0 %v4565_v49  ;;  %1097 = vmatpush1.bf16.msra.mxu1 %v4565_v49  ;;  %v4589_v49 = vld [vmem:[#allocation5 + $0x180] ss:$8 sps:$4 sm:$0xff]  }
  0xae   : > { %969 = vmatprep.subr.bf16.mxu0 %v4570_v52  ;;  %1098 = vmatprep.subr.bf16.mxu1 %v4570_v52  ;;  %v4594_v52 = vld [vmem:[#allocation5 + $0x194] ss:$8 sps:$4 sm:$0xff]  }
  0xb1   : > { %970 = vmatpush1.bf16.msra.mxu0 %v4568_v61  ;;  %1099 = vmatpush1.bf16.msra.mxu1 %v4568_v61  ;;  %v4592_v61 = vld [vmem:[#allocation5 + $0x190] ss:$8 sps:$4 sm:$0xff]  }
  0xb2   : > { %971 = vmatprep.subr.bf16.mxu0 %v4573_v62  ;;  %1100 = vmatprep.subr.bf16.mxu1 %v4573_v62  ;;  %v4597_v62 = vld [vmem:[#allocation5 + $0x1a4] ss:$8 sps:$4 sm:$0xff]  }
  0xb3   : > { %546 = vmatmul.mubr.bf16.gmra.mrb[4].mxu0 %v285_v63  ;;  %675 = vmatmul.mubr.bf16.gmra.mrb[4].mxu1 %v618_v0  ;;  %v293_v63 = vpack.c.bf16 %v241_v54, %v239_v53  ;;  %v626_v0 = vpack.c.bf16 %v273_v56, %v271_v55 }
  0xb4   : > { %555 = vmatprep.mubr.bf16.mxu0 %v288_v2  ;;  %684 = vmatprep.mubr.bf16.mxu1 %v621_v3  ;;  %v296_v2 = vpack.c.bf16 %v246_v58, %v244_v57  ;;  %v629_v3 = vpack.c.bf16 %v278_v60, %v276_v59  ;;  %v4613_v60 = vld [vmem:[#allocation5 + $0x200] ss:$8 sps:$4 sm:$0xff]  }
  0xb5   : > { %972 = vmatpush1.bf16.msra.mxu0 %v4571_v1  ;;  %1101 = vmatpush1.bf16.msra.mxu1 %v4571_v1  ;;  %v4595_v1 = vld [vmem:[#allocation5 + $0x1a0] ss:$8 sps:$4 sm:$0xff]  }
  0xb6   : > { %973 = vmatprep.subr.bf16.mxu0 %v4576_v4  ;;  %1102 = vmatprep.subr.bf16.mxu1 %v4576_v4  ;;  %v4600_v4 = vld [vmem:[#allocation5 + $0x1b4] ss:$8 sps:$4 sm:$0xff]  }
  0xb9   : > { %974 = vmatpush1.bf16.msra.mxu0 %v4574_v13  ;;  %1103 = vmatpush1.bf16.msra.mxu1 %v4574_v13  ;;  %v4598_v13 = vld [vmem:[#allocation5 + $0x1b0] ss:$8 sps:$4 sm:$0xff]  }
  0xba   : > { %975 = vmatprep.subr.bf16.mxu0 %v4579_v14  ;;  %1104 = vmatprep.subr.bf16.mxu1 %v4579_v14  ;;  %v4603_v14 = vld [vmem:[#allocation5 + $0x1c4] ss:$8 sps:$4 sm:$0xff]  }
  0xbb   : > { %556 = vmatmul.mubr.bf16.gmra.mrb[8].mxu0 %v287_v15  ;;  %685 = vmatmul.mubr.bf16.gmra.mrb[8].mxu1 %v620_v16  ;;  %v295_v15 = vpack.c.bf16 %v245_v6, %v243_v5  ;;  %v628_v16 = vpack.c.bf16 %v277_v8, %v275_v7  ;;  %v4616_v5 = vld [vmem:[#allocation5 + $0x210] ss:$8 sps:$4 sm:$0xff]  }
  0xbc   : > { %565 = vmatprep.mubr.bf16.mxu0 %v290_v18  ;;  %694 = vmatprep.mubr.bf16.mxu1 %v623_v19  ;;  %v298_v18 = vpack.c.bf16 %v250_v10, %v248_v9  ;;  %v631_v19 = vpack.c.bf16 %v282_v12, %v280_v11  ;;  %v4621_v11 = vld [vmem:[#allocation5 + $0x224] ss:$8 sps:$4 sm:$0xff]  }
  0xbd   : > { %976 = vmatpush1.bf16.msra.mxu0 %v4577_v17  ;;  %1105 = vmatpush1.bf16.msra.mxu1 %v4577_v17  ;;  %v4601_v17 = vld [vmem:[#allocation5 + $0x1c0] ss:$8 sps:$4 sm:$0xff]  }
  0xbe   : > { %977 = vmatprep.subr.bf16.mxu0 %v4582_v20  ;;  %1106 = vmatprep.subr.bf16.mxu1 %v4582_v20  ;;  %v4606_v20 = vld [vmem:[#allocation5 + $0x1d4] ss:$8 sps:$4 sm:$0xff]  }
  0xc1   : > { %978 = vmatpush1.bf16.msra.mxu0 %v4580_v29  ;;  %1107 = vmatpush1.bf16.msra.mxu1 %v4580_v29  ;;  %v4607_v29 = vld [vmem:[#allocation5 + $0x1e0] ss:$8 sps:$4 sm:$0xff]  }
  0xc2   : > { %979 = vmatprep.subr.bf16.mxu0 %v4585_v30  ;;  %1108 = vmatprep.subr.bf16.mxu1 %v4585_v30  ;;  %v4612_v30 = vld [vmem:[#allocation5 + $0x1f4] ss:$8 sps:$4 sm:$0xff]  }
  0xc3   : > { %566 = vmatmul.mubr.bf16.gmra.mrb[12].mxu0 %v289_v31  ;;  %695 = vmatmul.mubr.bf16.gmra.mrb[12].mxu1 %v622_v32  ;;  %v4610_v31 = vld [vmem:[#allocation5 + $0x1f0] ss:$8 sps:$4 sm:$0xff]   ;;  %v4615_v32 = vld [vmem:[#allocation5 + $0x204] ss:$8 sps:$4 sm:$0xff]  }
  0xc4   : > { %575 = vmatprep.mubr.bf16.mxu0 %v292_v34  ;;  %704 = vmatprep.mubr.bf16.mxu1 %v625_v35 }
  0xc5   : > { %980 = vmatpush1.bf16.msra.mxu0 %v4583_v33  ;;  %1109 = vmatpush1.bf16.msra.mxu1 %v4583_v33  ;;  %v333_v33 = vlaneseq }
  0xc6   : > { %981 = vmatprep.subr.bf16.mxu0 %v4588_v36  ;;  %1110 = vmatprep.subr.bf16.mxu1 %v4588_v36  ;;  %v331_v36 = vld [vmem:[#allocation7] ss:$8 sm:$0x3] }
  0xc7   : > { %v334_v34 = vshrl.u32 %v333_v33, 7 }
  0xc9   : > { %982 = vmatpush1.bf16.msra.mxu0 %v4586_v45  ;;  %1111 = vmatpush1.bf16.msra.mxu1 %v4586_v45  ;;  %v5341_v35 = vsub.s32 0, %v334_v34  ;;  %v5343_v37 = vsub.s32 1, %v334_v34 }
  0xca   : > { %983 = vmatprep.subr.bf16.mxu0 %v4591_v46  ;;  %1112 = vmatprep.subr.bf16.mxu1 %v4591_v46 }
  0xcb   : > { %576 = vmatmul.mubr.bf16.gmra.mrb[16].mxu0 %v291_v47  ;;  %705 = vmatmul.mubr.bf16.gmra.mrb[16].mxu1 %v624_v48  ;;  %v5346_v38 = vrot.slane %v331_v36, %v5341_v35  ;;  %v5349_v41 = vrot.slane %v331_v36, %v5343_v37  ;;  %v4627_v36 = vld [vmem:[#allocation5 + $0x244] ss:$8 sps:$4 sm:$0xff]  }
  0xcc   : > { %585 = vmatprep.mubr.bf16.mxu0 %v294_v50  ;;  %714 = vmatprep.mubr.bf16.mxu1 %v627_v51 }
  0xcd   : > { %984 = vmatpush1.bf16.msra.mxu0 %v4589_v49  ;;  %1113 = vmatpush1.bf16.msra.mxu1 %v4589_v49 }
  0xce   : > { %985 = vmatprep.subr.bf16.mxu0 %v4594_v52  ;;  %1114 = vmatprep.subr.bf16.mxu1 %v4594_v52 }
  0xd1   : > { %986 = vmatpush1.bf16.msra.mxu0 %v4592_v61  ;;  %1115 = vmatpush1.bf16.msra.mxu1 %v4592_v61  ;;  %v4618_v61 = vld [vmem:[#allocation5 + $0x214] ss:$8 sps:$4 sm:$0xff]  }
  0xd2   : > { %987 = vmatprep.subr.bf16.mxu0 %v4597_v62  ;;  %1116 = vmatprep.subr.bf16.mxu1 %v4597_v62 }
  0xd3   : > { %586 = vmatmul.mubr.bf16.gmra.mrb[20].mxu0 %v293_v63  ;;  %715 = vmatmul.mubr.bf16.gmra.mrb[20].mxu1 %v626_v0 }
  0xd4   : > { %595 = vmatprep.mubr.bf16.mxu0 %v296_v2  ;;  %724 = vmatprep.mubr.bf16.mxu1 %v629_v3 }
  0xd5   : > { %988 = vmatpush1.bf16.msra.mxu0 %v4595_v1  ;;  %1117 = vmatpush1.bf16.msra.mxu1 %v4595_v1 }
  0xd6   : > { %989 = vmatprep.subr.bf16.mxu0 %v4600_v4  ;;  %1118 = vmatprep.subr.bf16.mxu1 %v4600_v4 }
  0xd9   : > { %990 = vmatpush1.bf16.msra.mxu0 %v4598_v13  ;;  %1119 = vmatpush1.bf16.msra.mxu1 %v4598_v13 }
  0xda   : > { %991 = vmatprep.subr.bf16.mxu0 %v4603_v14  ;;  %1120 = vmatprep.subr.bf16.mxu1 %v4603_v14 }
  0xdb   : > { %596 = vmatmul.mubr.bf16.gmra.mrb[24].mxu0 %v295_v15  ;;  %725 = vmatmul.mubr.bf16.gmra.mrb[24].mxu1 %v628_v16 }
  0xdc   : > { %605 = vmatprep.mubr.bf16.mxu0 %v298_v18  ;;  %734 = vmatprep.mubr.bf16.mxu1 %v631_v19 }
  0xdd   : > { %992 = vmatpush1.bf16.msra.mxu0 %v4601_v17  ;;  %1121 = vmatpush1.bf16.msra.mxu1 %v4601_v17 }
  0xde   : > { %993 = vmatprep.subr.bf16.mxu0 %v4606_v20  ;;  %1122 = vmatprep.subr.bf16.mxu1 %v4606_v20  ;;  %v4619_v20 = vld [vmem:[#allocation5 + $0x220] ss:$8 sps:$4 sm:$0xff]  }
  0xe1   : > { %994 = vmatpush1.bf16.msra.mxu0 %v4604_v25  ;;  %1123 = vmatpush1.bf16.msra.mxu1 %v4604_v25 }
  0xe2   : > { %995 = vmatprep.subr.bf16.mxu0 %v4609_v28  ;;  %1124 = vmatprep.subr.bf16.mxu1 %v4609_v28 }
  0xe3   : > { %606 = vmatmul.mubr.bf16.gmra.mrb[28].mxu0 %v297_v26  ;;  %735 = vmatmul.mubr.bf16.gmra.mrb[28].mxu1 %v630_v27 }
  0xe5   : > { %996 = vmatpush1.bf16.msra.mxu0 %v4607_v29  ;;  %1125 = vmatpush1.bf16.msra.mxu1 %v4607_v29  ;;  %v4622_v29 = vld [vmem:[#allocation5 + $0x230] ss:$8 sps:$4 sm:$0xff]  }
  0xe6   : > { %997 = vmatprep.subr.bf16.mxu0 %v4612_v30  ;;  %1126 = vmatprep.subr.bf16.mxu1 %v4612_v30 }
  0xe9   : > { %998 = vmatpush1.bf16.msra.mxu0 %v4610_v31  ;;  %1127 = vmatpush1.bf16.msra.mxu1 %v4610_v31 }
  0xea   : > { %1431 = vmatprep.subr.bf16.mxu0 %v4615_v32  ;;  %1560 = vmatprep.subr.bf16.mxu1 %v4615_v32 }
 0x17e   : > { %v537_v39 = vpop.f32.mrb[0].mxu0  ;;  %v666_v40 = vpop.f32.mrb[0].mxu1 }
 0x17f   : > { %v539_v42 = vpop.f32.mrb[1].mxu0  ;;  %v668_v43 = vpop.f32.mrb[1].mxu1  ;;  %v538_v46 = vadd.f32 %v537_v39, %v5346_v38  ;;  %v667_v47 = vadd.f32 %v666_v40, %v5346_v38 }
 0x180   : > { %v541_v44 = vpop.f32.mrb[2].mxu0  ;;  %v670_v45 = vpop.f32.mrb[2].mxu1  ;;  %v540_v52 = vadd.f32 %v539_v42, %v5349_v41  ;;  %v669_v53 = vadd.f32 %v668_v43, %v5349_v41 }
 0x181   : > { %v542_v48 = vadd.f32 %v541_v44, %v5346_v38  ;;  %v671_v49 = vadd.f32 %v670_v45, %v5346_v38  ;;  %v543_v50 = vpop.f32.mrb[3].mxu0  ;;  %v672_v51 = vpop.f32.mrb[3].mxu1 }
 0x182   : > { %v544_v54 = vadd.f32 %v543_v50, %v5349_v41  ;;  %v673_v55 = vadd.f32 %v672_v51, %v5349_v41 }
 0x183   : > { %v745_v56 = vpack.c.bf16 %v542_v48, %v538_v46  ;;  %v1080_v57 = vpack.c.bf16 %v671_v49, %v667_v47  ;;  %v4625_v48 = vld [vmem:[#allocation5 + $0x240] ss:$8 sps:$4 sm:$0xff]   ;;  %v4630_v49 = vld [vmem:[#allocation5 + $0x254] ss:$8 sps:$4 sm:$0xff]  }
 0x184   : > { %v746_v58 = vpack.c.bf16 %v544_v54, %v540_v52  ;;  %v1081_v59 = vpack.c.bf16 %v673_v55, %v669_v53 }
 0x186   : > { %v547_v62 = vpop.f32.mrb[4].mxu0  ;;  %v676_v63 = vpop.f32.mrb[4].mxu1  ;;  %999 = vmatprep.mubr.bf16.mxu0 %v746_v58  ;;  %1128 = vmatprep.mubr.bf16.mxu1 %v1081_v59 }
 0x187   : > { %v549_v0 = vpop.f32.mrb[5].mxu0  ;;  %v678_v1 = vpop.f32.mrb[5].mxu1  ;;  %1000 = vmatmul.mubr.bf16.vlgmr.msra.gmra.mrb[32].mxu0 %v745_v56  ;;  %1129 = vmatmul.mubr.bf16.vlgmr.msra.gmra.mrb[32].mxu1 %v1080_v57  ;;  %v548_v2 = vadd.f32 %v547_v62, %v5346_v38  ;;  %v677_v6 = vadd.f32 %v676_v63, %v5346_v38  ;;  %v4628_v57 = vld [vmem:[#allocation5 + $0x250] ss:$8 sps:$4 sm:$0xff]   ;;  %v4633_v63 = vld [vmem:[#allocation5 + $0x264] ss:$8 sps:$4 sm:$0xff]  }
 0x188   : > { %v551_v3 = vpop.f32.mrb[6].mxu0  ;;  %v680_v4 = vpop.f32.mrb[6].mxu1  ;;  %1432 = vmatpush1.bf16.msra.mxu0 %v4613_v60  ;;  %1561 = vmatpush1.bf16.msra.mxu1 %v4613_v60  ;;  %v550_v12 = vadd.f32 %v549_v0, %v5349_v41  ;;  %v679_v13 = vadd.f32 %v678_v1, %v5349_v41 }
 0x189   : > { %v552_v7 = vadd.f32 %v551_v3, %v5346_v38  ;;  %v681_v8 = vadd.f32 %v680_v4, %v5346_v38  ;;  %v553_v9 = vpop.f32.mrb[7].mxu0  ;;  %v682_v10 = vpop.f32.mrb[7].mxu1  ;;  %1433 = vmatprep.subr.bf16.mxu0 %v4618_v61  ;;  %1562 = vmatprep.subr.bf16.mxu1 %v4618_v61 }
 0x18a   : > { %v554_v14 = vadd.f32 %v553_v9, %v5349_v41  ;;  %v683_v15 = vadd.f32 %v682_v10, %v5349_v41  ;;  %v4636_v9 = vld [vmem:[#allocation5 + $0x274] ss:$8 sps:$4 sm:$0xff]  }
 0x18b   : > { %v747_v16 = vpack.c.bf16 %v552_v7, %v548_v2  ;;  %v1082_v17 = vpack.c.bf16 %v681_v8, %v677_v6  ;;  %v4631_v8 = vld [vmem:[#allocation5 + $0x260] ss:$8 sps:$4 sm:$0xff]  }
 0x18c   : > { %v748_v18 = vpack.c.bf16 %v554_v14, %v550_v12  ;;  %v1083_v19 = vpack.c.bf16 %v683_v15, %v679_v13  ;;  %1434 = vmatpush1.bf16.msra.mxu0 %v4616_v5  ;;  %1563 = vmatpush1.bf16.msra.mxu1 %v4616_v5 }
 0x18d   : > { %1435 = vmatprep.subr.bf16.mxu0 %v4621_v11  ;;  %1564 = vmatprep.subr.bf16.mxu1 %v4621_v11 }
 0x18e   : > { %v557_v22 = vpop.f32.mrb[8].mxu0  ;;  %v686_v23 = vpop.f32.mrb[8].mxu1  ;;  %1009 = vmatprep.mubr.bf16.mxu0 %v748_v18  ;;  %1138 = vmatprep.mubr.bf16.mxu1 %v1083_v19 }
 0x18f   : > { %v559_v24 = vpop.f32.mrb[9].mxu0  ;;  %v688_v25 = vpop.f32.mrb[9].mxu1  ;;  %1010 = vmatmul.mubr.bf16.gmra.mrb[36].mxu0 %v747_v16  ;;  %1139 = vmatmul.mubr.bf16.gmra.mrb[36].mxu1 %v1082_v17  ;;  %v558_v26 = vadd.f32 %v557_v22, %v5346_v38  ;;  %v687_v30 = vadd.f32 %v686_v23, %v5346_v38  ;;  %v4634_v17 = vld [vmem:[#allocation5 + $0x270] ss:$8 sps:$4 sm:$0xff]   ;;  %v4639_v23 = vld [vmem:[#allocation5 + $0x284] ss:$8 sps:$4 sm:$0xff]  }
 0x190   : > { %v561_v27 = vpop.f32.mrb[10].mxu0  ;;  %v690_v28 = vpop.f32.mrb[10].mxu1  ;;  %1436 = vmatpush1.bf16.msra.mxu0 %v4619_v20  ;;  %1565 = vmatpush1.bf16.msra.mxu1 %v4619_v20  ;;  %v560_v39 = vadd.f32 %v559_v24, %v5349_v41  ;;  %v689_v40 = vadd.f32 %v688_v25, %v5349_v41 }
 0x191   : > { %v562_v31 = vadd.f32 %v561_v27, %v5346_v38  ;;  %v691_v32 = vadd.f32 %v690_v28, %v5346_v38  ;;  %v563_v33 = vpop.f32.mrb[11].mxu0  ;;  %v692_v34 = vpop.f32.mrb[11].mxu1  ;;  %1437 = vmatprep.subr.bf16.mxu0 %v4624_v21  ;;  %1566 = vmatprep.subr.bf16.mxu1 %v4624_v21 }
 0x192   : > { %v564_v42 = vadd.f32 %v563_v33, %v5349_v41  ;;  %v693_v43 = vadd.f32 %v692_v34, %v5349_v41  ;;  %v4642_v33 = vld [vmem:[#allocation5 + $0x294] ss:$8 sps:$4 sm:$0xff]  }
 0x193   : > { %v749_v44 = vpack.c.bf16 %v562_v31, %v558_v26  ;;  %v1084_v45 = vpack.c.bf16 %v691_v32, %v687_v30  ;;  %v4637_v32 = vld [vmem:[#allocation5 + $0x280] ss:$8 sps:$4 sm:$0xff]  }
 0x194   : > { %v750_v46 = vpack.c.bf16 %v564_v42, %v560_v39  ;;  %v1085_v47 = vpack.c.bf16 %v693_v43, %v689_v40  ;;  %1438 = vmatpush1.bf16.msra.mxu0 %v4622_v29  ;;  %1567 = vmatpush1.bf16.msra.mxu1 %v4622_v29 }
 0x195   : > { %1439 = vmatprep.subr.bf16.mxu0 %v4627_v36  ;;  %1568 = vmatprep.subr.bf16.mxu1 %v4627_v36 }
 0x196   : > { %v567_v50 = vpop.f32.mrb[12].mxu0  ;;  %v696_v51 = vpop.f32.mrb[12].mxu1  ;;  %1019 = vmatprep.mubr.bf16.mxu0 %v750_v46  ;;  %1148 = vmatprep.mubr.bf16.mxu1 %v1085_v47 }
 0x197   : > { %v569_v52 = vpop.f32.mrb[13].mxu0  ;;  %v698_v53 = vpop.f32.mrb[13].mxu1  ;;  %1020 = vmatmul.mubr.bf16.gmra.mrb[40].mxu0 %v749_v44  ;;  %1149 = vmatmul.mubr.bf16.gmra.mrb[40].mxu1 %v1084_v45  ;;  %v568_v54 = vadd.f32 %v567_v50, %v5346_v38  ;;  %v697_v58 = vadd.f32 %v696_v51, %v5346_v38  ;;  %v4640_v45 = vld [vmem:[#allocation5 + $0x290] ss:$8 sps:$4 sm:$0xff]   ;;  %v4645_v51 = vld [vmem:[#allocation5 + $0x2a4] ss:$8 sps:$4 sm:$0xff]  }
 0x198   : > { %v571_v55 = vpop.f32.mrb[14].mxu0  ;;  %v700_v56 = vpop.f32.mrb[14].mxu1  ;;  %1440 = vmatpush1.bf16.msra.mxu0 %v4625_v48  ;;  %1569 = vmatpush1.bf16.msra.mxu1 %v4625_v48  ;;  %v570_v0 = vadd.f32 %v569_v52, %v5349_v41  ;;  %v699_v1 = vadd.f32 %v698_v53, %v5349_v41 }
 0x199   : > { %v572_v59 = vadd.f32 %v571_v55, %v5346_v38  ;;  %v701_v60 = vadd.f32 %v700_v56, %v5346_v38  ;;  %v573_v61 = vpop.f32.mrb[15].mxu0  ;;  %v702_v62 = vpop.f32.mrb[15].mxu1  ;;  %1441 = vmatprep.subr.bf16.mxu0 %v4630_v49  ;;  %1570 = vmatprep.subr.bf16.mxu1 %v4630_v49 }
 0x19a   : > { %v574_v2 = vadd.f32 %v573_v61, %v5349_v41  ;;  %v703_v3 = vadd.f32 %v702_v62, %v5349_v41  ;;  %v4648_v61 = vld [vmem:[#allocation5 + $0x2b4] ss:$8 sps:$4 sm:$0xff]  }
 0x19b   : > { %v751_v4 = vpack.c.bf16 %v572_v59, %v568_v54  ;;  %v1086_v5 = vpack.c.bf16 %v701_v60, %v697_v58  ;;  %v4643_v60 = vld [vmem:[#allocation5 + $0x2a0] ss:$8 sps:$4 sm:$0xff]  }
 0x19c   : > { %v752_v6 = vpack.c.bf16 %v574_v2, %v570_v0  ;;  %v1087_v7 = vpack.c.bf16 %v703_v3, %v699_v1  ;;  %1442 = vmatpush1.bf16.msra.mxu0 %v4628_v57  ;;  %1571 = vmatpush1.bf16.msra.mxu1 %v4628_v57 }
 0x19d   : > { %1443 = vmatprep.subr.bf16.mxu0 %v4633_v63  ;;  %1572 = vmatprep.subr.bf16.mxu1 %v4633_v63 }
 0x19e   : > { %v577_v10 = vpop.f32.mrb[16].mxu0  ;;  %v706_v11 = vpop.f32.mrb[16].mxu1  ;;  %1029 = vmatprep.mubr.bf16.mxu0 %v752_v6  ;;  %1158 = vmatprep.mubr.bf16.mxu1 %v1087_v7 }
 0x19f   : > { %v579_v12 = vpop.f32.mrb[17].mxu0  ;;  %v708_v13 = vpop.f32.mrb[17].mxu1  ;;  %1030 = vmatmul.mubr.bf16.gmra.mrb[44].mxu0 %v751_v4  ;;  %1159 = vmatmul.mubr.bf16.gmra.mrb[44].mxu1 %v1086_v5  ;;  %v578_v14 = vadd.f32 %v577_v10, %v5346_v38  ;;  %v707_v18 = vadd.f32 %v706_v11, %v5346_v38  ;;  %v4646_v5 = vld [vmem:[#allocation5 + $0x2b0] ss:$8 sps:$4 sm:$0xff]   ;;  %v4651_v11 = vld [vmem:[#allocation5 + $0x2c4] ss:$8 sps:$4 sm:$0xff]  }
 0x1a0   : > { %v581_v15 = vpop.f32.mrb[18].mxu0  ;;  %v710_v16 = vpop.f32.mrb[18].mxu1  ;;  %1444 = vmatpush1.bf16.msra.mxu0 %v4631_v8  ;;  %1573 = vmatpush1.bf16.msra.mxu1 %v4631_v8  ;;  %v580_v24 = vadd.f32 %v579_v12, %v5349_v41  ;;  %v709_v25 = vadd.f32 %v708_v13, %v5349_v41 }
 0x1a1   : > { %v582_v19 = vadd.f32 %v581_v15, %v5346_v38  ;;  %v711_v20 = vadd.f32 %v710_v16, %v5346_v38  ;;  %v583_v21 = vpop.f32.mrb[19].mxu0  ;;  %v712_v22 = vpop.f32.mrb[19].mxu1  ;;  %1445 = vmatprep.subr.bf16.mxu0 %v4636_v9  ;;  %1574 = vmatprep.subr.bf16.mxu1 %v4636_v9 }
 0x1a2   : > { %v584_v26 = vadd.f32 %v583_v21, %v5349_v41  ;;  %v713_v27 = vadd.f32 %v712_v22, %v5349_v41  ;;  %v4654_v21 = vld [vmem:[#allocation5 + $0x2d4] ss:$8 sps:$4 sm:$0xff]  }
 0x1a3   : > { %v753_v28 = vpack.c.bf16 %v582_v19, %v578_v14  ;;  %v1088_v29 = vpack.c.bf16 %v711_v20, %v707_v18  ;;  %v4649_v20 = vld [vmem:[#allocation5 + $0x2c0] ss:$8 sps:$4 sm:$0xff]  }
 0x1a4   : > { %v754_v30 = vpack.c.bf16 %v584_v26, %v580_v24  ;;  %v1089_v31 = vpack.c.bf16 %v713_v27, %v709_v25  ;;  %1446 = vmatpush1.bf16.msra.mxu0 %v4634_v17  ;;  %1575 = vmatpush1.bf16.msra.mxu1 %v4634_v17 }
 0x1a5   : > { %1447 = vmatprep.subr.bf16.mxu0 %v4639_v23  ;;  %1576 = vmatprep.subr.bf16.mxu1 %v4639_v23 }
 0x1a6   : > { %v587_v34 = vpop.f32.mrb[20].mxu0  ;;  %v716_v36 = vpop.f32.mrb[20].mxu1  ;;  %1039 = vmatprep.mubr.bf16.mxu0 %v754_v30  ;;  %1168 = vmatprep.mubr.bf16.mxu1 %v1089_v31 }
 0x1a7   : > { %v589_v39 = vpop.f32.mrb[21].mxu0  ;;  %v718_v40 = vpop.f32.mrb[21].mxu1  ;;  %1040 = vmatmul.mubr.bf16.gmra.mrb[48].mxu0 %v753_v28  ;;  %1169 = vmatmul.mubr.bf16.gmra.mrb[48].mxu1 %v1088_v29  ;;  %v588_v42 = vadd.f32 %v587_v34, %v5346_v38  ;;  %v717_v46 = vadd.f32 %v716_v36, %v5346_v38  ;;  %v4652_v29 = vld [vmem:[#allocation5 + $0x2d0] ss:$8 sps:$4 sm:$0xff]  }
 0x1a8   : > { %v591_v43 = vpop.f32.mrb[22].mxu0  ;;  %v720_v44 = vpop.f32.mrb[22].mxu1  ;;  %1448 = vmatpush1.bf16.msra.mxu0 %v4637_v32  ;;  %1577 = vmatpush1.bf16.msra.mxu1 %v4637_v32  ;;  %v590_v52 = vadd.f32 %v589_v39, %v5349_v41  ;;  %v719_v53 = vadd.f32 %v718_v40, %v5349_v41 }
 0x1a9   : > { %v592_v47 = vadd.f32 %v591_v43, %v5346_v38  ;;  %v721_v48 = vadd.f32 %v720_v44, %v5346_v38  ;;  %v593_v49 = vpop.f32.mrb[23].mxu0  ;;  %v722_v50 = vpop.f32.mrb[23].mxu1  ;;  %1449 = vmatprep.subr.bf16.mxu0 %v4642_v33  ;;  %1578 = vmatprep.subr.bf16.mxu1 %v4642_v33 }
 0x1aa   : > { %v594_v54 = vadd.f32 %v593_v49, %v5349_v41  ;;  %v723_v55 = vadd.f32 %v722_v50, %v5349_v41  ;;  %v4658_v49 = vld [vmem:[#allocation5 + $0x2f0] ss:$8 sps:$4 sm:$0xff]   ;;  %v795_v50 = vld [vmem:[#allocation7 + $0x1] ss:$8 sm:$0x3] }
 0x1ab   : > { %v755_v56 = vpack.c.bf16 %v592_v47, %v588_v42  ;;  %v1090_v57 = vpack.c.bf16 %v721_v48, %v717_v46  ;;  %v4655_v47 = vld [vmem:[#allocation5 + $0x2e0] ss:$8 sps:$4 sm:$0xff]   ;;  %v4660_v48 = vld [vmem:[#allocation5 + $0x2f4] ss:$8 sps:$4 sm:$0xff]  }
 0x1ac   : > { %v756_v58 = vpack.c.bf16 %v594_v54, %v590_v52  ;;  %v1091_v59 = vpack.c.bf16 %v723_v55, %v719_v53  ;;  %1450 = vmatpush1.bf16.msra.mxu0 %v4640_v45  ;;  %1579 = vmatpush1.bf16.msra.mxu1 %v4640_v45  ;;  %v5419_v54 = vrot.slane %v795_v50, %v5343_v37 }
 0x1ad   : > { %1451 = vmatprep.subr.bf16.mxu0 %v4645_v51  ;;  %1580 = vmatprep.subr.bf16.mxu1 %v4645_v51  ;;  %v5416_v51 = vrot.slane %v795_v50, %v5341_v35  ;;  %v4675_v50 = vld [vmem:[#allocation5 + $0x344] ss:$8 sps:$4 sm:$0xff]  }
 0x1ae   : > { %v597_v62 = vpop.f32.mrb[24].mxu0  ;;  %v726_v63 = vpop.f32.mrb[24].mxu1  ;;  %1049 = vmatprep.mubr.bf16.mxu0 %v756_v58  ;;  %1178 = vmatprep.mubr.bf16.mxu1 %v1091_v59 }
 0x1af   : > { %v599_v0 = vpop.f32.mrb[25].mxu0  ;;  %v728_v1 = vpop.f32.mrb[25].mxu1  ;;  %1050 = vmatmul.mubr.bf16.gmra.mrb[52].mxu0 %v755_v56  ;;  %1179 = vmatmul.mubr.bf16.gmra.mrb[52].mxu1 %v1090_v57  ;;  %v598_v2 = vadd.f32 %v597_v62, %v5346_v38  ;;  %v727_v6 = vadd.f32 %v726_v63, %v5346_v38 }
 0x1b0   : > { %v601_v3 = vpop.f32.mrb[26].mxu0  ;;  %v730_v4 = vpop.f32.mrb[26].mxu1  ;;  %1452 = vmatpush1.bf16.msra.mxu0 %v4643_v60  ;;  %1581 = vmatpush1.bf16.msra.mxu1 %v4643_v60  ;;  %v600_v12 = vadd.f32 %v599_v0, %v5349_v41  ;;  %v729_v13 = vadd.f32 %v728_v1, %v5349_v41 }
 0x1b1   : > { %v602_v7 = vadd.f32 %v601_v3, %v5346_v38  ;;  %v731_v8 = vadd.f32 %v730_v4, %v5346_v38  ;;  %v603_v9 = vpop.f32.mrb[27].mxu0  ;;  %v732_v10 = vpop.f32.mrb[27].mxu1  ;;  %1453 = vmatprep.subr.bf16.mxu0 %v4648_v61  ;;  %1582 = vmatprep.subr.bf16.mxu1 %v4648_v61 }
 0x1b2   : > { %v604_v14 = vadd.f32 %v603_v9, %v5349_v41  ;;  %v733_v15 = vadd.f32 %v732_v10, %v5349_v41  ;;  %v4661_v9 = vld [vmem:[#allocation5 + $0x300] ss:$8 sps:$4 sm:$0xff]   ;;  %v4666_v10 = vld [vmem:[#allocation5 + $0x314] ss:$8 sps:$4 sm:$0xff]  }
 0x1b3   : > { %v757_v16 = vpack.c.bf16 %v602_v7, %v598_v2  ;;  %v1092_v17 = vpack.c.bf16 %v731_v8, %v727_v6 }
 0x1b4   : > { %v758_v18 = vpack.c.bf16 %v604_v14, %v600_v12  ;;  %v1093_v19 = vpack.c.bf16 %v733_v15, %v729_v13  ;;  %1454 = vmatpush1.bf16.msra.mxu0 %v4646_v5  ;;  %1583 = vmatpush1.bf16.msra.mxu1 %v4646_v5 }
 0x1b5   : > { %1455 = vmatprep.subr.bf16.mxu0 %v4651_v11  ;;  %1584 = vmatprep.subr.bf16.mxu1 %v4651_v11 }
 0x1b6   : > { %v607_v22 = vpop.f32.mrb[28].mxu0  ;;  %v736_v23 = vpop.f32.mrb[28].mxu1  ;;  %1059 = vmatprep.mubr.bf16.mxu0 %v758_v18  ;;  %1188 = vmatprep.mubr.bf16.mxu1 %v1093_v19  ;;  %v4664_v18 = vld [vmem:[#allocation5 + $0x310] ss:$8 sps:$4 sm:$0xff]  }
 0x1b7   : > { %v609_v24 = vpop.f32.mrb[29].mxu0  ;;  %v738_v25 = vpop.f32.mrb[29].mxu1  ;;  %1060 = vmatmul.mubr.bf16.gmra.mrb[56].mxu0 %v757_v16  ;;  %1189 = vmatmul.mubr.bf16.gmra.mrb[56].mxu1 %v1092_v17  ;;  %v608_v26 = vadd.f32 %v607_v22, %v5346_v38  ;;  %v737_v30 = vadd.f32 %v736_v23, %v5346_v38 }
 0x1b8   : > { %v611_v27 = vpop.f32.mrb[30].mxu0  ;;  %v740_v28 = vpop.f32.mrb[30].mxu1  ;;  %1456 = vmatpush1.bf16.msra.mxu0 %v4649_v20  ;;  %1585 = vmatpush1.bf16.msra.mxu1 %v4649_v20  ;;  %v610_v36 = vadd.f32 %v609_v24, %v5349_v41  ;;  %v739_v39 = vadd.f32 %v738_v25, %v5349_v41  ;;  %v4669_v24 = vld [vmem:[#allocation5 + $0x324] ss:$8 sps:$4 sm:$0xff]  }
 0x1b9   : > { %v612_v31 = vadd.f32 %v611_v27, %v5346_v38  ;;  %v741_v32 = vadd.f32 %v740_v28, %v5346_v38  ;;  %v613_v33 = vpop.f32.mrb[31].mxu0  ;;  %v742_v34 = vpop.f32.mrb[31].mxu1  ;;  %1457 = vmatprep.subr.bf16.mxu0 %v4654_v21  ;;  %1586 = vmatprep.subr.bf16.mxu1 %v4654_v21  ;;  %v4657_v38 = vld [vmem:[#allocation5 + $0x2e4] ss:$8 sps:$4 sm:$0xff]  }
 0x1ba   : > { %v614_v40 = vadd.f32 %v613_v33, %v5349_v41  ;;  %v743_v42 = vadd.f32 %v742_v34, %v5349_v41  ;;  %v4663_v41 = vld [vmem:[#allocation5 + $0x304] ss:$8 sps:$4 sm:$0xff]   ;;  %v4667_v33 = vld [vmem:[#allocation5 + $0x320] ss:$8 sps:$4 sm:$0xff]   ;;  %v4672_v34 = vld [vmem:[#allocation5 + $0x334] ss:$8 sps:$4 sm:$0xff]  }
 0x1bb   : > { %v759_v43 = vpack.c.bf16 %v612_v31, %v608_v26  ;;  %v1094_v44 = vpack.c.bf16 %v741_v32, %v737_v30 }
 0x1bc   : > { %v760_v45 = vpack.c.bf16 %v614_v40, %v610_v36  ;;  %v1095_v46 = vpack.c.bf16 %v743_v42, %v739_v39  ;;  %1458 = vmatpush1.bf16.msra.mxu0 %v4652_v29  ;;  %1587 = vmatpush1.bf16.msra.mxu1 %v4652_v29 }
 0x1bd   : > { %1459 = vmatprep.subr.bf16.mxu0 %v4657_v38  ;;  %1588 = vmatprep.subr.bf16.mxu1 %v4657_v38 }
 0x1be   : > { %1069 = vmatprep.mubr.bf16.mxu0 %v760_v45  ;;  %1198 = vmatprep.mubr.bf16.mxu1 %v1095_v46  ;;  %v4670_v46 = vld [vmem:[#allocation5 + $0x330] ss:$8 sps:$4 sm:$0xff]  }
 0x1bf   : > { %1070 = vmatmul.mubr.bf16.gmra.mrb[60].mxu0 %v759_v43  ;;  %1199 = vmatmul.mubr.bf16.gmra.mrb[60].mxu1 %v1094_v44 }
 0x1c0   : > { %1460 = vmatpush1.bf16.msra.mxu0 %v4655_v47  ;;  %1589 = vmatpush1.bf16.msra.mxu1 %v4655_v47 }
 0x1c1   : > { %1461 = vmatprep.subr.bf16.mxu0 %v4660_v48  ;;  %1590 = vmatprep.subr.bf16.mxu1 %v4660_v48 }
 0x1c4   : > { %1462 = vmatpush1.bf16.msra.mxu0 %v4658_v49  ;;  %1591 = vmatpush1.bf16.msra.mxu1 %v4658_v49 }
 0x1c5   : > { %1895 = vmatprep.subr.bf16.mxu0 %v4663_v41  ;;  %2024 = vmatprep.subr.bf16.mxu1 %v4663_v41 }
 0x25a   : > { %v1001_v52 = vpop.f32.mrb[32].mxu0  ;;  %v1130_v53 = vpop.f32.mrb[32].mxu1 }
 0x25b   : > { %v1003_v55 = vpop.f32.mrb[33].mxu0  ;;  %v1132_v56 = vpop.f32.mrb[33].mxu1  ;;  %v1002_v59 = vadd.f32 %v1001_v52, %v5416_v51  ;;  %v1131_v60 = vadd.f32 %v1130_v53, %v5416_v51 }
 0x25c   : > { %v1005_v57 = vpop.f32.mrb[34].mxu0  ;;  %v1134_v58 = vpop.f32.mrb[34].mxu1  ;;  %v1004_v1 = vadd.f32 %v1003_v55, %v5419_v54  ;;  %v1133_v2 = vadd.f32 %v1132_v56, %v5419_v54 }
 0x25d   : > { %v1006_v61 = vadd.f32 %v1005_v57, %v5416_v51  ;;  %v1135_v62 = vadd.f32 %v1134_v58, %v5416_v51  ;;  %v1007_v63 = vpop.f32.mrb[35].mxu0  ;;  %v1136_v0 = vpop.f32.mrb[35].mxu1 }
 0x25e   : > { %v1008_v3 = vadd.f32 %v1007_v63, %v5419_v54  ;;  %v1137_v4 = vadd.f32 %v1136_v0, %v5419_v54 }
 0x25f   : > { %v1209_v5 = vpack.c.bf16 %v1006_v61, %v1002_v59  ;;  %v1544_v6 = vpack.c.bf16 %v1135_v62, %v1131_v60  ;;  %v4673_v61 = vld [vmem:[#allocation5 + $0x340] ss:$8 sps:$4 sm:$0xff]   ;;  %v4678_v62 = vld [vmem:[#allocation5 + $0x354] ss:$8 sps:$4 sm:$0xff]  }
 0x260   : > { %v1210_v7 = vpack.c.bf16 %v1008_v3, %v1004_v1  ;;  %v1545_v8 = vpack.c.bf16 %v1137_v4, %v1133_v2 }
 0x262   : > { %v1011_v11 = vpop.f32.mrb[36].mxu0  ;;  %v1140_v12 = vpop.f32.mrb[36].mxu1  ;;  %1463 = vmatprep.mubr.bf16.mxu0 %v1210_v7  ;;  %1592 = vmatprep.mubr.bf16.mxu1 %v1545_v8 }
 0x263   : > { %v1013_v13 = vpop.f32.mrb[37].mxu0  ;;  %v1142_v14 = vpop.f32.mrb[37].mxu1  ;;  %1464 = vmatmul.mubr.bf16.vlgmr.msra.gmra.mrb[64].mxu0 %v1209_v5  ;;  %1593 = vmatmul.mubr.bf16.vlgmr.msra.gmra.mrb[64].mxu1 %v1544_v6  ;;  %v1012_v15 = vadd.f32 %v1011_v11, %v5416_v51  ;;  %v1141_v19 = vadd.f32 %v1140_v12, %v5416_v51  ;;  %v4676_v6 = vld [vmem:[#allocation5 + $0x350] ss:$8 sps:$4 sm:$0xff]   ;;  %v4681_v12 = vld [vmem:[#allocation5 + $0x364] ss:$8 sps:$4 sm:$0xff]  }
 0x264   : > { %v1015_v16 = vpop.f32.mrb[38].mxu0  ;;  %v1144_v17 = vpop.f32.mrb[38].mxu1  ;;  %1896 = vmatpush1.bf16.msra.mxu0 %v4661_v9  ;;  %2025 = vmatpush1.bf16.msra.mxu1 %v4661_v9  ;;  %v1014_v25 = vadd.f32 %v1013_v13, %v5419_v54  ;;  %v1143_v26 = vadd.f32 %v1142_v14, %v5419_v54 }
 0x265   : > { %v1016_v20 = vadd.f32 %v1015_v16, %v5416_v51  ;;  %v1145_v21 = vadd.f32 %v1144_v17, %v5416_v51  ;;  %v1017_v22 = vpop.f32.mrb[39].mxu0  ;;  %v1146_v23 = vpop.f32.mrb[39].mxu1  ;;  %1897 = vmatprep.subr.bf16.mxu0 %v4666_v10  ;;  %2026 = vmatprep.subr.bf16.mxu1 %v4666_v10 }
 0x266   : > { %v1018_v27 = vadd.f32 %v1017_v22, %v5419_v54  ;;  %v1147_v28 = vadd.f32 %v1146_v23, %v5419_v54  ;;  %v4684_v22 = vld [vmem:[#allocation5 + $0x374] ss:$8 sps:$4 sm:$0xff]  }
 0x267   : > { %v1211_v29 = vpack.c.bf16 %v1016_v20, %v1012_v15  ;;  %v1546_v30 = vpack.c.bf16 %v1145_v21, %v1141_v19  ;;  %v4679_v21 = vld [vmem:[#allocation5 + $0x360] ss:$8 sps:$4 sm:$0xff]  }
 0x268   : > { %v1212_v31 = vpack.c.bf16 %v1018_v27, %v1014_v25  ;;  %v1547_v32 = vpack.c.bf16 %v1147_v28, %v1143_v26  ;;  %1898 = vmatpush1.bf16.msra.mxu0 %v4664_v18  ;;  %2027 = vmatpush1.bf16.msra.mxu1 %v4664_v18 }
 0x269   : > { %1899 = vmatprep.subr.bf16.mxu0 %v4669_v24  ;;  %2028 = vmatprep.subr.bf16.mxu1 %v4669_v24 }
 0x26a   : > { %v1021_v36 = vpop.f32.mrb[40].mxu0  ;;  %v1150_v39 = vpop.f32.mrb[40].mxu1  ;;  %1473 = vmatprep.mubr.bf16.mxu0 %v1212_v31  ;;  %1602 = vmatprep.mubr.bf16.mxu1 %v1547_v32 }
 0x26b   : > { %v1023_v40 = vpop.f32.mrb[41].mxu0  ;;  %v1152_v42 = vpop.f32.mrb[41].mxu1  ;;  %1474 = vmatmul.mubr.bf16.gmra.mrb[68].mxu0 %v1211_v29  ;;  %1603 = vmatmul.mubr.bf16.gmra.mrb[68].mxu1 %v1546_v30  ;;  %v1022_v43 = vadd.f32 %v1021_v36, %v5416_v51  ;;  %v1151_v38 = vadd.f32 %v1150_v39, %v5416_v51  ;;  %v4682_v30 = vld [vmem:[#allocation5 + $0x370] ss:$8 sps:$4 sm:$0xff]   ;;  %v4687_v39 = vld [vmem:[#allocation5 + $0x384] ss:$8 sps:$4 sm:$0xff]  }
 0x26c   : > { %v1025_v44 = vpop.f32.mrb[42].mxu0  ;;  %v1154_v45 = vpop.f32.mrb[42].mxu1  ;;  %1900 = vmatpush1.bf16.msra.mxu0 %v4667_v33  ;;  %2029 = vmatpush1.bf16.msra.mxu1 %v4667_v33  ;;  %v1024_v52 = vadd.f32 %v1023_v40, %v5419_v54  ;;  %v1153_v53 = vadd.f32 %v1152_v42, %v5419_v54 }
 0x26d   : > { %v1026_v47 = vadd.f32 %v1025_v44, %v5416_v51  ;;  %v1155_v48 = vadd.f32 %v1154_v45, %v5416_v51  ;;  %v1027_v49 = vpop.f32.mrb[43].mxu0  ;;  %v1156_v41 = vpop.f32.mrb[43].mxu1  ;;  %1901 = vmatprep.subr.bf16.mxu0 %v4672_v34  ;;  %2030 = vmatprep.subr.bf16.mxu1 %v4672_v34 }
 0x26e   : > { %v1028_v55 = vadd.f32 %v1027_v49, %v5419_v54  ;;  %v1157_v56 = vadd.f32 %v1156_v41, %v5419_v54  ;;  %v4690_v49 = vld [vmem:[#allocation5 + $0x394] ss:$8 sps:$4 sm:$0xff]  }
 0x26f   : > { %v1213_v57 = vpack.c.bf16 %v1026_v47, %v1022_v43  ;;  %v1548_v58 = vpack.c.bf16 %v1155_v48, %v1151_v38  ;;  %v4685_v48 = vld [vmem:[#allocation5 + $0x380] ss:$8 sps:$4 sm:$0xff]  }
 0x270   : > { %v1214_v59 = vpack.c.bf16 %v1028_v55, %v1024_v52  ;;  %v1549_v60 = vpack.c.bf16 %v1157_v56, %v1153_v53  ;;  %1902 = vmatpush1.bf16.msra.mxu0 %v4670_v46  ;;  %2031 = vmatpush1.bf16.msra.mxu1 %v4670_v46 }
 0x271   : > { %1903 = vmatprep.subr.bf16.mxu0 %v4675_v50  ;;  %2032 = vmatprep.subr.bf16.mxu1 %v4675_v50 }
 0x272   : > { %v1031_v63 = vpop.f32.mrb[44].mxu0  ;;  %v1160_v0 = vpop.f32.mrb[44].mxu1  ;;  %1483 = vmatprep.mubr.bf16.mxu0 %v1214_v59  ;;  %1612 = vmatprep.mubr.bf16.mxu1 %v1549_v60 }
 0x273   : > { %v1033_v1 = vpop.f32.mrb[45].mxu0  ;;  %v1162_v2 = vpop.f32.mrb[45].mxu1  ;;  %1484 = vmatmul.mubr.bf16.gmra.mrb[72].mxu0 %v1213_v57  ;;  %1613 = vmatmul.mubr.bf16.gmra.mrb[72].mxu1 %v1548_v58  ;;  %v1032_v3 = vadd.f32 %v1031_v63, %v5416_v51  ;;  %v1161_v7 = vadd.f32 %v1160_v0, %v5416_v51  ;;  %v4688_v58 = vld [vmem:[#allocation5 + $0x390] ss:$8 sps:$4 sm:$0xff]   ;;  %v4693_v0 = vld [vmem:[#allocation5 + $0x3a4] ss:$8 sps:$4 sm:$0xff]  }
 0x274   : > { %v1035_v4 = vpop.f32.mrb[46].mxu0  ;;  %v1164_v5 = vpop.f32.mrb[46].mxu1  ;;  %1904 = vmatpush1.bf16.msra.mxu0 %v4673_v61  ;;  %2033 = vmatpush1.bf16.msra.mxu1 %v4673_v61  ;;  %v1034_v13 = vadd.f32 %v1033_v1, %v5419_v54  ;;  %v1163_v14 = vadd.f32 %v1162_v2, %v5419_v54 }
 0x275   : > { %v1036_v8 = vadd.f32 %v1035_v4, %v5416_v51  ;;  %v1165_v9 = vadd.f32 %v1164_v5, %v5416_v51  ;;  %v1037_v10 = vpop.f32.mrb[47].mxu0  ;;  %v1166_v11 = vpop.f32.mrb[47].mxu1  ;;  %1905 = vmatprep.subr.bf16.mxu0 %v4678_v62  ;;  %2034 = vmatprep.subr.bf16.mxu1 %v4678_v62 }
 0x276   : > { %v1038_v15 = vadd.f32 %v1037_v10, %v5419_v54  ;;  %v1167_v16 = vadd.f32 %v1166_v11, %v5419_v54  ;;  %v4696_v10 = vld [vmem:[#allocation5 + $0x3b4] ss:$8 sps:$4 sm:$0xff]  }
 0x277   : > { %v1215_v17 = vpack.c.bf16 %v1036_v8, %v1032_v3  ;;  %v1550_v18 = vpack.c.bf16 %v1165_v9, %v1161_v7  ;;  %v4691_v9 = vld [vmem:[#allocation5 + $0x3a0] ss:$8 sps:$4 sm:$0xff]  }
 0x278   : > { %v1216_v19 = vpack.c.bf16 %v1038_v15, %v1034_v13  ;;  %v1551_v20 = vpack.c.bf16 %v1167_v16, %v1163_v14  ;;  %1906 = vmatpush1.bf16.msra.mxu0 %v4676_v6  ;;  %2035 = vmatpush1.bf16.msra.mxu1 %v4676_v6 }
 0x279   : > { %1907 = vmatprep.subr.bf16.mxu0 %v4681_v12  ;;  %2036 = vmatprep.subr.bf16.mxu1 %v4681_v12 }
 0x27a   : > { %v1041_v23 = vpop.f32.mrb[48].mxu0  ;;  %v1170_v24 = vpop.f32.mrb[48].mxu1  ;;  %1493 = vmatprep.mubr.bf16.mxu0 %v1216_v19  ;;  %1622 = vmatprep.mubr.bf16.mxu1 %v1551_v20 }
 0x27b   : > { %v1043_v25 = vpop.f32.mrb[49].mxu0  ;;  %v1172_v26 = vpop.f32.mrb[49].mxu1  ;;  %1494 = vmatmul.mubr.bf16.gmra.mrb[76].mxu0 %v1215_v17  ;;  %1623 = vmatmul.mubr.bf16.gmra.mrb[76].mxu1 %v1550_v18  ;;  %v1042_v27 = vadd.f32 %v1041_v23, %v5416_v51  ;;  %v1171_v31 = vadd.f32 %v1170_v24, %v5416_v51  ;;  %v4694_v18 = vld [vmem:[#allocation5 + $0x3b0] ss:$8 sps:$4 sm:$0xff]   ;;  %v4699_v24 = vld [vmem:[#allocation5 + $0x3c4] ss:$8 sps:$4 sm:$0xff]  }
 0x27c   : > { %v1045_v28 = vpop.f32.mrb[50].mxu0  ;;  %v1174_v29 = vpop.f32.mrb[50].mxu1  ;;  %1908 = vmatpush1.bf16.msra.mxu0 %v4679_v21  ;;  %2037 = vmatpush1.bf16.msra.mxu1 %v4679_v21  ;;  %v1044_v40 = vadd.f32 %v1043_v25, %v5419_v54  ;;  %v1173_v42 = vadd.f32 %v1172_v26, %v5419_v54 }
 0x27d   : > { %v1046_v32 = vadd.f32 %v1045_v28, %v5416_v51  ;;  %v1175_v33 = vadd.f32 %v1174_v29, %v5416_v51  ;;  %v1047_v34 = vpop.f32.mrb[51].mxu0  ;;  %v1176_v36 = vpop.f32.mrb[51].mxu1  ;;  %1909 = vmatprep.subr.bf16.mxu0 %v4684_v22  ;;  %2038 = vmatprep.subr.bf16.mxu1 %v4684_v22 }
 0x27e   : > { %v1048_v43 = vadd.f32 %v1047_v34, %v5419_v54  ;;  %v1177_v44 = vadd.f32 %v1176_v36, %v5419_v54  ;;  %v4702_v34 = vld [vmem:[#allocation5 + $0x3d4] ss:$8 sps:$4 sm:$0xff]  }
 0x27f   : > { %v1217_v45 = vpack.c.bf16 %v1046_v32, %v1042_v27  ;;  %v1552_v46 = vpack.c.bf16 %v1175_v33, %v1171_v31  ;;  %v4697_v33 = vld [vmem:[#allocation5 + $0x3c0] ss:$8 sps:$4 sm:$0xff]  }
 0x280   : > { %v1218_v38 = vpack.c.bf16 %v1048_v43, %v1044_v40  ;;  %v1553_v47 = vpack.c.bf16 %v1177_v44, %v1173_v42  ;;  %1910 = vmatpush1.bf16.msra.mxu0 %v4682_v30  ;;  %2039 = vmatpush1.bf16.msra.mxu1 %v4682_v30 }
 0x281   : > { %1911 = vmatprep.subr.bf16.mxu0 %v4687_v39  ;;  %2040 = vmatprep.subr.bf16.mxu1 %v4687_v39 }
 0x282   : > { %v1051_v41 = vpop.f32.mrb[52].mxu0  ;;  %v1180_v50 = vpop.f32.mrb[52].mxu1  ;;  %1503 = vmatprep.mubr.bf16.mxu0 %v1218_v38  ;;  %1632 = vmatprep.mubr.bf16.mxu1 %v1553_v47 }
 0x283   : > { %v1053_v52 = vpop.f32.mrb[53].mxu0  ;;  %v1182_v53 = vpop.f32.mrb[53].mxu1  ;;  %1504 = vmatmul.mubr.bf16.gmra.mrb[80].mxu0 %v1217_v45  ;;  %1633 = vmatmul.mubr.bf16.gmra.mrb[80].mxu1 %v1552_v46  ;;  %v1052_v55 = vadd.f32 %v1051_v41, %v5416_v51  ;;  %v1181_v59 = vadd.f32 %v1180_v50, %v5416_v51  ;;  %v4700_v46 = vld [vmem:[#allocation5 + $0x3d0] ss:$8 sps:$4 sm:$0xff]  }
 0x284   : > { %v1055_v56 = vpop.f32.mrb[54].mxu0  ;;  %v1184_v57 = vpop.f32.mrb[54].mxu1  ;;  %1912 = vmatpush1.bf16.msra.mxu0 %v4685_v48  ;;  %2041 = vmatpush1.bf16.msra.mxu1 %v4685_v48  ;;  %v1054_v1 = vadd.f32 %v1053_v52, %v5419_v54  ;;  %v1183_v2 = vadd.f32 %v1182_v53, %v5419_v54 }
 0x285   : > { %v1056_v60 = vadd.f32 %v1055_v56, %v5416_v51  ;;  %v1185_v61 = vadd.f32 %v1184_v57, %v5416_v51  ;;  %v1057_v62 = vpop.f32.mrb[55].mxu0  ;;  %v1186_v63 = vpop.f32.mrb[55].mxu1  ;;  %1913 = vmatprep.subr.bf16.mxu0 %v4690_v49  ;;  %2042 = vmatprep.subr.bf16.mxu1 %v4690_v49 }
 0x286   : > { %v1058_v3 = vadd.f32 %v1057_v62, %v5419_v54  ;;  %v1187_v4 = vadd.f32 %v1186_v63, %v5419_v54  ;;  %v4706_v62 = vld [vmem:[#allocation5 + $0x3f0] ss:$8 sps:$4 sm:$0xff]   ;;  %v1259_v63 = vld [vmem:[#allocation7 + $0x2] ss:$8 sm:$0x3] }
 0x287   : > { %v1219_v5 = vpack.c.bf16 %v1056_v60, %v1052_v55  ;;  %v1554_v6 = vpack.c.bf16 %v1185_v61, %v1181_v59  ;;  %v4703_v60 = vld [vmem:[#allocation5 + $0x3e0] ss:$8 sps:$4 sm:$0xff]   ;;  %v4708_v61 = vld [vmem:[#allocation5 + $0x3f4] ss:$8 sps:$4 sm:$0xff]  }
 0x288   : > { %v1220_v7 = vpack.c.bf16 %v1058_v3, %v1054_v1  ;;  %v1555_v8 = vpack.c.bf16 %v1187_v4, %v1183_v2  ;;  %1914 = vmatpush1.bf16.msra.mxu0 %v4688_v58  ;;  %2043 = vmatpush1.bf16.msra.mxu1 %v4688_v58  ;;  %v5489_v3 = vrot.slane %v1259_v63, %v5343_v37 }
 0x289   : > { %1915 = vmatprep.subr.bf16.mxu0 %v4693_v0  ;;  %2044 = vmatprep.subr.bf16.mxu1 %v4693_v0  ;;  %v5486_v0 = vrot.slane %v1259_v63, %v5341_v35  ;;  %v4723_v63 = vld [vmem:[#allocation5 + $0x444] ss:$8 sps:$4 sm:$0xff]  }
 0x28a   : > { %v1061_v11 = vpop.f32.mrb[56].mxu0  ;;  %v1190_v12 = vpop.f32.mrb[56].mxu1  ;;  %1513 = vmatprep.mubr.bf16.mxu0 %v1220_v7  ;;  %1642 = vmatprep.mubr.bf16.mxu1 %v1555_v8 }
 0x28b   : > { %v1063_v13 = vpop.f32.mrb[57].mxu0  ;;  %v1192_v14 = vpop.f32.mrb[57].mxu1  ;;  %1514 = vmatmul.mubr.bf16.gmra.mrb[84].mxu0 %v1219_v5  ;;  %1643 = vmatmul.mubr.bf16.gmra.mrb[84].mxu1 %v1554_v6  ;;  %v1062_v15 = vadd.f32 %v1061_v11, %v5416_v51  ;;  %v1191_v19 = vadd.f32 %v1190_v12, %v5416_v51 }
 0x28c   : > { %v1065_v16 = vpop.f32.mrb[58].mxu0  ;;  %v1194_v17 = vpop.f32.mrb[58].mxu1  ;;  %1916 = vmatpush1.bf16.msra.mxu0 %v4691_v9  ;;  %2045 = vmatpush1.bf16.msra.mxu1 %v4691_v9  ;;  %v1064_v25 = vadd.f32 %v1063_v13, %v5419_v54  ;;  %v1193_v26 = vadd.f32 %v1192_v14, %v5419_v54 }
 0x28d   : > { %v1066_v20 = vadd.f32 %v1065_v16, %v5416_v51  ;;  %v1195_v21 = vadd.f32 %v1194_v17, %v5416_v51  ;;  %v1067_v22 = vpop.f32.mrb[59].mxu0  ;;  %v1196_v23 = vpop.f32.mrb[59].mxu1  ;;  %1917 = vmatprep.subr.bf16.mxu0 %v4696_v10  ;;  %2046 = vmatprep.subr.bf16.mxu1 %v4696_v10 }
 0x28e   : > { %v1068_v27 = vadd.f32 %v1067_v22, %v5419_v54  ;;  %v1197_v28 = vadd.f32 %v1196_v23, %v5419_v54  ;;  %v4709_v22 = vld [vmem:[#allocation5 + $0x400] ss:$8 sps:$4 sm:$0xff]   ;;  %v4714_v23 = vld [vmem:[#allocation5 + $0x414] ss:$8 sps:$4 sm:$0xff]  }
 0x28f   : > { %v1221_v29 = vpack.c.bf16 %v1066_v20, %v1062_v15  ;;  %v1556_v30 = vpack.c.bf16 %v1195_v21, %v1191_v19 }
 0x290   : > { %v1222_v31 = vpack.c.bf16 %v1068_v27, %v1064_v25  ;;  %v1557_v32 = vpack.c.bf16 %v1197_v28, %v1193_v26  ;;  %1918 = vmatpush1.bf16.msra.mxu0 %v4694_v18  ;;  %2047 = vmatpush1.bf16.msra.mxu1 %v4694_v18 }
 0x291   : > { %1919 = vmatprep.subr.bf16.mxu0 %v4699_v24  ;;  %2048 = vmatprep.subr.bf16.mxu1 %v4699_v24 }
 0x292   : > { %v1071_v36 = vpop.f32.mrb[60].mxu0  ;;  %v1200_v39 = vpop.f32.mrb[60].mxu1  ;;  %1523 = vmatprep.mubr.bf16.mxu0 %v1222_v31  ;;  %1652 = vmatprep.mubr.bf16.mxu1 %v1557_v32  ;;  %v4712_v31 = vld [vmem:[#allocation5 + $0x410] ss:$8 sps:$4 sm:$0xff]  }
 0x293   : > { %v1073_v40 = vpop.f32.mrb[61].mxu0  ;;  %v1202_v42 = vpop.f32.mrb[61].mxu1  ;;  %1524 = vmatmul.mubr.bf16.gmra.mrb[88].mxu0 %v1221_v29  ;;  %1653 = vmatmul.mubr.bf16.gmra.mrb[88].mxu1 %v1556_v30  ;;  %v1072_v43 = vadd.f32 %v1071_v36, %v5416_v51  ;;  %v1201_v38 = vadd.f32 %v1200_v39, %v5416_v51 }
 0x294   : > { %v1075_v44 = vpop.f32.mrb[62].mxu0  ;;  %v1204_v45 = vpop.f32.mrb[62].mxu1  ;;  %1920 = vmatpush1.bf16.msra.mxu0 %v4697_v33  ;;  %2049 = vmatpush1.bf16.msra.mxu1 %v4697_v33  ;;  %v1074_v50 = vadd.f32 %v1073_v40, %v5419_v54  ;;  %v1203_v52 = vadd.f32 %v1202_v42, %v5419_v54  ;;  %v4717_v40 = vld [vmem:[#allocation5 + $0x424] ss:$8 sps:$4 sm:$0xff]  }
 0x295   : > { %v1076_v47 = vadd.f32 %v1075_v44, %v5416_v51  ;;  %v1205_v48 = vadd.f32 %v1204_v45, %v5416_v51  ;;  %v1077_v49 = vpop.f32.mrb[63].mxu0  ;;  %v1206_v41 = vpop.f32.mrb[63].mxu1  ;;  %1921 = vmatprep.subr.bf16.mxu0 %v4702_v34  ;;  %2050 = vmatprep.subr.bf16.mxu1 %v4702_v34  ;;  %v4705_v51 = vld [vmem:[#allocation5 + $0x3e4] ss:$8 sps:$4 sm:$0xff]  }
 0x296   : > { %v1078_v53 = vadd.f32 %v1077_v49, %v5419_v54  ;;  %v1207_v55 = vadd.f32 %v1206_v41, %v5419_v54  ;;  %v4711_v54 = vld [vmem:[#allocation5 + $0x404] ss:$8 sps:$4 sm:$0xff]   ;;  %v4715_v49 = vld [vmem:[#allocation5 + $0x420] ss:$8 sps:$4 sm:$0xff]   ;;  %v4720_v41 = vld [vmem:[#allocation5 + $0x434] ss:$8 sps:$4 sm:$0xff]  }
 0x297   : > { %v1223_v56 = vpack.c.bf16 %v1076_v47, %v1072_v43  ;;  %v1558_v57 = vpack.c.bf16 %v1205_v48, %v1201_v38 }
 0x298   : > { %v1224_v58 = vpack.c.bf16 %v1078_v53, %v1074_v50  ;;  %v1559_v59 = vpack.c.bf16 %v1207_v55, %v1203_v52  ;;  %1922 = vmatpush1.bf16.msra.mxu0 %v4700_v46  ;;  %2051 = vmatpush1.bf16.msra.mxu1 %v4700_v46 }
 0x299   : > { %1923 = vmatprep.subr.bf16.mxu0 %v4705_v51  ;;  %2052 = vmatprep.subr.bf16.mxu1 %v4705_v51 }
 0x29a   : > { %1533 = vmatprep.mubr.bf16.mxu0 %v1224_v58  ;;  %1662 = vmatprep.mubr.bf16.mxu1 %v1559_v59  ;;  %v4718_v59 = vld [vmem:[#allocation5 + $0x430] ss:$8 sps:$4 sm:$0xff]  }
 0x29b   : > { %1534 = vmatmul.mubr.bf16.gmra.mrb[92].mxu0 %v1223_v56  ;;  %1663 = vmatmul.mubr.bf16.gmra.mrb[92].mxu1 %v1558_v57 }
 0x29c   : > { %1924 = vmatpush1.bf16.msra.mxu0 %v4703_v60  ;;  %2053 = vmatpush1.bf16.msra.mxu1 %v4703_v60 }
 0x29d   : > { %1925 = vmatprep.subr.bf16.mxu0 %v4708_v61  ;;  %2054 = vmatprep.subr.bf16.mxu1 %v4708_v61 }
 0x2a0   : > { %1926 = vmatpush1.bf16.msra.mxu0 %v4706_v62  ;;  %2055 = vmatpush1.bf16.msra.mxu1 %v4706_v62 }
 0x2a1   : > { %2359 = vmatprep.subr.bf16.mxu0 %v4711_v54  ;;  %2488 = vmatprep.subr.bf16.mxu1 %v4711_v54 }
 0x336   : > { %v1465_v1 = vpop.f32.mrb[64].mxu0  ;;  %v1594_v2 = vpop.f32.mrb[64].mxu1 }
 0x337   : > { %v1467_v4 = vpop.f32.mrb[65].mxu0  ;;  %v1596_v5 = vpop.f32.mrb[65].mxu1  ;;  %v1466_v8 = vadd.f32 %v1465_v1, %v5486_v0  ;;  %v1595_v9 = vadd.f32 %v1594_v2, %v5486_v0 }
 0x338   : > { %v1469_v6 = vpop.f32.mrb[66].mxu0  ;;  %v1598_v7 = vpop.f32.mrb[66].mxu1  ;;  %v1468_v14 = vadd.f32 %v1467_v4, %v5489_v3  ;;  %v1597_v15 = vadd.f32 %v1596_v5, %v5489_v3 }
 0x339   : > { %v1470_v10 = vadd.f32 %v1469_v6, %v5486_v0  ;;  %v1599_v11 = vadd.f32 %v1598_v7, %v5486_v0  ;;  %v1471_v12 = vpop.f32.mrb[67].mxu0  ;;  %v1600_v13 = vpop.f32.mrb[67].mxu1 }
 0x33a   : > { %v1472_v16 = vadd.f32 %v1471_v12, %v5489_v3  ;;  %v1601_v17 = vadd.f32 %v1600_v13, %v5489_v3 }
 0x33b   : > { %v1673_v18 = vpack.c.bf16 %v1470_v10, %v1466_v8  ;;  %v2008_v19 = vpack.c.bf16 %v1599_v11, %v1595_v9  ;;  %v4721_v10 = vld [vmem:[#allocation5 + $0x440] ss:$8 sps:$4 sm:$0xff]   ;;  %v4726_v11 = vld [vmem:[#allocation5 + $0x454] ss:$8 sps:$4 sm:$0xff]  }
 0x33c   : > { %v1674_v20 = vpack.c.bf16 %v1472_v16, %v1468_v14  ;;  %v2009_v21 = vpack.c.bf16 %v1601_v17, %v1597_v15 }
 0x33e   : > { %v1475_v24 = vpop.f32.mrb[68].mxu0  ;;  %v1604_v25 = vpop.f32.mrb[68].mxu1  ;;  %1927 = vmatprep.mubr.bf16.mxu0 %v1674_v20  ;;  %2056 = vmatprep.mubr.bf16.mxu1 %v2009_v21 }
 0x33f   : > { %v1477_v26 = vpop.f32.mrb[69].mxu0  ;;  %v1606_v27 = vpop.f32.mrb[69].mxu1  ;;  %1928 = vmatmul.mubr.bf16.vlgmr.msra.gmra.mrb[96].mxu0 %v1673_v18  ;;  %2057 = vmatmul.mubr.bf16.vlgmr.msra.gmra.mrb[96].mxu1 %v2008_v19  ;;  %v1476_v28 = vadd.f32 %v1475_v24, %v5486_v0  ;;  %v1605_v32 = vadd.f32 %v1604_v25, %v5486_v0  ;;  %v4724_v19 = vld [vmem:[#allocation5 + $0x450] ss:$8 sps:$4 sm:$0xff]   ;;  %v4729_v25 = vld [vmem:[#allocation5 + $0x464] ss:$8 sps:$4 sm:$0xff]  }
 0x340   : > { %v1479_v29 = vpop.f32.mrb[70].mxu0  ;;  %v1608_v30 = vpop.f32.mrb[70].mxu1  ;;  %2360 = vmatpush1.bf16.msra.mxu0 %v4709_v22  ;;  %2489 = vmatpush1.bf16.msra.mxu1 %v4709_v22  ;;  %v1478_v42 = vadd.f32 %v1477_v26, %v5489_v3  ;;  %v1607_v43 = vadd.f32 %v1606_v27, %v5489_v3 }
 0x341   : > { %v1480_v33 = vadd.f32 %v1479_v29, %v5486_v0  ;;  %v1609_v34 = vadd.f32 %v1608_v30, %v5486_v0  ;;  %v1481_v36 = vpop.f32.mrb[71].mxu0  ;;  %v1610_v39 = vpop.f32.mrb[71].mxu1  ;;  %2361 = vmatprep.subr.bf16.mxu0 %v4714_v23  ;;  %2490 = vmatprep.subr.bf16.mxu1 %v4714_v23 }
 0x342   : > { %v1482_v44 = vadd.f32 %v1481_v36, %v5489_v3  ;;  %v1611_v45 = vadd.f32 %v1610_v39, %v5489_v3  ;;  %v4732_v36 = vld [vmem:[#allocation5 + $0x474] ss:$8 sps:$4 sm:$0xff]  }
 0x343   : > { %v1675_v46 = vpack.c.bf16 %v1480_v33, %v1476_v28  ;;  %v2010_v38 = vpack.c.bf16 %v1609_v34, %v1605_v32  ;;  %v4727_v34 = vld [vmem:[#allocation5 + $0x460] ss:$8 sps:$4 sm:$0xff]  }
 0x344   : > { %v1676_v47 = vpack.c.bf16 %v1482_v44, %v1478_v42  ;;  %v2011_v48 = vpack.c.bf16 %v1611_v45, %v1607_v43  ;;  %2362 = vmatpush1.bf16.msra.mxu0 %v4712_v31  ;;  %2491 = vmatpush1.bf16.msra.mxu1 %v4712_v31 }
 0x345   : > { %2363 = vmatprep.subr.bf16.mxu0 %v4717_v40  ;;  %2492 = vmatprep.subr.bf16.mxu1 %v4717_v40 }
 0x346   : > { %v1485_v50 = vpop.f32.mrb[72].mxu0  ;;  %v1614_v52 = vpop.f32.mrb[72].mxu1  ;;  %1937 = vmatprep.mubr.bf16.mxu0 %v1676_v47  ;;  %2066 = vmatprep.mubr.bf16.mxu1 %v2011_v48 }
 0x347   : > { %v1487_v53 = vpop.f32.mrb[73].mxu0  ;;  %v1616_v55 = vpop.f32.mrb[73].mxu1  ;;  %1938 = vmatmul.mubr.bf16.gmra.mrb[100].mxu0 %v1675_v46  ;;  %2067 = vmatmul.mubr.bf16.gmra.mrb[100].mxu1 %v2010_v38  ;;  %v1486_v56 = vadd.f32 %v1485_v50, %v5486_v0  ;;  %v1615_v51 = vadd.f32 %v1614_v52, %v5486_v0  ;;  %v4730_v38 = vld [vmem:[#allocation5 + $0x470] ss:$8 sps:$4 sm:$0xff]   ;;  %v4735_v52 = vld [vmem:[#allocation5 + $0x484] ss:$8 sps:$4 sm:$0xff]  }
 0x348   : > { %v1489_v57 = vpop.f32.mrb[74].mxu0  ;;  %v1618_v58 = vpop.f32.mrb[74].mxu1  ;;  %2364 = vmatpush1.bf16.msra.mxu0 %v4715_v49  ;;  %2493 = vmatpush1.bf16.msra.mxu1 %v4715_v49  ;;  %v1488_v1 = vadd.f32 %v1487_v53, %v5489_v3  ;;  %v1617_v2 = vadd.f32 %v1616_v55, %v5489_v3 }
 0x349   : > { %v1490_v60 = vadd.f32 %v1489_v57, %v5486_v0  ;;  %v1619_v61 = vadd.f32 %v1618_v58, %v5486_v0  ;;  %v1491_v62 = vpop.f32.mrb[75].mxu0  ;;  %v1620_v54 = vpop.f32.mrb[75].mxu1  ;;  %2365 = vmatprep.subr.bf16.mxu0 %v4720_v41  ;;  %2494 = vmatprep.subr.bf16.mxu1 %v4720_v41 }
 0x34a   : > { %v1492_v4 = vadd.f32 %v1491_v62, %v5489_v3  ;;  %v1621_v5 = vadd.f32 %v1620_v54, %v5489_v3  ;;  %v4738_v62 = vld [vmem:[#allocation5 + $0x494] ss:$8 sps:$4 sm:$0xff]  }
 0x34b   : > { %v1677_v6 = vpack.c.bf16 %v1490_v60, %v1486_v56  ;;  %v2012_v7 = vpack.c.bf16 %v1619_v61, %v1615_v51  ;;  %v4733_v61 = vld [vmem:[#allocation5 + $0x480] ss:$8 sps:$4 sm:$0xff]  }
 0x34c   : > { %v1678_v8 = vpack.c.bf16 %v1492_v4, %v1488_v1  ;;  %v2013_v9 = vpack.c.bf16 %v1621_v5, %v1617_v2  ;;  %2366 = vmatpush1.bf16.msra.mxu0 %v4718_v59  ;;  %2495 = vmatpush1.bf16.msra.mxu1 %v4718_v59 }
 0x34d   : > { %2367 = vmatprep.subr.bf16.mxu0 %v4723_v63  ;;  %2496 = vmatprep.subr.bf16.mxu1 %v4723_v63 }
 0x34e   : > { %v1495_v12 = vpop.f32.mrb[76].mxu0  ;;  %v1624_v13 = vpop.f32.mrb[76].mxu1  ;;  %1947 = vmatprep.mubr.bf16.mxu0 %v1678_v8  ;;  %2076 = vmatprep.mubr.bf16.mxu1 %v2013_v9 }
 0x34f   : > { %v1497_v14 = vpop.f32.mrb[77].mxu0  ;;  %v1626_v15 = vpop.f32.mrb[77].mxu1  ;;  %1948 = vmatmul.mubr.bf16.gmra.mrb[104].mxu0 %v1677_v6  ;;  %2077 = vmatmul.mubr.bf16.gmra.mrb[104].mxu1 %v2012_v7  ;;  %v1496_v16 = vadd.f32 %v1495_v12, %v5486_v0  ;;  %v1625_v20 = vadd.f32 %v1624_v13, %v5486_v0  ;;  %v4736_v7 = vld [vmem:[#allocation5 + $0x490] ss:$8 sps:$4 sm:$0xff]   ;;  %v4741_v13 = vld [vmem:[#allocation5 + $0x4a4] ss:$8 sps:$4 sm:$0xff]  }
 0x350   : > { %v1499_v17 = vpop.f32.mrb[78].mxu0  ;;  %v1628_v18 = vpop.f32.mrb[78].mxu1  ;;  %2368 = vmatpush1.bf16.msra.mxu0 %v4721_v10  ;;  %2497 = vmatpush1.bf16.msra.mxu1 %v4721_v10  ;;  %v1498_v26 = vadd.f32 %v1497_v14, %v5489_v3  ;;  %v1627_v27 = vadd.f32 %v1626_v15, %v5489_v3 }
 0x351   : > { %v1500_v21 = vadd.f32 %v1499_v17, %v5486_v0  ;;  %v1629_v22 = vadd.f32 %v1628_v18, %v5486_v0  ;;  %v1501_v23 = vpop.f32.mrb[79].mxu0  ;;  %v1630_v24 = vpop.f32.mrb[79].mxu1  ;;  %2369 = vmatprep.subr.bf16.mxu0 %v4726_v11  ;;  %2498 = vmatprep.subr.bf16.mxu1 %v4726_v11 }
 0x352   : > { %v1502_v28 = vadd.f32 %v1501_v23, %v5489_v3  ;;  %v1631_v29 = vadd.f32 %v1630_v24, %v5489_v3  ;;  %v4744_v23 = vld [vmem:[#allocation5 + $0x4b4] ss:$8 sps:$4 sm:$0xff]  }
 0x353   : > { %v1679_v30 = vpack.c.bf16 %v1500_v21, %v1496_v16  ;;  %v2014_v31 = vpack.c.bf16 %v1629_v22, %v1625_v20  ;;  %v4739_v22 = vld [vmem:[#allocation5 + $0x4a0] ss:$8 sps:$4 sm:$0xff]  }
 0x354   : > { %v1680_v32 = vpack.c.bf16 %v1502_v28, %v1498_v26  ;;  %v2015_v33 = vpack.c.bf16 %v1631_v29, %v1627_v27  ;;  %2370 = vmatpush1.bf16.msra.mxu0 %v4724_v19  ;;  %2499 = vmatpush1.bf16.msra.mxu1 %v4724_v19 }
 0x355   : > { %2371 = vmatprep.subr.bf16.mxu0 %v4729_v25  ;;  %2500 = vmatprep.subr.bf16.mxu1 %v4729_v25 }
 0x356   : > { %v1505_v39 = vpop.f32.mrb[80].mxu0  ;;  %v1634_v40 = vpop.f32.mrb[80].mxu1  ;;  %1957 = vmatprep.mubr.bf16.mxu0 %v1680_v32  ;;  %2086 = vmatprep.mubr.bf16.mxu1 %v2015_v33 }
 0x357   : > { %v1507_v42 = vpop.f32.mrb[81].mxu0  ;;  %v1636_v43 = vpop.f32.mrb[81].mxu1  ;;  %1958 = vmatmul.mubr.bf16.gmra.mrb[108].mxu0 %v1679_v30  ;;  %2087 = vmatmul.mubr.bf16.gmra.mrb[108].mxu1 %v2014_v31  ;;  %v1506_v44 = vadd.f32 %v1505_v39, %v5486_v0  ;;  %v1635_v47 = vadd.f32 %v1634_v40, %v5486_v0  ;;  %v4742_v31 = vld [vmem:[#allocation5 + $0x4b0] ss:$8 sps:$4 sm:$0xff]   ;;  %v4747_v40 = vld [vmem:[#allocation5 + $0x4c4] ss:$8 sps:$4 sm:$0xff]  }
 0x358   : > { %v1509_v45 = vpop.f32.mrb[82].mxu0  ;;  %v1638_v46 = vpop.f32.mrb[82].mxu1  ;;  %2372 = vmatpush1.bf16.msra.mxu0 %v4727_v34  ;;  %2501 = vmatpush1.bf16.msra.mxu1 %v4727_v34  ;;  %v1508_v53 = vadd.f32 %v1507_v42, %v5489_v3  ;;  %v1637_v55 = vadd.f32 %v1636_v43, %v5489_v3 }
 0x359   : > { %v1510_v48 = vadd.f32 %v1509_v45, %v5486_v0  ;;  %v1639_v49 = vadd.f32 %v1638_v46, %v5486_v0  ;;  %v1511_v41 = vpop.f32.mrb[83].mxu0  ;;  %v1640_v50 = vpop.f32.mrb[83].mxu1  ;;  %2373 = vmatprep.subr.bf16.mxu0 %v4732_v36  ;;  %2502 = vmatprep.subr.bf16.mxu1 %v4732_v36 }
 0x35a   : > { %v1512_v56 = vadd.f32 %v1511_v41, %v5489_v3  ;;  %v1641_v57 = vadd.f32 %v1640_v50, %v5489_v3  ;;  %v4750_v41 = vld [vmem:[#allocation5 + $0x4d4] ss:$8 sps:$4 sm:$0xff]  }
 0x35b   : > { %v1681_v58 = vpack.c.bf16 %v1510_v48, %v1506_v44  ;;  %v2016_v59 = vpack.c.bf16 %v1639_v49, %v1635_v47  ;;  %v4745_v49 = vld [vmem:[#allocation5 + $0x4c0] ss:$8 sps:$4 sm:$0xff]  }
 0x35c   : > { %v1682_v51 = vpack.c.bf16 %v1512_v56, %v1508_v53  ;;  %v2017_v60 = vpack.c.bf16 %v1641_v57, %v1637_v55  ;;  %2374 = vmatpush1.bf16.msra.mxu0 %v4730_v38  ;;  %2503 = vmatpush1.bf16.msra.mxu1 %v4730_v38 }
 0x35d   : > { %2375 = vmatprep.subr.bf16.mxu0 %v4735_v52  ;;  %2504 = vmatprep.subr.bf16.mxu1 %v4735_v52 }
 0x35e   : > { %v1515_v54 = vpop.f32.mrb[84].mxu0  ;;  %v1644_v63 = vpop.f32.mrb[84].mxu1  ;;  %1967 = vmatprep.mubr.bf16.mxu0 %v1682_v51  ;;  %2096 = vmatprep.mubr.bf16.mxu1 %v2017_v60 }
 0x35f   : > { %v1517_v1 = vpop.f32.mrb[85].mxu0  ;;  %v1646_v2 = vpop.f32.mrb[85].mxu1  ;;  %1968 = vmatmul.mubr.bf16.gmra.mrb[112].mxu0 %v1681_v58  ;;  %2097 = vmatmul.mubr.bf16.gmra.mrb[112].mxu1 %v2016_v59  ;;  %v1516_v4 = vadd.f32 %v1515_v54, %v5486_v0  ;;  %v1645_v8 = vadd.f32 %v1644_v63, %v5486_v0  ;;  %v4748_v59 = vld [vmem:[#allocation5 + $0x4d0] ss:$8 sps:$4 sm:$0xff]  }
 0x360   : > { %v1519_v5 = vpop.f32.mrb[86].mxu0  ;;  %v1648_v6 = vpop.f32.mrb[86].mxu1  ;;  %2376 = vmatpush1.bf16.msra.mxu0 %v4733_v61  ;;  %2505 = vmatpush1.bf16.msra.mxu1 %v4733_v61  ;;  %v1518_v14 = vadd.f32 %v1517_v1, %v5489_v3  ;;  %v1647_v15 = vadd.f32 %v1646_v2, %v5489_v3 }
 0x361   : > { %v1520_v9 = vadd.f32 %v1519_v5, %v5486_v0  ;;  %v1649_v10 = vadd.f32 %v1648_v6, %v5486_v0  ;;  %v1521_v11 = vpop.f32.mrb[87].mxu0  ;;  %v1650_v12 = vpop.f32.mrb[87].mxu1  ;;  %2377 = vmatprep.subr.bf16.mxu0 %v4738_v62  ;;  %2506 = vmatprep.subr.bf16.mxu1 %v4738_v62 }
 0x362   : > { %v1522_v16 = vadd.f32 %v1521_v11, %v5489_v3  ;;  %v1651_v17 = vadd.f32 %v1650_v12, %v5489_v3  ;;  %v4754_v11 = vld [vmem:[#allocation5 + $0x4f0] ss:$8 sps:$4 sm:$0xff]   ;;  %v1723_v12 = vld [vmem:[#allocation7 + $0x3] ss:$8 sm:$0x3] }
 0x363   : > { %v1683_v18 = vpack.c.bf16 %v1520_v9, %v1516_v4  ;;  %v2018_v19 = vpack.c.bf16 %v1649_v10, %v1645_v8  ;;  %v4751_v9 = vld [vmem:[#allocation5 + $0x4e0] ss:$8 sps:$4 sm:$0xff]   ;;  %v4756_v10 = vld [vmem:[#allocation5 + $0x4f4] ss:$8 sps:$4 sm:$0xff]  }
 0x364   : > { %v1684_v20 = vpack.c.bf16 %v1522_v16, %v1518_v14  ;;  %v2019_v21 = vpack.c.bf16 %v1651_v17, %v1647_v15  ;;  %2378 = vmatpush1.bf16.msra.mxu0 %v4736_v7  ;;  %2507 = vmatpush1.bf16.msra.mxu1 %v4736_v7  ;;  %v5559_v16 = vrot.slane %v1723_v12, %v5343_v37 }
 0x365   : > { %2379 = vmatprep.subr.bf16.mxu0 %v4741_v13  ;;  %2508 = vmatprep.subr.bf16.mxu1 %v4741_v13  ;;  %v5556_v13 = vrot.slane %v1723_v12, %v5341_v35  ;;  %v4771_v12 = vld [vmem:[#allocation5 + $0x544] ss:$8 sps:$4 sm:$0xff]  }
 0x366   : > { %v1525_v24 = vpop.f32.mrb[88].mxu0  ;;  %v1654_v25 = vpop.f32.mrb[88].mxu1  ;;  %1977 = vmatprep.mubr.bf16.mxu0 %v1684_v20  ;;  %2106 = vmatprep.mubr.bf16.mxu1 %v2019_v21 }
 0x367   : > { %v1527_v26 = vpop.f32.mrb[89].mxu0  ;;  %v1656_v27 = vpop.f32.mrb[89].mxu1  ;;  %1978 = vmatmul.mubr.bf16.gmra.mrb[116].mxu0 %v1683_v18  ;;  %2107 = vmatmul.mubr.bf16.gmra.mrb[116].mxu1 %v2018_v19  ;;  %v1526_v28 = vadd.f32 %v1525_v24, %v5486_v0  ;;  %v1655_v32 = vadd.f32 %v1654_v25, %v5486_v0 }
 0x368   : > { %v1529_v29 = vpop.f32.mrb[90].mxu0  ;;  %v1658_v30 = vpop.f32.mrb[90].mxu1  ;;  %2380 = vmatpush1.bf16.msra.mxu0 %v4739_v22  ;;  %2509 = vmatpush1.bf16.msra.mxu1 %v4739_v22  ;;  %v1528_v42 = vadd.f32 %v1527_v26, %v5489_v3  ;;  %v1657_v43 = vadd.f32 %v1656_v27, %v5489_v3 }
 0x369   : > { %v1530_v33 = vadd.f32 %v1529_v29, %v5486_v0  ;;  %v1659_v34 = vadd.f32 %v1658_v30, %v5486_v0  ;;  %v1531_v36 = vpop.f32.mrb[91].mxu0  ;;  %v1660_v39 = vpop.f32.mrb[91].mxu1  ;;  %2381 = vmatprep.subr.bf16.mxu0 %v4744_v23  ;;  %2510 = vmatprep.subr.bf16.mxu1 %v4744_v23 }
 0x36a   : > { %v1532_v44 = vadd.f32 %v1531_v36, %v5489_v3  ;;  %v1661_v45 = vadd.f32 %v1660_v39, %v5489_v3  ;;  %v4757_v36 = vld [vmem:[#allocation5 + $0x500] ss:$8 sps:$4 sm:$0xff]   ;;  %v4762_v39 = vld [vmem:[#allocation5 + $0x514] ss:$8 sps:$4 sm:$0xff]  }
 0x36b   : > { %v1685_v46 = vpack.c.bf16 %v1530_v33, %v1526_v28  ;;  %v2020_v38 = vpack.c.bf16 %v1659_v34, %v1655_v32 }
 0x36c   : > { %v1686_v47 = vpack.c.bf16 %v1532_v44, %v1528_v42  ;;  %v2021_v48 = vpack.c.bf16 %v1661_v45, %v1657_v43  ;;  %2382 = vmatpush1.bf16.msra.mxu0 %v4742_v31  ;;  %2511 = vmatpush1.bf16.msra.mxu1 %v4742_v31 }
 0x36d   : > { %2383 = vmatprep.subr.bf16.mxu0 %v4747_v40  ;;  %2512 = vmatprep.subr.bf16.mxu1 %v4747_v40 }
 0x36e   : > { %v1535_v50 = vpop.f32.mrb[92].mxu0  ;;  %v1664_v52 = vpop.f32.mrb[92].mxu1  ;;  %1987 = vmatprep.mubr.bf16.mxu0 %v1686_v47  ;;  %2116 = vmatprep.mubr.bf16.mxu1 %v2021_v48  ;;  %v4760_v47 = vld [vmem:[#allocation5 + $0x510] ss:$8 sps:$4 sm:$0xff]  }
 0x36f   : > { %v1537_v53 = vpop.f32.mrb[93].mxu0  ;;  %v1666_v55 = vpop.f32.mrb[93].mxu1  ;;  %1988 = vmatmul.mubr.bf16.gmra.mrb[120].mxu0 %v1685_v46  ;;  %2117 = vmatmul.mubr.bf16.gmra.mrb[120].mxu1 %v2020_v38  ;;  %v1536_v56 = vadd.f32 %v1535_v50, %v5486_v0  ;;  %v1665_v51 = vadd.f32 %v1664_v52, %v5486_v0 }
 0x370   : > { %v1539_v57 = vpop.f32.mrb[94].mxu0  ;;  %v1668_v58 = vpop.f32.mrb[94].mxu1  ;;  %2384 = vmatpush1.bf16.msra.mxu0 %v4745_v49  ;;  %2513 = vmatpush1.bf16.msra.mxu1 %v4745_v49  ;;  %v1538_v63 = vadd.f32 %v1537_v53, %v5489_v3  ;;  %v1667_v1 = vadd.f32 %v1666_v55, %v5489_v3  ;;  %v4765_v53 = vld [vmem:[#allocation5 + $0x524] ss:$8 sps:$4 sm:$0xff]  }
 0x371   : > { %v1540_v60 = vadd.f32 %v1539_v57, %v5486_v0  ;;  %v1669_v61 = vadd.f32 %v1668_v58, %v5486_v0  ;;  %v1541_v62 = vpop.f32.mrb[95].mxu0  ;;  %v1670_v54 = vpop.f32.mrb[95].mxu1  ;;  %2385 = vmatprep.subr.bf16.mxu0 %v4750_v41  ;;  %2514 = vmatprep.subr.bf16.mxu1 %v4750_v41  ;;  %v4753_v0 = vld [vmem:[#allocation5 + $0x4e4] ss:$8 sps:$4 sm:$0xff]  }
 0x372   : > { %v1542_v2 = vadd.f32 %v1541_v62, %v5489_v3  ;;  %v1671_v4 = vadd.f32 %v1670_v54, %v5489_v3  ;;  %v4759_v3 = vld [vmem:[#allocation5 + $0x504] ss:$8 sps:$4 sm:$0xff]   ;;  %v4763_v62 = vld [vmem:[#allocation5 + $0x520] ss:$8 sps:$4 sm:$0xff]   ;;  %v4768_v54 = vld [vmem:[#allocation5 + $0x534] ss:$8 sps:$4 sm:$0xff]  }
 0x373   : > { %v1687_v5 = vpack.c.bf16 %v1540_v60, %v1536_v56  ;;  %v2022_v6 = vpack.c.bf16 %v1669_v61, %v1665_v51 }
 0x374   : > { %v1688_v7 = vpack.c.bf16 %v1542_v2, %v1538_v63  ;;  %v2023_v8 = vpack.c.bf16 %v1671_v4, %v1667_v1  ;;  %2386 = vmatpush1.bf16.msra.mxu0 %v4748_v59  ;;  %2515 = vmatpush1.bf16.msra.mxu1 %v4748_v59 }
 0x375   : > { %2387 = vmatprep.subr.bf16.mxu0 %v4753_v0  ;;  %2516 = vmatprep.subr.bf16.mxu1 %v4753_v0 }
 0x376   : > { %1997 = vmatprep.mubr.bf16.mxu0 %v1688_v7  ;;  %2126 = vmatprep.mubr.bf16.mxu1 %v2023_v8  ;;  %v4766_v8 = vld [vmem:[#allocation5 + $0x530] ss:$8 sps:$4 sm:$0xff]  }
 0x377   : > { %1998 = vmatmul.mubr.bf16.gmra.mrb[124].mxu0 %v1687_v5  ;;  %2127 = vmatmul.mubr.bf16.gmra.mrb[124].mxu1 %v2022_v6 }
 0x378   : > { %2388 = vmatpush1.bf16.msra.mxu0 %v4751_v9  ;;  %2517 = vmatpush1.bf16.msra.mxu1 %v4751_v9 }
 0x379   : > { %2389 = vmatprep.subr.bf16.mxu0 %v4756_v10  ;;  %2518 = vmatprep.subr.bf16.mxu1 %v4756_v10 }
 0x37c   : > { %2390 = vmatpush1.bf16.msra.mxu0 %v4754_v11  ;;  %2519 = vmatpush1.bf16.msra.mxu1 %v4754_v11 }
 0x37d   : > { %2823 = vmatprep.subr.bf16.mxu0 %v4759_v3  ;;  %2952 = vmatprep.subr.bf16.mxu1 %v4759_v3 }
 0x412   : > { %v1929_v14 = vpop.f32.mrb[96].mxu0  ;;  %v2058_v15 = vpop.f32.mrb[96].mxu1 }
 0x413   : > { %v1931_v17 = vpop.f32.mrb[97].mxu0  ;;  %v2060_v18 = vpop.f32.mrb[97].mxu1  ;;  %v1930_v21 = vadd.f32 %v1929_v14, %v5556_v13  ;;  %v2059_v22 = vadd.f32 %v2058_v15, %v5556_v13 }
 0x414   : > { %v1933_v19 = vpop.f32.mrb[98].mxu0  ;;  %v2062_v20 = vpop.f32.mrb[98].mxu1  ;;  %v1932_v27 = vadd.f32 %v1931_v17, %v5559_v16  ;;  %v2061_v28 = vadd.f32 %v2060_v18, %v5559_v16 }
 0x415   : > { %v1934_v23 = vadd.f32 %v1933_v19, %v5556_v13  ;;  %v2063_v24 = vadd.f32 %v2062_v20, %v5556_v13  ;;  %v1935_v25 = vpop.f32.mrb[99].mxu0  ;;  %v2064_v26 = vpop.f32.mrb[99].mxu1 }
 0x416   : > { %v1936_v29 = vadd.f32 %v1935_v25, %v5559_v16  ;;  %v2065_v30 = vadd.f32 %v2064_v26, %v5559_v16 }
 0x417   : > { %v2137_v31 = vpack.c.bf16 %v1934_v23, %v1930_v21  ;;  %v2472_v32 = vpack.c.bf16 %v2063_v24, %v2059_v22  ;;  %v4769_v23 = vld [vmem:[#allocation5 + $0x540] ss:$8 sps:$4 sm:$0xff]   ;;  %v4774_v24 = vld [vmem:[#allocation5 + $0x554] ss:$8 sps:$4 sm:$0xff]  }
 0x418   : > { %v2138_v33 = vpack.c.bf16 %v1936_v29, %v1932_v27  ;;  %v2473_v34 = vpack.c.bf16 %v2065_v30, %v2061_v28 }
 0x41a   : > { %v1939_v40 = vpop.f32.mrb[100].mxu0  ;;  %v2068_v42 = vpop.f32.mrb[100].mxu1  ;;  %2391 = vmatprep.mubr.bf16.mxu0 %v2138_v33  ;;  %2520 = vmatprep.mubr.bf16.mxu1 %v2473_v34 }
 0x41b   : > { %v1941_v43 = vpop.f32.mrb[101].mxu0  ;;  %v2070_v44 = vpop.f32.mrb[101].mxu1  ;;  %2392 = vmatmul.mubr.bf16.vlgmr.msra.gmra.mrb[128].mxu0 %v2137_v31  ;;  %2521 = vmatmul.mubr.bf16.vlgmr.msra.gmra.mrb[128].mxu1 %v2472_v32  ;;  %v1940_v45 = vadd.f32 %v1939_v40, %v5556_v13  ;;  %v2069_v48 = vadd.f32 %v2068_v42, %v5556_v13  ;;  %v4772_v32 = vld [vmem:[#allocation5 + $0x550] ss:$8 sps:$4 sm:$0xff]   ;;  %v4777_v42 = vld [vmem:[#allocation5 + $0x564] ss:$8 sps:$4 sm:$0xff]  }
 0x41c   : > { %v1943_v46 = vpop.f32.mrb[102].mxu0  ;;  %v2072_v38 = vpop.f32.mrb[102].mxu1  ;;  %2824 = vmatpush1.bf16.msra.mxu0 %v4757_v36  ;;  %2953 = vmatpush1.bf16.msra.mxu1 %v4757_v36  ;;  %v1942_v55 = vadd.f32 %v1941_v43, %v5559_v16  ;;  %v2071_v56 = vadd.f32 %v2070_v44, %v5559_v16 }
 0x41d   : > { %v1944_v49 = vadd.f32 %v1943_v46, %v5556_v13  ;;  %v2073_v41 = vadd.f32 %v2072_v38, %v5556_v13  ;;  %v1945_v50 = vpop.f32.mrb[103].mxu0  ;;  %v2074_v52 = vpop.f32.mrb[103].mxu1  ;;  %2825 = vmatprep.subr.bf16.mxu0 %v4762_v39  ;;  %2954 = vmatprep.subr.bf16.mxu1 %v4762_v39 }
 0x41e   : > { %v1946_v57 = vadd.f32 %v1945_v50, %v5559_v16  ;;  %v2075_v58 = vadd.f32 %v2074_v52, %v5559_v16  ;;  %v4780_v50 = vld [vmem:[#allocation5 + $0x574] ss:$8 sps:$4 sm:$0xff]  }
 0x41f   : > { %v2139_v59 = vpack.c.bf16 %v1944_v49, %v1940_v45  ;;  %v2474_v51 = vpack.c.bf16 %v2073_v41, %v2069_v48  ;;  %v4775_v41 = vld [vmem:[#allocation5 + $0x560] ss:$8 sps:$4 sm:$0xff]  }
 0x420   : > { %v2140_v60 = vpack.c.bf16 %v1946_v57, %v1942_v55  ;;  %v2475_v61 = vpack.c.bf16 %v2075_v58, %v2071_v56  ;;  %2826 = vmatpush1.bf16.msra.mxu0 %v4760_v47  ;;  %2955 = vmatpush1.bf16.msra.mxu1 %v4760_v47 }
 0x421   : > { %2827 = vmatprep.subr.bf16.mxu0 %v4765_v53  ;;  %2956 = vmatprep.subr.bf16.mxu1 %v4765_v53 }
 0x422   : > { %v1949_v63 = vpop.f32.mrb[104].mxu0  ;;  %v2078_v1 = vpop.f32.mrb[104].mxu1  ;;  %2401 = vmatprep.mubr.bf16.mxu0 %v2140_v60  ;;  %2530 = vmatprep.mubr.bf16.mxu1 %v2475_v61 }
 0x423   : > { %v1951_v2 = vpop.f32.mrb[105].mxu0  ;;  %v2080_v4 = vpop.f32.mrb[105].mxu1  ;;  %2402 = vmatmul.mubr.bf16.gmra.mrb[132].mxu0 %v2139_v59  ;;  %2531 = vmatmul.mubr.bf16.gmra.mrb[132].mxu1 %v2474_v51  ;;  %v1950_v5 = vadd.f32 %v1949_v63, %v5556_v13  ;;  %v2079_v0 = vadd.f32 %v2078_v1, %v5556_v13  ;;  %v4778_v51 = vld [vmem:[#allocation5 + $0x570] ss:$8 sps:$4 sm:$0xff]   ;;  %v4783_v1 = vld [vmem:[#allocation5 + $0x584] ss:$8 sps:$4 sm:$0xff]  }
 0x424   : > { %v1953_v6 = vpop.f32.mrb[106].mxu0  ;;  %v2082_v7 = vpop.f32.mrb[106].mxu1  ;;  %2828 = vmatpush1.bf16.msra.mxu0 %v4763_v62  ;;  %2957 = vmatpush1.bf16.msra.mxu1 %v4763_v62  ;;  %v1952_v14 = vadd.f32 %v1951_v2, %v5559_v16  ;;  %v2081_v15 = vadd.f32 %v2080_v4, %v5559_v16 }
 0x425   : > { %v1954_v9 = vadd.f32 %v1953_v6, %v5556_v13  ;;  %v2083_v10 = vadd.f32 %v2082_v7, %v5556_v13  ;;  %v1955_v11 = vpop.f32.mrb[107].mxu0  ;;  %v2084_v3 = vpop.f32.mrb[107].mxu1  ;;  %2829 = vmatprep.subr.bf16.mxu0 %v4768_v54  ;;  %2958 = vmatprep.subr.bf16.mxu1 %v4768_v54 }
 0x426   : > { %v1956_v17 = vadd.f32 %v1955_v11, %v5559_v16  ;;  %v2085_v18 = vadd.f32 %v2084_v3, %v5559_v16  ;;  %v4786_v11 = vld [vmem:[#allocation5 + $0x594] ss:$8 sps:$4 sm:$0xff]  }
 0x427   : > { %v2141_v19 = vpack.c.bf16 %v1954_v9, %v1950_v5  ;;  %v2476_v20 = vpack.c.bf16 %v2083_v10, %v2079_v0  ;;  %v4781_v10 = vld [vmem:[#allocation5 + $0x580] ss:$8 sps:$4 sm:$0xff]  }
 0x428   : > { %v2142_v21 = vpack.c.bf16 %v1956_v17, %v1952_v14  ;;  %v2477_v22 = vpack.c.bf16 %v2085_v18, %v2081_v15  ;;  %2830 = vmatpush1.bf16.msra.mxu0 %v4766_v8  ;;  %2959 = vmatpush1.bf16.msra.mxu1 %v4766_v8 }
 0x429   : > { %2831 = vmatprep.subr.bf16.mxu0 %v4771_v12  ;;  %2960 = vmatprep.subr.bf16.mxu1 %v4771_v12 }
 0x42a   : > { %v1959_v25 = vpop.f32.mrb[108].mxu0  ;;  %v2088_v26 = vpop.f32.mrb[108].mxu1  ;;  %2411 = vmatprep.mubr.bf16.mxu0 %v2142_v21  ;;  %2540 = vmatprep.mubr.bf16.mxu1 %v2477_v22 }
 0x42b   : > { %v1961_v27 = vpop.f32.mrb[109].mxu0  ;;  %v2090_v28 = vpop.f32.mrb[109].mxu1  ;;  %2412 = vmatmul.mubr.bf16.gmra.mrb[136].mxu0 %v2141_v19  ;;  %2541 = vmatmul.mubr.bf16.gmra.mrb[136].mxu1 %v2476_v20  ;;  %v1960_v29 = vadd.f32 %v1959_v25, %v5556_v13  ;;  %v2089_v33 = vadd.f32 %v2088_v26, %v5556_v13  ;;  %v4784_v20 = vld [vmem:[#allocation5 + $0x590] ss:$8 sps:$4 sm:$0xff]   ;;  %v4789_v26 = vld [vmem:[#allocation5 + $0x5a4] ss:$8 sps:$4 sm:$0xff]  }
 0x42c   : > { %v1963_v30 = vpop.f32.mrb[110].mxu0  ;;  %v2092_v31 = vpop.f32.mrb[110].mxu1  ;;  %2832 = vmatpush1.bf16.msra.mxu0 %v4769_v23  ;;  %2961 = vmatpush1.bf16.msra.mxu1 %v4769_v23  ;;  %v1962_v43 = vadd.f32 %v1961_v27, %v5559_v16  ;;  %v2091_v44 = vadd.f32 %v2090_v28, %v5559_v16 }
 0x42d   : > { %v1964_v34 = vadd.f32 %v1963_v30, %v5556_v13  ;;  %v2093_v36 = vadd.f32 %v2092_v31, %v5556_v13  ;;  %v1965_v39 = vpop.f32.mrb[111].mxu0  ;;  %v2094_v40 = vpop.f32.mrb[111].mxu1  ;;  %2833 = vmatprep.subr.bf16.mxu0 %v4774_v24  ;;  %2962 = vmatprep.subr.bf16.mxu1 %v4774_v24 }
 0x42e   : > { %v1966_v45 = vadd.f32 %v1965_v39, %v5559_v16  ;;  %v2095_v46 = vadd.f32 %v2094_v40, %v5559_v16  ;;  %v4792_v39 = vld [vmem:[#allocation5 + $0x5b4] ss:$8 sps:$4 sm:$0xff]  }
 0x42f   : > { %v2143_v38 = vpack.c.bf16 %v1964_v34, %v1960_v29  ;;  %v2478_v47 = vpack.c.bf16 %v2093_v36, %v2089_v33  ;;  %v4787_v36 = vld [vmem:[#allocation5 + $0x5a0] ss:$8 sps:$4 sm:$0xff]  }
 0x430   : > { %v2144_v48 = vpack.c.bf16 %v1966_v45, %v1962_v43  ;;  %v2479_v49 = vpack.c.bf16 %v2095_v46, %v2091_v44  ;;  %2834 = vmatpush1.bf16.msra.mxu0 %v4772_v32  ;;  %2963 = vmatpush1.bf16.msra.mxu1 %v4772_v32 }
 0x431   : > { %2835 = vmatprep.subr.bf16.mxu0 %v4777_v42  ;;  %2964 = vmatprep.subr.bf16.mxu1 %v4777_v42 }
 0x432   : > { %v1969_v52 = vpop.f32.mrb[112].mxu0  ;;  %v2098_v53 = vpop.f32.mrb[112].mxu1  ;;  %2421 = vmatprep.mubr.bf16.mxu0 %v2144_v48  ;;  %2550 = vmatprep.mubr.bf16.mxu1 %v2479_v49 }
 0x433   : > { %v1971_v55 = vpop.f32.mrb[113].mxu0  ;;  %v2100_v56 = vpop.f32.mrb[113].mxu1  ;;  %2422 = vmatmul.mubr.bf16.gmra.mrb[140].mxu0 %v2143_v38  ;;  %2551 = vmatmul.mubr.bf16.gmra.mrb[140].mxu1 %v2478_v47  ;;  %v1970_v57 = vadd.f32 %v1969_v52, %v5556_v13  ;;  %v2099_v60 = vadd.f32 %v2098_v53, %v5556_v13  ;;  %v4790_v47 = vld [vmem:[#allocation5 + $0x5b0] ss:$8 sps:$4 sm:$0xff]   ;;  %v4795_v53 = vld [vmem:[#allocation5 + $0x5c4] ss:$8 sps:$4 sm:$0xff]  }
 0x434   : > { %v1973_v58 = vpop.f32.mrb[114].mxu0  ;;  %v2102_v59 = vpop.f32.mrb[114].mxu1  ;;  %2836 = vmatpush1.bf16.msra.mxu0 %v4775_v41  ;;  %2965 = vmatpush1.bf16.msra.mxu1 %v4775_v41  ;;  %v1972_v2 = vadd.f32 %v1971_v55, %v5559_v16  ;;  %v2101_v4 = vadd.f32 %v2100_v56, %v5559_v16 }
 0x435   : > { %v1974_v61 = vadd.f32 %v1973_v58, %v5556_v13  ;;  %v2103_v62 = vadd.f32 %v2102_v59, %v5556_v13  ;;  %v1975_v54 = vpop.f32.mrb[115].mxu0  ;;  %v2104_v63 = vpop.f32.mrb[115].mxu1  ;;  %2837 = vmatprep.subr.bf16.mxu0 %v4780_v50  ;;  %2966 = vmatprep.subr.bf16.mxu1 %v4780_v50 }
 0x436   : > { %v1976_v5 = vadd.f32 %v1975_v54, %v5559_v16  ;;  %v2105_v6 = vadd.f32 %v2104_v63, %v5559_v16  ;;  %v4798_v54 = vld [vmem:[#allocation5 + $0x5d4] ss:$8 sps:$4 sm:$0xff]  }
 0x437   : > { %v2145_v7 = vpack.c.bf16 %v1974_v61, %v1970_v57  ;;  %v2480_v8 = vpack.c.bf16 %v2103_v62, %v2099_v60  ;;  %v4793_v62 = vld [vmem:[#allocation5 + $0x5c0] ss:$8 sps:$4 sm:$0xff]  }
 0x438   : > { %v2146_v0 = vpack.c.bf16 %v1976_v5, %v1972_v2  ;;  %v2481_v9 = vpack.c.bf16 %v2105_v6, %v2101_v4  ;;  %2838 = vmatpush1.bf16.msra.mxu0 %v4778_v51  ;;  %2967 = vmatpush1.bf16.msra.mxu1 %v4778_v51 }
 0x439   : > { %2839 = vmatprep.subr.bf16.mxu0 %v4783_v1  ;;  %2968 = vmatprep.subr.bf16.mxu1 %v4783_v1 }
 0x43a   : > { %v1979_v3 = vpop.f32.mrb[116].mxu0  ;;  %v2108_v12 = vpop.f32.mrb[116].mxu1  ;;  %2431 = vmatprep.mubr.bf16.mxu0 %v2146_v0  ;;  %2560 = vmatprep.mubr.bf16.mxu1 %v2481_v9 }
 0x43b   : > { %v1981_v14 = vpop.f32.mrb[117].mxu0  ;;  %v2110_v15 = vpop.f32.mrb[117].mxu1  ;;  %2432 = vmatmul.mubr.bf16.gmra.mrb[144].mxu0 %v2145_v7  ;;  %2561 = vmatmul.mubr.bf16.gmra.mrb[144].mxu1 %v2480_v8  ;;  %v1980_v17 = vadd.f32 %v1979_v3, %v5556_v13  ;;  %v2109_v21 = vadd.f32 %v2108_v12, %v5556_v13  ;;  %v4796_v8 = vld [vmem:[#allocation5 + $0x5d0] ss:$8 sps:$4 sm:$0xff]  }
 0x43c   : > { %v1983_v18 = vpop.f32.mrb[118].mxu0  ;;  %v2112_v19 = vpop.f32.mrb[118].mxu1  ;;  %2840 = vmatpush1.bf16.msra.mxu0 %v4781_v10  ;;  %2969 = vmatpush1.bf16.msra.mxu1 %v4781_v10  ;;  %v1982_v27 = vadd.f32 %v1981_v14, %v5559_v16  ;;  %v2111_v28 = vadd.f32 %v2110_v15, %v5559_v16 }
 0x43d   : > { %v1984_v22 = vadd.f32 %v1983_v18, %v5556_v13  ;;  %v2113_v23 = vadd.f32 %v2112_v19, %v5556_v13  ;;  %v1985_v24 = vpop.f32.mrb[119].mxu0  ;;  %v2114_v25 = vpop.f32.mrb[119].mxu1  ;;  %2841 = vmatprep.subr.bf16.mxu0 %v4786_v11  ;;  %2970 = vmatprep.subr.bf16.mxu1 %v4786_v11 }
 0x43e   : > { %v1986_v29 = vadd.f32 %v1985_v24, %v5559_v16  ;;  %v2115_v30 = vadd.f32 %v2114_v25, %v5559_v16  ;;  %v4802_v24 = vld [vmem:[#allocation5 + $0x5f0] ss:$8 sps:$4 sm:$0xff]   ;;  %v2187_v25 = vld [vmem:[#allocation7 + $0x4] ss:$8 sm:$0x3] }
 0x43f   : > { %v2147_v31 = vpack.c.bf16 %v1984_v22, %v1980_v17  ;;  %v2482_v32 = vpack.c.bf16 %v2113_v23, %v2109_v21  ;;  %v4799_v22 = vld [vmem:[#allocation5 + $0x5e0] ss:$8 sps:$4 sm:$0xff]   ;;  %v4804_v23 = vld [vmem:[#allocation5 + $0x5f4] ss:$8 sps:$4 sm:$0xff]  }
 0x440   : > { %v2148_v33 = vpack.c.bf16 %v1986_v29, %v1982_v27  ;;  %v2483_v34 = vpack.c.bf16 %v2115_v30, %v2111_v28  ;;  %2842 = vmatpush1.bf16.msra.mxu0 %v4784_v20  ;;  %2971 = vmatpush1.bf16.msra.mxu1 %v4784_v20  ;;  %v5629_v29 = vrot.slane %v2187_v25, %v5343_v37 }
 0x441   : > { %2843 = vmatprep.subr.bf16.mxu0 %v4789_v26  ;;  %2972 = vmatprep.subr.bf16.mxu1 %v4789_v26  ;;  %v5626_v26 = vrot.slane %v2187_v25, %v5341_v35  ;;  %v4819_v25 = vld [vmem:[#allocation5 + $0x644] ss:$8 sps:$4 sm:$0xff]  }
 0x442   : > { %v1989_v40 = vpop.f32.mrb[120].mxu0  ;;  %v2118_v42 = vpop.f32.mrb[120].mxu1  ;;  %2441 = vmatprep.mubr.bf16.mxu0 %v2148_v33  ;;  %2570 = vmatprep.mubr.bf16.mxu1 %v2483_v34 }
 0x443   : > { %v1991_v43 = vpop.f32.mrb[121].mxu0  ;;  %v2120_v44 = vpop.f32.mrb[121].mxu1  ;;  %2442 = vmatmul.mubr.bf16.gmra.mrb[148].mxu0 %v2147_v31  ;;  %2571 = vmatmul.mubr.bf16.gmra.mrb[148].mxu1 %v2482_v32  ;;  %v1990_v45 = vadd.f32 %v1989_v40, %v5556_v13  ;;  %v2119_v48 = vadd.f32 %v2118_v42, %v5556_v13 }
 0x444   : > { %v1993_v46 = vpop.f32.mrb[122].mxu0  ;;  %v2122_v38 = vpop.f32.mrb[122].mxu1  ;;  %2844 = vmatpush1.bf16.msra.mxu0 %v4787_v36  ;;  %2973 = vmatpush1.bf16.msra.mxu1 %v4787_v36  ;;  %v1992_v55 = vadd.f32 %v1991_v43, %v5559_v16  ;;  %v2121_v56 = vadd.f32 %v2120_v44, %v5559_v16 }
 0x445   : > { %v1994_v49 = vadd.f32 %v1993_v46, %v5556_v13  ;;  %v2123_v41 = vadd.f32 %v2122_v38, %v5556_v13  ;;  %v1995_v50 = vpop.f32.mrb[123].mxu0  ;;  %v2124_v52 = vpop.f32.mrb[123].mxu1  ;;  %2845 = vmatprep.subr.bf16.mxu0 %v4792_v39  ;;  %2974 = vmatprep.subr.bf16.mxu1 %v4792_v39 }
 0x446   : > { %v1996_v57 = vadd.f32 %v1995_v50, %v5559_v16  ;;  %v2125_v58 = vadd.f32 %v2124_v52, %v5559_v16  ;;  %v4805_v50 = vld [vmem:[#allocation5 + $0x600] ss:$8 sps:$4 sm:$0xff]   ;;  %v4810_v52 = vld [vmem:[#allocation5 + $0x614] ss:$8 sps:$4 sm:$0xff]  }
 0x447   : > { %v2149_v59 = vpack.c.bf16 %v1994_v49, %v1990_v45  ;;  %v2484_v51 = vpack.c.bf16 %v2123_v41, %v2119_v48 }
 0x448   : > { %v2150_v60 = vpack.c.bf16 %v1996_v57, %v1992_v55  ;;  %v2485_v61 = vpack.c.bf16 %v2125_v58, %v2121_v56  ;;  %2846 = vmatpush1.bf16.msra.mxu0 %v4790_v47  ;;  %2975 = vmatpush1.bf16.msra.mxu1 %v4790_v47 }
 0x449   : > { %2847 = vmatprep.subr.bf16.mxu0 %v4795_v53  ;;  %2976 = vmatprep.subr.bf16.mxu1 %v4795_v53 }
 0x44a   : > { %v1999_v63 = vpop.f32.mrb[124].mxu0  ;;  %v2128_v1 = vpop.f32.mrb[124].mxu1  ;;  %2451 = vmatprep.mubr.bf16.mxu0 %v2150_v60  ;;  %2580 = vmatprep.mubr.bf16.mxu1 %v2485_v61  ;;  %v4808_v60 = vld [vmem:[#allocation5 + $0x610] ss:$8 sps:$4 sm:$0xff]  }
 0x44b   : > { %v2001_v2 = vpop.f32.mrb[125].mxu0  ;;  %v2130_v4 = vpop.f32.mrb[125].mxu1  ;;  %2452 = vmatmul.mubr.bf16.gmra.mrb[152].mxu0 %v2149_v59  ;;  %2581 = vmatmul.mubr.bf16.gmra.mrb[152].mxu1 %v2484_v51  ;;  %v2000_v5 = vadd.f32 %v1999_v63, %v5556_v13  ;;  %v2129_v0 = vadd.f32 %v2128_v1, %v5556_v13 }
 0x44c   : > { %v2003_v6 = vpop.f32.mrb[126].mxu0  ;;  %v2132_v7 = vpop.f32.mrb[126].mxu1  ;;  %2848 = vmatpush1.bf16.msra.mxu0 %v4793_v62  ;;  %2977 = vmatpush1.bf16.msra.mxu1 %v4793_v62  ;;  %v2002_v12 = vadd.f32 %v2001_v2, %v5559_v16  ;;  %v2131_v14 = vadd.f32 %v2130_v4, %v5559_v16  ;;  %v4813_v2 = vld [vmem:[#allocation5 + $0x624] ss:$8 sps:$4 sm:$0xff]  }
 0x44d   : > { %v2004_v9 = vadd.f32 %v2003_v6, %v5556_v13  ;;  %v2133_v10 = vadd.f32 %v2132_v7, %v5556_v13  ;;  %v2005_v11 = vpop.f32.mrb[127].mxu0  ;;  %v2134_v3 = vpop.f32.mrb[127].mxu1  ;;  %2849 = vmatprep.subr.bf16.mxu0 %v4798_v54  ;;  %2978 = vmatprep.subr.bf16.mxu1 %v4798_v54  ;;  %v4801_v13 = vld [vmem:[#allocation5 + $0x5e4] ss:$8 sps:$4 sm:$0xff]  }
 0x44e   : > { %v2006_v15 = vadd.f32 %v2005_v11, %v5559_v16  ;;  %v2135_v17 = vadd.f32 %v2134_v3, %v5559_v16  ;;  %v4807_v16 = vld [vmem:[#allocation5 + $0x604] ss:$8 sps:$4 sm:$0xff]   ;;  %v4811_v11 = vld [vmem:[#allocation5 + $0x620] ss:$8 sps:$4 sm:$0xff]   ;;  %v4816_v3 = vld [vmem:[#allocation5 + $0x634] ss:$8 sps:$4 sm:$0xff]  }
 0x44f   : > { %v2151_v18 = vpack.c.bf16 %v2004_v9, %v2000_v5  ;;  %v2486_v19 = vpack.c.bf16 %v2133_v10, %v2129_v0 }
 0x450   : > { %v2152_v20 = vpack.c.bf16 %v2006_v15, %v2002_v12  ;;  %v2487_v21 = vpack.c.bf16 %v2135_v17, %v2131_v14  ;;  %2850 = vmatpush1.bf16.msra.mxu0 %v4796_v8  ;;  %2979 = vmatpush1.bf16.msra.mxu1 %v4796_v8 }
 0x451   : > { %2851 = vmatprep.subr.bf16.mxu0 %v4801_v13  ;;  %2980 = vmatprep.subr.bf16.mxu1 %v4801_v13 }
 0x452   : > { %2461 = vmatprep.mubr.bf16.mxu0 %v2152_v20  ;;  %2590 = vmatprep.mubr.bf16.mxu1 %v2487_v21  ;;  %v4814_v21 = vld [vmem:[#allocation5 + $0x630] ss:$8 sps:$4 sm:$0xff]  }
 0x453   : > { %2462 = vmatmul.mubr.bf16.gmra.mrb[156].mxu0 %v2151_v18  ;;  %2591 = vmatmul.mubr.bf16.gmra.mrb[156].mxu1 %v2486_v19 }
 0x454   : > { %2852 = vmatpush1.bf16.msra.mxu0 %v4799_v22  ;;  %2981 = vmatpush1.bf16.msra.mxu1 %v4799_v22 }
 0x455   : > { %2853 = vmatprep.subr.bf16.mxu0 %v4804_v23  ;;  %2982 = vmatprep.subr.bf16.mxu1 %v4804_v23 }
 0x458   : > { %2854 = vmatpush1.bf16.msra.mxu0 %v4802_v24  ;;  %2983 = vmatpush1.bf16.msra.mxu1 %v4802_v24 }
 0x459   : > { %3287 = vmatprep.subr.bf16.mxu0 %v4807_v16  ;;  %3416 = vmatprep.subr.bf16.mxu1 %v4807_v16 }
 0x4ee   : > { %v2393_v27 = vpop.f32.mrb[128].mxu0  ;;  %v2522_v28 = vpop.f32.mrb[128].mxu1 }
 0x4ef   : > { %v2395_v30 = vpop.f32.mrb[129].mxu0  ;;  %v2524_v31 = vpop.f32.mrb[129].mxu1  ;;  %v2394_v34 = vadd.f32 %v2393_v27, %v5626_v26  ;;  %v2523_v36 = vadd.f32 %v2522_v28, %v5626_v26 }
 0x4f0   : > { %v2397_v32 = vpop.f32.mrb[130].mxu0  ;;  %v2526_v33 = vpop.f32.mrb[130].mxu1  ;;  %v2396_v44 = vadd.f32 %v2395_v30, %v5629_v29  ;;  %v2525_v45 = vadd.f32 %v2524_v31, %v5629_v29 }
 0x4f1   : > { %v2398_v39 = vadd.f32 %v2397_v32, %v5626_v26  ;;  %v2527_v40 = vadd.f32 %v2526_v33, %v5626_v26  ;;  %v2399_v42 = vpop.f32.mrb[131].mxu0  ;;  %v2528_v43 = vpop.f32.mrb[131].mxu1 }
 0x4f2   : > { %v2400_v46 = vadd.f32 %v2399_v42, %v5629_v29  ;;  %v2529_v38 = vadd.f32 %v2528_v43, %v5629_v29 }
 0x4f3   : > { %v2601_v47 = vpack.c.bf16 %v2398_v39, %v2394_v34  ;;  %v2936_v48 = vpack.c.bf16 %v2527_v40, %v2523_v36  ;;  %v4817_v39 = vld [vmem:[#allocation5 + $0x640] ss:$8 sps:$4 sm:$0xff]   ;;  %v4822_v40 = vld [vmem:[#allocation5 + $0x654] ss:$8 sps:$4 sm:$0xff]  }
 0x4f4   : > { %v2602_v49 = vpack.c.bf16 %v2400_v46, %v2396_v44  ;;  %v2937_v41 = vpack.c.bf16 %v2529_v38, %v2525_v45 }
 0x4f6   : > { %v2403_v53 = vpop.f32.mrb[132].mxu0  ;;  %v2532_v55 = vpop.f32.mrb[132].mxu1  ;;  %2855 = vmatprep.mubr.bf16.mxu0 %v2602_v49  ;;  %2984 = vmatprep.mubr.bf16.mxu1 %v2937_v41 }
 0x4f7   : > { %v2405_v56 = vpop.f32.mrb[133].mxu0  ;;  %v2534_v57 = vpop.f32.mrb[133].mxu1  ;;  %2856 = vmatmul.mubr.bf16.vlgmr.msra.gmra.mrb[160].mxu0 %v2601_v47  ;;  %2985 = vmatmul.mubr.bf16.vlgmr.msra.gmra.mrb[160].mxu1 %v2936_v48  ;;  %v2404_v58 = vadd.f32 %v2403_v53, %v5626_v26  ;;  %v2533_v61 = vadd.f32 %v2532_v55, %v5626_v26  ;;  %v4820_v48 = vld [vmem:[#allocation5 + $0x650] ss:$8 sps:$4 sm:$0xff]   ;;  %v4825_v55 = vld [vmem:[#allocation5 + $0x664] ss:$8 sps:$4 sm:$0xff]  }
 0x4f8   : > { %v2407_v59 = vpop.f32.mrb[134].mxu0  ;;  %v2536_v51 = vpop.f32.mrb[134].mxu1  ;;  %3288 = vmatpush1.bf16.msra.mxu0 %v4805_v50  ;;  %3417 = vmatpush1.bf16.msra.mxu1 %v4805_v50  ;;  %v2406_v4 = vadd.f32 %v2405_v56, %v5629_v29  ;;  %v2535_v5 = vadd.f32 %v2534_v57, %v5629_v29 }
 0x4f9   : > { %v2408_v62 = vadd.f32 %v2407_v59, %v5626_v26  ;;  %v2537_v54 = vadd.f32 %v2536_v51, %v5626_v26  ;;  %v2409_v63 = vpop.f32.mrb[135].mxu0  ;;  %v2538_v1 = vpop.f32.mrb[135].mxu1  ;;  %3289 = vmatprep.subr.bf16.mxu0 %v4810_v52  ;;  %3418 = vmatprep.subr.bf16.mxu1 %v4810_v52 }
 0x4fa   : > { %v2410_v6 = vadd.f32 %v2409_v63, %v5629_v29  ;;  %v2539_v7 = vadd.f32 %v2538_v1, %v5629_v29  ;;  %v4828_v63 = vld [vmem:[#allocation5 + $0x674] ss:$8 sps:$4 sm:$0xff]  }
 0x4fb   : > { %v2603_v8 = vpack.c.bf16 %v2408_v62, %v2404_v58  ;;  %v2938_v0 = vpack.c.bf16 %v2537_v54, %v2533_v61  ;;  %v4823_v54 = vld [vmem:[#allocation5 + $0x660] ss:$8 sps:$4 sm:$0xff]  }
 0x4fc   : > { %v2604_v9 = vpack.c.bf16 %v2410_v6, %v2406_v4  ;;  %v2939_v10 = vpack.c.bf16 %v2539_v7, %v2535_v5  ;;  %3290 = vmatpush1.bf16.msra.mxu0 %v4808_v60  ;;  %3419 = vmatpush1.bf16.msra.mxu1 %v4808_v60 }
 0x4fd   : > { %3291 = vmatprep.subr.bf16.mxu0 %v4813_v2  ;;  %3420 = vmatprep.subr.bf16.mxu1 %v4813_v2 }
 0x4fe   : > { %v2413_v12 = vpop.f32.mrb[136].mxu0  ;;  %v2542_v14 = vpop.f32.mrb[136].mxu1  ;;  %2865 = vmatprep.mubr.bf16.mxu0 %v2604_v9  ;;  %2994 = vmatprep.mubr.bf16.mxu1 %v2939_v10 }
 0x4ff   : > { %v2415_v15 = vpop.f32.mrb[137].mxu0  ;;  %v2544_v17 = vpop.f32.mrb[137].mxu1  ;;  %2866 = vmatmul.mubr.bf16.gmra.mrb[164].mxu0 %v2603_v8  ;;  %2995 = vmatmul.mubr.bf16.gmra.mrb[164].mxu1 %v2938_v0  ;;  %v2414_v18 = vadd.f32 %v2413_v12, %v5626_v26  ;;  %v2543_v13 = vadd.f32 %v2542_v14, %v5626_v26  ;;  %v4826_v0 = vld [vmem:[#allocation5 + $0x670] ss:$8 sps:$4 sm:$0xff]   ;;  %v4831_v14 = vld [vmem:[#allocation5 + $0x684] ss:$8 sps:$4 sm:$0xff]  }
 0x500   : > { %v2417_v19 = vpop.f32.mrb[138].mxu0  ;;  %v2546_v20 = vpop.f32.mrb[138].mxu1  ;;  %3292 = vmatpush1.bf16.msra.mxu0 %v4811_v11  ;;  %3421 = vmatpush1.bf16.msra.mxu1 %v4811_v11  ;;  %v2416_v27 = vadd.f32 %v2415_v15, %v5629_v29  ;;  %v2545_v28 = vadd.f32 %v2544_v17, %v5629_v29 }
 0x501   : > { %v2418_v22 = vadd.f32 %v2417_v19, %v5626_v26  ;;  %v2547_v23 = vadd.f32 %v2546_v20, %v5626_v26  ;;  %v2419_v24 = vpop.f32.mrb[139].mxu0  ;;  %v2548_v16 = vpop.f32.mrb[139].mxu1  ;;  %3293 = vmatprep.subr.bf16.mxu0 %v4816_v3  ;;  %3422 = vmatprep.subr.bf16.mxu1 %v4816_v3 }
 0x502   : > { %v2420_v30 = vadd.f32 %v2419_v24, %v5629_v29  ;;  %v2549_v31 = vadd.f32 %v2548_v16, %v5629_v29  ;;  %v4834_v24 = vld [vmem:[#allocation5 + $0x694] ss:$8 sps:$4 sm:$0xff]  }
 0x503   : > { %v2605_v32 = vpack.c.bf16 %v2418_v22, %v2414_v18  ;;  %v2940_v33 = vpack.c.bf16 %v2547_v23, %v2543_v13  ;;  %v4829_v23 = vld [vmem:[#allocation5 + $0x680] ss:$8 sps:$4 sm:$0xff]  }
 0x504   : > { %v2606_v34 = vpack.c.bf16 %v2420_v30, %v2416_v27  ;;  %v2941_v36 = vpack.c.bf16 %v2549_v31, %v2545_v28  ;;  %3294 = vmatpush1.bf16.msra.mxu0 %v4814_v21  ;;  %3423 = vmatpush1.bf16.msra.mxu1 %v4814_v21 }
 0x505   : > { %3295 = vmatprep.subr.bf16.mxu0 %v4819_v25  ;;  %3424 = vmatprep.subr.bf16.mxu1 %v4819_v25 }
 0x506   : > { %v2423_v42 = vpop.f32.mrb[140].mxu0  ;;  %v2552_v43 = vpop.f32.mrb[140].mxu1  ;;  %2875 = vmatprep.mubr.bf16.mxu0 %v2606_v34  ;;  %3004 = vmatprep.mubr.bf16.mxu1 %v2941_v36 }
 0x507   : > { %v2425_v44 = vpop.f32.mrb[141].mxu0  ;;  %v2554_v45 = vpop.f32.mrb[141].mxu1  ;;  %2876 = vmatmul.mubr.bf16.gmra.mrb[168].mxu0 %v2605_v32  ;;  %3005 = vmatmul.mubr.bf16.gmra.mrb[168].mxu1 %v2940_v33  ;;  %v2424_v46 = vadd.f32 %v2423_v42, %v5626_v26  ;;  %v2553_v49 = vadd.f32 %v2552_v43, %v5626_v26  ;;  %v4832_v33 = vld [vmem:[#allocation5 + $0x690] ss:$8 sps:$4 sm:$0xff]   ;;  %v4837_v43 = vld [vmem:[#allocation5 + $0x6a4] ss:$8 sps:$4 sm:$0xff]  }
 0x508   : > { %v2427_v38 = vpop.f32.mrb[142].mxu0  ;;  %v2556_v47 = vpop.f32.mrb[142].mxu1  ;;  %3296 = vmatpush1.bf16.msra.mxu0 %v4817_v39  ;;  %3425 = vmatpush1.bf16.msra.mxu1 %v4817_v39  ;;  %v2426_v56 = vadd.f32 %v2425_v44, %v5629_v29  ;;  %v2555_v57 = vadd.f32 %v2554_v45, %v5629_v29 }
 0x509   : > { %v2428_v41 = vadd.f32 %v2427_v38, %v5626_v26  ;;  %v2557_v50 = vadd.f32 %v2556_v47, %v5626_v26  ;;  %v2429_v52 = vpop.f32.mrb[143].mxu0  ;;  %v2558_v53 = vpop.f32.mrb[143].mxu1  ;;  %3297 = vmatprep.subr.bf16.mxu0 %v4822_v40  ;;  %3426 = vmatprep.subr.bf16.mxu1 %v4822_v40 }
 0x50a   : > { %v2430_v58 = vadd.f32 %v2429_v52, %v5629_v29  ;;  %v2559_v59 = vadd.f32 %v2558_v53, %v5629_v29  ;;  %v4840_v52 = vld [vmem:[#allocation5 + $0x6b4] ss:$8 sps:$4 sm:$0xff]  }
 0x50b   : > { %v2607_v51 = vpack.c.bf16 %v2428_v41, %v2424_v46  ;;  %v2942_v60 = vpack.c.bf16 %v2557_v50, %v2553_v49  ;;  %v4835_v50 = vld [vmem:[#allocation5 + $0x6a0] ss:$8 sps:$4 sm:$0xff]  }
 0x50c   : > { %v2608_v61 = vpack.c.bf16 %v2430_v58, %v2426_v56  ;;  %v2943_v62 = vpack.c.bf16 %v2559_v59, %v2555_v57  ;;  %3298 = vmatpush1.bf16.msra.mxu0 %v4820_v48  ;;  %3427 = vmatpush1.bf16.msra.mxu1 %v4820_v48 }
 0x50d   : > { %3299 = vmatprep.subr.bf16.mxu0 %v4825_v55  ;;  %3428 = vmatprep.subr.bf16.mxu1 %v4825_v55 }
 0x50e   : > { %v2433_v1 = vpop.f32.mrb[144].mxu0  ;;  %v2562_v2 = vpop.f32.mrb[144].mxu1  ;;  %2885 = vmatprep.mubr.bf16.mxu0 %v2608_v61  ;;  %3014 = vmatprep.mubr.bf16.mxu1 %v2943_v62 }
 0x50f   : > { %v2435_v4 = vpop.f32.mrb[145].mxu0  ;;  %v2564_v5 = vpop.f32.mrb[145].mxu1  ;;  %2886 = vmatmul.mubr.bf16.gmra.mrb[172].mxu0 %v2607_v51  ;;  %3015 = vmatmul.mubr.bf16.gmra.mrb[172].mxu1 %v2942_v60  ;;  %v2434_v6 = vadd.f32 %v2433_v1, %v5626_v26  ;;  %v2563_v9 = vadd.f32 %v2562_v2, %v5626_v26  ;;  %v4838_v60 = vld [vmem:[#allocation5 + $0x6b0] ss:$8 sps:$4 sm:$0xff]   ;;  %v4843_v2 = vld [vmem:[#allocation5 + $0x6c4] ss:$8 sps:$4 sm:$0xff]  }
 0x510   : > { %v2437_v7 = vpop.f32.mrb[146].mxu0  ;;  %v2566_v8 = vpop.f32.mrb[146].mxu1  ;;  %3300 = vmatpush1.bf16.msra.mxu0 %v4823_v54  ;;  %3429 = vmatpush1.bf16.msra.mxu1 %v4823_v54  ;;  %v2436_v15 = vadd.f32 %v2435_v4, %v5629_v29  ;;  %v2565_v17 = vadd.f32 %v2564_v5, %v5629_v29 }
 0x511   : > { %v2438_v10 = vadd.f32 %v2437_v7, %v5626_v26  ;;  %v2567_v11 = vadd.f32 %v2566_v8, %v5626_v26  ;;  %v2439_v3 = vpop.f32.mrb[147].mxu0  ;;  %v2568_v12 = vpop.f32.mrb[147].mxu1  ;;  %3301 = vmatprep.subr.bf16.mxu0 %v4828_v63  ;;  %3430 = vmatprep.subr.bf16.mxu1 %v4828_v63 }
 0x512   : > { %v2440_v18 = vadd.f32 %v2439_v3, %v5629_v29  ;;  %v2569_v19 = vadd.f32 %v2568_v12, %v5629_v29  ;;  %v4846_v3 = vld [vmem:[#allocation5 + $0x6d4] ss:$8 sps:$4 sm:$0xff]  }
 0x513   : > { %v2609_v20 = vpack.c.bf16 %v2438_v10, %v2434_v6  ;;  %v2944_v21 = vpack.c.bf16 %v2567_v11, %v2563_v9  ;;  %v4841_v11 = vld [vmem:[#allocation5 + $0x6c0] ss:$8 sps:$4 sm:$0xff]  }
 0x514   : > { %v2610_v13 = vpack.c.bf16 %v2440_v18, %v2436_v15  ;;  %v2945_v22 = vpack.c.bf16 %v2569_v19, %v2565_v17  ;;  %3302 = vmatpush1.bf16.msra.mxu0 %v4826_v0  ;;  %3431 = vmatpush1.bf16.msra.mxu1 %v4826_v0 }
 0x515   : > { %3303 = vmatprep.subr.bf16.mxu0 %v4831_v14  ;;  %3432 = vmatprep.subr.bf16.mxu1 %v4831_v14 }
 0x516   : > { %v2443_v16 = vpop.f32.mrb[148].mxu0  ;;  %v2572_v25 = vpop.f32.mrb[148].mxu1  ;;  %2895 = vmatprep.mubr.bf16.mxu0 %v2610_v13  ;;  %3024 = vmatprep.mubr.bf16.mxu1 %v2945_v22 }
 0x517   : > { %v2445_v27 = vpop.f32.mrb[149].mxu0  ;;  %v2574_v28 = vpop.f32.mrb[149].mxu1  ;;  %2896 = vmatmul.mubr.bf16.gmra.mrb[176].mxu0 %v2609_v20  ;;  %3025 = vmatmul.mubr.bf16.gmra.mrb[176].mxu1 %v2944_v21  ;;  %v2444_v30 = vadd.f32 %v2443_v16, %v5626_v26  ;;  %v2573_v34 = vadd.f32 %v2572_v25, %v5626_v26  ;;  %v4844_v21 = vld [vmem:[#allocation5 + $0x6d0] ss:$8 sps:$4 sm:$0xff]  }
 0x518   : > { %v2447_v31 = vpop.f32.mrb[150].mxu0  ;;  %v2576_v32 = vpop.f32.mrb[150].mxu1  ;;  %3304 = vmatpush1.bf16.msra.mxu0 %v4829_v23  ;;  %3433 = vmatpush1.bf16.msra.mxu1 %v4829_v23  ;;  %v2446_v44 = vadd.f32 %v2445_v27, %v5629_v29  ;;  %v2575_v45 = vadd.f32 %v2574_v28, %v5629_v29 }
 0x519   : > { %v2448_v36 = vadd.f32 %v2447_v31, %v5626_v26  ;;  %v2577_v39 = vadd.f32 %v2576_v32, %v5626_v26  ;;  %v2449_v40 = vpop.f32.mrb[151].mxu0  ;;  %v2578_v42 = vpop.f32.mrb[151].mxu1  ;;  %3305 = vmatprep.subr.bf16.mxu0 %v4834_v24  ;;  %3434 = vmatprep.subr.bf16.mxu1 %v4834_v24 }
 0x51a   : > { %v2450_v46 = vadd.f32 %v2449_v40, %v5629_v29  ;;  %v2579_v38 = vadd.f32 %v2578_v42, %v5629_v29  ;;  %v4850_v40 = vld [vmem:[#allocation5 + $0x6f0] ss:$8 sps:$4 sm:$0xff]   ;;  %v2651_v42 = vld [vmem:[#allocation7 + $0x5] ss:$8 sm:$0x3] }
 0x51b   : > { %v2611_v47 = vpack.c.bf16 %v2448_v36, %v2444_v30  ;;  %v2946_v48 = vpack.c.bf16 %v2577_v39, %v2573_v34  ;;  %v4847_v36 = vld [vmem:[#allocation5 + $0x6e0] ss:$8 sps:$4 sm:$0xff]   ;;  %v4852_v39 = vld [vmem:[#allocation5 + $0x6f4] ss:$8 sps:$4 sm:$0xff]  }
 0x51c   : > { %v2612_v49 = vpack.c.bf16 %v2450_v46, %v2446_v44  ;;  %v2947_v41 = vpack.c.bf16 %v2579_v38, %v2575_v45  ;;  %3306 = vmatpush1.bf16.msra.mxu0 %v4832_v33  ;;  %3435 = vmatpush1.bf16.msra.mxu1 %v4832_v33  ;;  %v5699_v46 = vrot.slane %v2651_v42, %v5343_v37 }
 0x51d   : > { %3307 = vmatprep.subr.bf16.mxu0 %v4837_v43  ;;  %3436 = vmatprep.subr.bf16.mxu1 %v4837_v43  ;;  %v5696_v43 = vrot.slane %v2651_v42, %v5341_v35  ;;  %v4867_v42 = vld [vmem:[#allocation5 + $0x744] ss:$8 sps:$4 sm:$0xff]  }
 0x51e   : > { %v2453_v53 = vpop.f32.mrb[152].mxu0  ;;  %v2582_v55 = vpop.f32.mrb[152].mxu1  ;;  %2905 = vmatprep.mubr.bf16.mxu0 %v2612_v49  ;;  %3034 = vmatprep.mubr.bf16.mxu1 %v2947_v41 }
 0x51f   : > { %v2455_v56 = vpop.f32.mrb[153].mxu0  ;;  %v2584_v57 = vpop.f32.mrb[153].mxu1  ;;  %2906 = vmatmul.mubr.bf16.gmra.mrb[180].mxu0 %v2611_v47  ;;  %3035 = vmatmul.mubr.bf16.gmra.mrb[180].mxu1 %v2946_v48  ;;  %v2454_v58 = vadd.f32 %v2453_v53, %v5626_v26  ;;  %v2583_v61 = vadd.f32 %v2582_v55, %v5626_v26 }
 0x520   : > { %v2457_v59 = vpop.f32.mrb[154].mxu0  ;;  %v2586_v51 = vpop.f32.mrb[154].mxu1  ;;  %3308 = vmatpush1.bf16.msra.mxu0 %v4835_v50  ;;  %3437 = vmatpush1.bf16.msra.mxu1 %v4835_v50  ;;  %v2456_v4 = vadd.f32 %v2455_v56, %v5629_v29  ;;  %v2585_v5 = vadd.f32 %v2584_v57, %v5629_v29 }
 0x521   : > { %v2458_v62 = vadd.f32 %v2457_v59, %v5626_v26  ;;  %v2587_v54 = vadd.f32 %v2586_v51, %v5626_v26  ;;  %v2459_v63 = vpop.f32.mrb[155].mxu0  ;;  %v2588_v1 = vpop.f32.mrb[155].mxu1  ;;  %3309 = vmatprep.subr.bf16.mxu0 %v4840_v52  ;;  %3438 = vmatprep.subr.bf16.mxu1 %v4840_v52 }
 0x522   : > { %v2460_v6 = vadd.f32 %v2459_v63, %v5629_v29  ;;  %v2589_v7 = vadd.f32 %v2588_v1, %v5629_v29  ;;  %v4853_v63 = vld [vmem:[#allocation5 + $0x700] ss:$8 sps:$4 sm:$0xff]   ;;  %v4858_v1 = vld [vmem:[#allocation5 + $0x714] ss:$8 sps:$4 sm:$0xff]  }
 0x523   : > { %v2613_v8 = vpack.c.bf16 %v2458_v62, %v2454_v58  ;;  %v2948_v0 = vpack.c.bf16 %v2587_v54, %v2583_v61 }
 0x524   : > { %v2614_v9 = vpack.c.bf16 %v2460_v6, %v2456_v4  ;;  %v2949_v10 = vpack.c.bf16 %v2589_v7, %v2585_v5  ;;  %3310 = vmatpush1.bf16.msra.mxu0 %v4838_v60  ;;  %3439 = vmatpush1.bf16.msra.mxu1 %v4838_v60 }
 0x525   : > { %3311 = vmatprep.subr.bf16.mxu0 %v4843_v2  ;;  %3440 = vmatprep.subr.bf16.mxu1 %v4843_v2 }
 0x526   : > { %v2463_v12 = vpop.f32.mrb[156].mxu0  ;;  %v2592_v14 = vpop.f32.mrb[156].mxu1  ;;  %2915 = vmatprep.mubr.bf16.mxu0 %v2614_v9  ;;  %3044 = vmatprep.mubr.bf16.mxu1 %v2949_v10  ;;  %v4856_v9 = vld [vmem:[#allocation5 + $0x710] ss:$8 sps:$4 sm:$0xff]  }
 0x527   : > { %v2465_v15 = vpop.f32.mrb[157].mxu0  ;;  %v2594_v17 = vpop.f32.mrb[157].mxu1  ;;  %2916 = vmatmul.mubr.bf16.gmra.mrb[184].mxu0 %v2613_v8  ;;  %3045 = vmatmul.mubr.bf16.gmra.mrb[184].mxu1 %v2948_v0  ;;  %v2464_v18 = vadd.f32 %v2463_v12, %v5626_v26  ;;  %v2593_v13 = vadd.f32 %v2592_v14, %v5626_v26 }
 0x528   : > { %v2467_v19 = vpop.f32.mrb[158].mxu0  ;;  %v2596_v20 = vpop.f32.mrb[158].mxu1  ;;  %3312 = vmatpush1.bf16.msra.mxu0 %v4841_v11  ;;  %3441 = vmatpush1.bf16.msra.mxu1 %v4841_v11  ;;  %v2466_v25 = vadd.f32 %v2465_v15, %v5629_v29  ;;  %v2595_v27 = vadd.f32 %v2594_v17, %v5629_v29  ;;  %v4861_v15 = vld [vmem:[#allocation5 + $0x724] ss:$8 sps:$4 sm:$0xff]  }
 0x529   : > { %v2468_v22 = vadd.f32 %v2467_v19, %v5626_v26  ;;  %v2597_v23 = vadd.f32 %v2596_v20, %v5626_v26  ;;  %v2469_v24 = vpop.f32.mrb[159].mxu0  ;;  %v2598_v16 = vpop.f32.mrb[159].mxu1  ;;  %3313 = vmatprep.subr.bf16.mxu0 %v4846_v3  ;;  %3442 = vmatprep.subr.bf16.mxu1 %v4846_v3  ;;  %v4849_v26 = vld [vmem:[#allocation5 + $0x6e4] ss:$8 sps:$4 sm:$0xff]  }
 0x52a   : > { %v2470_v28 = vadd.f32 %v2469_v24, %v5629_v29  ;;  %v2599_v30 = vadd.f32 %v2598_v16, %v5629_v29  ;;  %v4855_v29 = vld [vmem:[#allocation5 + $0x704] ss:$8 sps:$4 sm:$0xff]   ;;  %v4859_v24 = vld [vmem:[#allocation5 + $0x720] ss:$8 sps:$4 sm:$0xff]   ;;  %v4864_v16 = vld [vmem:[#allocation5 + $0x734] ss:$8 sps:$4 sm:$0xff]  }
 0x52b   : > { %v2615_v31 = vpack.c.bf16 %v2468_v22, %v2464_v18  ;;  %v2950_v32 = vpack.c.bf16 %v2597_v23, %v2593_v13 }
 0x52c   : > { %v2616_v33 = vpack.c.bf16 %v2470_v28, %v2466_v25  ;;  %v2951_v34 = vpack.c.bf16 %v2599_v30, %v2595_v27  ;;  %3314 = vmatpush1.bf16.msra.mxu0 %v4844_v21  ;;  %3443 = vmatpush1.bf16.msra.mxu1 %v4844_v21 }
 0x52d   : > { %3315 = vmatprep.subr.bf16.mxu0 %v4849_v26  ;;  %3444 = vmatprep.subr.bf16.mxu1 %v4849_v26 }
 0x52e   : > { %2925 = vmatprep.mubr.bf16.mxu0 %v2616_v33  ;;  %3054 = vmatprep.mubr.bf16.mxu1 %v2951_v34  ;;  %v4862_v34 = vld [vmem:[#allocation5 + $0x730] ss:$8 sps:$4 sm:$0xff]  }
 0x52f   : > { %2926 = vmatmul.mubr.bf16.gmra.mrb[188].mxu0 %v2615_v31  ;;  %3055 = vmatmul.mubr.bf16.gmra.mrb[188].mxu1 %v2950_v32 }
 0x530   : > { %3316 = vmatpush1.bf16.msra.mxu0 %v4847_v36  ;;  %3445 = vmatpush1.bf16.msra.mxu1 %v4847_v36 }
 0x531   : > { %3317 = vmatprep.subr.bf16.mxu0 %v4852_v39  ;;  %3446 = vmatprep.subr.bf16.mxu1 %v4852_v39 }
 0x534   : > { %3318 = vmatpush1.bf16.msra.mxu0 %v4850_v40  ;;  %3447 = vmatpush1.bf16.msra.mxu1 %v4850_v40 }
 0x535   : > { %3751 = vmatprep.subr.bf16.mxu0 %v4855_v29  ;;  %3880 = vmatprep.subr.bf16.mxu1 %v4855_v29 }
 0x5ca   : > { %v2857_v44 = vpop.f32.mrb[160].mxu0  ;;  %v2986_v45 = vpop.f32.mrb[160].mxu1 }
 0x5cb   : > { %v2859_v38 = vpop.f32.mrb[161].mxu0  ;;  %v2988_v47 = vpop.f32.mrb[161].mxu1  ;;  %v2858_v41 = vadd.f32 %v2857_v44, %v5696_v43  ;;  %v2987_v50 = vadd.f32 %v2986_v45, %v5696_v43 }
 0x5cc   : > { %v2861_v48 = vpop.f32.mrb[162].mxu0  ;;  %v2990_v49 = vpop.f32.mrb[162].mxu1  ;;  %v2860_v57 = vadd.f32 %v2859_v38, %v5699_v46  ;;  %v2989_v58 = vadd.f32 %v2988_v47, %v5699_v46 }
 0x5cd   : > { %v2862_v52 = vadd.f32 %v2861_v48, %v5696_v43  ;;  %v2991_v53 = vadd.f32 %v2990_v49, %v5696_v43  ;;  %v2863_v55 = vpop.f32.mrb[163].mxu0  ;;  %v2992_v56 = vpop.f32.mrb[163].mxu1 }
 0x5ce   : > { %v2864_v59 = vadd.f32 %v2863_v55, %v5699_v46  ;;  %v2993_v51 = vadd.f32 %v2992_v56, %v5699_v46 }
 0x5cf   : > { %v3065_v60 = vpack.c.bf16 %v2862_v52, %v2858_v41  ;;  %v3400_v61 = vpack.c.bf16 %v2991_v53, %v2987_v50  ;;  %v4865_v52 = vld [vmem:[#allocation5 + $0x740] ss:$8 sps:$4 sm:$0xff]   ;;  %v4870_v53 = vld [vmem:[#allocation5 + $0x754] ss:$8 sps:$4 sm:$0xff]  }
 0x5d0   : > { %v3066_v62 = vpack.c.bf16 %v2864_v59, %v2860_v57  ;;  %v3401_v54 = vpack.c.bf16 %v2993_v51, %v2989_v58 }
 0x5d2   : > { %v2867_v2 = vpop.f32.mrb[164].mxu0  ;;  %v2996_v4 = vpop.f32.mrb[164].mxu1  ;;  %3319 = vmatprep.mubr.bf16.mxu0 %v3066_v62  ;;  %3448 = vmatprep.mubr.bf16.mxu1 %v3401_v54 }
 0x5d3   : > { %v2869_v5 = vpop.f32.mrb[165].mxu0  ;;  %v2998_v6 = vpop.f32.mrb[165].mxu1  ;;  %3320 = vmatmul.mubr.bf16.vlgmr.msra.gmra.mrb[192].mxu0 %v3065_v60  ;;  %3449 = vmatmul.mubr.bf16.vlgmr.msra.gmra.mrb[192].mxu1 %v3400_v61  ;;  %v2868_v7 = vadd.f32 %v2867_v2, %v5696_v43  ;;  %v2997_v10 = vadd.f32 %v2996_v4, %v5696_v43  ;;  %v4868_v61 = vld [vmem:[#allocation5 + $0x750] ss:$8 sps:$4 sm:$0xff]   ;;  %v4873_v4 = vld [vmem:[#allocation5 + $0x764] ss:$8 sps:$4 sm:$0xff]  }
 0x5d4   : > { %v2871_v8 = vpop.f32.mrb[166].mxu0  ;;  %v3000_v0 = vpop.f32.mrb[166].mxu1  ;;  %3752 = vmatpush1.bf16.msra.mxu0 %v4853_v63  ;;  %3881 = vmatpush1.bf16.msra.mxu1 %v4853_v63  ;;  %v2870_v17 = vadd.f32 %v2869_v5, %v5699_v46  ;;  %v2999_v18 = vadd.f32 %v2998_v6, %v5699_v46 }
 0x5d5   : > { %v2872_v11 = vadd.f32 %v2871_v8, %v5696_v43  ;;  %v3001_v3 = vadd.f32 %v3000_v0, %v5696_v43  ;;  %v2873_v12 = vpop.f32.mrb[167].mxu0  ;;  %v3002_v14 = vpop.f32.mrb[167].mxu1  ;;  %3753 = vmatprep.subr.bf16.mxu0 %v4858_v1  ;;  %3882 = vmatprep.subr.bf16.mxu1 %v4858_v1 }
 0x5d6   : > { %v2874_v19 = vadd.f32 %v2873_v12, %v5699_v46  ;;  %v3003_v20 = vadd.f32 %v3002_v14, %v5699_v46  ;;  %v4876_v12 = vld [vmem:[#allocation5 + $0x774] ss:$8 sps:$4 sm:$0xff]  }
 0x5d7   : > { %v3067_v21 = vpack.c.bf16 %v2872_v11, %v2868_v7  ;;  %v3402_v13 = vpack.c.bf16 %v3001_v3, %v2997_v10  ;;  %v4871_v3 = vld [vmem:[#allocation5 + $0x760] ss:$8 sps:$4 sm:$0xff]  }
 0x5d8   : > { %v3068_v22 = vpack.c.bf16 %v2874_v19, %v2870_v17  ;;  %v3403_v23 = vpack.c.bf16 %v3003_v20, %v2999_v18  ;;  %3754 = vmatpush1.bf16.msra.mxu0 %v4856_v9  ;;  %3883 = vmatpush1.bf16.msra.mxu1 %v4856_v9 }
 0x5d9   : > { %3755 = vmatprep.subr.bf16.mxu0 %v4861_v15  ;;  %3884 = vmatprep.subr.bf16.mxu1 %v4861_v15 }
 0x5da   : > { %v2877_v25 = vpop.f32.mrb[168].mxu0  ;;  %v3006_v27 = vpop.f32.mrb[168].mxu1  ;;  %3329 = vmatprep.mubr.bf16.mxu0 %v3068_v22  ;;  %3458 = vmatprep.mubr.bf16.mxu1 %v3403_v23 }
 0x5db   : > { %v2879_v28 = vpop.f32.mrb[169].mxu0  ;;  %v3008_v30 = vpop.f32.mrb[169].mxu1  ;;  %3330 = vmatmul.mubr.bf16.gmra.mrb[196].mxu0 %v3067_v21  ;;  %3459 = vmatmul.mubr.bf16.gmra.mrb[196].mxu1 %v3402_v13  ;;  %v2878_v31 = vadd.f32 %v2877_v25, %v5696_v43  ;;  %v3007_v26 = vadd.f32 %v3006_v27, %v5696_v43  ;;  %v4874_v13 = vld [vmem:[#allocation5 + $0x770] ss:$8 sps:$4 sm:$0xff]   ;;  %v4879_v27 = vld [vmem:[#allocation5 + $0x784] ss:$8 sps:$4 sm:$0xff]  }
 0x5dc   : > { %v2881_v32 = vpop.f32.mrb[170].mxu0  ;;  %v3010_v33 = vpop.f32.mrb[170].mxu1  ;;  %3756 = vmatpush1.bf16.msra.mxu0 %v4859_v24  ;;  %3885 = vmatpush1.bf16.msra.mxu1 %v4859_v24  ;;  %v2880_v44 = vadd.f32 %v2879_v28, %v5699_v46  ;;  %v3009_v45 = vadd.f32 %v3008_v30, %v5699_v46 }
 0x5dd   : > { %v2882_v36 = vadd.f32 %v2881_v32, %v5696_v43  ;;  %v3011_v39 = vadd.f32 %v3010_v33, %v5696_v43  ;;  %v2883_v40 = vpop.f32.mrb[171].mxu0  ;;  %v3012_v29 = vpop.f32.mrb[171].mxu1  ;;  %3757 = vmatprep.subr.bf16.mxu0 %v4864_v16  ;;  %3886 = vmatprep.subr.bf16.mxu1 %v4864_v16 }
 0x5de   : > { %v2884_v38 = vadd.f32 %v2883_v40, %v5699_v46  ;;  %v3013_v47 = vadd.f32 %v3012_v29, %v5699_v46  ;;  %v4882_v40 = vld [vmem:[#allocation5 + $0x794] ss:$8 sps:$4 sm:$0xff]  }
 0x5df   : > { %v3069_v48 = vpack.c.bf16 %v2882_v36, %v2878_v31  ;;  %v3404_v49 = vpack.c.bf16 %v3011_v39, %v3007_v26  ;;  %v4877_v39 = vld [vmem:[#allocation5 + $0x780] ss:$8 sps:$4 sm:$0xff]  }
 0x5e0   : > { %v3070_v41 = vpack.c.bf16 %v2884_v38, %v2880_v44  ;;  %v3405_v50 = vpack.c.bf16 %v3013_v47, %v3009_v45  ;;  %3758 = vmatpush1.bf16.msra.mxu0 %v4862_v34  ;;  %3887 = vmatpush1.bf16.msra.mxu1 %v4862_v34 }
 0x5e1   : > { %3759 = vmatprep.subr.bf16.mxu0 %v4867_v42  ;;  %3888 = vmatprep.subr.bf16.mxu1 %v4867_v42 }
 0x5e2   : > { %v2887_v55 = vpop.f32.mrb[172].mxu0  ;;  %v3016_v56 = vpop.f32.mrb[172].mxu1  ;;  %3339 = vmatprep.mubr.bf16.mxu0 %v3070_v41  ;;  %3468 = vmatprep.mubr.bf16.mxu1 %v3405_v50 }
 0x5e3   : > { %v2889_v57 = vpop.f32.mrb[173].mxu0  ;;  %v3018_v58 = vpop.f32.mrb[173].mxu1  ;;  %3340 = vmatmul.mubr.bf16.gmra.mrb[200].mxu0 %v3069_v48  ;;  %3469 = vmatmul.mubr.bf16.gmra.mrb[200].mxu1 %v3404_v49  ;;  %v2888_v59 = vadd.f32 %v2887_v55, %v5696_v43  ;;  %v3017_v62 = vadd.f32 %v3016_v56, %v5696_v43  ;;  %v4880_v49 = vld [vmem:[#allocation5 + $0x790] ss:$8 sps:$4 sm:$0xff]   ;;  %v4885_v56 = vld [vmem:[#allocation5 + $0x7a4] ss:$8 sps:$4 sm:$0xff]  }
 0x5e4   : > { %v2891_v51 = vpop.f32.mrb[174].mxu0  ;;  %v3020_v60 = vpop.f32.mrb[174].mxu1  ;;  %3760 = vmatpush1.bf16.msra.mxu0 %v4865_v52  ;;  %3889 = vmatpush1.bf16.msra.mxu1 %v4865_v52  ;;  %v2890_v5 = vadd.f32 %v2889_v57, %v5699_v46  ;;  %v3019_v6 = vadd.f32 %v3018_v58, %v5699_v46 }
 0x5e5   : > { %v2892_v54 = vadd.f32 %v2891_v51, %v5696_v43  ;;  %v3021_v63 = vadd.f32 %v3020_v60, %v5696_v43  ;;  %v2893_v1 = vpop.f32.mrb[175].mxu0  ;;  %v3022_v2 = vpop.f32.mrb[175].mxu1  ;;  %3761 = vmatprep.subr.bf16.mxu0 %v4870_v53  ;;  %3890 = vmatprep.subr.bf16.mxu1 %v4870_v53 }
 0x5e6   : > { %v2894_v7 = vadd.f32 %v2893_v1, %v5699_v46  ;;  %v3023_v8 = vadd.f32 %v3022_v2, %v5699_v46  ;;  %v4888_v1 = vld [vmem:[#allocation5 + $0x7b4] ss:$8 sps:$4 sm:$0xff]  }
 0x5e7   : > { %v3071_v0 = vpack.c.bf16 %v2892_v54, %v2888_v59  ;;  %v3406_v9 = vpack.c.bf16 %v3021_v63, %v3017_v62  ;;  %v4883_v63 = vld [vmem:[#allocation5 + $0x7a0] ss:$8 sps:$4 sm:$0xff]  }
 0x5e8   : > { %v3072_v10 = vpack.c.bf16 %v2894_v7, %v2890_v5  ;;  %v3407_v11 = vpack.c.bf16 %v3023_v8, %v3019_v6  ;;  %3762 = vmatpush1.bf16.msra.mxu0 %v4868_v61  ;;  %3891 = vmatpush1.bf16.msra.mxu1 %v4868_v61 }
 0x5e9   : > { %3763 = vmatprep.subr.bf16.mxu0 %v4873_v4  ;;  %3892 = vmatprep.subr.bf16.mxu1 %v4873_v4 }
 0x5ea   : > { %v2897_v14 = vpop.f32.mrb[176].mxu0  ;;  %v3026_v15 = vpop.f32.mrb[176].mxu1  ;;  %3349 = vmatprep.mubr.bf16.mxu0 %v3072_v10  ;;  %3478 = vmatprep.mubr.bf16.mxu1 %v3407_v11 }
 0x5eb   : > { %v2899_v17 = vpop.f32.mrb[177].mxu0  ;;  %v3028_v18 = vpop.f32.mrb[177].mxu1  ;;  %3350 = vmatmul.mubr.bf16.gmra.mrb[204].mxu0 %v3071_v0  ;;  %3479 = vmatmul.mubr.bf16.gmra.mrb[204].mxu1 %v3406_v9  ;;  %v2898_v19 = vadd.f32 %v2897_v14, %v5696_v43  ;;  %v3027_v22 = vadd.f32 %v3026_v15, %v5696_v43  ;;  %v4886_v9 = vld [vmem:[#allocation5 + $0x7b0] ss:$8 sps:$4 sm:$0xff]   ;;  %v4891_v15 = vld [vmem:[#allocation5 + $0x7c4] ss:$8 sps:$4 sm:$0xff]  }
 0x5ec   : > { %v2901_v20 = vpop.f32.mrb[178].mxu0  ;;  %v3030_v21 = vpop.f32.mrb[178].mxu1  ;;  %3764 = vmatpush1.bf16.msra.mxu0 %v4871_v3  ;;  %3893 = vmatpush1.bf16.msra.mxu1 %v4871_v3  ;;  %v2900_v28 = vadd.f32 %v2899_v17, %v5699_v46  ;;  %v3029_v30 = vadd.f32 %v3028_v18, %v5699_v46 }
 0x5ed   : > { %v2902_v23 = vadd.f32 %v2901_v20, %v5696_v43  ;;  %v3031_v24 = vadd.f32 %v3030_v21, %v5696_v43  ;;  %v2903_v16 = vpop.f32.mrb[179].mxu0  ;;  %v3032_v25 = vpop.f32.mrb[179].mxu1  ;;  %3765 = vmatprep.subr.bf16.mxu0 %v4876_v12  ;;  %3894 = vmatprep.subr.bf16.mxu1 %v4876_v12 }
 0x5ee   : > { %v2904_v31 = vadd.f32 %v2903_v16, %v5699_v46  ;;  %v3033_v32 = vadd.f32 %v3032_v25, %v5699_v46  ;;  %v4894_v16 = vld [vmem:[#allocation5 + $0x7d4] ss:$8 sps:$4 sm:$0xff]  }
 0x5ef   : > { %v3073_v33 = vpack.c.bf16 %v2902_v23, %v2898_v19  ;;  %v3408_v34 = vpack.c.bf16 %v3031_v24, %v3027_v22  ;;  %v4889_v24 = vld [vmem:[#allocation5 + $0x7c0] ss:$8 sps:$4 sm:$0xff]  }
 0x5f0   : > { %v3074_v26 = vpack.c.bf16 %v2904_v31, %v2900_v28  ;;  %v3409_v36 = vpack.c.bf16 %v3033_v32, %v3029_v30  ;;  %3766 = vmatpush1.bf16.msra.mxu0 %v4874_v13  ;;  %3895 = vmatpush1.bf16.msra.mxu1 %v4874_v13 }
 0x5f1   : > { %3767 = vmatprep.subr.bf16.mxu0 %v4879_v27  ;;  %3896 = vmatprep.subr.bf16.mxu1 %v4879_v27 }
 0x5f2   : > { %v2907_v29 = vpop.f32.mrb[180].mxu0  ;;  %v3036_v42 = vpop.f32.mrb[180].mxu1  ;;  %3359 = vmatprep.mubr.bf16.mxu0 %v3074_v26  ;;  %3488 = vmatprep.mubr.bf16.mxu1 %v3409_v36 }
 0x5f3   : > { %v2909_v44 = vpop.f32.mrb[181].mxu0  ;;  %v3038_v45 = vpop.f32.mrb[181].mxu1  ;;  %3360 = vmatmul.mubr.bf16.gmra.mrb[208].mxu0 %v3073_v33  ;;  %3489 = vmatmul.mubr.bf16.gmra.mrb[208].mxu1 %v3408_v34  ;;  %v2908_v38 = vadd.f32 %v2907_v29, %v5696_v43  ;;  %v3037_v41 = vadd.f32 %v3036_v42, %v5696_v43  ;;  %v4892_v34 = vld [vmem:[#allocation5 + $0x7d0] ss:$8 sps:$4 sm:$0xff]  }
 0x5f4   : > { %v2911_v47 = vpop.f32.mrb[182].mxu0  ;;  %v3040_v48 = vpop.f32.mrb[182].mxu1  ;;  %3768 = vmatpush1.bf16.msra.mxu0 %v4877_v39  ;;  %3897 = vmatpush1.bf16.msra.mxu1 %v4877_v39  ;;  %v2910_v57 = vadd.f32 %v2909_v44, %v5699_v46  ;;  %v3039_v58 = vadd.f32 %v3038_v45, %v5699_v46 }
 0x5f5   : > { %v2912_v50 = vadd.f32 %v2911_v47, %v5696_v43  ;;  %v3041_v52 = vadd.f32 %v3040_v48, %v5696_v43  ;;  %v2913_v53 = vpop.f32.mrb[183].mxu0  ;;  %v3042_v55 = vpop.f32.mrb[183].mxu1  ;;  %3769 = vmatprep.subr.bf16.mxu0 %v4882_v40  ;;  %3898 = vmatprep.subr.bf16.mxu1 %v4882_v40 }
 0x5f6   : > { %v2914_v59 = vadd.f32 %v2913_v53, %v5699_v46  ;;  %v3043_v51 = vadd.f32 %v3042_v55, %v5699_v46  ;;  %v4898_v53 = vld [vmem:[#allocation5 + $0x7f0] ss:$8 sps:$4 sm:$0xff]  }
 0x5f7   : > { %v3075_v60 = vpack.c.bf16 %v2912_v50, %v2908_v38  ;;  %v3410_v61 = vpack.c.bf16 %v3041_v52, %v3037_v41  ;;  %v4895_v50 = vld [vmem:[#allocation5 + $0x7e0] ss:$8 sps:$4 sm:$0xff]   ;;  %v4900_v52 = vld [vmem:[#allocation5 + $0x7f4] ss:$8 sps:$4 sm:$0xff]  }
 0x5f8   : > { %v3076_v62 = vpack.c.bf16 %v2914_v59, %v2910_v57  ;;  %v3411_v54 = vpack.c.bf16 %v3043_v51, %v3039_v58  ;;  %3770 = vmatpush1.bf16.msra.mxu0 %v4880_v49  ;;  %3899 = vmatpush1.bf16.msra.mxu1 %v4880_v49 }
 0x5f9   : > { %3771 = vmatprep.subr.bf16.mxu0 %v4885_v56  ;;  %3900 = vmatprep.subr.bf16.mxu1 %v4885_v56 }
 0x5fa   : > { %v2917_v2 = vpop.f32.mrb[184].mxu0  ;;  %v3046_v4 = vpop.f32.mrb[184].mxu1  ;;  %3369 = vmatprep.mubr.bf16.mxu0 %v3076_v62  ;;  %3498 = vmatprep.mubr.bf16.mxu1 %v3411_v54 }
 0x5fb   : > { %v2919_v5 = vpop.f32.mrb[185].mxu0  ;;  %v3048_v6 = vpop.f32.mrb[185].mxu1  ;;  %3370 = vmatmul.mubr.bf16.gmra.mrb[212].mxu0 %v3075_v60  ;;  %3499 = vmatmul.mubr.bf16.gmra.mrb[212].mxu1 %v3410_v61  ;;  %v2918_v7 = vadd.f32 %v2917_v2, %v5696_v43  ;;  %v3047_v10 = vadd.f32 %v3046_v4, %v5696_v43 }
 0x5fc   : > { %v2921_v8 = vpop.f32.mrb[186].mxu0  ;;  %v3050_v0 = vpop.f32.mrb[186].mxu1  ;;  %3772 = vmatpush1.bf16.msra.mxu0 %v4883_v63  ;;  %3901 = vmatpush1.bf16.msra.mxu1 %v4883_v63  ;;  %v2920_v17 = vadd.f32 %v2919_v5, %v5699_v46  ;;  %v3049_v18 = vadd.f32 %v3048_v6, %v5699_v46 }
 0x5fd   : > { %v2922_v11 = vadd.f32 %v2921_v8, %v5696_v43  ;;  %v3051_v3 = vadd.f32 %v3050_v0, %v5696_v43  ;;  %v2923_v12 = vpop.f32.mrb[187].mxu0  ;;  %v3052_v14 = vpop.f32.mrb[187].mxu1  ;;  %3773 = vmatprep.subr.bf16.mxu0 %v4888_v1  ;;  %3902 = vmatprep.subr.bf16.mxu1 %v4888_v1 }
 0x5fe   : > { %v2924_v19 = vadd.f32 %v2923_v12, %v5699_v46  ;;  %v3053_v20 = vadd.f32 %v3052_v14, %v5699_v46 }
 0x5ff   : > { %v3077_v21 = vpack.c.bf16 %v2922_v11, %v2918_v7  ;;  %v3412_v13 = vpack.c.bf16 %v3051_v3, %v3047_v10 }
 0x600   : > { %v3078_v22 = vpack.c.bf16 %v2924_v19, %v2920_v17  ;;  %v3413_v23 = vpack.c.bf16 %v3053_v20, %v3049_v18  ;;  %3774 = vmatpush1.bf16.msra.mxu0 %v4886_v9  ;;  %3903 = vmatpush1.bf16.msra.mxu1 %v4886_v9 }
 0x601   : > { %3775 = vmatprep.subr.bf16.mxu0 %v4891_v15  ;;  %3904 = vmatprep.subr.bf16.mxu1 %v4891_v15 }
 0x602   : > { %v2927_v25 = vpop.f32.mrb[188].mxu0  ;;  %v3056_v27 = vpop.f32.mrb[188].mxu1  ;;  %3379 = vmatprep.mubr.bf16.mxu0 %v3078_v22  ;;  %3508 = vmatprep.mubr.bf16.mxu1 %v3413_v23 }
 0x603   : > { %v2929_v28 = vpop.f32.mrb[189].mxu0  ;;  %v3058_v30 = vpop.f32.mrb[189].mxu1  ;;  %3380 = vmatmul.mubr.bf16.gmra.mrb[216].mxu0 %v3077_v21  ;;  %3509 = vmatmul.mubr.bf16.gmra.mrb[216].mxu1 %v3412_v13  ;;  %v2928_v31 = vadd.f32 %v2927_v25, %v5696_v43  ;;  %v3057_v26 = vadd.f32 %v3056_v27, %v5696_v43 }
 0x604   : > { %v2931_v32 = vpop.f32.mrb[190].mxu0  ;;  %v3060_v33 = vpop.f32.mrb[190].mxu1  ;;  %3776 = vmatpush1.bf16.msra.mxu0 %v4889_v24  ;;  %3905 = vmatpush1.bf16.msra.mxu1 %v4889_v24  ;;  %v2930_v42 = vadd.f32 %v2929_v28, %v5699_v46  ;;  %v3059_v44 = vadd.f32 %v3058_v30, %v5699_v46 }
 0x605   : > { %v2932_v36 = vadd.f32 %v2931_v32, %v5696_v43  ;;  %v3061_v39 = vadd.f32 %v3060_v33, %v5696_v43  ;;  %v2933_v40 = vpop.f32.mrb[191].mxu0  ;;  %v3062_v29 = vpop.f32.mrb[191].mxu1  ;;  %3777 = vmatprep.subr.bf16.mxu0 %v4894_v16  ;;  %3906 = vmatprep.subr.bf16.mxu1 %v4894_v16  ;;  %v4897_v43 = vld [vmem:[#allocation5 + $0x7e4] ss:$8 sps:$4 sm:$0xff]  }
 0x606   : > { %v2934_v45 = vadd.f32 %v2933_v40, %v5699_v46  ;;  %v3063_v38 = vadd.f32 %v3062_v29, %v5699_v46  ;;  %v3115_v46 = vld [vmem:[#allocation7 + $0x6] ss:$8 sm:$0x3] }
 0x607   : > { %v3079_v47 = vpack.c.bf16 %v2932_v36, %v2928_v31  ;;  %v3414_v48 = vpack.c.bf16 %v3061_v39, %v3057_v26  ;;  %v5766_v55 = vrot.slane %v3115_v46, %v5341_v35  ;;  %v5769_v58 = vrot.slane %v3115_v46, %v5343_v37 }
 0x608   : > { %v3080_v49 = vpack.c.bf16 %v2934_v45, %v2930_v42  ;;  %v3415_v41 = vpack.c.bf16 %v3063_v38, %v3059_v44  ;;  %3778 = vmatpush1.bf16.msra.mxu0 %v4892_v34  ;;  %3907 = vmatpush1.bf16.msra.mxu1 %v4892_v34 }
 0x609   : > { %3779 = vmatprep.subr.bf16.mxu0 %v4897_v43  ;;  %3908 = vmatprep.subr.bf16.mxu1 %v4897_v43 }
 0x60a   : > { %3389 = vmatprep.mubr.bf16.mxu0 %v3080_v49  ;;  %3518 = vmatprep.mubr.bf16.mxu1 %v3415_v41 }
 0x60b   : > { %3390 = vmatmul.mubr.bf16.gmra.mrb[220].mxu0 %v3079_v47  ;;  %3519 = vmatmul.mubr.bf16.gmra.mrb[220].mxu1 %v3414_v48 }
 0x60c   : > { %3780 = vmatpush1.bf16.msra.mxu0 %v4895_v50  ;;  %3909 = vmatpush1.bf16.msra.mxu1 %v4895_v50 }
 0x60d   : > { %3781 = vmatprep.subr.bf16.mxu0 %v4900_v52  ;;  %3910 = vmatprep.subr.bf16.mxu1 %v4900_v52 }
 0x610   : > { %3782 = vmatpush1.bf16.msra.mxu0 %v4898_v53  ;;  %3911 = vmatpush1.bf16.msra.mxu1 %v4898_v53 }
 0x6a6   : > { %v3321_v56 = vpop.f32.mrb[192].mxu0  ;;  %v3450_v57 = vpop.f32.mrb[192].mxu1 }
 0x6a7   : > { %v3323_v59 = vpop.f32.mrb[193].mxu0  ;;  %v3452_v51 = vpop.f32.mrb[193].mxu1  ;;  %v3322_v62 = vadd.f32 %v3321_v56, %v5766_v55  ;;  %v3451_v54 = vadd.f32 %v3450_v57, %v5766_v55 }
 0x6a8   : > { %v3325_v60 = vpop.f32.mrb[194].mxu0  ;;  %v3454_v61 = vpop.f32.mrb[194].mxu1  ;;  %v3324_v5 = vadd.f32 %v3323_v59, %v5769_v58  ;;  %v3453_v6 = vadd.f32 %v3452_v51, %v5769_v58 }
 0x6a9   : > { %v3326_v63 = vadd.f32 %v3325_v60, %v5766_v55  ;;  %v3455_v1 = vadd.f32 %v3454_v61, %v5766_v55  ;;  %v3327_v2 = vpop.f32.mrb[195].mxu0  ;;  %v3456_v4 = vpop.f32.mrb[195].mxu1 }
 0x6aa   : > { %v3328_v7 = vadd.f32 %v3327_v2, %v5769_v58  ;;  %v3457_v8 = vadd.f32 %v3456_v4, %v5769_v58 }
 0x6ab   : > { %v3529_v0 = vpack.c.bf16 %v3326_v63, %v3322_v62  ;;  %v3864_v9 = vpack.c.bf16 %v3455_v1, %v3451_v54 }
 0x6ac   : > { %v3530_v10 = vpack.c.bf16 %v3328_v7, %v3324_v5  ;;  %v3865_v11 = vpack.c.bf16 %v3457_v8, %v3453_v6 }
 0x6ae   : > { %v3331_v3 = vpop.f32.mrb[196].mxu0  ;;  %v3460_v12 = vpop.f32.mrb[196].mxu1  ;;  %3783 = vmatprep.mubr.bf16.mxu0 %v3530_v10  ;;  %3912 = vmatprep.mubr.bf16.mxu1 %v3865_v11 }
 0x6af   : > { %v3333_v14 = vpop.f32.mrb[197].mxu0  ;;  %v3462_v15 = vpop.f32.mrb[197].mxu1  ;;  %3784 = vmatmul.mubr.bf16.vlgmr.msra.gmra.mrb[224].mxu0 %v3529_v0  ;;  %3913 = vmatmul.mubr.bf16.vlgmr.msra.gmra.mrb[224].mxu1 %v3864_v9  ;;  %v3332_v19 = vadd.f32 %v3331_v3, %v5766_v55  ;;  %v3461_v20 = vadd.f32 %v3460_v12, %v5766_v55 }
 0x6b0   : > { %v3335_v17 = vpop.f32.mrb[198].mxu0  ;;  %v3464_v18 = vpop.f32.mrb[198].mxu1  ;;  %v3334_v24 = vadd.f32 %v3333_v14, %v5769_v58  ;;  %v3463_v16 = vadd.f32 %v3462_v15, %v5769_v58 }
 0x6b1   : > { %v3336_v21 = vadd.f32 %v3335_v17, %v5766_v55  ;;  %v3465_v13 = vadd.f32 %v3464_v18, %v5766_v55  ;;  %v3337_v22 = vpop.f32.mrb[199].mxu0  ;;  %v3466_v23 = vpop.f32.mrb[199].mxu1 }
 0x6b2   : > { %v3338_v25 = vadd.f32 %v3337_v22, %v5769_v58  ;;  %v3467_v27 = vadd.f32 %v3466_v23, %v5769_v58 }
 0x6b3   : > { %v3531_v28 = vpack.c.bf16 %v3336_v21, %v3332_v19  ;;  %v3866_v30 = vpack.c.bf16 %v3465_v13, %v3461_v20 }
 0x6b4   : > { %v3532_v31 = vpack.c.bf16 %v3338_v25, %v3334_v24  ;;  %v3867_v32 = vpack.c.bf16 %v3467_v27, %v3463_v16 }
 0x6b6   : > { %v3341_v33 = vpop.f32.mrb[200].mxu0  ;;  %v3470_v34 = vpop.f32.mrb[200].mxu1  ;;  %3793 = vmatprep.mubr.bf16.mxu0 %v3532_v31  ;;  %3922 = vmatprep.mubr.bf16.mxu1 %v3867_v32 }
 0x6b7   : > { %v3343_v26 = vpop.f32.mrb[201].mxu0  ;;  %v3472_v36 = vpop.f32.mrb[201].mxu1  ;;  %3794 = vmatmul.mubr.bf16.gmra.mrb[228].mxu0 %v3531_v28  ;;  %3923 = vmatmul.mubr.bf16.gmra.mrb[228].mxu1 %v3866_v30  ;;  %v3342_v29 = vadd.f32 %v3341_v33, %v5766_v55  ;;  %v3471_v42 = vadd.f32 %v3470_v34, %v5766_v55 }
 0x6b8   : > { %v3345_v39 = vpop.f32.mrb[202].mxu0  ;;  %v3474_v40 = vpop.f32.mrb[202].mxu1  ;;  %v3344_v48 = vadd.f32 %v3343_v26, %v5769_v58  ;;  %v3473_v49 = vadd.f32 %v3472_v36, %v5769_v58 }
 0x6b9   : > { %v3346_v44 = vadd.f32 %v3345_v39, %v5766_v55  ;;  %v3475_v45 = vadd.f32 %v3474_v40, %v5766_v55  ;;  %v3347_v38 = vpop.f32.mrb[203].mxu0  ;;  %v3476_v47 = vpop.f32.mrb[203].mxu1 }
 0x6ba   : > { %v3348_v41 = vadd.f32 %v3347_v38, %v5769_v58  ;;  %v3477_v43 = vadd.f32 %v3476_v47, %v5769_v58 }
 0x6bb   : > { %v3533_v50 = vpack.c.bf16 %v3346_v44, %v3342_v29  ;;  %v3868_v52 = vpack.c.bf16 %v3475_v45, %v3471_v42 }
 0x6bc   : > { %v3534_v53 = vpack.c.bf16 %v3348_v41, %v3344_v48  ;;  %v3869_v46 = vpack.c.bf16 %v3477_v43, %v3473_v49 }
 0x6be   : > { %v3351_v56 = vpop.f32.mrb[204].mxu0  ;;  %v3480_v57 = vpop.f32.mrb[204].mxu1  ;;  %3803 = vmatprep.mubr.bf16.mxu0 %v3534_v53  ;;  %3932 = vmatprep.mubr.bf16.mxu1 %v3869_v46 }
 0x6bf   : > { %v3353_v59 = vpop.f32.mrb[205].mxu0  ;;  %v3482_v51 = vpop.f32.mrb[205].mxu1  ;;  %3804 = vmatmul.mubr.bf16.gmra.mrb[232].mxu0 %v3533_v50  ;;  %3933 = vmatmul.mubr.bf16.gmra.mrb[232].mxu1 %v3868_v52  ;;  %v3352_v62 = vadd.f32 %v3351_v56, %v5766_v55  ;;  %v3481_v54 = vadd.f32 %v3480_v57, %v5766_v55 }
 0x6c0   : > { %v3355_v60 = vpop.f32.mrb[206].mxu0  ;;  %v3484_v61 = vpop.f32.mrb[206].mxu1  ;;  %v3354_v5 = vadd.f32 %v3353_v59, %v5769_v58  ;;  %v3483_v6 = vadd.f32 %v3482_v51, %v5769_v58 }
 0x6c1   : > { %v3356_v63 = vadd.f32 %v3355_v60, %v5766_v55  ;;  %v3485_v1 = vadd.f32 %v3484_v61, %v5766_v55  ;;  %v3357_v2 = vpop.f32.mrb[207].mxu0  ;;  %v3486_v4 = vpop.f32.mrb[207].mxu1 }
 0x6c2   : > { %v3358_v7 = vadd.f32 %v3357_v2, %v5769_v58  ;;  %v3487_v8 = vadd.f32 %v3486_v4, %v5769_v58 }
 0x6c3   : > { %v3535_v0 = vpack.c.bf16 %v3356_v63, %v3352_v62  ;;  %v3870_v9 = vpack.c.bf16 %v3485_v1, %v3481_v54 }
 0x6c4   : > { %v3536_v10 = vpack.c.bf16 %v3358_v7, %v3354_v5  ;;  %v3871_v11 = vpack.c.bf16 %v3487_v8, %v3483_v6 }
 0x6c6   : > { %v3361_v3 = vpop.f32.mrb[208].mxu0  ;;  %v3490_v12 = vpop.f32.mrb[208].mxu1  ;;  %3813 = vmatprep.mubr.bf16.mxu0 %v3536_v10  ;;  %3942 = vmatprep.mubr.bf16.mxu1 %v3871_v11 }
 0x6c7   : > { %v3363_v14 = vpop.f32.mrb[209].mxu0  ;;  %v3492_v15 = vpop.f32.mrb[209].mxu1  ;;  %3814 = vmatmul.mubr.bf16.gmra.mrb[236].mxu0 %v3535_v0  ;;  %3943 = vmatmul.mubr.bf16.gmra.mrb[236].mxu1 %v3870_v9  ;;  %v3362_v19 = vadd.f32 %v3361_v3, %v5766_v55  ;;  %v3491_v20 = vadd.f32 %v3490_v12, %v5766_v55 }
 0x6c8   : > { %v3365_v17 = vpop.f32.mrb[210].mxu0  ;;  %v3494_v18 = vpop.f32.mrb[210].mxu1  ;;  %v3364_v24 = vadd.f32 %v3363_v14, %v5769_v58  ;;  %v3493_v16 = vadd.f32 %v3492_v15, %v5769_v58 }
 0x6c9   : > { %v3366_v21 = vadd.f32 %v3365_v17, %v5766_v55  ;;  %v3495_v13 = vadd.f32 %v3494_v18, %v5766_v55  ;;  %v3367_v22 = vpop.f32.mrb[211].mxu0  ;;  %v3496_v23 = vpop.f32.mrb[211].mxu1 }
 0x6ca   : > { %v3368_v25 = vadd.f32 %v3367_v22, %v5769_v58  ;;  %v3497_v27 = vadd.f32 %v3496_v23, %v5769_v58 }
 0x6cb   : > { %v3537_v28 = vpack.c.bf16 %v3366_v21, %v3362_v19  ;;  %v3872_v30 = vpack.c.bf16 %v3495_v13, %v3491_v20 }
 0x6cc   : > { %v3538_v31 = vpack.c.bf16 %v3368_v25, %v3364_v24  ;;  %v3873_v32 = vpack.c.bf16 %v3497_v27, %v3493_v16 }
 0x6ce   : > { %v3371_v33 = vpop.f32.mrb[212].mxu0  ;;  %v3500_v34 = vpop.f32.mrb[212].mxu1  ;;  %3823 = vmatprep.mubr.bf16.mxu0 %v3538_v31  ;;  %3952 = vmatprep.mubr.bf16.mxu1 %v3873_v32 }
 0x6cf   : > { %v3373_v26 = vpop.f32.mrb[213].mxu0  ;;  %v3502_v36 = vpop.f32.mrb[213].mxu1  ;;  %3824 = vmatmul.mubr.bf16.gmra.mrb[240].mxu0 %v3537_v28  ;;  %3953 = vmatmul.mubr.bf16.gmra.mrb[240].mxu1 %v3872_v30  ;;  %v3372_v29 = vadd.f32 %v3371_v33, %v5766_v55  ;;  %v3501_v42 = vadd.f32 %v3500_v34, %v5766_v55 }
 0x6d0   : > { %v3375_v39 = vpop.f32.mrb[214].mxu0  ;;  %v3504_v40 = vpop.f32.mrb[214].mxu1  ;;  %v3374_v48 = vadd.f32 %v3373_v26, %v5769_v58  ;;  %v3503_v49 = vadd.f32 %v3502_v36, %v5769_v58 }
 0x6d1   : > { %v3376_v44 = vadd.f32 %v3375_v39, %v5766_v55  ;;  %v3505_v45 = vadd.f32 %v3504_v40, %v5766_v55  ;;  %v3377_v38 = vpop.f32.mrb[215].mxu0  ;;  %v3506_v47 = vpop.f32.mrb[215].mxu1 }
 0x6d2   : > { %v3378_v41 = vadd.f32 %v3377_v38, %v5769_v58  ;;  %v3507_v43 = vadd.f32 %v3506_v47, %v5769_v58 }
 0x6d3   : > { %v3539_v50 = vpack.c.bf16 %v3376_v44, %v3372_v29  ;;  %v3874_v52 = vpack.c.bf16 %v3505_v45, %v3501_v42 }
 0x6d4   : > { %v3540_v53 = vpack.c.bf16 %v3378_v41, %v3374_v48  ;;  %v3875_v46 = vpack.c.bf16 %v3507_v43, %v3503_v49 }
 0x6d6   : > { %v3381_v56 = vpop.f32.mrb[216].mxu0  ;;  %v3510_v57 = vpop.f32.mrb[216].mxu1  ;;  %3833 = vmatprep.mubr.bf16.mxu0 %v3540_v53  ;;  %3962 = vmatprep.mubr.bf16.mxu1 %v3875_v46 }
 0x6d7   : > { %v3383_v59 = vpop.f32.mrb[217].mxu0  ;;  %v3512_v51 = vpop.f32.mrb[217].mxu1  ;;  %3834 = vmatmul.mubr.bf16.gmra.mrb[244].mxu0 %v3539_v50  ;;  %3963 = vmatmul.mubr.bf16.gmra.mrb[244].mxu1 %v3874_v52  ;;  %v3382_v62 = vadd.f32 %v3381_v56, %v5766_v55  ;;  %v3511_v54 = vadd.f32 %v3510_v57, %v5766_v55 }
 0x6d8   : > { %v3385_v60 = vpop.f32.mrb[218].mxu0  ;;  %v3514_v61 = vpop.f32.mrb[218].mxu1  ;;  %v3384_v5 = vadd.f32 %v3383_v59, %v5769_v58  ;;  %v3513_v6 = vadd.f32 %v3512_v51, %v5769_v58 }
 0x6d9   : > { %v3386_v63 = vadd.f32 %v3385_v60, %v5766_v55  ;;  %v3515_v1 = vadd.f32 %v3514_v61, %v5766_v55  ;;  %v3387_v2 = vpop.f32.mrb[219].mxu0  ;;  %v3516_v4 = vpop.f32.mrb[219].mxu1 }
 0x6da   : > { %v3388_v7 = vadd.f32 %v3387_v2, %v5769_v58  ;;  %v3517_v8 = vadd.f32 %v3516_v4, %v5769_v58 }
 0x6db   : > { %v3541_v0 = vpack.c.bf16 %v3386_v63, %v3382_v62  ;;  %v3876_v9 = vpack.c.bf16 %v3515_v1, %v3511_v54 }
 0x6dc   : > { %v3542_v10 = vpack.c.bf16 %v3388_v7, %v3384_v5  ;;  %v3877_v11 = vpack.c.bf16 %v3517_v8, %v3513_v6 }
 0x6de   : > { %v3391_v3 = vpop.f32.mrb[220].mxu0  ;;  %v3520_v12 = vpop.f32.mrb[220].mxu1  ;;  %3843 = vmatprep.mubr.bf16.mxu0 %v3542_v10  ;;  %3972 = vmatprep.mubr.bf16.mxu1 %v3877_v11 }
 0x6df   : > { %v3393_v14 = vpop.f32.mrb[221].mxu0  ;;  %v3522_v15 = vpop.f32.mrb[221].mxu1  ;;  %3844 = vmatmul.mubr.bf16.gmra.mrb[248].mxu0 %v3541_v0  ;;  %3973 = vmatmul.mubr.bf16.gmra.mrb[248].mxu1 %v3876_v9  ;;  %v3392_v19 = vadd.f32 %v3391_v3, %v5766_v55  ;;  %v3521_v20 = vadd.f32 %v3520_v12, %v5766_v55 }
 0x6e0   : > { %v3395_v17 = vpop.f32.mrb[222].mxu0  ;;  %v3524_v18 = vpop.f32.mrb[222].mxu1  ;;  %v3394_v24 = vadd.f32 %v3393_v14, %v5769_v58  ;;  %v3523_v16 = vadd.f32 %v3522_v15, %v5769_v58 }
 0x6e1   : > { %v3396_v21 = vadd.f32 %v3395_v17, %v5766_v55  ;;  %v3525_v13 = vadd.f32 %v3524_v18, %v5766_v55  ;;  %v3397_v22 = vpop.f32.mrb[223].mxu0  ;;  %v3526_v23 = vpop.f32.mrb[223].mxu1  ;;  %v3579_v55 = vld [vmem:[#allocation7 + $0x7] ss:$8 sm:$0x3] }
 0x6e2   : > { %v3398_v25 = vadd.f32 %v3397_v22, %v5769_v58  ;;  %v3527_v27 = vadd.f32 %v3526_v23, %v5769_v58  ;;  %v5836_v33 = vrot.slane %v3579_v55, %v5341_v35  ;;  %v5839_v34 = vrot.slane %v3579_v55, %v5343_v37 }
 0x6e3   : > { %v3543_v28 = vpack.c.bf16 %v3396_v21, %v3392_v19  ;;  %v3878_v30 = vpack.c.bf16 %v3525_v13, %v3521_v20 }
 0x6e4   : > { %v3544_v31 = vpack.c.bf16 %v3398_v25, %v3394_v24  ;;  %v3879_v32 = vpack.c.bf16 %v3527_v27, %v3523_v16 }
 0x6e6   : > { %3853 = vmatprep.mubr.bf16.mxu0 %v3544_v31  ;;  %3982 = vmatprep.mubr.bf16.mxu1 %v3879_v32 }
 0x6e7   : > { %3854 = vmatmul.mubr.bf16.gmra.mrb[252].mxu0 %v3543_v28  ;;  %3983 = vmatmul.mubr.bf16.gmra.mrb[252].mxu1 %v3878_v30 }
 0x782   : > { %v3785_v26 = vpop.f32.mrb[224].mxu0  ;;  %v3914_v36 = vpop.f32.mrb[224].mxu1 }
 0x783   : > { %v3786_v58 = vadd.f32 %v3785_v26, %v5836_v33  ;;  %v3915_v39 = vadd.f32 %v3914_v36, %v5836_v33  ;;  %v3787_v40 = vpop.f32.mrb[225].mxu0  ;;  %v3916_v29 = vpop.f32.mrb[225].mxu1 }
 0x784   : > { %v3788_v42 = vadd.f32 %v3787_v40, %v5839_v34  ;;  %v3917_v44 = vadd.f32 %v3916_v29, %v5839_v34  ;;  %v3789_v45 = vpop.f32.mrb[226].mxu0  ;;  %v3918_v38 = vpop.f32.mrb[226].mxu1 }
 0x785   : > { %3993 = vst [vmem:[%s5847_s18] sm:$0xff] %v3786_v58  ;;  %4025 = vst [vmem:[%s5847_s18 + $0x100] sm:$0xff] %v3915_v39  ;;  %v3790_v35 = vadd.f32 %v3789_v45, %v5836_v33  ;;  %v3919_v37 = vadd.f32 %v3918_v38, %v5836_v33  ;;  %v3791_v47 = vpop.f32.mrb[227].mxu0  ;;  %v3920_v48 = vpop.f32.mrb[227].mxu1 }
 0x786   : > { %3994 = vst [vmem:[%s5847_s18 + $0x8] sm:$0xff] %v3788_v42  ;;  %4026 = vst [vmem:[%s5847_s18 + $0x108] sm:$0xff] %v3917_v44  ;;  %v3792_v49 = vadd.f32 %v3791_v47, %v5839_v34  ;;  %v3921_v41 = vadd.f32 %v3920_v48, %v5839_v34 }
 0x787   : > { %3995 = vst [vmem:[%s5847_s18 + $0x10] sm:$0xff] %v3790_v35  ;;  %4027 = vst [vmem:[%s5847_s18 + $0x110] sm:$0xff] %v3919_v37 }
 0x788   : > { %3996 = vst [vmem:[%s5847_s18 + $0x18] sm:$0xff] %v3792_v49  ;;  %4028 = vst [vmem:[%s5847_s18 + $0x118] sm:$0xff] %v3921_v41 }
 0x78a   : > { %v3795_v43 = vpop.f32.mrb[228].mxu0  ;;  %v3924_v50 = vpop.f32.mrb[228].mxu1 }
 0x78b   : > { %v3796_v52 = vadd.f32 %v3795_v43, %v5836_v33  ;;  %v3925_v53 = vadd.f32 %v3924_v50, %v5836_v33  ;;  %v3797_v46 = vpop.f32.mrb[229].mxu0  ;;  %v3926_v56 = vpop.f32.mrb[229].mxu1 }
 0x78c   : > { %v3798_v57 = vadd.f32 %v3797_v46, %v5839_v34  ;;  %v3927_v59 = vadd.f32 %v3926_v56, %v5839_v34  ;;  %v3799_v51 = vpop.f32.mrb[230].mxu0  ;;  %v3928_v60 = vpop.f32.mrb[230].mxu1 }
 0x78d   : > { %3997 = vst [vmem:[%s5847_s18 + $0x20] sm:$0xff] %v3796_v52  ;;  %4029 = vst [vmem:[%s5847_s18 + $0x120] sm:$0xff] %v3925_v53  ;;  %v3800_v61 = vadd.f32 %v3799_v51, %v5836_v33  ;;  %v3929_v62 = vadd.f32 %v3928_v60, %v5836_v33  ;;  %v3801_v54 = vpop.f32.mrb[231].mxu0  ;;  %v3930_v63 = vpop.f32.mrb[231].mxu1 }
 0x78e   : > { %3998 = vst [vmem:[%s5847_s18 + $0x28] sm:$0xff] %v3798_v57  ;;  %4030 = vst [vmem:[%s5847_s18 + $0x128] sm:$0xff] %v3927_v59  ;;  %v3802_v1 = vadd.f32 %v3801_v54, %v5839_v34  ;;  %v3931_v2 = vadd.f32 %v3930_v63, %v5839_v34 }
 0x78f   : > { %3999 = vst [vmem:[%s5847_s18 + $0x30] sm:$0xff] %v3800_v61  ;;  %4031 = vst [vmem:[%s5847_s18 + $0x130] sm:$0xff] %v3929_v62 }
 0x790   : > { %4000 = vst [vmem:[%s5847_s18 + $0x38] sm:$0xff] %v3802_v1  ;;  %4032 = vst [vmem:[%s5847_s18 + $0x138] sm:$0xff] %v3931_v2 }
 0x792   : > { %v3805_v4 = vpop.f32.mrb[232].mxu0  ;;  %v3934_v5 = vpop.f32.mrb[232].mxu1 }
 0x793   : > { %v3806_v6 = vadd.f32 %v3805_v4, %v5836_v33  ;;  %v3935_v7 = vadd.f32 %v3934_v5, %v5836_v33  ;;  %v3807_v8 = vpop.f32.mrb[233].mxu0  ;;  %v3936_v0 = vpop.f32.mrb[233].mxu1 }
 0x794   : > { %v3808_v9 = vadd.f32 %v3807_v8, %v5839_v34  ;;  %v3937_v10 = vadd.f32 %v3936_v0, %v5839_v34  ;;  %v3809_v11 = vpop.f32.mrb[234].mxu0  ;;  %v3938_v3 = vpop.f32.mrb[234].mxu1 }
 0x795   : > { %4001 = vst [vmem:[%s5847_s18 + $0x40] sm:$0xff] %v3806_v6  ;;  %4033 = vst [vmem:[%s5847_s18 + $0x140] sm:$0xff] %v3935_v7  ;;  %v3810_v12 = vadd.f32 %v3809_v11, %v5836_v33  ;;  %v3939_v14 = vadd.f32 %v3938_v3, %v5836_v33  ;;  %v3811_v15 = vpop.f32.mrb[235].mxu0  ;;  %v3940_v17 = vpop.f32.mrb[235].mxu1 }
 0x796   : > { %4002 = vst [vmem:[%s5847_s18 + $0x48] sm:$0xff] %v3808_v9  ;;  %4034 = vst [vmem:[%s5847_s18 + $0x148] sm:$0xff] %v3937_v10  ;;  %v3812_v18 = vadd.f32 %v3811_v15, %v5839_v34  ;;  %v3941_v19 = vadd.f32 %v3940_v17, %v5839_v34 }
 0x797   : > { %4003 = vst [vmem:[%s5847_s18 + $0x50] sm:$0xff] %v3810_v12  ;;  %4035 = vst [vmem:[%s5847_s18 + $0x150] sm:$0xff] %v3939_v14 }
 0x798   : > { %4004 = vst [vmem:[%s5847_s18 + $0x58] sm:$0xff] %v3812_v18  ;;  %4036 = vst [vmem:[%s5847_s18 + $0x158] sm:$0xff] %v3941_v19 }
 0x79a   : > { %v3815_v20 = vpop.f32.mrb[236].mxu0  ;;  %v3944_v21 = vpop.f32.mrb[236].mxu1 }
 0x79b   : > { %v3816_v13 = vadd.f32 %v3815_v20, %v5836_v33  ;;  %v3945_v22 = vadd.f32 %v3944_v21, %v5836_v33  ;;  %v3817_v23 = vpop.f32.mrb[237].mxu0  ;;  %v3946_v24 = vpop.f32.mrb[237].mxu1 }
 0x79c   : > { %v3818_v16 = vadd.f32 %v3817_v23, %v5839_v34  ;;  %v3947_v25 = vadd.f32 %v3946_v24, %v5839_v34  ;;  %v3819_v27 = vpop.f32.mrb[238].mxu0  ;;  %v3948_v28 = vpop.f32.mrb[238].mxu1 }
 0x79d   : > { %4005 = vst [vmem:[%s5847_s18 + $0x60] sm:$0xff] %v3816_v13  ;;  %4037 = vst [vmem:[%s5847_s18 + $0x160] sm:$0xff] %v3945_v22  ;;  %v3820_v30 = vadd.f32 %v3819_v27, %v5836_v33  ;;  %v3949_v31 = vadd.f32 %v3948_v28, %v5836_v33  ;;  %v3821_v32 = vpop.f32.mrb[239].mxu0  ;;  %v3950_v55 = vpop.f32.mrb[239].mxu1 }
 0x79e   : > { %4006 = vst [vmem:[%s5847_s18 + $0x68] sm:$0xff] %v3818_v16  ;;  %4038 = vst [vmem:[%s5847_s18 + $0x168] sm:$0xff] %v3947_v25  ;;  %v3822_v26 = vadd.f32 %v3821_v32, %v5839_v34  ;;  %v3951_v36 = vadd.f32 %v3950_v55, %v5839_v34 }
 0x79f   : > { %4007 = vst [vmem:[%s5847_s18 + $0x70] sm:$0xff] %v3820_v30  ;;  %4039 = vst [vmem:[%s5847_s18 + $0x170] sm:$0xff] %v3949_v31 }
 0x7a0   : > { %4008 = vst [vmem:[%s5847_s18 + $0x78] sm:$0xff] %v3822_v26  ;;  %4040 = vst [vmem:[%s5847_s18 + $0x178] sm:$0xff] %v3951_v36 }
 0x7a2   : > { %v3825_v58 = vpop.f32.mrb[240].mxu0  ;;  %v3954_v39 = vpop.f32.mrb[240].mxu1 }
 0x7a3   : > { %v3826_v40 = vadd.f32 %v3825_v58, %v5836_v33  ;;  %v3955_v29 = vadd.f32 %v3954_v39, %v5836_v33  ;;  %v3827_v42 = vpop.f32.mrb[241].mxu0  ;;  %v3956_v44 = vpop.f32.mrb[241].mxu1 }
 0x7a4   : > { %v3828_v45 = vadd.f32 %v3827_v42, %v5839_v34  ;;  %v3957_v38 = vadd.f32 %v3956_v44, %v5839_v34  ;;  %v3829_v35 = vpop.f32.mrb[242].mxu0  ;;  %v3958_v37 = vpop.f32.mrb[242].mxu1 }
 0x7a5   : > { %4009 = vst [vmem:[%s5847_s18 + $0x80] sm:$0xff] %v3826_v40  ;;  %4041 = vst [vmem:[%s5847_s18 + $0x180] sm:$0xff] %v3955_v29  ;;  %v3830_v47 = vadd.f32 %v3829_v35, %v5836_v33  ;;  %v3959_v48 = vadd.f32 %v3958_v37, %v5836_v33  ;;  %v3831_v49 = vpop.f32.mrb[243].mxu0  ;;  %v3960_v41 = vpop.f32.mrb[243].mxu1 }
 0x7a6   : > { %4010 = vst [vmem:[%s5847_s18 + $0x88] sm:$0xff] %v3828_v45  ;;  %4042 = vst [vmem:[%s5847_s18 + $0x188] sm:$0xff] %v3957_v38  ;;  %v3832_v43 = vadd.f32 %v3831_v49, %v5839_v34  ;;  %v3961_v50 = vadd.f32 %v3960_v41, %v5839_v34 }
 0x7a7   : > { %4011 = vst [vmem:[%s5847_s18 + $0x90] sm:$0xff] %v3830_v47  ;;  %4043 = vst [vmem:[%s5847_s18 + $0x190] sm:$0xff] %v3959_v48 }
 0x7a8   : > { %4012 = vst [vmem:[%s5847_s18 + $0x98] sm:$0xff] %v3832_v43  ;;  %4044 = vst [vmem:[%s5847_s18 + $0x198] sm:$0xff] %v3961_v50 }
 0x7aa   : > { %v3835_v52 = vpop.f32.mrb[244].mxu0  ;;  %v3964_v53 = vpop.f32.mrb[244].mxu1 }
 0x7ab   : > { %v3836_v46 = vadd.f32 %v3835_v52, %v5836_v33  ;;  %v3965_v56 = vadd.f32 %v3964_v53, %v5836_v33  ;;  %v3837_v57 = vpop.f32.mrb[245].mxu0  ;;  %v3966_v59 = vpop.f32.mrb[245].mxu1 }
 0x7ac   : > { %v3838_v51 = vadd.f32 %v3837_v57, %v5839_v34  ;;  %v3967_v60 = vadd.f32 %v3966_v59, %v5839_v34  ;;  %v3839_v61 = vpop.f32.mrb[246].mxu0  ;;  %v3968_v62 = vpop.f32.mrb[246].mxu1 }
 0x7ad   : > { %4013 = vst [vmem:[%s5847_s18 + $0xa0] sm:$0xff] %v3836_v46  ;;  %4045 = vst [vmem:[%s5847_s18 + $0x1a0] sm:$0xff] %v3965_v56  ;;  %v3840_v54 = vadd.f32 %v3839_v61, %v5836_v33  ;;  %v3969_v63 = vadd.f32 %v3968_v62, %v5836_v33  ;;  %v3841_v1 = vpop.f32.mrb[247].mxu0  ;;  %v3970_v2 = vpop.f32.mrb[247].mxu1 }
 0x7ae   : > { %4014 = vst [vmem:[%s5847_s18 + $0xa8] sm:$0xff] %v3838_v51  ;;  %4046 = vst [vmem:[%s5847_s18 + $0x1a8] sm:$0xff] %v3967_v60  ;;  %v3842_v4 = vadd.f32 %v3841_v1, %v5839_v34  ;;  %v3971_v5 = vadd.f32 %v3970_v2, %v5839_v34 }
 0x7af   : > { %4015 = vst [vmem:[%s5847_s18 + $0xb0] sm:$0xff] %v3840_v54  ;;  %4047 = vst [vmem:[%s5847_s18 + $0x1b0] sm:$0xff] %v3969_v63 }
 0x7b0   : > { %4016 = vst [vmem:[%s5847_s18 + $0xb8] sm:$0xff] %v3842_v4  ;;  %4048 = vst [vmem:[%s5847_s18 + $0x1b8] sm:$0xff] %v3971_v5 }
 0x7b2   : > { %v3845_v6 = vpop.f32.mrb[248].mxu0  ;;  %v3974_v7 = vpop.f32.mrb[248].mxu1 }
 0x7b3   : > { %v3846_v8 = vadd.f32 %v3845_v6, %v5836_v33  ;;  %v3975_v0 = vadd.f32 %v3974_v7, %v5836_v33  ;;  %v3847_v9 = vpop.f32.mrb[249].mxu0  ;;  %v3976_v10 = vpop.f32.mrb[249].mxu1 }
 0x7b4   : > { %v3848_v11 = vadd.f32 %v3847_v9, %v5839_v34  ;;  %v3977_v3 = vadd.f32 %v3976_v10, %v5839_v34  ;;  %v3849_v12 = vpop.f32.mrb[250].mxu0  ;;  %v3978_v14 = vpop.f32.mrb[250].mxu1 }
 0x7b5   : > { %4017 = vst [vmem:[%s5847_s18 + $0xc0] sm:$0xff] %v3846_v8  ;;  %4049 = vst [vmem:[%s5847_s18 + $0x1c0] sm:$0xff] %v3975_v0  ;;  %v3850_v15 = vadd.f32 %v3849_v12, %v5836_v33  ;;  %v3979_v17 = vadd.f32 %v3978_v14, %v5836_v33  ;;  %v3851_v18 = vpop.f32.mrb[251].mxu0  ;;  %v3980_v19 = vpop.f32.mrb[251].mxu1 }
 0x7b6   : > { %4018 = vst [vmem:[%s5847_s18 + $0xc8] sm:$0xff] %v3848_v11  ;;  %4050 = vst [vmem:[%s5847_s18 + $0x1c8] sm:$0xff] %v3977_v3  ;;  %v3852_v20 = vadd.f32 %v3851_v18, %v5839_v34  ;;  %v3981_v21 = vadd.f32 %v3980_v19, %v5839_v34 }
 0x7b7   : > { %4019 = vst [vmem:[%s5847_s18 + $0xd0] sm:$0xff] %v3850_v15  ;;  %4051 = vst [vmem:[%s5847_s18 + $0x1d0] sm:$0xff] %v3979_v17 }
 0x7b8   : > { %4020 = vst [vmem:[%s5847_s18 + $0xd8] sm:$0xff] %v3852_v20  ;;  %4052 = vst [vmem:[%s5847_s18 + $0x1d8] sm:$0xff] %v3981_v21 }
 0x7ba   : > { %v3855_v13 = vpop.f32.mrb[252].mxu0  ;;  %v3984_v22 = vpop.f32.mrb[252].mxu1 }
 0x7bb   : > { %v3856_v23 = vadd.f32 %v3855_v13, %v5836_v33  ;;  %v3985_v24 = vadd.f32 %v3984_v22, %v5836_v33  ;;  %v3857_v16 = vpop.f32.mrb[253].mxu0  ;;  %v3986_v25 = vpop.f32.mrb[253].mxu1 }
 0x7bc   : > { %v3858_v27 = vadd.f32 %v3857_v16, %v5839_v34  ;;  %v3987_v28 = vadd.f32 %v3986_v25, %v5839_v34  ;;  %v3859_v30 = vpop.f32.mrb[254].mxu0  ;;  %v3988_v31 = vpop.f32.mrb[254].mxu1 }
 0x7bd   : > { %4021 = vst [vmem:[%s5847_s18 + $0xe0] sm:$0xff] %v3856_v23  ;;  %4053 = vst [vmem:[%s5847_s18 + $0x1e0] sm:$0xff] %v3985_v24  ;;  %v3860_v32 = vadd.f32 %v3859_v30, %v5836_v33  ;;  %v3989_v55 = vadd.f32 %v3988_v31, %v5836_v33  ;;  %v3861_v26 = vpop.f32.mrb[255].mxu0  ;;  %v3990_v36 = vpop.f32.mrb[255].mxu1 }
 0x7be   : > { %4022 = vst [vmem:[%s5847_s18 + $0xe8] sm:$0xff] %v3858_v27  ;;  %4054 = vst [vmem:[%s5847_s18 + $0x1e8] sm:$0xff] %v3987_v28  ;;  %v3862_v58 = vadd.f32 %v3861_v26, %v5839_v34  ;;  %v3991_v39 = vadd.f32 %v3990_v36, %v5839_v34 }
 0x7bf   : > { %4023 = vst [vmem:[%s5847_s18 + $0xf0] sm:$0xff] %v3860_v32  ;;  %4055 = vst [vmem:[%s5847_s18 + $0x1f0] sm:$0xff] %v3989_v55 }
 0x7c0   : > { %4024 = vst [vmem:[%s5847_s18 + $0xf8] sm:$0xff] %v3862_v58  ;;  %4056 = vst [vmem:[%s5847_s18 + $0x1f8] sm:$0xff] %v3991_v39 }
 0x7c1   : > { %5000 = shalt.err (!%p4997_p2)
}
 0x7c2   : > { %s5001_s25 = scalar_lea.hbm %s5970_s26, 8192  ;;  %s5005_s21 = scalar_lea.hbm %s6027_s3, 16384 }
 0x7c3   : > { %p5002_p13 = scmp.ne.s32.totalorder %s5970_s26, %s5001_s25  ;;  %p5006_p4 = scmp.lt.u32.totalorder %s5970_s26, %s6027_s3 }
 0x7c4   : > { %p5007_p5 = scmp.lt.u32.totalorder %s5005_s21, %s5001_s25  ;;  %p5009_p11 = scmp.lt.u32.totalorder %s5001_s25, %s5970_s26 }
 0x7c5   : > { %p5003_p6 = pnand %p5002_p13, %p6041_p0 }
 0x7c6   : > { %p5008_p8 = por %p5007_p5, %p5006_p4 }
 0x7c7   : > { %p5004_p10 = pneg %p5003_p6 }
 0x7c8   : > { %p5010_p1 = por %p5009_p11, %p5008_p8 }
 0x7ca   : > { %p5011_p3 = pnand %p5010_p1, %p5004_p10 }
 0x7cc   : > { %5014 = shalt.err (!%p5011_p3)
}
 0x7cd   : > { %s5067_s30 = smov 256   ;;  %s5068_s18 = smov 16  }
 0x7ce   : > { %4454 = dma.vmem_to_hbm [thread:$0]  (%p6041_p0), %s5972_s17, 8192, %s5970_s26, %s4058_s27, %s5067_s30, %s5067_s30, %s5068_s18  }
 0x7cf PF: > { %s4087_s20 = sand.u32 1, %s5045_s12   ;;  %p6042_p7 = scmp.ne.s32.totalorder %s6032_s19, 0 }
 0x7d0   : > { %p6043_p9 = scmp.ge.s32.totalorder %s5057_s15, 2  ;;  %s4088_s16 = scalar_lea.sflag [#allocation4], %s4087_s20 }
 0x7d2   : > { %p4468_p12 = pnand %p6043_p9, %p6042_p7 }
 0x7d4   : > { %5040 = dma.done.wait (!%p4468_p12), %s4088_s16, 8192  }
 0x7d5   : > { %5042 = vsyncadd (!%p4468_p12), %s4088_s16, 4294959104  ;;  %p17_p2 = scmp.ge.s32.totalorder %s5199_s4, 4   ;;  %s6044_s12 = smov %s5049_s13 }
 0x7d6   : > { %s6045_s13 = smov %s5053_s14  ;;  %s6046_s14 = smov %s5215_s7 }
 0x7d7   : > { %s6047_s15 = smov %s5199_s4  ;;  %19 = sbr.rel (!%p17_p2) target bundleno = 6 (0x6), region = 99 }
 0x7de   :  { %4093 = vsyncpa [#allocation3], 1 }
 0x7df   :  { %4095 = vsyncpa [#allocation3 + $0x1], 1 }
 0x7e0   :  { %4096 = vsyncpa [#allocation6], 1 }
 0x7e1   :  { %4097 = vsyncpa [#allocation4], 1 }
 0x7e2   :  { %4099 = vsyncpa [#allocation4 + $0x1], 1 }

// kernel: tpu_custom_call.1
= control target key start
LH: loop header
LB: loop body
LE: loop exit
PB: predicated region body
PF: predicated region fallthrough
CT: control target
= control target key end

     0   :  { %8 = vsyncpa [#allocation3], 0  ;;  %s6024_s0 = inlined_call_operand.hbm [shape: f32[512,256], index: 0, kind: input, shape index: {}]   ;;  %s6025_s1 = inlined_call_operand.hbm [shape: bf16[8,256,256], index: 1, kind: input, shape index: {}]   ;;  %s6026_s2 = inlined_call_operand.hbm [shape: f32[8,256], index: 2, kind: input, shape index: {}]   ;;  %s6027_s3 = inlined_call_operand.hbm [shape: f32[512,256], index: 3, kind: output, shape index: {}]  }
   0x1   :  { %10 = vsyncpa [#allocation3 + $0x1], 0 }
   0x2   :  { %11 = vsyncpa [#allocation6], 0 }
   0x3   :  { %12 = vsyncpa [#allocation4], 0 }
   0x4   :  { %14 = vsyncpa [#allocation4 + $0x1], 0  ;;  %s5089_s12 = smov 0   ;;  %s5091_s13 = smov 0  }
   0x5   :  { %s5093_s14 = smov 0   ;;  %s5095_s15 = smov 0  }
   0x6 LB: > { %s5110_s16 = sadd.s32 4294967295, %s5057_s15   ;;  %s4164_s17 = sadd.s32 4294967294, %s5057_s15   ;;  %s5057_s15 = sphi %s5095_s15, %s6047_s15   ;;  %s5053_s14 = sphi %s5093_s14, %s6046_s14   ;;  %s5049_s13 = sphi %s5091_s13, %s6045_s13   ;;  %s5045_s12 = sphi %s5089_s12, %s6044_s12  }
   0x7   : > { %p40_p0 = scmp.ne.s32.totalorder %s5049_s13, %s5045_s12  ;;  %p6028_p1 = scmp.eq.s32.totalorder %s5110_s16, 0 }
   0x8   : > { %p112_p3 = scmp.eq.s32.totalorder %s4164_s17, 1  ;;  %p4165_p5 = scmp.ge.s32.totalorder %s5057_s15, 1 }
   0x9   : > { %p5119_p4 = por %p6028_p1, %p40_p0  ;;  %p119_p7 = scmp.lt.s32.totalorder %s5057_s15, 3 }
   0xa   : > { %p5124_p6 = por %p112_p3, %p40_p0  ;;  %s5059_s21 = smov [#allocation5]  }
   0xb   : > { %s6031_s18 = scalar_select %p5119_p4, 1, 0 }
   0xc   : > { %s6032_s19 = scalar_select %p5124_p6, 1, 0 }
   0xd   : > { %p5129_p8 = pnand %p4165_p5, %p119_p7  ;;  %s131_s22 = sshll.u32 %s5059_s21, 4  ;;  %s5133_s22 = int_to_ptr.vmem [resolvable:$true] %s131_s22 }
   0xe   : > { %s5060_s24 = smov [#allocation7]   ;;  %s4901_s28 = scalar_lea.hbm %s6025_s1, 32768 }
   0xf   : > { %p4456_p9 = pneg %p5129_p8  ;;  %s145_s25 = sshll.u32 %s5060_s24, 4  ;;  %s5144_s25 = int_to_ptr.vmem [resolvable:$true] %s145_s25 }
  0x10   : > { %p4902_p12 = scmp.ne.s32.totalorder %s6025_s1, %s4901_s28  ;;  %p4908_p5 = scmp.lt.u32.totalorder %s4901_s28, %s6025_s1 }
  0x11   : > { %p5140_p11 = pnand %p4456_p9, %p6028_p1 }
  0x13   : > { %p4903_p13 = pneg %p5140_p11 }
  0x15   : > { %p4904_p0 = pnand %p4903_p13, %p4902_p12 }
  0x17   : > { %p4905_p3 = pneg %p4904_p0 }
  0x19   : > { %p4910_p7 = pnand %p4908_p5, %p4905_p3 }
  0x1b   : > { %4913 = shalt.err (!%p4910_p7)
}
  0x1c   : > { %s4914_s6 = scalar_lea.vmem %s5133_s22, 32768  ;;  %p4922_p2 = scmp.lt.s32.totalorder %s5133_s22, %s5133_s22 }
  0x1d   : > { %p4915_p9 = scmp.ne.s32.totalorder %s5133_s22, %s4914_s6  ;;  %p4923_p12 = scmp.lt.s32.totalorder %s4914_s6, %s4914_s6 }
  0x1f   : > { %p4917_p10 = pnand %p4915_p9, %p4903_p13  ;;  %p4924_p0 = por %p4923_p12, %p4922_p2 }
  0x21   : > { %p4918_p1 = pneg %p4917_p10 }
  0x23   : > { %p4925_p6 = pnand %p4924_p0, %p4918_p1 }
  0x25   : > { %4928 = shalt.err (!%p4925_p6)
}
  0x26   : > { %s5061_s7 = smov 128   ;;  %s5062_s8 = smov 8  }
  0x27   : > { %4459 = dma.hbm_to_vmem [thread:$0]  (!%p5140_p11), %s6025_s1, 32768, %s5133_s22, [#allocation6], %s5061_s7, %s5061_s7, %s5062_s8  }
  0x28   : > { %s4929_s21 = scalar_lea.hbm %s6026_s2, 256 }
  0x29   : > { %p4930_p2 = scmp.ne.s32.totalorder %s6026_s2, %s4929_s21  ;;  %p4936_p10 = scmp.lt.u32.totalorder %s4929_s21, %s6026_s2 }
  0x2b   : > { %p4932_p1 = pnand %p4930_p2, %p4903_p13 }
  0x2d   : > { %p4933_p6 = pneg %p4932_p1 }
  0x2f   : > { %p4938_p3 = pnand %p4936_p10, %p4933_p6 }
  0x31   : > { %4941 = shalt.err (!%p4938_p3)
}
  0x32   : > { %s4942_s22 = scalar_lea.vmem %s5144_s25, 256  ;;  %p4950_p12 = scmp.lt.s32.totalorder %s5144_s25, %s5144_s25 }
  0x33   : > { %p4943_p5 = scmp.ne.s32.totalorder %s5144_s25, %s4942_s22  ;;  %p4951_p0 = scmp.lt.s32.totalorder %s4942_s22, %s4942_s22 }
  0x35   : > { %p4945_p7 = pnand %p4943_p5, %p4903_p13  ;;  %p4952_p2 = por %p4951_p0, %p4950_p12 }
  0x37   : > { %p4946_p9 = pneg %p4945_p7 }
  0x39   : > { %p4953_p1 = pnand %p4952_p2, %p4946_p9 }
  0x3b   : > { %4956 = shalt.err (!%p4953_p1)
}
  0x3c   : > { %4462 = dma.hbm_to_vmem [thread:$0]  (!%p5140_p11), %s6026_s2, 256, %s5144_s25, [#allocation6]  }
  0x3d   : > { %s5199_s4 = sadd.s32 1, %s5057_s15   ;;  %s27_s23 = sadd.s32 1, %s5053_s14 }
  0x3e   : > { %s24_s5 = ssub.s32 %s5057_s15, %s5199_s4  ;;  %p34_p13 = scmp.ne.s32.totalorder %s5053_s14, %s5049_s13 }
  0x3f   : > { %p25_p6 = scmp.eq.s32.totalorder %s24_s5, 0  ;;  %p35_p10 = scmp.eq.s32.totalorder %s5057_s15, 0 }
  0x40   : > { %p6035_p3 = scmp.eq.s32.totalorder %s5110_s16, 1  ;;  %p4473_p7 = scmp.lt.s32.totalorder %s5057_s15, 2 }
  0x41   : > { %s5215_s7 = scalar_select %p25_p6, %s5053_s14, %s27_s23  }
  0x42   : > { %p5209_p5 = por %p6035_p3, %p34_p13  ;;  %p36_p9 = por %p35_p10, %p34_p13 }
  0x43   : > { %s156_s8 = sand.u32 1, %s5053_s14   ;;  %s4441_s25 = sshll.u32 %s5057_s15, 13 }
  0x44   : > { %s6036_s6 = scalar_select %p5209_p5, 1, 0 }
  0x45   : > { %s4169_s9 = sshll.u32 %s156_s8, 9  ;;  %s5222_s17 = scalar_lea.hbm %s6024_s0, %s4441_s25 }
  0x46   : > { %s160_s21 = scalar_lea.vmem [#allocation2], %s4169_s9  ;;  %p5226_p11 = pnand %p4473_p7, %p36_p9 }
  0x47   : > { %s168_s24 = sshll.u32 %s160_s21, 4  ;;  %s5230_s27 = scalar_lea.sflag [#allocation3], %s156_s8  ;;  %s5224_s24 = int_to_ptr.vmem [resolvable:$true] %s168_s24 }
  0x48   : > { %s4957_s28 = scalar_lea.hbm %s5222_s17, 8192  ;;  %p4959_p0 = pneg %p5226_p11 }
  0x49   : > { %p4958_p12 = scmp.ne.s32.totalorder %s5222_s17, %s4957_s28  ;;  %s4962_s30 = scalar_lea.hbm %s6024_s0, 16384 }
  0x4a   : > { %p4963_p13 = scmp.lt.u32.totalorder %s5222_s17, %s6024_s0  ;;  %p4964_p6 = scmp.lt.u32.totalorder %s4962_s30, %s4957_s28 }
  0x4b   : > { %p4960_p2 = pnand %p4959_p0, %p4958_p12  ;;  %p4966_p3 = scmp.lt.u32.totalorder %s4957_s28, %s5222_s17 }
  0x4c   : > { %p4965_p10 = por %p4964_p6, %p4963_p13 }
  0x4d   : > { %p4961_p1 = pneg %p4960_p2 }
  0x4e   : > { %p4967_p7 = por %p4966_p3, %p4965_p10 }
  0x50   : > { %p4968_p9 = pnand %p4967_p7, %p4961_p1 }
  0x52   : > { %4971 = shalt.err (!%p4968_p9)
}
  0x53   : > { %s4972_s8 = scalar_lea.vmem %s5224_s24, 8192  ;;  %s5063_s9 = smov [#allocation2]  }
  0x54   : > { %p4973_p12 = scmp.ne.s32.totalorder %s5224_s24, %s4972_s8  ;;  %s4977_s25 = sshll.u32 %s5063_s9, 4  ;;  %s4978_s25 = int_to_ptr.vmem [resolvable:$false] %s4977_s25 }
  0x55   : > { %s4979_s10 = scalar_lea.vmem %s4978_s25, 16384  ;;  %p4980_p4 = scmp.lt.s32.totalorder %s5224_s24, %s4978_s25 }
  0x56   : > { %p4975_p2 = pnand %p4973_p12, %p4959_p0  ;;  %p4981_p13 = scmp.lt.s32.totalorder %s4979_s10, %s4972_s8 }
  0x58   : > { %p4976_p5 = pneg %p4975_p2  ;;  %p4982_p6 = por %p4981_p13, %p4980_p4 }
  0x5a   : > { %p4983_p10 = pnand %p4982_p6, %p4976_p5 }
  0x5c   : > { %4986 = shalt.err (!%p4983_p10)
}
  0x5d   : > { %s5064_s11 = smov 256   ;;  %s5065_s21 = smov 16  }
  0x5e   : > { %4466 = dma.hbm_to_vmem [thread:$0]  (!%p5226_p11), %s5222_s17, 8192, %s5224_s24, %s5230_s27, %s5064_s11, %s5064_s11, %s5065_s21  }
  0x5f   : > { %180 = sbr.rel (%p5129_p8) target bundleno = 1999 (0x7cf), region = 32  ;;  %s5261_s28 = sand.u32 (!%p5129_p8), 1, %s5049_s13  }
  0x60   : > { %s4174_s22 = sshll.u32 (!%p5129_p8), %s5261_s28, 9  ;;  %s183_s29 = scalar_lea.sflag (!%p5129_p8), [#allocation3], %s5261_s28 }
  0x61   : > { %s5267_s30 = scalar_lea.vmem (!%p5129_p8), [#allocation2], %s4174_s22  ;;  %p6038_p4 = scmp.ne.s32.totalorder (!%p5129_p8), %s6031_s18, 0 }
  0x66   : > { %5032 = dma.done.wait (%p6038_p4), %s183_s29, 8192  }
  0x67   : > { %5034 = vsyncadd (%p6038_p4), %s183_s29, 4294959104  ;;  %p6039_p5 = scmp.eq.s32.totalorder %s5110_s16, 0 }
  0x69   : > { %5036 = dma.done.wait (%p6039_p5), [#allocation6], 33024   ;;  %p6040_p8 = pmov %p6039_p5 }
  0x6a   : > { %v4517_v0 = vld [vmem:[#allocation5 + $0x4] ss:$8 sps:$4 sm:$0xff]   ;;  %v4519_v1 = vld [vmem:[#allocation5] ss:$8 sps:$4 sm:$0xff]   ;;  %v4520_v2 = vld [vmem:[#allocation5 + $0x14] ss:$8 sps:$4 sm:$0xff]  }
  0x6b   : > { %5038 = vsyncadd (%p6040_p8), [#allocation6], 4294934272  ;;  %503 = vmatprep.subr.bf16.mxu0 %v4517_v0  ;;  %632 = vmatprep.subr.bf16.mxu1 %v4517_v0  ;;  %v4522_v3 = vld [vmem:[#allocation5 + $0x10] ss:$8 sps:$4 sm:$0xff]   ;;  %v4523_v4 = vld [vmem:[#allocation5 + $0x24] ss:$8 sps:$4 sm:$0xff]  }
  0x6c   : > { %504 = vmatpush1.bf16.msra.mxu0 %v4519_v1  ;;  %633 = vmatpush1.bf16.msra.mxu1 %v4519_v1  ;;  %v4525_v5 = vld [vmem:[#allocation5 + $0x20] ss:$8 sps:$4 sm:$0xff]   ;;  %v4526_v6 = vld [vmem:[#allocation5 + $0x34] ss:$8 sps:$4 sm:$0xff]   ;;  %v4528_v7 = vld [vmem:[#allocation5 + $0x30] ss:$8 sps:$4 sm:$0xff]  }
  0x6d   : > { %505 = vmatprep.subr.bf16.mxu0 %v4520_v2  ;;  %634 = vmatprep.subr.bf16.mxu1 %v4520_v2  ;;  %v4529_v8 = vld [vmem:[#allocation5 + $0x44] ss:$8 sps:$4 sm:$0xff]   ;;  %v4531_v9 = vld [vmem:[#allocation5 + $0x40] ss:$8 sps:$4 sm:$0xff]   ;;  %v4532_v10 = vld [vmem:[#allocation5 + $0x54] ss:$8 sps:$4 sm:$0xff]  }
  0x6e   : > { %v4534_v11 = vld [vmem:[#allocation5 + $0x50] ss:$8 sps:$4 sm:$0xff]   ;;  %v4535_v12 = vld [vmem:[#allocation5 + $0x64] ss:$8 sps:$4 sm:$0xff]   ;;  %v4537_v18 = vld [vmem:[#allocation5 + $0x60] ss:$8 sps:$4 sm:$0xff]  }
  0x6f   : > { %v220_v13 = vld [vmem:[%s5267_s30 + $0x8] sm:$0xff]  ;;  %v222_v14 = vld [vmem:[%s5267_s30 + $0x18] sm:$0xff]  ;;  %v219_v38 = vld [vmem:[%s5267_s30] sm:$0xff]  ;;  %s5847_s18 = scalar_lea.vmem [#allocation8], %s4174_s22  ;;  %s4443_s20 = sshll.u32 %s5110_s16, 13 }
  0x70   : > { %506 = vmatpush1.bf16.msra.mxu0 %v4522_v3  ;;  %635 = vmatpush1.bf16.msra.mxu1 %v4522_v3  ;;  %v284_v15 = vpack.c.bf16 %v222_v14, %v220_v13  ;;  %v252_v16 = vld [vmem:[%s5267_s30 + $0x108] sm:$0xff]  ;;  %v254_v17 = vld [vmem:[%s5267_s30 + $0x118] sm:$0xff]  ;;  %v221_v39 = vld [vmem:[%s5267_s30 + $0x10] sm:$0xff]  ;;  %s4072_s17 = sshll.u32 %s5847_s18, 4  ;;  %s5970_s26 = scalar_lea.hbm %s6027_s3, %s4443_s20  ;;  %s5972_s17 = int_to_ptr.vmem [resolvable:$true] %s4072_s17 }
  0x71   : > { %507 = vmatprep.subr.bf16.mxu0 %v4523_v4  ;;  %636 = vmatprep.subr.bf16.mxu1 %v4523_v4  ;;  %v617_v19 = vpack.c.bf16 %v254_v17, %v252_v16  ;;  %v4538_v20 = vld [vmem:[#allocation5 + $0x74] ss:$8 sps:$4 sm:$0xff]   ;;  %v4540_v21 = vld [vmem:[#allocation5 + $0x70] ss:$8 sps:$4 sm:$0xff]   ;;  %v4541_v22 = vld [vmem:[#allocation5 + $0x84] ss:$8 sps:$4 sm:$0xff]   ;;  %v283_v47 = vpack.c.bf16 %v221_v39, %v219_v38 }
  0x72   : > { %535 = vmatprep.mubr.bf16.mxu0 %v284_v15  ;;  %v4543_v23 = vld [vmem:[#allocation5 + $0x80] ss:$8 sps:$4 sm:$0xff]   ;;  %v4544_v24 = vld [vmem:[#allocation5 + $0x94] ss:$8 sps:$4 sm:$0xff]   ;;  %v4546_v25 = vld [vmem:[#allocation5 + $0x90] ss:$8 sps:$4 sm:$0xff]  }
  0x73   : > { %664 = vmatprep.mubr.bf16.mxu1 %v617_v19  ;;  %v4547_v26 = vld [vmem:[#allocation5 + $0xa4] ss:$8 sps:$4 sm:$0xff]   ;;  %v4549_v27 = vld [vmem:[#allocation5 + $0xa0] ss:$8 sps:$4 sm:$0xff]   ;;  %v4550_v28 = vld [vmem:[#allocation5 + $0xb4] ss:$8 sps:$4 sm:$0xff]  }
  0x74   : > { %508 = vmatpush1.bf16.msra.mxu0 %v4525_v5  ;;  %637 = vmatpush1.bf16.msra.mxu1 %v4525_v5  ;;  %v4552_v29 = vld [vmem:[#allocation5 + $0xb0] ss:$8 sps:$4 sm:$0xff]   ;;  %v4553_v30 = vld [vmem:[#allocation5 + $0xc4] ss:$8 sps:$4 sm:$0xff]   ;;  %v4555_v31 = vld [vmem:[#allocation5 + $0xc0] ss:$8 sps:$4 sm:$0xff]  }
  0x75   : > { %509 = vmatprep.subr.bf16.mxu0 %v4526_v6  ;;  %638 = vmatprep.subr.bf16.mxu1 %v4526_v6  ;;  %v4556_v32 = vld [vmem:[#allocation5 + $0xd4] ss:$8 sps:$4 sm:$0xff]   ;;  %v4558_v33 = vld [vmem:[#allocation5 + $0xd0] ss:$8 sps:$4 sm:$0xff]   ;;  %v4559_v34 = vld [vmem:[#allocation5 + $0xe4] ss:$8 sps:$4 sm:$0xff]  }
  0x76   : > { %v4561_v35 = vld [vmem:[#allocation5 + $0xe0] ss:$8 sps:$4 sm:$0xff]   ;;  %v4562_v36 = vld [vmem:[#allocation5 + $0xf4] ss:$8 sps:$4 sm:$0xff]   ;;  %v4564_v37 = vld [vmem:[#allocation5 + $0xf0] ss:$8 sps:$4 sm:$0xff]  }
  0x77   : > { %v251_v40 = vld [vmem:[%s5267_s30 + $0x100] sm:$0xff]  ;;  %v253_v41 = vld [vmem:[%s5267_s30 + $0x110] sm:$0xff]  ;;  %v224_v42 = vld [vmem:[%s5267_s30 + $0x28] sm:$0xff]  ;;  %s4058_s27 = scalar_lea.sflag [#allocation4], %s5261_s28  ;;  %s4987_s23 = scalar_lea.vmem %s5972_s17, 8192 }
  0x78   : > { %510 = vmatpush1.bf16.msra.mxu0 %v4528_v7  ;;  %639 = vmatpush1.bf16.msra.mxu1 %v4528_v7  ;;  %v226_v43 = vld [vmem:[%s5267_s30 + $0x38] sm:$0xff]  ;;  %v256_v44 = vld [vmem:[%s5267_s30 + $0x128] sm:$0xff]  ;;  %v616_v48 = vpack.c.bf16 %v253_v41, %v251_v40  ;;  %v223_v53 = vld [vmem:[%s5267_s30 + $0x20] sm:$0xff]  ;;  %p4988_p11 = scmp.ne.s32.totalorder %s5972_s17, %s4987_s23  ;;  %p6041_p0 = scmp.ne.s32.totalorder %s6036_s6, 0 }
  0x79   : > { %511 = vmatprep.subr.bf16.mxu0 %v4529_v8  ;;  %640 = vmatprep.subr.bf16.mxu1 %v4529_v8  ;;  %v258_v45 = vld [vmem:[%s5267_s30 + $0x138] sm:$0xff]  ;;  %v4567_v46 = vld [vmem:[#allocation5 + $0x104] ss:$8 sps:$4 sm:$0xff]   ;;  %v4565_v49 = vld [vmem:[#allocation5 + $0x100] ss:$8 sps:$4 sm:$0xff]   ;;  %v286_v50 = vpack.c.bf16 %v226_v43, %v224_v42  ;;  %s5066_s5 = smov [#allocation8]  }
  0x7a   : > { %v619_v51 = vpack.c.bf16 %v258_v45, %v256_v44  ;;  %v4570_v52 = vld [vmem:[#allocation5 + $0x114] ss:$8 sps:$4 sm:$0xff]   ;;  %v255_v55 = vld [vmem:[%s5267_s30 + $0x120] sm:$0xff]  ;;  %v228_v57 = vld [vmem:[%s5267_s30 + $0x48] sm:$0xff]  ;;  %p4989_p1 = pnand %p4988_p11, %p6041_p0  ;;  %s4991_s8 = sshll.u32 %s5066_s5, 4  ;;  %s4992_s8 = int_to_ptr.vmem [resolvable:$false] %s4991_s8 }
  0x7b   : > { %v225_v54 = vld [vmem:[%s5267_s30 + $0x30] sm:$0xff]  ;;  %v230_v58 = vld [vmem:[%s5267_s30 + $0x58] sm:$0xff]  ;;  %v260_v59 = vld [vmem:[%s5267_s30 + $0x148] sm:$0xff]  ;;  %s4993_s9 = scalar_lea.vmem %s4992_s8, 16384  ;;  %p4994_p7 = scmp.lt.s32.totalorder %s5972_s17, %s4992_s8 }
  0x7c   : > { %512 = vmatpush1.bf16.msra.mxu0 %v4531_v9  ;;  %641 = vmatpush1.bf16.msra.mxu1 %v4531_v9  ;;  %v257_v56 = vld [vmem:[%s5267_s30 + $0x130] sm:$0xff]  ;;  %v262_v60 = vld [vmem:[%s5267_s30 + $0x158] sm:$0xff]  ;;  %v4573_v62 = vld [vmem:[#allocation5 + $0x124] ss:$8 sps:$4 sm:$0xff]   ;;  %v285_v63 = vpack.c.bf16 %v225_v54, %v223_v53  ;;  %v288_v2 = vpack.c.bf16 %v230_v58, %v228_v57  ;;  %p4990_p3 = pneg %p4989_p1  ;;  %p4995_p9 = scmp.lt.s32.totalorder %s4993_s9, %s4987_s23 }
  0x7d   : > { %513 = vmatprep.subr.bf16.mxu0 %v4532_v10  ;;  %642 = vmatprep.subr.bf16.mxu1 %v4532_v10  ;;  %v4568_v61 = vld [vmem:[#allocation5 + $0x110] ss:$8 sps:$4 sm:$0xff]   ;;  %v618_v0 = vpack.c.bf16 %v257_v56, %v255_v55  ;;  %v4571_v1 = vld [vmem:[#allocation5 + $0x120] ss:$8 sps:$4 sm:$0xff]   ;;  %v621_v3 = vpack.c.bf16 %v262_v60, %v260_v59  ;;  %v4576_v4 = vld [vmem:[#allocation5 + $0x134] ss:$8 sps:$4 sm:$0xff]  }
  0x7e   : > { %v227_v5 = vld [vmem:[%s5267_s30 + $0x40] sm:$0xff]  ;;  %v229_v6 = vld [vmem:[%s5267_s30 + $0x50] sm:$0xff]  ;;  %v232_v9 = vld [vmem:[%s5267_s30 + $0x68] sm:$0xff]  ;;  %p4996_p12 = por %p4995_p9, %p4994_p7 }
  0x7f   : > { %v259_v7 = vld [vmem:[%s5267_s30 + $0x140] sm:$0xff]  ;;  %v261_v8 = vld [vmem:[%s5267_s30 + $0x150] sm:$0xff]  ;;  %v234_v10 = vld [vmem:[%s5267_s30 + $0x78] sm:$0xff]  ;;  %v287_v15 = vpack.c.bf16 %v229_v6, %v227_v5 }
  0x80   : > { %514 = vmatpush1.bf16.msra.mxu0 %v4534_v11  ;;  %643 = vmatpush1.bf16.msra.mxu1 %v4534_v11  ;;  %v264_v11 = vld [vmem:[%s5267_s30 + $0x168] sm:$0xff]  ;;  %v4574_v13 = vld [vmem:[#allocation5 + $0x130] ss:$8 sps:$4 sm:$0xff]   ;;  %v620_v16 = vpack.c.bf16 %v261_v8, %v259_v7  ;;  %v267_v39 = vld [vmem:[%s5267_s30 + $0x180] sm:$0xff]  ;;  %p4997_p2 = pnand %p4996_p12, %p4990_p3 }
  0x81   : > { %515 = vmatprep.subr.bf16.mxu0 %v4535_v12  ;;  %644 = vmatprep.subr.bf16.mxu1 %v4535_v12  ;;  %v266_v12 = vld [vmem:[%s5267_s30 + $0x178] sm:$0xff]  ;;  %v4579_v14 = vld [vmem:[#allocation5 + $0x144] ss:$8 sps:$4 sm:$0xff]   ;;  %v4577_v17 = vld [vmem:[#allocation5 + $0x140] ss:$8 sps:$4 sm:$0xff]  }
  0x82   : > { %v623_v19 = vpack.c.bf16 %v266_v12, %v264_v11  ;;  %v237_v38 = vld [vmem:[%s5267_s30 + $0x90] sm:$0xff]  ;;  %v240_v41 = vld [vmem:[%s5267_s30 + $0xa8] sm:$0xff]  ;;  %v242_v42 = vld [vmem:[%s5267_s30 + $0xb8] sm:$0xff] }
  0x83   : > { %v269_v40 = vld [vmem:[%s5267_s30 + $0x190] sm:$0xff]  ;;  %v272_v43 = vld [vmem:[%s5267_s30 + $0x1a8] sm:$0xff]  ;;  %v274_v44 = vld [vmem:[%s5267_s30 + $0x1b8] sm:$0xff] }
  0x84   : > { %516 = vmatpush1.bf16.msra.mxu0 %v4537_v18  ;;  %645 = vmatpush1.bf16.msra.mxu1 %v4537_v18  ;;  %v290_v18 = vpack.c.bf16 %v234_v10, %v232_v9  ;;  %v4586_v45 = vld [vmem:[#allocation5 + $0x170] ss:$8 sps:$4 sm:$0xff]   ;;  %v239_v53 = vld [vmem:[%s5267_s30 + $0xa0] sm:$0xff]  ;;  %v244_v57 = vld [vmem:[%s5267_s30 + $0xc8] sm:$0xff] }
  0x85   : > { %517 = vmatprep.subr.bf16.mxu0 %v4538_v20  ;;  %646 = vmatprep.subr.bf16.mxu1 %v4538_v20  ;;  %v4582_v20 = vld [vmem:[#allocation5 + $0x154] ss:$8 sps:$4 sm:$0xff]   ;;  %v271_v55 = vld [vmem:[%s5267_s30 + $0x1a0] sm:$0xff]  ;;  %v276_v59 = vld [vmem:[%s5267_s30 + $0x1c8] sm:$0xff] }
  0x86   : > { %v241_v54 = vld [vmem:[%s5267_s30 + $0xb0] sm:$0xff]  ;;  %v246_v58 = vld [vmem:[%s5267_s30 + $0xd8] sm:$0xff]  ;;  %v243_v5 = vld [vmem:[%s5267_s30 + $0xc0] sm:$0xff] }
  0x87   : > { %v273_v56 = vld [vmem:[%s5267_s30 + $0x1b0] sm:$0xff]  ;;  %v278_v60 = vld [vmem:[%s5267_s30 + $0x1d8] sm:$0xff]  ;;  %v275_v7 = vld [vmem:[%s5267_s30 + $0x1c0] sm:$0xff] }
  0x88   : > { %518 = vmatpush1.bf16.msra.mxu0 %v4540_v21  ;;  %647 = vmatpush1.bf16.msra.mxu1 %v4540_v21  ;;  %v231_v21 = vld [vmem:[%s5267_s30 + $0x60] sm:$0xff]  ;;  %v245_v6 = vld [vmem:[%s5267_s30 + $0xd0] sm:$0xff]  ;;  %v248_v9 = vld [vmem:[%s5267_s30 + $0xe8] sm:$0xff] }
  0x89   : > { %519 = vmatprep.subr.bf16.mxu0 %v4541_v22  ;;  %648 = vmatprep.subr.bf16.mxu1 %v4541_v22  ;;  %v233_v22 = vld [vmem:[%s5267_s30 + $0x70] sm:$0xff]  ;;  %v250_v10 = vld [vmem:[%s5267_s30 + $0xf8] sm:$0xff]  ;;  %v280_v11 = vld [vmem:[%s5267_s30 + $0x1e8] sm:$0xff] }
  0x8a   : > { %v277_v8 = vld [vmem:[%s5267_s30 + $0x1d0] sm:$0xff]  ;;  %v282_v12 = vld [vmem:[%s5267_s30 + $0x1f8] sm:$0xff] }
  0x8c   : > { %520 = vmatpush1.bf16.msra.mxu0 %v4543_v23  ;;  %649 = vmatpush1.bf16.msra.mxu1 %v4543_v23  ;;  %v263_v23 = vld [vmem:[%s5267_s30 + $0x160] sm:$0xff] }
  0x8d   : > { %521 = vmatprep.subr.bf16.mxu0 %v4544_v24  ;;  %650 = vmatprep.subr.bf16.mxu1 %v4544_v24  ;;  %v265_v24 = vld [vmem:[%s5267_s30 + $0x170] sm:$0xff] }
  0x90   : > { %522 = vmatpush1.bf16.msra.mxu0 %v4546_v25  ;;  %651 = vmatpush1.bf16.msra.mxu1 %v4546_v25  ;;  %v236_v25 = vld [vmem:[%s5267_s30 + $0x88] sm:$0xff] }
  0x91   : > { %523 = vmatprep.subr.bf16.mxu0 %v4547_v26  ;;  %652 = vmatprep.subr.bf16.mxu1 %v4547_v26  ;;  %v238_v26 = vld [vmem:[%s5267_s30 + $0x98] sm:$0xff] }
  0x94   : > { %524 = vmatpush1.bf16.msra.mxu0 %v4549_v27  ;;  %653 = vmatpush1.bf16.msra.mxu1 %v4549_v27  ;;  %v268_v27 = vld [vmem:[%s5267_s30 + $0x188] sm:$0xff] }
  0x95   : > { %525 = vmatprep.subr.bf16.mxu0 %v4550_v28  ;;  %654 = vmatprep.subr.bf16.mxu1 %v4550_v28  ;;  %v270_v28 = vld [vmem:[%s5267_s30 + $0x198] sm:$0xff] }
  0x98   : > { %526 = vmatpush1.bf16.msra.mxu0 %v4552_v29  ;;  %655 = vmatpush1.bf16.msra.mxu1 %v4552_v29  ;;  %v4580_v29 = vld [vmem:[#allocation5 + $0x150] ss:$8 sps:$4 sm:$0xff]  }
  0x99   : > { %527 = vmatprep.subr.bf16.mxu0 %v4553_v30  ;;  %656 = vmatprep.subr.bf16.mxu1 %v4553_v30  ;;  %v4585_v30 = vld [vmem:[#allocation5 + $0x164] ss:$8 sps:$4 sm:$0xff]  }
  0x9c   : > { %528 = vmatpush1.bf16.msra.mxu0 %v4555_v31  ;;  %657 = vmatpush1.bf16.msra.mxu1 %v4555_v31  ;;  %v289_v31 = vpack.c.bf16 %v233_v22, %v231_v21  ;;  %v247_v21 = vld [vmem:[%s5267_s30 + $0xe0] sm:$0xff]  ;;  %v249_v22 = vld [vmem:[%s5267_s30 + $0xf0] sm:$0xff] }
  0x9d   : > { %529 = vmatprep.subr.bf16.mxu0 %v4556_v32  ;;  %658 = vmatprep.subr.bf16.mxu1 %v4556_v32  ;;  %v622_v32 = vpack.c.bf16 %v265_v24, %v263_v23  ;;  %v279_v23 = vld [vmem:[%s5267_s30 + $0x1e0] sm:$0xff]  ;;  %v281_v24 = vld [vmem:[%s5267_s30 + $0x1f0] sm:$0xff] }
  0xa0   : > { %530 = vmatpush1.bf16.msra.mxu0 %v4558_v33  ;;  %659 = vmatpush1.bf16.msra.mxu1 %v4558_v33  ;;  %v4583_v33 = vld [vmem:[#allocation5 + $0x160] ss:$8 sps:$4 sm:$0xff]  }
  0xa1   : > { %531 = vmatprep.subr.bf16.mxu0 %v4559_v34  ;;  %660 = vmatprep.subr.bf16.mxu1 %v4559_v34  ;;  %v292_v34 = vpack.c.bf16 %v238_v26, %v236_v25  ;;  %v4604_v25 = vld [vmem:[#allocation5 + $0x1d0] ss:$8 sps:$4 sm:$0xff]   ;;  %v297_v26 = vpack.c.bf16 %v249_v22, %v247_v21  ;;  %v4624_v21 = vld [vmem:[#allocation5 + $0x234] ss:$8 sps:$4 sm:$0xff]  }
  0xa4   : > { %532 = vmatpush1.bf16.msra.mxu0 %v4561_v35  ;;  %661 = vmatpush1.bf16.msra.mxu1 %v4561_v35  ;;  %v625_v35 = vpack.c.bf16 %v270_v28, %v268_v27  ;;  %v630_v27 = vpack.c.bf16 %v281_v24, %v279_v23  ;;  %v4609_v28 = vld [vmem:[#allocation5 + $0x1e4] ss:$8 sps:$4 sm:$0xff]  }
  0xa5   : > { %533 = vmatprep.subr.bf16.mxu0 %v4562_v36  ;;  %662 = vmatprep.subr.bf16.mxu1 %v4562_v36  ;;  %v4588_v36 = vld [vmem:[#allocation5 + $0x174] ss:$8 sps:$4 sm:$0xff]  }
  0xa8   : > { %534 = vmatpush1.bf16.msra.mxu0 %v4564_v37  ;;  %663 = vmatpush1.bf16.msra.mxu1 %v4564_v37  ;;  %v235_v37 = vld [vmem:[%s5267_s30 + $0x80] sm:$0xff] }
  0xa9   : > { %967 = vmatprep.subr.bf16.mxu0 %v4567_v46  ;;  %1096 = vmatprep.subr.bf16.mxu1 %v4567_v46  ;;  %v4591_v46 = vld [vmem:[#allocation5 + $0x184] ss:$8 sps:$4 sm:$0xff]  }
  0xab   : > { %536 = vmatmul.mubr.bf16.vlgmr.msra.gmra.mrb[0].mxu0 %v283_v47  ;;  %665 = vmatmul.mubr.bf16.vlgmr.msra.gmra.mrb[0].mxu1 %v616_v48  ;;  %v291_v47 = vpack.c.bf16 %v237_v38, %v235_v37  ;;  %v624_v48 = vpack.c.bf16 %v269_v40, %v267_v39 }
  0xac   : > { %545 = vmatprep.mubr.bf16.mxu0 %v286_v50  ;;  %674 = vmatprep.mubr.bf16.mxu1 %v619_v51  ;;  %v294_v50 = vpack.c.bf16 %v242_v42, %v240_v41  ;;  %v627_v51 = vpack.c.bf16 %v274_v44, %v272_v43 }
  0xad   : > { %968 = vmatpush1.bf16.msra.mxu0 %v4565_v49  ;;  %1097 = vmatpush1.bf16.msra.mxu1 %v4565_v49  ;;  %v4589_v49 = vld [vmem:[#allocation5 + $0x180] ss:$8 sps:$4 sm:$0xff]  }
  0xae   : > { %969 = vmatprep.subr.bf16.mxu0 %v4570_v52  ;;  %1098 = vmatprep.subr.bf16.mxu1 %v4570_v52  ;;  %v4594_v52 = vld [vmem:[#allocation5 + $0x194] ss:$8 sps:$4 sm:$0xff]  }
  0xb1   : > { %970 = vmatpush1.bf16.msra.mxu0 %v4568_v61  ;;  %1099 = vmatpush1.bf16.msra.mxu1 %v4568_v61  ;;  %v4592_v61 = vld [vmem:[#allocation5 + $0x190] ss:$8 sps:$4 sm:$0xff]  }
  0xb2   : > { %971 = vmatprep.subr.bf16.mxu0 %v4573_v62  ;;  %1100 = vmatprep.subr.bf16.mxu1 %v4573_v62  ;;  %v4597_v62 = vld [vmem:[#allocation5 + $0x1a4] ss:$8 sps:$4 sm:$0xff]  }
  0xb3   : > { %546 = vmatmul.mubr.bf16.gmra.mrb[4].mxu0 %v285_v63  ;;  %675 = vmatmul.mubr.bf16.gmra.mrb[4].mxu1 %v618_v0  ;;  %v293_v63 = vpack.c.bf16 %v241_v54, %v239_v53  ;;  %v626_v0 = vpack.c.bf16 %v273_v56, %v271_v55 }
  0xb4   : > { %555 = vmatprep.mubr.bf16.mxu0 %v288_v2  ;;  %684 = vmatprep.mubr.bf16.mxu1 %v621_v3  ;;  %v296_v2 = vpack.c.bf16 %v246_v58, %v244_v57  ;;  %v629_v3 = vpack.c.bf16 %v278_v60, %v276_v59  ;;  %v4613_v60 = vld [vmem:[#allocation5 + $0x200] ss:$8 sps:$4 sm:$0xff]  }
  0xb5   : > { %972 = vmatpush1.bf16.msra.mxu0 %v4571_v1  ;;  %1101 = vmatpush1.bf16.msra.mxu1 %v4571_v1  ;;  %v4595_v1 = vld [vmem:[#allocation5 + $0x1a0] ss:$8 sps:$4 sm:$0xff]  }
  0xb6   : > { %973 = vmatprep.subr.bf16.mxu0 %v4576_v4  ;;  %1102 = vmatprep.subr.bf16.mxu1 %v4576_v4  ;;  %v4600_v4 = vld [vmem:[#allocation5 + $0x1b4] ss:$8 sps:$4 sm:$0xff]  }
  0xb9   : > { %974 = vmatpush1.bf16.msra.mxu0 %v4574_v13  ;;  %1103 = vmatpush1.bf16.msra.mxu1 %v4574_v13  ;;  %v4598_v13 = vld [vmem:[#allocation5 + $0x1b0] ss:$8 sps:$4 sm:$0xff]  }
  0xba   : > { %975 = vmatprep.subr.bf16.mxu0 %v4579_v14  ;;  %1104 = vmatprep.subr.bf16.mxu1 %v4579_v14  ;;  %v4603_v14 = vld [vmem:[#allocation5 + $0x1c4] ss:$8 sps:$4 sm:$0xff]  }
  0xbb   : > { %556 = vmatmul.mubr.bf16.gmra.mrb[8].mxu0 %v287_v15  ;;  %685 = vmatmul.mubr.bf16.gmra.mrb[8].mxu1 %v620_v16  ;;  %v295_v15 = vpack.c.bf16 %v245_v6, %v243_v5  ;;  %v628_v16 = vpack.c.bf16 %v277_v8, %v275_v7  ;;  %v4616_v5 = vld [vmem:[#allocation5 + $0x210] ss:$8 sps:$4 sm:$0xff]  }
  0xbc   : > { %565 = vmatprep.mubr.bf16.mxu0 %v290_v18  ;;  %694 = vmatprep.mubr.bf16.mxu1 %v623_v19  ;;  %v298_v18 = vpack.c.bf16 %v250_v10, %v248_v9  ;;  %v631_v19 = vpack.c.bf16 %v282_v12, %v280_v11  ;;  %v4621_v11 = vld [vmem:[#allocation5 + $0x224] ss:$8 sps:$4 sm:$0xff]  }
  0xbd   : > { %976 = vmatpush1.bf16.msra.mxu0 %v4577_v17  ;;  %1105 = vmatpush1.bf16.msra.mxu1 %v4577_v17  ;;  %v4601_v17 = vld [vmem:[#allocation5 + $0x1c0] ss:$8 sps:$4 sm:$0xff]  }
  0xbe   : > { %977 = vmatprep.subr.bf16.mxu0 %v4582_v20  ;;  %1106 = vmatprep.subr.bf16.mxu1 %v4582_v20  ;;  %v4606_v20 = vld [vmem:[#allocation5 + $0x1d4] ss:$8 sps:$4 sm:$0xff]  }
  0xc1   : > { %978 = vmatpush1.bf16.msra.mxu0 %v4580_v29  ;;  %1107 = vmatpush1.bf16.msra.mxu1 %v4580_v29  ;;  %v4607_v29 = vld [vmem:[#allocation5 + $0x1e0] ss:$8 sps:$4 sm:$0xff]  }
  0xc2   : > { %979 = vmatprep.subr.bf16.mxu0 %v4585_v30  ;;  %1108 = vmatprep.subr.bf16.mxu1 %v4585_v30  ;;  %v4612_v30 = vld [vmem:[#allocation5 + $0x1f4] ss:$8 sps:$4 sm:$0xff]  }
  0xc3   : > { %566 = vmatmul.mubr.bf16.gmra.mrb[12].mxu0 %v289_v31  ;;  %695 = vmatmul.mubr.bf16.gmra.mrb[12].mxu1 %v622_v32  ;;  %v4610_v31 = vld [vmem:[#allocation5 + $0x1f0] ss:$8 sps:$4 sm:$0xff]   ;;  %v4615_v32 = vld [vmem:[#allocation5 + $0x204] ss:$8 sps:$4 sm:$0xff]  }
  0xc4   : > { %575 = vmatprep.mubr.bf16.mxu0 %v292_v34  ;;  %704 = vmatprep.mubr.bf16.mxu1 %v625_v35 }
  0xc5   : > { %980 = vmatpush1.bf16.msra.mxu0 %v4583_v33  ;;  %1109 = vmatpush1.bf16.msra.mxu1 %v4583_v33  ;;  %v333_v33 = vlaneseq }
  0xc6   : > { %981 = vmatprep.subr.bf16.mxu0 %v4588_v36  ;;  %1110 = vmatprep.subr.bf16.mxu1 %v4588_v36  ;;  %v331_v36 = vld [vmem:[#allocation7] ss:$8 sm:$0x3] }
  0xc7   : > { %v334_v34 = vshrl.u32 %v333_v33, 7 }
  0xc9   : > { %982 = vmatpush1.bf16.msra.mxu0 %v4586_v45  ;;  %1111 = vmatpush1.bf16.msra.mxu1 %v4586_v45  ;;  %v5341_v35 = vsub.s32 0, %v334_v34  ;;  %v5343_v37 = vsub.s32 1, %v334_v34 }
  0xca   : > { %983 = vmatprep.subr.bf16.mxu0 %v4591_v46  ;;  %1112 = vmatprep.subr.bf16.mxu1 %v4591_v46 }
  0xcb   : > { %576 = vmatmul.mubr.bf16.gmra.mrb[16].mxu0 %v291_v47  ;;  %705 = vmatmul.mubr.bf16.gmra.mrb[16].mxu1 %v624_v48  ;;  %v5346_v38 = vrot.slane %v331_v36, %v5341_v35  ;;  %v5349_v41 = vrot.slane %v331_v36, %v5343_v37  ;;  %v4627_v36 = vld [vmem:[#allocation5 + $0x244] ss:$8 sps:$4 sm:$0xff]  }
  0xcc   : > { %585 = vmatprep.mubr.bf16.mxu0 %v294_v50  ;;  %714 = vmatprep.mubr.bf16.mxu1 %v627_v51 }
  0xcd   : > { %984 = vmatpush1.bf16.msra.mxu0 %v4589_v49  ;;  %1113 = vmatpush1.bf16.msra.mxu1 %v4589_v49 }
  0xce   : > { %985 = vmatprep.subr.bf16.mxu0 %v4594_v52  ;;  %1114 = vmatprep.subr.bf16.mxu1 %v4594_v52 }
  0xd1   : > { %986 = vmatpush1.bf16.msra.mxu0 %v4592_v61  ;;  %1115 = vmatpush1.bf16.msra.mxu1 %v4592_v61  ;;  %v4618_v61 = vld [vmem:[#allocation5 + $0x214] ss:$8 sps:$4 sm:$0xff]  }
  0xd2   : > { %987 = vmatprep.subr.bf16.mxu0 %v4597_v62  ;;  %1116 = vmatprep.subr.bf16.mxu1 %v4597_v62 }
  0xd3   : > { %586 = vmatmul.mubr.bf16.gmra.mrb[20].mxu0 %v293_v63  ;;  %715 = vmatmul.mubr.bf16.gmra.mrb[20].mxu1 %v626_v0 }
  0xd4   : > { %595 = vmatprep.mubr.bf16.mxu0 %v296_v2  ;;  %724 = vmatprep.mubr.bf16.mxu1 %v629_v3 }
  0xd5   : > { %988 = vmatpush1.bf16.msra.mxu0 %v4595_v1  ;;  %1117 = vmatpush1.bf16.msra.mxu1 %v4595_v1 }
  0xd6   : > { %989 = vmatprep.subr.bf16.mxu0 %v4600_v4  ;;  %1118 = vmatprep.subr.bf16.mxu1 %v4600_v4 }
  0xd9   : > { %990 = vmatpush1.bf16.msra.mxu0 %v4598_v13  ;;  %1119 = vmatpush1.bf16.msra.mxu1 %v4598_v13 }
  0xda   : > { %991 = vmatprep.subr.bf16.mxu0 %v4603_v14  ;;  %1120 = vmatprep.subr.bf16.mxu1 %v4603_v14 }
  0xdb   : > { %596 = vmatmul.mubr.bf16.gmra.mrb[24].mxu0 %v295_v15  ;;  %725 = vmatmul.mubr.bf16.gmra.mrb[24].mxu1 %v628_v16 }
  0xdc   : > { %605 = vmatprep.mubr.bf16.mxu0 %v298_v18  ;;  %734 = vmatprep.mubr.bf16.mxu1 %v631_v19 }
  0xdd   : > { %992 = vmatpush1.bf16.msra.mxu0 %v4601_v17  ;;  %1121 = vmatpush1.bf16.msra.mxu1 %v4601_v17 }
  0xde   : > { %993 = vmatprep.subr.bf16.mxu0 %v4606_v20  ;;  %1122 = vmatprep.subr.bf16.mxu1 %v4606_v20  ;;  %v4619_v20 = vld [vmem:[#allocation5 + $0x220] ss:$8 sps:$4 sm:$0xff]  }
  0xe1   : > { %994 = vmatpush1.bf16.msra.mxu0 %v4604_v25  ;;  %1123 = vmatpush1.bf16.msra.mxu1 %v4604_v25 }
  0xe2   : > { %995 = vmatprep.subr.bf16.mxu0 %v4609_v28  ;;  %1124 = vmatprep.subr.bf16.mxu1 %v4609_v28 }
  0xe3   : > { %606 = vmatmul.mubr.bf16.gmra.mrb[28].mxu0 %v297_v26  ;;  %735 = vmatmul.mubr.bf16.gmra.mrb[28].mxu1 %v630_v27 }
  0xe5   : > { %996 = vmatpush1.bf16.msra.mxu0 %v4607_v29  ;;  %1125 = vmatpush1.bf16.msra.mxu1 %v4607_v29  ;;  %v4622_v29 = vld [vmem:[#allocation5 + $0x230] ss:$8 sps:$4 sm:$0xff]  }
  0xe6   : > { %997 = vmatprep.subr.bf16.mxu0 %v4612_v30  ;;  %1126 = vmatprep.subr.bf16.mxu1 %v4612_v30 }
  0xe9   : > { %998 = vmatpush1.bf16.msra.mxu0 %v4610_v31  ;;  %1127 = vmatpush1.bf16.msra.mxu1 %v4610_v31 }
  0xea   : > { %1431 = vmatprep.subr.bf16.mxu0 %v4615_v32  ;;  %1560 = vmatprep.subr.bf16.mxu1 %v4615_v32 }
 0x17e   : > { %v537_v39 = vpop.f32.mrb[0].mxu0  ;;  %v666_v40 = vpop.f32.mrb[0].mxu1 }
 0x17f   : > { %v539_v42 = vpop.f32.mrb[1].mxu0  ;;  %v668_v43 = vpop.f32.mrb[1].mxu1  ;;  %v538_v46 = vadd.f32 %v537_v39, %v5346_v38  ;;  %v667_v47 = vadd.f32 %v666_v40, %v5346_v38 }
 0x180   : > { %v541_v44 = vpop.f32.mrb[2].mxu0  ;;  %v670_v45 = vpop.f32.mrb[2].mxu1  ;;  %v540_v52 = vadd.f32 %v539_v42, %v5349_v41  ;;  %v669_v53 = vadd.f32 %v668_v43, %v5349_v41 }
 0x181   : > { %v542_v48 = vadd.f32 %v541_v44, %v5346_v38  ;;  %v671_v49 = vadd.f32 %v670_v45, %v5346_v38  ;;  %v543_v50 = vpop.f32.mrb[3].mxu0  ;;  %v672_v51 = vpop.f32.mrb[3].mxu1 }
 0x182   : > { %v544_v54 = vadd.f32 %v543_v50, %v5349_v41  ;;  %v673_v55 = vadd.f32 %v672_v51, %v5349_v41 }
 0x183   : > { %v745_v56 = vpack.c.bf16 %v542_v48, %v538_v46  ;;  %v1080_v57 = vpack.c.bf16 %v671_v49, %v667_v47  ;;  %v4625_v48 = vld [vmem:[#allocation5 + $0x240] ss:$8 sps:$4 sm:$0xff]   ;;  %v4630_v49 = vld [vmem:[#allocation5 + $0x254] ss:$8 sps:$4 sm:$0xff]  }
 0x184   : > { %v746_v58 = vpack.c.bf16 %v544_v54, %v540_v52  ;;  %v1081_v59 = vpack.c.bf16 %v673_v55, %v669_v53 }
 0x186   : > { %v547_v62 = vpop.f32.mrb[4].mxu0  ;;  %v676_v63 = vpop.f32.mrb[4].mxu1  ;;  %999 = vmatprep.mubr.bf16.mxu0 %v746_v58  ;;  %1128 = vmatprep.mubr.bf16.mxu1 %v1081_v59 }
 0x187   : > { %v549_v0 = vpop.f32.mrb[5].mxu0  ;;  %v678_v1 = vpop.f32.mrb[5].mxu1  ;;  %1000 = vmatmul.mubr.bf16.vlgmr.msra.gmra.mrb[32].mxu0 %v745_v56  ;;  %1129 = vmatmul.mubr.bf16.vlgmr.msra.gmra.mrb[32].mxu1 %v1080_v57  ;;  %v548_v2 = vadd.f32 %v547_v62, %v5346_v38  ;;  %v677_v6 = vadd.f32 %v676_v63, %v5346_v38  ;;  %v4628_v57 = vld [vmem:[#allocation5 + $0x250] ss:$8 sps:$4 sm:$0xff]   ;;  %v4633_v63 = vld [vmem:[#allocation5 + $0x264] ss:$8 sps:$4 sm:$0xff]  }
 0x188   : > { %v551_v3 = vpop.f32.mrb[6].mxu0  ;;  %v680_v4 = vpop.f32.mrb[6].mxu1  ;;  %1432 = vmatpush1.bf16.msra.mxu0 %v4613_v60  ;;  %1561 = vmatpush1.bf16.msra.mxu1 %v4613_v60  ;;  %v550_v12 = vadd.f32 %v549_v0, %v5349_v41  ;;  %v679_v13 = vadd.f32 %v678_v1, %v5349_v41 }
 0x189   : > { %v552_v7 = vadd.f32 %v551_v3, %v5346_v38  ;;  %v681_v8 = vadd.f32 %v680_v4, %v5346_v38  ;;  %v553_v9 = vpop.f32.mrb[7].mxu0  ;;  %v682_v10 = vpop.f32.mrb[7].mxu1  ;;  %1433 = vmatprep.subr.bf16.mxu0 %v4618_v61  ;;  %1562 = vmatprep.subr.bf16.mxu1 %v4618_v61 }
 0x18a   : > { %v554_v14 = vadd.f32 %v553_v9, %v5349_v41  ;;  %v683_v15 = vadd.f32 %v682_v10, %v5349_v41  ;;  %v4636_v9 = vld [vmem:[#allocation5 + $0x274] ss:$8 sps:$4 sm:$0xff]  }
 0x18b   : > { %v747_v16 = vpack.c.bf16 %v552_v7, %v548_v2  ;;  %v1082_v17 = vpack.c.bf16 %v681_v8, %v677_v6  ;;  %v4631_v8 = vld [vmem:[#allocation5 + $0x260] ss:$8 sps:$4 sm:$0xff]  }
 0x18c   : > { %v748_v18 = vpack.c.bf16 %v554_v14, %v550_v12  ;;  %v1083_v19 = vpack.c.bf16 %v683_v15, %v679_v13  ;;  %1434 = vmatpush1.bf16.msra.mxu0 %v4616_v5  ;;  %1563 = vmatpush1.bf16.msra.mxu1 %v4616_v5 }
 0x18d   : > { %1435 = vmatprep.subr.bf16.mxu0 %v4621_v11  ;;  %1564 = vmatprep.subr.bf16.mxu1 %v4621_v11 }
 0x18e   : > { %v557_v22 = vpop.f32.mrb[8].mxu0  ;;  %v686_v23 = vpop.f32.mrb[8].mxu1  ;;  %1009 = vmatprep.mubr.bf16.mxu0 %v748_v18  ;;  %1138 = vmatprep.mubr.bf16.mxu1 %v1083_v19 }
 0x18f   : > { %v559_v24 = vpop.f32.mrb[9].mxu0  ;;  %v688_v25 = vpop.f32.mrb[9].mxu1  ;;  %1010 = vmatmul.mubr.bf16.gmra.mrb[36].mxu0 %v747_v16  ;;  %1139 = vmatmul.mubr.bf16.gmra.mrb[36].mxu1 %v1082_v17  ;;  %v558_v26 = vadd.f32 %v557_v22, %v5346_v38  ;;  %v687_v30 = vadd.f32 %v686_v23, %v5346_v38  ;;  %v4634_v17 = vld [vmem:[#allocation5 + $0x270] ss:$8 sps:$4 sm:$0xff]   ;;  %v4639_v23 = vld [vmem:[#allocation5 + $0x284] ss:$8 sps:$4 sm:$0xff]  }
 0x190   : > { %v561_v27 = vpop.f32.mrb[10].mxu0  ;;  %v690_v28 = vpop.f32.mrb[10].mxu1  ;;  %1436 = vmatpush1.bf16.msra.mxu0 %v4619_v20  ;;  %1565 = vmatpush1.bf16.msra.mxu1 %v4619_v20  ;;  %v560_v39 = vadd.f32 %v559_v24, %v5349_v41  ;;  %v689_v40 = vadd.f32 %v688_v25, %v5349_v41 }
 0x191   : > { %v562_v31 = vadd.f32 %v561_v27, %v5346_v38  ;;  %v691_v32 = vadd.f32 %v690_v28, %v5346_v38  ;;  %v563_v33 = vpop.f32.mrb[11].mxu0  ;;  %v692_v34 = vpop.f32.mrb[11].mxu1  ;;  %1437 = vmatprep.subr.bf16.mxu0 %v4624_v21  ;;  %1566 = vmatprep.subr.bf16.mxu1 %v4624_v21 }
 0x192   : > { %v564_v42 = vadd.f32 %v563_v33, %v5349_v41  ;;  %v693_v43 = vadd.f32 %v692_v34, %v5349_v41  ;;  %v4642_v33 = vld [vmem:[#allocation5 + $0x294] ss:$8 sps:$4 sm:$0xff]  }
 0x193   : > { %v749_v44 = vpack.c.bf16 %v562_v31, %v558_v26  ;;  %v1084_v45 = vpack.c.bf16 %v691_v32, %v687_v30  ;;  %v4637_v32 = vld [vmem:[#allocation5 + $0x280] ss:$8 sps:$4 sm:$0xff]  }
 0x194   : > { %v750_v46 = vpack.c.bf16 %v564_v42, %v560_v39  ;;  %v1085_v47 = vpack.c.bf16 %v693_v43, %v689_v40  ;;  %1438 = vmatpush1.bf16.msra.mxu0 %v4622_v29  ;;  %1567 = vmatpush1.bf16.msra.mxu1 %v4622_v29 }
 0x195   : > { %1439 = vmatprep.subr.bf16.mxu0 %v4627_v36  ;;  %1568 = vmatprep.subr.bf16.mxu1 %v4627_v36 }
 0x196   : > { %v567_v50 = vpop.f32.mrb[12].mxu0  ;;  %v696_v51 = vpop.f32.mrb[12].mxu1  ;;  %1019 = vmatprep.mubr.bf16.mxu0 %v750_v46  ;;  %1148 = vmatprep.mubr.bf16.mxu1 %v1085_v47 }
 0x197   : > { %v569_v52 = vpop.f32.mrb[13].mxu0  ;;  %v698_v53 = vpop.f32.mrb[13].mxu1  ;;  %1020 = vmatmul.mubr.bf16.gmra.mrb[40].mxu0 %v749_v44  ;;  %1149 = vmatmul.mubr.bf16.gmra.mrb[40].mxu1 %v1084_v45  ;;  %v568_v54 = vadd.f32 %v567_v50, %v5346_v38  ;;  %v697_v58 = vadd.f32 %v696_v51, %v5346_v38  ;;  %v4640_v45 = vld [vmem:[#allocation5 + $0x290] ss:$8 sps:$4 sm:$0xff]   ;;  %v4645_v51 = vld [vmem:[#allocation5 + $0x2a4] ss:$8 sps:$4 sm:$0xff]  }
 0x198   : > { %v571_v55 = vpop.f32.mrb[14].mxu0  ;;  %v700_v56 = vpop.f32.mrb[14].mxu1  ;;  %1440 = vmatpush1.bf16.msra.mxu0 %v4625_v48  ;;  %1569 = vmatpush1.bf16.msra.mxu1 %v4625_v48  ;;  %v570_v0 = vadd.f32 %v569_v52, %v5349_v41  ;;  %v699_v1 = vadd.f32 %v698_v53, %v5349_v41 }
 0x199   : > { %v572_v59 = vadd.f32 %v571_v55, %v5346_v38  ;;  %v701_v60 = vadd.f32 %v700_v56, %v5346_v38  ;;  %v573_v61 = vpop.f32.mrb[15].mxu0  ;;  %v702_v62 = vpop.f32.mrb[15].mxu1  ;;  %1441 = vmatprep.subr.bf16.mxu0 %v4630_v49  ;;  %1570 = vmatprep.subr.bf16.mxu1 %v4630_v49 }
 0x19a   : > { %v574_v2 = vadd.f32 %v573_v61, %v5349_v41  ;;  %v703_v3 = vadd.f32 %v702_v62, %v5349_v41  ;;  %v4648_v61 = vld [vmem:[#allocation5 + $0x2b4] ss:$8 sps:$4 sm:$0xff]  }
 0x19b   : > { %v751_v4 = vpack.c.bf16 %v572_v59, %v568_v54  ;;  %v1086_v5 = vpack.c.bf16 %v701_v60, %v697_v58  ;;  %v4643_v60 = vld [vmem:[#allocation5 + $0x2a0] ss:$8 sps:$4 sm:$0xff]  }
 0x19c   : > { %v752_v6 = vpack.c.bf16 %v574_v2, %v570_v0  ;;  %v1087_v7 = vpack.c.bf16 %v703_v3, %v699_v1  ;;  %1442 = vmatpush1.bf16.msra.mxu0 %v4628_v57  ;;  %1571 = vmatpush1.bf16.msra.mxu1 %v4628_v57 }
 0x19d   : > { %1443 = vmatprep.subr.bf16.mxu0 %v4633_v63  ;;  %1572 = vmatprep.subr.bf16.mxu1 %v4633_v63 }
 0x19e   : > { %v577_v10 = vpop.f32.mrb[16].mxu0  ;;  %v706_v11 = vpop.f32.mrb[16].mxu1  ;;  %1029 = vmatprep.mubr.bf16.mxu0 %v752_v6  ;;  %1158 = vmatprep.mubr.bf16.mxu1 %v1087_v7 }
 0x19f   : > { %v579_v12 = vpop.f32.mrb[17].mxu0  ;;  %v708_v13 = vpop.f32.mrb[17].mxu1  ;;  %1030 = vmatmul.mubr.bf16.gmra.mrb[44].mxu0 %v751_v4  ;;  %1159 = vmatmul.mubr.bf16.gmra.mrb[44].mxu1 %v1086_v5  ;;  %v578_v14 = vadd.f32 %v577_v10, %v5346_v38  ;;  %v707_v18 = vadd.f32 %v706_v11, %v5346_v38  ;;  %v4646_v5 = vld [vmem:[#allocation5 + $0x2b0] ss:$8 sps:$4 sm:$0xff]   ;;  %v4651_v11 = vld [vmem:[#allocation5 + $0x2c4] ss:$8 sps:$4 sm:$0xff]  }
 0x1a0   : > { %v581_v15 = vpop.f32.mrb[18].mxu0  ;;  %v710_v16 = vpop.f32.mrb[18].mxu1  ;;  %1444 = vmatpush1.bf16.msra.mxu0 %v4631_v8  ;;  %1573 = vmatpush1.bf16.msra.mxu1 %v4631_v8  ;;  %v580_v24 = vadd.f32 %v579_v12, %v5349_v41  ;;  %v709_v25 = vadd.f32 %v708_v13, %v5349_v41 }
 0x1a1   : > { %v582_v19 = vadd.f32 %v581_v15, %v5346_v38  ;;  %v711_v20 = vadd.f32 %v710_v16, %v5346_v38  ;;  %v583_v21 = vpop.f32.mrb[19].mxu0  ;;  %v712_v22 = vpop.f32.mrb[19].mxu1  ;;  %1445 = vmatprep.subr.bf16.mxu0 %v4636_v9  ;;  %1574 = vmatprep.subr.bf16.mxu1 %v4636_v9 }
 0x1a2   : > { %v584_v26 = vadd.f32 %v583_v21, %v5349_v41  ;;  %v713_v27 = vadd.f32 %v712_v22, %v5349_v41  ;;  %v4654_v21 = vld [vmem:[#allocation5 + $0x2d4] ss:$8 sps:$4 sm:$0xff]  }
 0x1a3   : > { %v753_v28 = vpack.c.bf16 %v582_v19, %v578_v14  ;;  %v1088_v29 = vpack.c.bf16 %v711_v20, %v707_v18  ;;  %v4649_v20 = vld [vmem:[#allocation5 + $0x2c0] ss:$8 sps:$4 sm:$0xff]  }
 0x1a4   : > { %v754_v30 = vpack.c.bf16 %v584_v26, %v580_v24  ;;  %v1089_v31 = vpack.c.bf16 %v713_v27, %v709_v25  ;;  %1446 = vmatpush1.bf16.msra.mxu0 %v4634_v17  ;;  %1575 = vmatpush1.bf16.msra.mxu1 %v4634_v17 }
 0x1a5   : > { %1447 = vmatprep.subr.bf16.mxu0 %v4639_v23  ;;  %1576 = vmatprep.subr.bf16.mxu1 %v4639_v23 }
 0x1a6   : > { %v587_v34 = vpop.f32.mrb[20].mxu0  ;;  %v716_v36 = vpop.f32.mrb[20].mxu1  ;;  %1039 = vmatprep.mubr.bf16.mxu0 %v754_v30  ;;  %1168 = vmatprep.mubr.bf16.mxu1 %v1089_v31 }
 0x1a7   : > { %v589_v39 = vpop.f32.mrb[21].mxu0  ;;  %v718_v40 = vpop.f32.mrb[21].mxu1  ;;  %1040 = vmatmul.mubr.bf16.gmra.mrb[48].mxu0 %v753_v28  ;;  %1169 = vmatmul.mubr.bf16.gmra.mrb[48].mxu1 %v1088_v29  ;;  %v588_v42 = vadd.f32 %v587_v34, %v5346_v38  ;;  %v717_v46 = vadd.f32 %v716_v36, %v5346_v38  ;;  %v4652_v29 = vld [vmem:[#allocation5 + $0x2d0] ss:$8 sps:$4 sm:$0xff]  }
 0x1a8   : > { %v591_v43 = vpop.f32.mrb[22].mxu0  ;;  %v720_v44 = vpop.f32.mrb[22].mxu1  ;;  %1448 = vmatpush1.bf16.msra.mxu0 %v4637_v32  ;;  %1577 = vmatpush1.bf16.msra.mxu1 %v4637_v32  ;;  %v590_v52 = vadd.f32 %v589_v39, %v5349_v41  ;;  %v719_v53 = vadd.f32 %v718_v40, %v5349_v41 }
 0x1a9   : > { %v592_v47 = vadd.f32 %v591_v43, %v5346_v38  ;;  %v721_v48 = vadd.f32 %v720_v44, %v5346_v38  ;;  %v593_v49 = vpop.f32.mrb[23].mxu0  ;;  %v722_v50 = vpop.f32.mrb[23].mxu1  ;;  %1449 = vmatprep.subr.bf16.mxu0 %v4642_v33  ;;  %1578 = vmatprep.subr.bf16.mxu1 %v4642_v33 }
 0x1aa   : > { %v594_v54 = vadd.f32 %v593_v49, %v5349_v41  ;;  %v723_v55 = vadd.f32 %v722_v50, %v5349_v41  ;;  %v4658_v49 = vld [vmem:[#allocation5 + $0x2f0] ss:$8 sps:$4 sm:$0xff]   ;;  %v795_v50 = vld [vmem:[#allocation7 + $0x1] ss:$8 sm:$0x3] }
 0x1ab   : > { %v755_v56 = vpack.c.bf16 %v592_v47, %v588_v42  ;;  %v1090_v57 = vpack.c.bf16 %v721_v48, %v717_v46  ;;  %v4655_v47 = vld [vmem:[#allocation5 + $0x2e0] ss:$8 sps:$4 sm:$0xff]   ;;  %v4660_v48 = vld [vmem:[#allocation5 + $0x2f4] ss:$8 sps:$4 sm:$0xff]  }
 0x1ac   : > { %v756_v58 = vpack.c.bf16 %v594_v54, %v590_v52  ;;  %v1091_v59 = vpack.c.bf16 %v723_v55, %v719_v53  ;;  %1450 = vmatpush1.bf16.msra.mxu0 %v4640_v45  ;;  %1579 = vmatpush1.bf16.msra.mxu1 %v4640_v45  ;;  %v5419_v54 = vrot.slane %v795_v50, %v5343_v37 }
 0x1ad   : > { %1451 = vmatprep.subr.bf16.mxu0 %v4645_v51  ;;  %1580 = vmatprep.subr.bf16.mxu1 %v4645_v51  ;;  %v5416_v51 = vrot.slane %v795_v50, %v5341_v35  ;;  %v4675_v50 = vld [vmem:[#allocation5 + $0x344] ss:$8 sps:$4 sm:$0xff]  }
 0x1ae   : > { %v597_v62 = vpop.f32.mrb[24].mxu0  ;;  %v726_v63 = vpop.f32.mrb[24].mxu1  ;;  %1049 = vmatprep.mubr.bf16.mxu0 %v756_v58  ;;  %1178 = vmatprep.mubr.bf16.mxu1 %v1091_v59 }
 0x1af   : > { %v599_v0 = vpop.f32.mrb[25].mxu0  ;;  %v728_v1 = vpop.f32.mrb[25].mxu1  ;;  %1050 = vmatmul.mubr.bf16.gmra.mrb[52].mxu0 %v755_v56  ;;  %1179 = vmatmul.mubr.bf16.gmra.mrb[52].mxu1 %v1090_v57  ;;  %v598_v2 = vadd.f32 %v597_v62, %v5346_v38  ;;  %v727_v6 = vadd.f32 %v726_v63, %v5346_v38 }
 0x1b0   : > { %v601_v3 = vpop.f32.mrb[26].mxu0  ;;  %v730_v4 = vpop.f32.mrb[26].mxu1  ;;  %1452 = vmatpush1.bf16.msra.mxu0 %v4643_v60  ;;  %1581 = vmatpush1.bf16.msra.mxu1 %v4643_v60  ;;  %v600_v12 = vadd.f32 %v599_v0, %v5349_v41  ;;  %v729_v13 = vadd.f32 %v728_v1, %v5349_v41 }
 0x1b1   : > { %v602_v7 = vadd.f32 %v601_v3, %v5346_v38  ;;  %v731_v8 = vadd.f32 %v730_v4, %v5346_v38  ;;  %v603_v9 = vpop.f32.mrb[27].mxu0  ;;  %v732_v10 = vpop.f32.mrb[27].mxu1  ;;  %1453 = vmatprep.subr.bf16.mxu0 %v4648_v61  ;;  %1582 = vmatprep.subr.bf16.mxu1 %v4648_v61 }
 0x1b2   : > { %v604_v14 = vadd.f32 %v603_v9, %v5349_v41  ;;  %v733_v15 = vadd.f32 %v732_v10, %v5349_v41  ;;  %v4661_v9 = vld [vmem:[#allocation5 + $0x300] ss:$8 sps:$4 sm:$0xff]   ;;  %v4666_v10 = vld [vmem:[#allocation5 + $0x314] ss:$8 sps:$4 sm:$0xff]  }
 0x1b3   : > { %v757_v16 = vpack.c.bf16 %v602_v7, %v598_v2  ;;  %v1092_v17 = vpack.c.bf16 %v731_v8, %v727_v6 }
 0x1b4   : > { %v758_v18 = vpack.c.bf16 %v604_v14, %v600_v12  ;;  %v1093_v19 = vpack.c.bf16 %v733_v15, %v729_v13  ;;  %1454 = vmatpush1.bf16.msra.mxu0 %v4646_v5  ;;  %1583 = vmatpush1.bf16.msra.mxu1 %v4646_v5 }
 0x1b5   : > { %1455 = vmatprep.subr.bf16.mxu0 %v4651_v11  ;;  %1584 = vmatprep.subr.bf16.mxu1 %v4651_v11 }
 0x1b6   : > { %v607_v22 = vpop.f32.mrb[28].mxu0  ;;  %v736_v23 = vpop.f32.mrb[28].mxu1  ;;  %1059 = vmatprep.mubr.bf16.mxu0 %v758_v18  ;;  %1188 = vmatprep.mubr.bf16.mxu1 %v1093_v19  ;;  %v4664_v18 = vld [vmem:[#allocation5 + $0x310] ss:$8 sps:$4 sm:$0xff]  }
 0x1b7   : > { %v609_v24 = vpop.f32.mrb[29].mxu0  ;;  %v738_v25 = vpop.f32.mrb[29].mxu1  ;;  %1060 = vmatmul.mubr.bf16.gmra.mrb[56].mxu0 %v757_v16  ;;  %1189 = vmatmul.mubr.bf16.gmra.mrb[56].mxu1 %v1092_v17  ;;  %v608_v26 = vadd.f32 %v607_v22, %v5346_v38  ;;  %v737_v30 = vadd.f32 %v736_v23, %v5346_v38 }
 0x1b8   : > { %v611_v27 = vpop.f32.mrb[30].mxu0  ;;  %v740_v28 = vpop.f32.mrb[30].mxu1  ;;  %1456 = vmatpush1.bf16.msra.mxu0 %v4649_v20  ;;  %1585 = vmatpush1.bf16.msra.mxu1 %v4649_v20  ;;  %v610_v36 = vadd.f32 %v609_v24, %v5349_v41  ;;  %v739_v39 = vadd.f32 %v738_v25, %v5349_v41  ;;  %v4669_v24 = vld [vmem:[#allocation5 + $0x324] ss:$8 sps:$4 sm:$0xff]  }
 0x1b9   : > { %v612_v31 = vadd.f32 %v611_v27, %v5346_v38  ;;  %v741_v32 = vadd.f32 %v740_v28, %v5346_v38  ;;  %v613_v33 = vpop.f32.mrb[31].mxu0  ;;  %v742_v34 = vpop.f32.mrb[31].mxu1  ;;  %1457 = vmatprep.subr.bf16.mxu0 %v4654_v21  ;;  %1586 = vmatprep.subr.bf16.mxu1 %v4654_v21  ;;  %v4657_v38 = vld [vmem:[#allocation5 + $0x2e4] ss:$8 sps:$4 sm:$0xff]  }
 0x1ba   : > { %v614_v40 = vadd.f32 %v613_v33, %v5349_v41  ;;  %v743_v42 = vadd.f32 %v742_v34, %v5349_v41  ;;  %v4663_v41 = vld [vmem:[#allocation5 + $0x304] ss:$8 sps:$4 sm:$0xff]   ;;  %v4667_v33 = vld [vmem:[#allocation5 + $0x320] ss:$8 sps:$4 sm:$0xff]   ;;  %v4672_v34 = vld [vmem:[#allocation5 + $0x334] ss:$8 sps:$4 sm:$0xff]  }
 0x1bb   : > { %v759_v43 = vpack.c.bf16 %v612_v31, %v608_v26  ;;  %v1094_v44 = vpack.c.bf16 %v741_v32, %v737_v30 }
 0x1bc   : > { %v760_v45 = vpack.c.bf16 %v614_v40, %v610_v36  ;;  %v1095_v46 = vpack.c.bf16 %v743_v42, %v739_v39  ;;  %1458 = vmatpush1.bf16.msra.mxu0 %v4652_v29  ;;  %1587 = vmatpush1.bf16.msra.mxu1 %v4652_v29 }
 0x1bd   : > { %1459 = vmatprep.subr.bf16.mxu0 %v4657_v38  ;;  %1588 = vmatprep.subr.bf16.mxu1 %v4657_v38 }
 0x1be   : > { %1069 = vmatprep.mubr.bf16.mxu0 %v760_v45  ;;  %1198 = vmatprep.mubr.bf16.mxu1 %v1095_v46  ;;  %v4670_v46 = vld [vmem:[#allocation5 + $0x330] ss:$8 sps:$4 sm:$0xff]  }
 0x1bf   : > { %1070 = vmatmul.mubr.bf16.gmra.mrb[60].mxu0 %v759_v43  ;;  %1199 = vmatmul.mubr.bf16.gmra.mrb[60].mxu1 %v1094_v44 }
 0x1c0   : > { %1460 = vmatpush1.bf16.msra.mxu0 %v4655_v47  ;;  %1589 = vmatpush1.bf16.msra.mxu1 %v4655_v47 }
 0x1c1   : > { %1461 = vmatprep.subr.bf16.mxu0 %v4660_v48  ;;  %1590 = vmatprep.subr.bf16.mxu1 %v4660_v48 }
 0x1c4   : > { %1462 = vmatpush1.bf16.msra.mxu0 %v4658_v49  ;;  %1591 = vmatpush1.bf16.msra.mxu1 %v4658_v49 }
 0x1c5   : > { %1895 = vmatprep.subr.bf16.mxu0 %v4663_v41  ;;  %2024 = vmatprep.subr.bf16.mxu1 %v4663_v41 }
 0x25a   : > { %v1001_v52 = vpop.f32.mrb[32].mxu0  ;;  %v1130_v53 = vpop.f32.mrb[32].mxu1 }
 0x25b   : > { %v1003_v55 = vpop.f32.mrb[33].mxu0  ;;  %v1132_v56 = vpop.f32.mrb[33].mxu1  ;;  %v1002_v59 = vadd.f32 %v1001_v52, %v5416_v51  ;;  %v1131_v60 = vadd.f32 %v1130_v53, %v5416_v51 }
 0x25c   : > { %v1005_v57 = vpop.f32.mrb[34].mxu0  ;;  %v1134_v58 = vpop.f32.mrb[34].mxu1  ;;  %v1004_v1 = vadd.f32 %v1003_v55, %v5419_v54  ;;  %v1133_v2 = vadd.f32 %v1132_v56, %v5419_v54 }
 0x25d   : > { %v1006_v61 = vadd.f32 %v1005_v57, %v5416_v51  ;;  %v1135_v62 = vadd.f32 %v1134_v58, %v5416_v51  ;;  %v1007_v63 = vpop.f32.mrb[35].mxu0  ;;  %v1136_v0 = vpop.f32.mrb[35].mxu1 }
 0x25e   : > { %v1008_v3 = vadd.f32 %v1007_v63, %v5419_v54  ;;  %v1137_v4 = vadd.f32 %v1136_v0, %v5419_v54 }
 0x25f   : > { %v1209_v5 = vpack.c.bf16 %v1006_v61, %v1002_v59  ;;  %v1544_v6 = vpack.c.bf16 %v1135_v62, %v1131_v60  ;;  %v4673_v61 = vld [vmem:[#allocation5 + $0x340] ss:$8 sps:$4 sm:$0xff]   ;;  %v4678_v62 = vld [vmem:[#allocation5 + $0x354] ss:$8 sps:$4 sm:$0xff]  }
 0x260   : > { %v1210_v7 = vpack.c.bf16 %v1008_v3, %v1004_v1  ;;  %v1545_v8 = vpack.c.bf16 %v1137_v4, %v1133_v2 }
 0x262   : > { %v1011_v11 = vpop.f32.mrb[36].mxu0  ;;  %v1140_v12 = vpop.f32.mrb[36].mxu1  ;;  %1463 = vmatprep.mubr.bf16.mxu0 %v1210_v7  ;;  %1592 = vmatprep.mubr.bf16.mxu1 %v1545_v8 }
 0x263   : > { %v1013_v13 = vpop.f32.mrb[37].mxu0  ;;  %v1142_v14 = vpop.f32.mrb[37].mxu1  ;;  %1464 = vmatmul.mubr.bf16.vlgmr.msra.gmra.mrb[64].mxu0 %v1209_v5  ;;  %1593 = vmatmul.mubr.bf16.vlgmr.msra.gmra.mrb[64].mxu1 %v1544_v6  ;;  %v1012_v15 = vadd.f32 %v1011_v11, %v5416_v51  ;;  %v1141_v19 = vadd.f32 %v1140_v12, %v5416_v51  ;;  %v4676_v6 = vld [vmem:[#allocation5 + $0x350] ss:$8 sps:$4 sm:$0xff]   ;;  %v4681_v12 = vld [vmem:[#allocation5 + $0x364] ss:$8 sps:$4 sm:$0xff]  }
 0x264   : > { %v1015_v16 = vpop.f32.mrb[38].mxu0  ;;  %v1144_v17 = vpop.f32.mrb[38].mxu1  ;;  %1896 = vmatpush1.bf16.msra.mxu0 %v4661_v9  ;;  %2025 = vmatpush1.bf16.msra.mxu1 %v4661_v9  ;;  %v1014_v25 = vadd.f32 %v1013_v13, %v5419_v54  ;;  %v1143_v26 = vadd.f32 %v1142_v14, %v5419_v54 }
 0x265   : > { %v1016_v20 = vadd.f32 %v1015_v16, %v5416_v51  ;;  %v1145_v21 = vadd.f32 %v1144_v17, %v5416_v51  ;;  %v1017_v22 = vpop.f32.mrb[39].mxu0  ;;  %v1146_v23 = vpop.f32.mrb[39].mxu1  ;;  %1897 = vmatprep.subr.bf16.mxu0 %v4666_v10  ;;  %2026 = vmatprep.subr.bf16.mxu1 %v4666_v10 }
 0x266   : > { %v1018_v27 = vadd.f32 %v1017_v22, %v5419_v54  ;;  %v1147_v28 = vadd.f32 %v1146_v23, %v5419_v54  ;;  %v4684_v22 = vld [vmem:[#allocation5 + $0x374] ss:$8 sps:$4 sm:$0xff]  }
 0x267   : > { %v1211_v29 = vpack.c.bf16 %v1016_v20, %v1012_v15  ;;  %v1546_v30 = vpack.c.bf16 %v1145_v21, %v1141_v19  ;;  %v4679_v21 = vld [vmem:[#allocation5 + $0x360] ss:$8 sps:$4 sm:$0xff]  }
 0x268   : > { %v1212_v31 = vpack.c.bf16 %v1018_v27, %v1014_v25  ;;  %v1547_v32 = vpack.c.bf16 %v1147_v28, %v1143_v26  ;;  %1898 = vmatpush1.bf16.msra.mxu0 %v4664_v18  ;;  %2027 = vmatpush1.bf16.msra.mxu1 %v4664_v18 }
 0x269   : > { %1899 = vmatprep.subr.bf16.mxu0 %v4669_v24  ;;  %2028 = vmatprep.subr.bf16.mxu1 %v4669_v24 }
 0x26a   : > { %v1021_v36 = vpop.f32.mrb[40].mxu0  ;;  %v1150_v39 = vpop.f32.mrb[40].mxu1  ;;  %1473 = vmatprep.mubr.bf16.mxu0 %v1212_v31  ;;  %1602 = vmatprep.mubr.bf16.mxu1 %v1547_v32 }
 0x26b   : > { %v1023_v40 = vpop.f32.mrb[41].mxu0  ;;  %v1152_v42 = vpop.f32.mrb[41].mxu1  ;;  %1474 = vmatmul.mubr.bf16.gmra.mrb[68].mxu0 %v1211_v29  ;;  %1603 = vmatmul.mubr.bf16.gmra.mrb[68].mxu1 %v1546_v30  ;;  %v1022_v43 = vadd.f32 %v1021_v36, %v5416_v51  ;;  %v1151_v38 = vadd.f32 %v1150_v39, %v5416_v51  ;;  %v4682_v30 = vld [vmem:[#allocation5 + $0x370] ss:$8 sps:$4 sm:$0xff]   ;;  %v4687_v39 = vld [vmem:[#allocation5 + $0x384] ss:$8 sps:$4 sm:$0xff]  }
 0x26c   : > { %v1025_v44 = vpop.f32.mrb[42].mxu0  ;;  %v1154_v45 = vpop.f32.mrb[42].mxu1  ;;  %1900 = vmatpush1.bf16.msra.mxu0 %v4667_v33  ;;  %2029 = vmatpush1.bf16.msra.mxu1 %v4667_v33  ;;  %v1024_v52 = vadd.f32 %v1023_v40, %v5419_v54  ;;  %v1153_v53 = vadd.f32 %v1152_v42, %v5419_v54 }
 0x26d   : > { %v1026_v47 = vadd.f32 %v1025_v44, %v5416_v51  ;;  %v1155_v48 = vadd.f32 %v1154_v45, %v5416_v51  ;;  %v1027_v49 = vpop.f32.mrb[43].mxu0  ;;  %v1156_v41 = vpop.f32.mrb[43].mxu1  ;;  %1901 = vmatprep.subr.bf16.mxu0 %v4672_v34  ;;  %2030 = vmatprep.subr.bf16.mxu1 %v4672_v34 }
 0x26e   : > { %v1028_v55 = vadd.f32 %v1027_v49, %v5419_v54  ;;  %v1157_v56 = vadd.f32 %v1156_v41, %v5419_v54  ;;  %v4690_v49 = vld [vmem:[#allocation5 + $0x394] ss:$8 sps:$4 sm:$0xff]  }
 0x26f   : > { %v1213_v57 = vpack.c.bf16 %v1026_v47, %v1022_v43  ;;  %v1548_v58 = vpack.c.bf16 %v1155_v48, %v1151_v38  ;;  %v4685_v48 = vld [vmem:[#allocation5 + $0x380] ss:$8 sps:$4 sm:$0xff]  }
 0x270   : > { %v1214_v59 = vpack.c.bf16 %v1028_v55, %v1024_v52  ;;  %v1549_v60 = vpack.c.bf16 %v1157_v56, %v1153_v53  ;;  %1902 = vmatpush1.bf16.msra.mxu0 %v4670_v46  ;;  %2031 = vmatpush1.bf16.msra.mxu1 %v4670_v46 }
 0x271   : > { %1903 = vmatprep.subr.bf16.mxu0 %v4675_v50  ;;  %2032 = vmatprep.subr.bf16.mxu1 %v4675_v50 }
 0x272   : > { %v1031_v63 = vpop.f32.mrb[44].mxu0  ;;  %v1160_v0 = vpop.f32.mrb[44].mxu1  ;;  %1483 = vmatprep.mubr.bf16.mxu0 %v1214_v59  ;;  %1612 = vmatprep.mubr.bf16.mxu1 %v1549_v60 }
 0x273   : > { %v1033_v1 = vpop.f32.mrb[45].mxu0  ;;  %v1162_v2 = vpop.f32.mrb[45].mxu1  ;;  %1484 = vmatmul.mubr.bf16.gmra.mrb[72].mxu0 %v1213_v57  ;;  %1613 = vmatmul.mubr.bf16.gmra.mrb[72].mxu1 %v1548_v58  ;;  %v1032_v3 = vadd.f32 %v1031_v63, %v5416_v51  ;;  %v1161_v7 = vadd.f32 %v1160_v0, %v5416_v51  ;;  %v4688_v58 = vld [vmem:[#allocation5 + $0x390] ss:$8 sps:$4 sm:$0xff]   ;;  %v4693_v0 = vld [vmem:[#allocation5 + $0x3a4] ss:$8 sps:$4 sm:$0xff]  }
 0x274   : > { %v1035_v4 = vpop.f32.mrb[46].mxu0  ;;  %v1164_v5 = vpop.f32.mrb[46].mxu1  ;;  %1904 = vmatpush1.bf16.msra.mxu0 %v4673_v61  ;;  %2033 = vmatpush1.bf16.msra.mxu1 %v4673_v61  ;;  %v1034_v13 = vadd.f32 %v1033_v1, %v5419_v54  ;;  %v1163_v14 = vadd.f32 %v1162_v2, %v5419_v54 }
 0x275   : > { %v1036_v8 = vadd.f32 %v1035_v4, %v5416_v51  ;;  %v1165_v9 = vadd.f32 %v1164_v5, %v5416_v51  ;;  %v1037_v10 = vpop.f32.mrb[47].mxu0  ;;  %v1166_v11 = vpop.f32.mrb[47].mxu1  ;;  %1905 = vmatprep.subr.bf16.mxu0 %v4678_v62  ;;  %2034 = vmatprep.subr.bf16.mxu1 %v4678_v62 }
 0x276   : > { %v1038_v15 = vadd.f32 %v1037_v10, %v5419_v54  ;;  %v1167_v16 = vadd.f32 %v1166_v11, %v5419_v54  ;;  %v4696_v10 = vld [vmem:[#allocation5 + $0x3b4] ss:$8 sps:$4 sm:$0xff]  }
 0x277   : > { %v1215_v17 = vpack.c.bf16 %v1036_v8, %v1032_v3  ;;  %v1550_v18 = vpack.c.bf16 %v1165_v9, %v1161_v7  ;;  %v4691_v9 = vld [vmem:[#allocation5 + $0x3a0] ss:$8 sps:$4 sm:$0xff]  }
 0x278   : > { %v1216_v19 = vpack.c.bf16 %v1038_v15, %v1034_v13  ;;  %v1551_v20 = vpack.c.bf16 %v1167_v16, %v1163_v14  ;;  %1906 = vmatpush1.bf16.msra.mxu0 %v4676_v6  ;;  %2035 = vmatpush1.bf16.msra.mxu1 %v4676_v6 }
 0x279   : > { %1907 = vmatprep.subr.bf16.mxu0 %v4681_v12  ;;  %2036 = vmatprep.subr.bf16.mxu1 %v4681_v12 }
 0x27a   : > { %v1041_v23 = vpop.f32.mrb[48].mxu0  ;;  %v1170_v24 = vpop.f32.mrb[48].mxu1  ;;  %1493 = vmatprep.mubr.bf16.mxu0 %v1216_v19  ;;  %1622 = vmatprep.mubr.bf16.mxu1 %v1551_v20 }
 0x27b   : > { %v1043_v25 = vpop.f32.mrb[49].mxu0  ;;  %v1172_v26 = vpop.f32.mrb[49].mxu1  ;;  %1494 = vmatmul.mubr.bf16.gmra.mrb[76].mxu0 %v1215_v17  ;;  %1623 = vmatmul.mubr.bf16.gmra.mrb[76].mxu1 %v1550_v18  ;;  %v1042_v27 = vadd.f32 %v1041_v23, %v5416_v51  ;;  %v1171_v31 = vadd.f32 %v1170_v24, %v5416_v51  ;;  %v4694_v18 = vld [vmem:[#allocation5 + $0x3b0] ss:$8 sps:$4 sm:$0xff]   ;;  %v4699_v24 = vld [vmem:[#allocation5 + $0x3c4] ss:$8 sps:$4 sm:$0xff]  }
 0x27c   : > { %v1045_v28 = vpop.f32.mrb[50].mxu0  ;;  %v1174_v29 = vpop.f32.mrb[50].mxu1  ;;  %1908 = vmatpush1.bf16.msra.mxu0 %v4679_v21  ;;  %2037 = vmatpush1.bf16.msra.mxu1 %v4679_v21  ;;  %v1044_v40 = vadd.f32 %v1043_v25, %v5419_v54  ;;  %v1173_v42 = vadd.f32 %v1172_v26, %v5419_v54 }
 0x27d   : > { %v1046_v32 = vadd.f32 %v1045_v28, %v5416_v51  ;;  %v1175_v33 = vadd.f32 %v1174_v29, %v5416_v51  ;;  %v1047_v34 = vpop.f32.mrb[51].mxu0  ;;  %v1176_v36 = vpop.f32.mrb[51].mxu1  ;;  %1909 = vmatprep.subr.bf16.mxu0 %v4684_v22  ;;  %2038 = vmatprep.subr.bf16.mxu1 %v4684_v22 }
 0x27e   : > { %v1048_v43 = vadd.f32 %v1047_v34, %v5419_v54  ;;  %v1177_v44 = vadd.f32 %v1176_v36, %v5419_v54  ;;  %v4702_v34 = vld [vmem:[#allocation5 + $0x3d4] ss:$8 sps:$4 sm:$0xff]  }
 0x27f   : > { %v1217_v45 = vpack.c.bf16 %v1046_v32, %v1042_v27  ;;  %v1552_v46 = vpack.c.bf16 %v1175_v33, %v1171_v31  ;;  %v4697_v33 = vld [vmem:[#allocation5 + $0x3c0] ss:$8 sps:$4 sm:$0xff]  }
 0x280   : > { %v1218_v38 = vpack.c.bf16 %v1048_v43, %v1044_v40  ;;  %v1553_v47 = vpack.c.bf16 %v1177_v44, %v1173_v42  ;;  %1910 = vmatpush1.bf16.msra.mxu0 %v4682_v30  ;;  %2039 = vmatpush1.bf16.msra.mxu1 %v4682_v30 }
 0x281   : > { %1911 = vmatprep.subr.bf16.mxu0 %v4687_v39  ;;  %2040 = vmatprep.subr.bf16.mxu1 %v4687_v39 }
 0x282   : > { %v1051_v41 = vpop.f32.mrb[52].mxu0  ;;  %v1180_v50 = vpop.f32.mrb[52].mxu1  ;;  %1503 = vmatprep.mubr.bf16.mxu0 %v1218_v38  ;;  %1632 = vmatprep.mubr.bf16.mxu1 %v1553_v47 }
 0x283   : > { %v1053_v52 = vpop.f32.mrb[53].mxu0  ;;  %v1182_v53 = vpop.f32.mrb[53].mxu1  ;;  %1504 = vmatmul.mubr.bf16.gmra.mrb[80].mxu0 %v1217_v45  ;;  %1633 = vmatmul.mubr.bf16.gmra.mrb[80].mxu1 %v1552_v46  ;;  %v1052_v55 = vadd.f32 %v1051_v41, %v5416_v51  ;;  %v1181_v59 = vadd.f32 %v1180_v50, %v5416_v51  ;;  %v4700_v46 = vld [vmem:[#allocation5 + $0x3d0] ss:$8 sps:$4 sm:$0xff]  }
 0x284   : > { %v1055_v56 = vpop.f32.mrb[54].mxu0  ;;  %v1184_v57 = vpop.f32.mrb[54].mxu1  ;;  %1912 = vmatpush1.bf16.msra.mxu0 %v4685_v48  ;;  %2041 = vmatpush1.bf16.msra.mxu1 %v4685_v48  ;;  %v1054_v1 = vadd.f32 %v1053_v52, %v5419_v54  ;;  %v1183_v2 = vadd.f32 %v1182_v53, %v5419_v54 }
 0x285   : > { %v1056_v60 = vadd.f32 %v1055_v56, %v5416_v51  ;;  %v1185_v61 = vadd.f32 %v1184_v57, %v5416_v51  ;;  %v1057_v62 = vpop.f32.mrb[55].mxu0  ;;  %v1186_v63 = vpop.f32.mrb[55].mxu1  ;;  %1913 = vmatprep.subr.bf16.mxu0 %v4690_v49  ;;  %2042 = vmatprep.subr.bf16.mxu1 %v4690_v49 }
 0x286   : > { %v1058_v3 = vadd.f32 %v1057_v62, %v5419_v54  ;;  %v1187_v4 = vadd.f32 %v1186_v63, %v5419_v54  ;;  %v4706_v62 = vld [vmem:[#allocation5 + $0x3f0] ss:$8 sps:$4 sm:$0xff]   ;;  %v1259_v63 = vld [vmem:[#allocation7 + $0x2] ss:$8 sm:$0x3] }
 0x287   : > { %v1219_v5 = vpack.c.bf16 %v1056_v60, %v1052_v55  ;;  %v1554_v6 = vpack.c.bf16 %v1185_v61, %v1181_v59  ;;  %v4703_v60 = vld [vmem:[#allocation5 + $0x3e0] ss:$8 sps:$4 sm:$0xff]   ;;  %v4708_v61 = vld [vmem:[#allocation5 + $0x3f4] ss:$8 sps:$4 sm:$0xff]  }
 0x288   : > { %v1220_v7 = vpack.c.bf16 %v1058_v3, %v1054_v1  ;;  %v1555_v8 = vpack.c.bf16 %v1187_v4, %v1183_v2  ;;  %1914 = vmatpush1.bf16.msra.mxu0 %v4688_v58  ;;  %2043 = vmatpush1.bf16.msra.mxu1 %v4688_v58  ;;  %v5489_v3 = vrot.slane %v1259_v63, %v5343_v37 }
 0x289   : > { %1915 = vmatprep.subr.bf16.mxu0 %v4693_v0  ;;  %2044 = vmatprep.subr.bf16.mxu1 %v4693_v0  ;;  %v5486_v0 = vrot.slane %v1259_v63, %v5341_v35  ;;  %v4723_v63 = vld [vmem:[#allocation5 + $0x444] ss:$8 sps:$4 sm:$0xff]  }
 0x28a   : > { %v1061_v11 = vpop.f32.mrb[56].mxu0  ;;  %v1190_v12 = vpop.f32.mrb[56].mxu1  ;;  %1513 = vmatprep.mubr.bf16.mxu0 %v1220_v7  ;;  %1642 = vmatprep.mubr.bf16.mxu1 %v1555_v8 }
 0x28b   : > { %v1063_v13 = vpop.f32.mrb[57].mxu0  ;;  %v1192_v14 = vpop.f32.mrb[57].mxu1  ;;  %1514 = vmatmul.mubr.bf16.gmra.mrb[84].mxu0 %v1219_v5  ;;  %1643 = vmatmul.mubr.bf16.gmra.mrb[84].mxu1 %v1554_v6  ;;  %v1062_v15 = vadd.f32 %v1061_v11, %v5416_v51  ;;  %v1191_v19 = vadd.f32 %v1190_v12, %v5416_v51 }
 0x28c   : > { %v1065_v16 = vpop.f32.mrb[58].mxu0  ;;  %v1194_v17 = vpop.f32.mrb[58].mxu1  ;;  %1916 = vmatpush1.bf16.msra.mxu0 %v4691_v9  ;;  %2045 = vmatpush1.bf16.msra.mxu1 %v4691_v9  ;;  %v1064_v25 = vadd.f32 %v1063_v13, %v5419_v54  ;;  %v1193_v26 = vadd.f32 %v1192_v14, %v5419_v54 }
 0x28d   : > { %v1066_v20 = vadd.f32 %v1065_v16, %v5416_v51  ;;  %v1195_v21 = vadd.f32 %v1194_v17, %v5416_v51  ;;  %v1067_v22 = vpop.f32.mrb[59].mxu0  ;;  %v1196_v23 = vpop.f32.mrb[59].mxu1  ;;  %1917 = vmatprep.subr.bf16.mxu0 %v4696_v10  ;;  %2046 = vmatprep.subr.bf16.mxu1 %v4696_v10 }
 0x28e   : > { %v1068_v27 = vadd.f32 %v1067_v22, %v5419_v54  ;;  %v1197_v28 = vadd.f32 %v1196_v23, %v5419_v54  ;;  %v4709_v22 = vld [vmem:[#allocation5 + $0x400] ss:$8 sps:$4 sm:$0xff]   ;;  %v4714_v23 = vld [vmem:[#allocation5 + $0x414] ss:$8 sps:$4 sm:$0xff]  }
 0x28f   : > { %v1221_v29 = vpack.c.bf16 %v1066_v20, %v1062_v15  ;;  %v1556_v30 = vpack.c.bf16 %v1195_v21, %v1191_v19 }
 0x290   : > { %v1222_v31 = vpack.c.bf16 %v1068_v27, %v1064_v25  ;;  %v1557_v32 = vpack.c.bf16 %v1197_v28, %v1193_v26  ;;  %1918 = vmatpush1.bf16.msra.mxu0 %v4694_v18  ;;  %2047 = vmatpush1.bf16.msra.mxu1 %v4694_v18 }
 0x291   : > { %1919 = vmatprep.subr.bf16.mxu0 %v4699_v24  ;;  %2048 = vmatprep.subr.bf16.mxu1 %v4699_v24 }
 0x292   : > { %v1071_v36 = vpop.f32.mrb[60].mxu0  ;;  %v1200_v39 = vpop.f32.mrb[60].mxu1  ;;  %1523 = vmatprep.mubr.bf16.mxu0 %v1222_v31  ;;  %1652 = vmatprep.mubr.bf16.mxu1 %v1557_v32  ;;  %v4712_v31 = vld [vmem:[#allocation5 + $0x410] ss:$8 sps:$4 sm:$0xff]  }
 0x293   : > { %v1073_v40 = vpop.f32.mrb[61].mxu0  ;;  %v1202_v42 = vpop.f32.mrb[61].mxu1  ;;  %1524 = vmatmul.mubr.bf16.gmra.mrb[88].mxu0 %v1221_v29  ;;  %1653 = vmatmul.mubr.bf16.gmra.mrb[88].mxu1 %v1556_v30  ;;  %v1072_v43 = vadd.f32 %v1071_v36, %v5416_v51  ;;  %v1201_v38 = vadd.f32 %v1200_v39, %v5416_v51 }
 0x294   : > { %v1075_v44 = vpop.f32.mrb[62].mxu0  ;;  %v1204_v45 = vpop.f32.mrb[62].mxu1  ;;  %1920 = vmatpush1.bf16.msra.mxu0 %v4697_v33  ;;  %2049 = vmatpush1.bf16.msra.mxu1 %v4697_v33  ;;  %v1074_v50 = vadd.f32 %v1073_v40, %v5419_v54  ;;  %v1203_v52 = vadd.f32 %v1202_v42, %v5419_v54  ;;  %v4717_v40 = vld [vmem:[#allocation5 + $0x424] ss:$8 sps:$4 sm:$0xff]  }
 0x295   : > { %v1076_v47 = vadd.f32 %v1075_v44, %v5416_v51  ;;  %v1205_v48 = vadd.f32 %v1204_v45, %v5416_v51  ;;  %v1077_v49 = vpop.f32.mrb[63].mxu0  ;;  %v1206_v41 = vpop.f32.mrb[63].mxu1  ;;  %1921 = vmatprep.subr.bf16.mxu0 %v4702_v34  ;;  %2050 = vmatprep.subr.bf16.mxu1 %v4702_v34  ;;  %v4705_v51 = vld [vmem:[#allocation5 + $0x3e4] ss:$8 sps:$4 sm:$0xff]  }
 0x296   : > { %v1078_v53 = vadd.f32 %v1077_v49, %v5419_v54  ;;  %v1207_v55 = vadd.f32 %v1206_v41, %v5419_v54  ;;  %v4711_v54 = vld [vmem:[#allocation5 + $0x404] ss:$8 sps:$4 sm:$0xff]   ;;  %v4715_v49 = vld [vmem:[#allocation5 + $0x420] ss:$8 sps:$4 sm:$0xff]   ;;  %v4720_v41 = vld [vmem:[#allocation5 + $0x434] ss:$8 sps:$4 sm:$0xff]  }
 0x297   : > { %v1223_v56 = vpack.c.bf16 %v1076_v47, %v1072_v43  ;;  %v1558_v57 = vpack.c.bf16 %v1205_v48, %v1201_v38 }
 0x298   : > { %v1224_v58 = vpack.c.bf16 %v1078_v53, %v1074_v50  ;;  %v1559_v59 = vpack.c.bf16 %v1207_v55, %v1203_v52  ;;  %1922 = vmatpush1.bf16.msra.mxu0 %v4700_v46  ;;  %2051 = vmatpush1.bf16.msra.mxu1 %v4700_v46 }
 0x299   : > { %1923 = vmatprep.subr.bf16.mxu0 %v4705_v51  ;;  %2052 = vmatprep.subr.bf16.mxu1 %v4705_v51 }
 0x29a   : > { %1533 = vmatprep.mubr.bf16.mxu0 %v1224_v58  ;;  %1662 = vmatprep.mubr.bf16.mxu1 %v1559_v59  ;;  %v4718_v59 = vld [vmem:[#allocation5 + $0x430] ss:$8 sps:$4 sm:$0xff]  }
 0x29b   : > { %1534 = vmatmul.mubr.bf16.gmra.mrb[92].mxu0 %v1223_v56  ;;  %1663 = vmatmul.mubr.bf16.gmra.mrb[92].mxu1 %v1558_v57 }
 0x29c   : > { %1924 = vmatpush1.bf16.msra.mxu0 %v4703_v60  ;;  %2053 = vmatpush1.bf16.msra.mxu1 %v4703_v60 }
 0x29d   : > { %1925 = vmatprep.subr.bf16.mxu0 %v4708_v61  ;;  %2054 = vmatprep.subr.bf16.mxu1 %v4708_v61 }
 0x2a0   : > { %1926 = vmatpush1.bf16.msra.mxu0 %v4706_v62  ;;  %2055 = vmatpush1.bf16.msra.mxu1 %v4706_v62 }
 0x2a1   : > { %2359 = vmatprep.subr.bf16.mxu0 %v4711_v54  ;;  %2488 = vmatprep.subr.bf16.mxu1 %v4711_v54 }
 0x336   : > { %v1465_v1 = vpop.f32.mrb[64].mxu0  ;;  %v1594_v2 = vpop.f32.mrb[64].mxu1 }
 0x337   : > { %v1467_v4 = vpop.f32.mrb[65].mxu0  ;;  %v1596_v5 = vpop.f32.mrb[65].mxu1  ;;  %v1466_v8 = vadd.f32 %v1465_v1, %v5486_v0  ;;  %v1595_v9 = vadd.f32 %v1594_v2, %v5486_v0 }
 0x338   : > { %v1469_v6 = vpop.f32.mrb[66].mxu0  ;;  %v1598_v7 = vpop.f32.mrb[66].mxu1  ;;  %v1468_v14 = vadd.f32 %v1467_v4, %v5489_v3  ;;  %v1597_v15 = vadd.f32 %v1596_v5, %v5489_v3 }
 0x339   : > { %v1470_v10 = vadd.f32 %v1469_v6, %v5486_v0  ;;  %v1599_v11 = vadd.f32 %v1598_v7, %v5486_v0  ;;  %v1471_v12 = vpop.f32.mrb[67].mxu0  ;;  %v1600_v13 = vpop.f32.mrb[67].mxu1 }
 0x33a   : > { %v1472_v16 = vadd.f32 %v1471_v12, %v5489_v3  ;;  %v1601_v17 = vadd.f32 %v1600_v13, %v5489_v3 }
 0x33b   : > { %v1673_v18 = vpack.c.bf16 %v1470_v10, %v1466_v8  ;;  %v2008_v19 = vpack.c.bf16 %v1599_v11, %v1595_v9  ;;  %v4721_v10 = vld [vmem:[#allocation5 + $0x440] ss:$8 sps:$4 sm:$0xff]   ;;  %v4726_v11 = vld [vmem:[#allocation5 + $0x454] ss:$8 sps:$4 sm:$0xff]  }
 0x33c   : > { %v1674_v20 = vpack.c.bf16 %v1472_v16, %v1468_v14  ;;  %v2009_v21 = vpack.c.bf16 %v1601_v17, %v1597_v15 }
 0x33e   : > { %v1475_v24 = vpop.f32.mrb[68].mxu0  ;;  %v1604_v25 = vpop.f32.mrb[68].mxu1  ;;  %1927 = vmatprep.mubr.bf16.mxu0 %v1674_v20  ;;  %2056 = vmatprep.mubr.bf16.mxu1 %v2009_v21 }
 0x33f   : > { %v1477_v26 = vpop.f32.mrb[69].mxu0  ;;  %v1606_v27 = vpop.f32.mrb[69].mxu1  ;;  %1928 = vmatmul.mubr.bf16.vlgmr.msra.gmra.mrb[96].mxu0 %v1673_v18  ;;  %2057 = vmatmul.mubr.bf16.vlgmr.msra.gmra.mrb[96].mxu1 %v2008_v19  ;;  %v1476_v28 = vadd.f32 %v1475_v24, %v5486_v0  ;;  %v1605_v32 = vadd.f32 %v1604_v25, %v5486_v0  ;;  %v4724_v19 = vld [vmem:[#allocation5 + $0x450] ss:$8 sps:$4 sm:$0xff]   ;;  %v4729_v25 = vld [vmem:[#allocation5 + $0x464] ss:$8 sps:$4 sm:$0xff]  }
 0x340   : > { %v1479_v29 = vpop.f32.mrb[70].mxu0  ;;  %v1608_v30 = vpop.f32.mrb[70].mxu1  ;;  %2360 = vmatpush1.bf16.msra.mxu0 %v4709_v22  ;;  %2489 = vmatpush1.bf16.msra.mxu1 %v4709_v22  ;;  %v1478_v42 = vadd.f32 %v1477_v26, %v5489_v3  ;;  %v1607_v43 = vadd.f32 %v1606_v27, %v5489_v3 }
 0x341   : > { %v1480_v33 = vadd.f32 %v1479_v29, %v5486_v0  ;;  %v1609_v34 = vadd.f32 %v1608_v30, %v5486_v0  ;;  %v1481_v36 = vpop.f32.mrb[71].mxu0  ;;  %v1610_v39 = vpop.f32.mrb[71].mxu1  ;;  %2361 = vmatprep.subr.bf16.mxu0 %v4714_v23  ;;  %2490 = vmatprep.subr.bf16.mxu1 %v4714_v23 }
 0x342   : > { %v1482_v44 = vadd.f32 %v1481_v36, %v5489_v3  ;;  %v1611_v45 = vadd.f32 %v1610_v39, %v5489_v3  ;;  %v4732_v36 = vld [vmem:[#allocation5 + $0x474] ss:$8 sps:$4 sm:$0xff]  }
 0x343   : > { %v1675_v46 = vpack.c.bf16 %v1480_v33, %v1476_v28  ;;  %v2010_v38 = vpack.c.bf16 %v1609_v34, %v1605_v32  ;;  %v4727_v34 = vld [vmem:[#allocation5 + $0x460] ss:$8 sps:$4 sm:$0xff]  }
 0x344   : > { %v1676_v47 = vpack.c.bf16 %v1482_v44, %v1478_v42  ;;  %v2011_v48 = vpack.c.bf16 %v1611_v45, %v1607_v43  ;;  %2362 = vmatpush1.bf16.msra.mxu0 %v4712_v31  ;;  %2491 = vmatpush1.bf16.msra.mxu1 %v4712_v31 }
 0x345   : > { %2363 = vmatprep.subr.bf16.mxu0 %v4717_v40  ;;  %2492 = vmatprep.subr.bf16.mxu1 %v4717_v40 }
 0x346   : > { %v1485_v50 = vpop.f32.mrb[72].mxu0  ;;  %v1614_v52 = vpop.f32.mrb[72].mxu1  ;;  %1937 = vmatprep.mubr.bf16.mxu0 %v1676_v47  ;;  %2066 = vmatprep.mubr.bf16.mxu1 %v2011_v48 }
 0x347   : > { %v1487_v53 = vpop.f32.mrb[73].mxu0  ;;  %v1616_v55 = vpop.f32.mrb[73].mxu1  ;;  %1938 = vmatmul.mubr.bf16.gmra.mrb[100].mxu0 %v1675_v46  ;;  %2067 = vmatmul.mubr.bf16.gmra.mrb[100].mxu1 %v2010_v38  ;;  %v1486_v56 = vadd.f32 %v1485_v50, %v5486_v0  ;;  %v1615_v51 = vadd.f32 %v1614_v52, %v5486_v0  ;;  %v4730_v38 = vld [vmem:[#allocation5 + $0x470] ss:$8 sps:$4 sm:$0xff]   ;;  %v4735_v52 = vld [vmem:[#allocation5 + $0x484] ss:$8 sps:$4 sm:$0xff]  }
 0x348   : > { %v1489_v57 = vpop.f32.mrb[74].mxu0  ;;  %v1618_v58 = vpop.f32.mrb[74].mxu1  ;;  %2364 = vmatpush1.bf16.msra.mxu0 %v4715_v49  ;;  %2493 = vmatpush1.bf16.msra.mxu1 %v4715_v49  ;;  %v1488_v1 = vadd.f32 %v1487_v53, %v5489_v3  ;;  %v1617_v2 = vadd.f32 %v1616_v55, %v5489_v3 }
 0x349   : > { %v1490_v60 = vadd.f32 %v1489_v57, %v5486_v0  ;;  %v1619_v61 = vadd.f32 %v1618_v58, %v5486_v0  ;;  %v1491_v62 = vpop.f32.mrb[75].mxu0  ;;  %v1620_v54 = vpop.f32.mrb[75].mxu1  ;;  %2365 = vmatprep.subr.bf16.mxu0 %v4720_v41  ;;  %2494 = vmatprep.subr.bf16.mxu1 %v4720_v41 }
 0x34a   : > { %v1492_v4 = vadd.f32 %v1491_v62, %v5489_v3  ;;  %v1621_v5 = vadd.f32 %v1620_v54, %v5489_v3  ;;  %v4738_v62 = vld [vmem:[#allocation5 + $0x494] ss:$8 sps:$4 sm:$0xff]  }
 0x34b   : > { %v1677_v6 = vpack.c.bf16 %v1490_v60, %v1486_v56  ;;  %v2012_v7 = vpack.c.bf16 %v1619_v61, %v1615_v51  ;;  %v4733_v61 = vld [vmem:[#allocation5 + $0x480] ss:$8 sps:$4 sm:$0xff]  }
 0x34c   : > { %v1678_v8 = vpack.c.bf16 %v1492_v4, %v1488_v1  ;;  %v2013_v9 = vpack.c.bf16 %v1621_v5, %v1617_v2  ;;  %2366 = vmatpush1.bf16.msra.mxu0 %v4718_v59  ;;  %2495 = vmatpush1.bf16.msra.mxu1 %v4718_v59 }
 0x34d   : > { %2367 = vmatprep.subr.bf16.mxu0 %v4723_v63  ;;  %2496 = vmatprep.subr.bf16.mxu1 %v4723_v63 }
 0x34e   : > { %v1495_v12 = vpop.f32.mrb[76].mxu0  ;;  %v1624_v13 = vpop.f32.mrb[76].mxu1  ;;  %1947 = vmatprep.mubr.bf16.mxu0 %v1678_v8  ;;  %2076 = vmatprep.mubr.bf16.mxu1 %v2013_v9 }
 0x34f   : > { %v1497_v14 = vpop.f32.mrb[77].mxu0  ;;  %v1626_v15 = vpop.f32.mrb[77].mxu1  ;;  %1948 = vmatmul.mubr.bf16.gmra.mrb[104].mxu0 %v1677_v6  ;;  %2077 = vmatmul.mubr.bf16.gmra.mrb[104].mxu1 %v2012_v7  ;;  %v1496_v16 = vadd.f32 %v1495_v12, %v5486_v0  ;;  %v1625_v20 = vadd.f32 %v1624_v13, %v5486_v0  ;;  %v4736_v7 = vld [vmem:[#allocation5 + $0x490] ss:$8 sps:$4 sm:$0xff]   ;;  %v4741_v13 = vld [vmem:[#allocation5 + $0x4a4] ss:$8 sps:$4 sm:$0xff]  }
 0x350   : > { %v1499_v17 = vpop.f32.mrb[78].mxu0  ;;  %v1628_v18 = vpop.f32.mrb[78].mxu1  ;;  %2368 = vmatpush1.bf16.msra.mxu0 %v4721_v10  ;;  %2497 = vmatpush1.bf16.msra.mxu1 %v4721_v10  ;;  %v1498_v26 = vadd.f32 %v1497_v14, %v5489_v3  ;;  %v1627_v27 = vadd.f32 %v1626_v15, %v5489_v3 }
 0x351   : > { %v1500_v21 = vadd.f32 %v1499_v17, %v5486_v0  ;;  %v1629_v22 = vadd.f32 %v1628_v18, %v5486_v0  ;;  %v1501_v23 = vpop.f32.mrb[79].mxu0  ;;  %v1630_v24 = vpop.f32.mrb[79].mxu1  ;;  %2369 = vmatprep.subr.bf16.mxu0 %v4726_v11  ;;  %2498 = vmatprep.subr.bf16.mxu1 %v4726_v11 }
 0x352   : > { %v1502_v28 = vadd.f32 %v1501_v23, %v5489_v3  ;;  %v1631_v29 = vadd.f32 %v1630_v24, %v5489_v3  ;;  %v4744_v23 = vld [vmem:[#allocation5 + $0x4b4] ss:$8 sps:$4 sm:$0xff]  }
 0x353   : > { %v1679_v30 = vpack.c.bf16 %v1500_v21, %v1496_v16  ;;  %v2014_v31 = vpack.c.bf16 %v1629_v22, %v1625_v20  ;;  %v4739_v22 = vld [vmem:[#allocation5 + $0x4a0] ss:$8 sps:$4 sm:$0xff]  }
 0x354   : > { %v1680_v32 = vpack.c.bf16 %v1502_v28, %v1498_v26  ;;  %v2015_v33 = vpack.c.bf16 %v1631_v29, %v1627_v27  ;;  %2370 = vmatpush1.bf16.msra.mxu0 %v4724_v19  ;;  %2499 = vmatpush1.bf16.msra.mxu1 %v4724_v19 }
 0x355   : > { %2371 = vmatprep.subr.bf16.mxu0 %v4729_v25  ;;  %2500 = vmatprep.subr.bf16.mxu1 %v4729_v25 }
 0x356   : > { %v1505_v39 = vpop.f32.mrb[80].mxu0  ;;  %v1634_v40 = vpop.f32.mrb[80].mxu1  ;;  %1957 = vmatprep.mubr.bf16.mxu0 %v1680_v32  ;;  %2086 = vmatprep.mubr.bf16.mxu1 %v2015_v33 }
 0x357   : > { %v1507_v42 = vpop.f32.mrb[81].mxu0  ;;  %v1636_v43 = vpop.f32.mrb[81].mxu1  ;;  %1958 = vmatmul.mubr.bf16.gmra.mrb[108].mxu0 %v1679_v30  ;;  %2087 = vmatmul.mubr.bf16.gmra.mrb[108].mxu1 %v2014_v31  ;;  %v1506_v44 = vadd.f32 %v1505_v39, %v5486_v0  ;;  %v1635_v47 = vadd.f32 %v1634_v40, %v5486_v0  ;;  %v4742_v31 = vld [vmem:[#allocation5 + $0x4b0] ss:$8 sps:$4 sm:$0xff]   ;;  %v4747_v40 = vld [vmem:[#allocation5 + $0x4c4] ss:$8 sps:$4 sm:$0xff]  }
 0x358   : > { %v1509_v45 = vpop.f32.mrb[82].mxu0  ;;  %v1638_v46 = vpop.f32.mrb[82].mxu1  ;;  %2372 = vmatpush1.bf16.msra.mxu0 %v4727_v34  ;;  %2501 = vmatpush1.bf16.msra.mxu1 %v4727_v34  ;;  %v1508_v53 = vadd.f32 %v1507_v42, %v5489_v3  ;;  %v1637_v55 = vadd.f32 %v1636_v43, %v5489_v3 }
 0x359   : > { %v1510_v48 = vadd.f32 %v1509_v45, %v5486_v0  ;;  %v1639_v49 = vadd.f32 %v1638_v46, %v5486_v0  ;;  %v1511_v41 = vpop.f32.mrb[83].mxu0  ;;  %v1640_v50 = vpop.f32.mrb[83].mxu1  ;;  %2373 = vmatprep.subr.bf16.mxu0 %v4732_v36  ;;  %2502 = vmatprep.subr.bf16.mxu1 %v4732_v36 }
 0x35a   : > { %v1512_v56 = vadd.f32 %v1511_v41, %v5489_v3  ;;  %v1641_v57 = vadd.f32 %v1640_v50, %v5489_v3  ;;  %v4750_v41 = vld [vmem:[#allocation5 + $0x4d4] ss:$8 sps:$4 sm:$0xff]  }
 0x35b   : > { %v1681_v58 = vpack.c.bf16 %v1510_v48, %v1506_v44  ;;  %v2016_v59 = vpack.c.bf16 %v1639_v49, %v1635_v47  ;;  %v4745_v49 = vld [vmem:[#allocation5 + $0x4c0] ss:$8 sps:$4 sm:$0xff]  }
 0x35c   : > { %v1682_v51 = vpack.c.bf16 %v1512_v56, %v1508_v53  ;;  %v2017_v60 = vpack.c.bf16 %v1641_v57, %v1637_v55  ;;  %2374 = vmatpush1.bf16.msra.mxu0 %v4730_v38  ;;  %2503 = vmatpush1.bf16.msra.mxu1 %v4730_v38 }
 0x35d   : > { %2375 = vmatprep.subr.bf16.mxu0 %v4735_v52  ;;  %2504 = vmatprep.subr.bf16.mxu1 %v4735_v52 }
 0x35e   : > { %v1515_v54 = vpop.f32.mrb[84].mxu0  ;;  %v1644_v63 = vpop.f32.mrb[84].mxu1  ;;  %1967 = vmatprep.mubr.bf16.mxu0 %v1682_v51  ;;  %2096 = vmatprep.mubr.bf16.mxu1 %v2017_v60 }
 0x35f   : > { %v1517_v1 = vpop.f32.mrb[85].mxu0  ;;  %v1646_v2 = vpop.f32.mrb[85].mxu1  ;;  %1968 = vmatmul.mubr.bf16.gmra.mrb[112].mxu0 %v1681_v58  ;;  %2097 = vmatmul.mubr.bf16.gmra.mrb[112].mxu1 %v2016_v59  ;;  %v1516_v4 = vadd.f32 %v1515_v54, %v5486_v0  ;;  %v1645_v8 = vadd.f32 %v1644_v63, %v5486_v0  ;;  %v4748_v59 = vld [vmem:[#allocation5 + $0x4d0] ss:$8 sps:$4 sm:$0xff]  }
 0x360   : > { %v1519_v5 = vpop.f32.mrb[86].mxu0  ;;  %v1648_v6 = vpop.f32.mrb[86].mxu1  ;;  %2376 = vmatpush1.bf16.msra.mxu0 %v4733_v61  ;;  %2505 = vmatpush1.bf16.msra.mxu1 %v4733_v61  ;;  %v1518_v14 = vadd.f32 %v1517_v1, %v5489_v3  ;;  %v1647_v15 = vadd.f32 %v1646_v2, %v5489_v3 }
 0x361   : > { %v1520_v9 = vadd.f32 %v1519_v5, %v5486_v0  ;;  %v1649_v10 = vadd.f32 %v1648_v6, %v5486_v0  ;;  %v1521_v11 = vpop.f32.mrb[87].mxu0  ;;  %v1650_v12 = vpop.f32.mrb[87].mxu1  ;;  %2377 = vmatprep.subr.bf16.mxu0 %v4738_v62  ;;  %2506 = vmatprep.subr.bf16.mxu1 %v4738_v62 }
 0x362   : > { %v1522_v16 = vadd.f32 %v1521_v11, %v5489_v3  ;;  %v1651_v17 = vadd.f32 %v1650_v12, %v5489_v3  ;;  %v4754_v11 = vld [vmem:[#allocation5 + $0x4f0] ss:$8 sps:$4 sm:$0xff]   ;;  %v1723_v12 = vld [vmem:[#allocation7 + $0x3] ss:$8 sm:$0x3] }
 0x363   : > { %v1683_v18 = vpack.c.bf16 %v1520_v9, %v1516_v4  ;;  %v2018_v19 = vpack.c.bf16 %v1649_v10, %v1645_v8  ;;  %v4751_v9 = vld [vmem:[#allocation5 + $0x4e0] ss:$8 sps:$4 sm:$0xff]   ;;  %v4756_v10 = vld [vmem:[#allocation5 + $0x4f4] ss:$8 sps:$4 sm:$0xff]  }
 0x364   : > { %v1684_v20 = vpack.c.bf16 %v1522_v16, %v1518_v14  ;;  %v2019_v21 = vpack.c.bf16 %v1651_v17, %v1647_v15  ;;  %2378 = vmatpush1.bf16.msra.mxu0 %v4736_v7  ;;  %2507 = vmatpush1.bf16.msra.mxu1 %v4736_v7  ;;  %v5559_v16 = vrot.slane %v1723_v12, %v5343_v37 }
 0x365   : > { %2379 = vmatprep.subr.bf16.mxu0 %v4741_v13  ;;  %2508 = vmatprep.subr.bf16.mxu1 %v4741_v13  ;;  %v5556_v13 = vrot.slane %v1723_v12, %v5341_v35  ;;  %v4771_v12 = vld [vmem:[#allocation5 + $0x544] ss:$8 sps:$4 sm:$0xff]  }
 0x366   : > { %v1525_v24 = vpop.f32.mrb[88].mxu0  ;;  %v1654_v25 = vpop.f32.mrb[88].mxu1  ;;  %1977 = vmatprep.mubr.bf16.mxu0 %v1684_v20  ;;  %2106 = vmatprep.mubr.bf16.mxu1 %v2019_v21 }
 0x367   : > { %v1527_v26 = vpop.f32.mrb[89].mxu0  ;;  %v1656_v27 = vpop.f32.mrb[89].mxu1  ;;  %1978 = vmatmul.mubr.bf16.gmra.mrb[116].mxu0 %v1683_v18  ;;  %2107 = vmatmul.mubr.bf16.gmra.mrb[116].mxu1 %v2018_v19  ;;  %v1526_v28 = vadd.f32 %v1525_v24, %v5486_v0  ;;  %v1655_v32 = vadd.f32 %v1654_v25, %v5486_v0 }
 0x368   : > { %v1529_v29 = vpop.f32.mrb[90].mxu0  ;;  %v1658_v30 = vpop.f32.mrb[90].mxu1  ;;  %2380 = vmatpush1.bf16.msra.mxu0 %v4739_v22  ;;  %2509 = vmatpush1.bf16.msra.mxu1 %v4739_v22  ;;  %v1528_v42 = vadd.f32 %v1527_v26, %v5489_v3  ;;  %v1657_v43 = vadd.f32 %v1656_v27, %v5489_v3 }
 0x369   : > { %v1530_v33 = vadd.f32 %v1529_v29, %v5486_v0  ;;  %v1659_v34 = vadd.f32 %v1658_v30, %v5486_v0  ;;  %v1531_v36 = vpop.f32.mrb[91].mxu0  ;;  %v1660_v39 = vpop.f32.mrb[91].mxu1  ;;  %2381 = vmatprep.subr.bf16.mxu0 %v4744_v23  ;;  %2510 = vmatprep.subr.bf16.mxu1 %v4744_v23 }
 0x36a   : > { %v1532_v44 = vadd.f32 %v1531_v36, %v5489_v3  ;;  %v1661_v45 = vadd.f32 %v1660_v39, %v5489_v3  ;;  %v4757_v36 = vld [vmem:[#allocation5 + $0x500] ss:$8 sps:$4 sm:$0xff]   ;;  %v4762_v39 = vld [vmem:[#allocation5 + $0x514] ss:$8 sps:$4 sm:$0xff]  }
 0x36b   : > { %v1685_v46 = vpack.c.bf16 %v1530_v33, %v1526_v28  ;;  %v2020_v38 = vpack.c.bf16 %v1659_v34, %v1655_v32 }
 0x36c   : > { %v1686_v47 = vpack.c.bf16 %v1532_v44, %v1528_v42  ;;  %v2021_v48 = vpack.c.bf16 %v1661_v45, %v1657_v43  ;;  %2382 = vmatpush1.bf16.msra.mxu0 %v4742_v31  ;;  %2511 = vmatpush1.bf16.msra.mxu1 %v4742_v31 }
 0x36d   : > { %2383 = vmatprep.subr.bf16.mxu0 %v4747_v40  ;;  %2512 = vmatprep.subr.bf16.mxu1 %v4747_v40 }
 0x36e   : > { %v1535_v50 = vpop.f32.mrb[92].mxu0  ;;  %v1664_v52 = vpop.f32.mrb[92].mxu1  ;;  %1987 = vmatprep.mubr.bf16.mxu0 %v1686_v47  ;;  %2116 = vmatprep.mubr.bf16.mxu1 %v2021_v48  ;;  %v4760_v47 = vld [vmem:[#allocation5 + $0x510] ss:$8 sps:$4 sm:$0xff]  }
 0x36f   : > { %v1537_v53 = vpop.f32.mrb[93].mxu0  ;;  %v1666_v55 = vpop.f32.mrb[93].mxu1  ;;  %1988 = vmatmul.mubr.bf16.gmra.mrb[120].mxu0 %v1685_v46  ;;  %2117 = vmatmul.mubr.bf16.gmra.mrb[120].mxu1 %v2020_v38  ;;  %v1536_v56 = vadd.f32 %v1535_v50, %v5486_v0  ;;  %v1665_v51 = vadd.f32 %v1664_v52, %v5486_v0 }
 0x370   : > { %v1539_v57 = vpop.f32.mrb[94].mxu0  ;;  %v1668_v58 = vpop.f32.mrb[94].mxu1  ;;  %2384 = vmatpush1.bf16.msra.mxu0 %v4745_v49  ;;  %2513 = vmatpush1.bf16.msra.mxu1 %v4745_v49  ;;  %v1538_v63 = vadd.f32 %v1537_v53, %v5489_v3  ;;  %v1667_v1 = vadd.f32 %v1666_v55, %v5489_v3  ;;  %v4765_v53 = vld [vmem:[#allocation5 + $0x524] ss:$8 sps:$4 sm:$0xff]  }
 0x371   : > { %v1540_v60 = vadd.f32 %v1539_v57, %v5486_v0  ;;  %v1669_v61 = vadd.f32 %v1668_v58, %v5486_v0  ;;  %v1541_v62 = vpop.f32.mrb[95].mxu0  ;;  %v1670_v54 = vpop.f32.mrb[95].mxu1  ;;  %2385 = vmatprep.subr.bf16.mxu0 %v4750_v41  ;;  %2514 = vmatprep.subr.bf16.mxu1 %v4750_v41  ;;  %v4753_v0 = vld [vmem:[#allocation5 + $0x4e4] ss:$8 sps:$4 sm:$0xff]  }
 0x372   : > { %v1542_v2 = vadd.f32 %v1541_v62, %v5489_v3  ;;  %v1671_v4 = vadd.f32 %v1670_v54, %v5489_v3  ;;  %v4759_v3 = vld [vmem:[#allocation5 + $0x504] ss:$8 sps:$4 sm:$0xff]   ;;  %v4763_v62 = vld [vmem:[#allocation5 + $0x520] ss:$8 sps:$4 sm:$0xff]   ;;  %v4768_v54 = vld [vmem:[#allocation5 + $0x534] ss:$8 sps:$4 sm:$0xff]  }
 0x373   : > { %v1687_v5 = vpack.c.bf16 %v1540_v60, %v1536_v56  ;;  %v2022_v6 = vpack.c.bf16 %v1669_v61, %v1665_v51 }
 0x374   : > { %v1688_v7 = vpack.c.bf16 %v1542_v2, %v1538_v63  ;;  %v2023_v8 = vpack.c.bf16 %v1671_v4, %v1667_v1  ;;  %2386 = vmatpush1.bf16.msra.mxu0 %v4748_v59  ;;  %2515 = vmatpush1.bf16.msra.mxu1 %v4748_v59 }
 0x375   : > { %2387 = vmatprep.subr.bf16.mxu0 %v4753_v0  ;;  %2516 = vmatprep.subr.bf16.mxu1 %v4753_v0 }
 0x376   : > { %1997 = vmatprep.mubr.bf16.mxu0 %v1688_v7  ;;  %2126 = vmatprep.mubr.bf16.mxu1 %v2023_v8  ;;  %v4766_v8 = vld [vmem:[#allocation5 + $0x530] ss:$8 sps:$4 sm:$0xff]  }
 0x377   : > { %1998 = vmatmul.mubr.bf16.gmra.mrb[124].mxu0 %v1687_v5  ;;  %2127 = vmatmul.mubr.bf16.gmra.mrb[124].mxu1 %v2022_v6 }
 0x378   : > { %2388 = vmatpush1.bf16.msra.mxu0 %v4751_v9  ;;  %2517 = vmatpush1.bf16.msra.mxu1 %v4751_v9 }
 0x379   : > { %2389 = vmatprep.subr.bf16.mxu0 %v4756_v10  ;;  %2518 = vmatprep.subr.bf16.mxu1 %v4756_v10 }
 0x37c   : > { %2390 = vmatpush1.bf16.msra.mxu0 %v4754_v11  ;;  %2519 = vmatpush1.bf16.msra.mxu1 %v4754_v11 }
 0x37d   : > { %2823 = vmatprep.subr.bf16.mxu0 %v4759_v3  ;;  %2952 = vmatprep.subr.bf16.mxu1 %v4759_v3 }
 0x412   : > { %v1929_v14 = vpop.f32.mrb[96].mxu0  ;;  %v2058_v15 = vpop.f32.mrb[96].mxu1 }
 0x413   : > { %v1931_v17 = vpop.f32.mrb[97].mxu0  ;;  %v2060_v18 = vpop.f32.mrb[97].mxu1  ;;  %v1930_v21 = vadd.f32 %v1929_v14, %v5556_v13  ;;  %v2059_v22 = vadd.f32 %v2058_v15, %v5556_v13 }
 0x414   : > { %v1933_v19 = vpop.f32.mrb[98].mxu0  ;;  %v2062_v20 = vpop.f32.mrb[98].mxu1  ;;  %v1932_v27 = vadd.f32 %v1931_v17, %v5559_v16  ;;  %v2061_v28 = vadd.f32 %v2060_v18, %v5559_v16 }
 0x415   : > { %v1934_v23 = vadd.f32 %v1933_v19, %v5556_v13  ;;  %v2063_v24 = vadd.f32 %v2062_v20, %v5556_v13  ;;  %v1935_v25 = vpop.f32.mrb[99].mxu0  ;;  %v2064_v26 = vpop.f32.mrb[99].mxu1 }
 0x416   : > { %v1936_v29 = vadd.f32 %v1935_v25, %v5559_v16  ;;  %v2065_v30 = vadd.f32 %v2064_v26, %v5559_v16 }
 0x417   : > { %v2137_v31 = vpack.c.bf16 %v1934_v23, %v1930_v21  ;;  %v2472_v32 = vpack.c.bf16 %v2063_v24, %v2059_v22  ;;  %v4769_v23 = vld [vmem:[#allocation5 + $0x540] ss:$8 sps:$4 sm:$0xff]   ;;  %v4774_v24 = vld [vmem:[#allocation5 + $0x554] ss:$8 sps:$4 sm:$0xff]  }
 0x418   : > { %v2138_v33 = vpack.c.bf16 %v1936_v29, %v1932_v27  ;;  %v2473_v34 = vpack.c.bf16 %v2065_v30, %v2061_v28 }
 0x41a   : > { %v1939_v40 = vpop.f32.mrb[100].mxu0  ;;  %v2068_v42 = vpop.f32.mrb[100].mxu1  ;;  %2391 = vmatprep.mubr.bf16.mxu0 %v2138_v33  ;;  %2520 = vmatprep.mubr.bf16.mxu1 %v2473_v34 }
 0x41b   : > { %v1941_v43 = vpop.f32.mrb[101].mxu0  ;;  %v2070_v44 = vpop.f32.mrb[101].mxu1  ;;  %2392 = vmatmul.mubr.bf16.vlgmr.msra.gmra.mrb[128].mxu0 %v2137_v31  ;;  %2521 = vmatmul.mubr.bf16.vlgmr.msra.gmra.mrb[128].mxu1 %v2472_v32  ;;  %v1940_v45 = vadd.f32 %v1939_v40, %v5556_v13  ;;  %v2069_v48 = vadd.f32 %v2068_v42, %v5556_v13  ;;  %v4772_v32 = vld [vmem:[#allocation5 + $0x550] ss:$8 sps:$4 sm:$0xff]   ;;  %v4777_v42 = vld [vmem:[#allocation5 + $0x564] ss:$8 sps:$4 sm:$0xff]  }
 0x41c   : > { %v1943_v46 = vpop.f32.mrb[102].mxu0  ;;  %v2072_v38 = vpop.f32.mrb[102].mxu1  ;;  %2824 = vmatpush1.bf16.msra.mxu0 %v4757_v36  ;;  %2953 = vmatpush1.bf16.msra.mxu1 %v4757_v36  ;;  %v1942_v55 = vadd.f32 %v1941_v43, %v5559_v16  ;;  %v2071_v56 = vadd.f32 %v2070_v44, %v5559_v16 }
 0x41d   : > { %v1944_v49 = vadd.f32 %v1943_v46, %v5556_v13  ;;  %v2073_v41 = vadd.f32 %v2072_v38, %v5556_v13  ;;  %v1945_v50 = vpop.f32.mrb[103].mxu0  ;;  %v2074_v52 = vpop.f32.mrb[103].mxu1  ;;  %2825 = vmatprep.subr.bf16.mxu0 %v4762_v39  ;;  %2954 = vmatprep.subr.bf16.mxu1 %v4762_v39 }
 0x41e   : > { %v1946_v57 = vadd.f32 %v1945_v50, %v5559_v16  ;;  %v2075_v58 = vadd.f32 %v2074_v52, %v5559_v16  ;;  %v4780_v50 = vld [vmem:[#allocation5 + $0x574] ss:$8 sps:$4 sm:$0xff]  }
 0x41f   : > { %v2139_v59 = vpack.c.bf16 %v1944_v49, %v1940_v45  ;;  %v2474_v51 = vpack.c.bf16 %v2073_v41, %v2069_v48  ;;  %v4775_v41 = vld [vmem:[#allocation5 + $0x560] ss:$8 sps:$4 sm:$0xff]  }
 0x420   : > { %v2140_v60 = vpack.c.bf16 %v1946_v57, %v1942_v55  ;;  %v2475_v61 = vpack.c.bf16 %v2075_v58, %v2071_v56  ;;  %2826 = vmatpush1.bf16.msra.mxu0 %v4760_v47  ;;  %2955 = vmatpush1.bf16.msra.mxu1 %v4760_v47 }
 0x421   : > { %2827 = vmatprep.subr.bf16.mxu0 %v4765_v53  ;;  %2956 = vmatprep.subr.bf16.mxu1 %v4765_v53 }
 0x422   : > { %v1949_v63 = vpop.f32.mrb[104].mxu0  ;;  %v2078_v1 = vpop.f32.mrb[104].mxu1  ;;  %2401 = vmatprep.mubr.bf16.mxu0 %v2140_v60  ;;  %2530 = vmatprep.mubr.bf16.mxu1 %v2475_v61 }
 0x423   : > { %v1951_v2 = vpop.f32.mrb[105].mxu0  ;;  %v2080_v4 = vpop.f32.mrb[105].mxu1  ;;  %2402 = vmatmul.mubr.bf16.gmra.mrb[132].mxu0 %v2139_v59  ;;  %2531 = vmatmul.mubr.bf16.gmra.mrb[132].mxu1 %v2474_v51  ;;  %v1950_v5 = vadd.f32 %v1949_v63, %v5556_v13  ;;  %v2079_v0 = vadd.f32 %v2078_v1, %v5556_v13  ;;  %v4778_v51 = vld [vmem:[#allocation5 + $0x570] ss:$8 sps:$4 sm:$0xff]   ;;  %v4783_v1 = vld [vmem:[#allocation5 + $0x584] ss:$8 sps:$4 sm:$0xff]  }
 0x424   : > { %v1953_v6 = vpop.f32.mrb[106].mxu0  ;;  %v2082_v7 = vpop.f32.mrb[106].mxu1  ;;  %2828 = vmatpush1.bf16.msra.mxu0 %v4763_v62  ;;  %2957 = vmatpush1.bf16.msra.mxu1 %v4763_v62  ;;  %v1952_v14 = vadd.f32 %v1951_v2, %v5559_v16  ;;  %v2081_v15 = vadd.f32 %v2080_v4, %v5559_v16 }
 0x425   : > { %v1954_v9 = vadd.f32 %v1953_v6, %v5556_v13  ;;  %v2083_v10 = vadd.f32 %v2082_v7, %v5556_v13  ;;  %v1955_v11 = vpop.f32.mrb[107].mxu0  ;;  %v2084_v3 = vpop.f32.mrb[107].mxu1  ;;  %2829 = vmatprep.subr.bf16.mxu0 %v4768_v54  ;;  %2958 = vmatprep.subr.bf16.mxu1 %v4768_v54 }
 0x426   : > { %v1956_v17 = vadd.f32 %v1955_v11, %v5559_v16  ;;  %v2085_v18 = vadd.f32 %v2084_v3, %v5559_v16  ;;  %v4786_v11 = vld [vmem:[#allocation5 + $0x594] ss:$8 sps:$4 sm:$0xff]  }
 0x427   : > { %v2141_v19 = vpack.c.bf16 %v1954_v9, %v1950_v5  ;;  %v2476_v20 = vpack.c.bf16 %v2083_v10, %v2079_v0  ;;  %v4781_v10 = vld [vmem:[#allocation5 + $0x580] ss:$8 sps:$4 sm:$0xff]  }
 0x428   : > { %v2142_v21 = vpack.c.bf16 %v1956_v17, %v1952_v14  ;;  %v2477_v22 = vpack.c.bf16 %v2085_v18, %v2081_v15  ;;  %2830 = vmatpush1.bf16.msra.mxu0 %v4766_v8  ;;  %2959 = vmatpush1.bf16.msra.mxu1 %v4766_v8 }
 0x429   : > { %2831 = vmatprep.subr.bf16.mxu0 %v4771_v12  ;;  %2960 = vmatprep.subr.bf16.mxu1 %v4771_v12 }
 0x42a   : > { %v1959_v25 = vpop.f32.mrb[108].mxu0  ;;  %v2088_v26 = vpop.f32.mrb[108].mxu1  ;;  %2411 = vmatprep.mubr.bf16.mxu0 %v2142_v21  ;;  %2540 = vmatprep.mubr.bf16.mxu1 %v2477_v22 }
 0x42b   : > { %v1961_v27 = vpop.f32.mrb[109].mxu0  ;;  %v2090_v28 = vpop.f32.mrb[109].mxu1  ;;  %2412 = vmatmul.mubr.bf16.gmra.mrb[136].mxu0 %v2141_v19  ;;  %2541 = vmatmul.mubr.bf16.gmra.mrb[136].mxu1 %v2476_v20  ;;  %v1960_v29 = vadd.f32 %v1959_v25, %v5556_v13  ;;  %v2089_v33 = vadd.f32 %v2088_v26, %v5556_v13  ;;  %v4784_v20 = vld [vmem:[#allocation5 + $0x590] ss:$8 sps:$4 sm:$0xff]   ;;  %v4789_v26 = vld [vmem:[#allocation5 + $0x5a4] ss:$8 sps:$4 sm:$0xff]  }
 0x42c   : > { %v1963_v30 = vpop.f32.mrb[110].mxu0  ;;  %v2092_v31 = vpop.f32.mrb[110].mxu1  ;;  %2832 = vmatpush1.bf16.msra.mxu0 %v4769_v23  ;;  %2961 = vmatpush1.bf16.msra.mxu1 %v4769_v23  ;;  %v1962_v43 = vadd.f32 %v1961_v27, %v5559_v16  ;;  %v2091_v44 = vadd.f32 %v2090_v28, %v5559_v16 }
 0x42d   : > { %v1964_v34 = vadd.f32 %v1963_v30, %v5556_v13  ;;  %v2093_v36 = vadd.f32 %v2092_v31, %v5556_v13  ;;  %v1965_v39 = vpop.f32.mrb[111].mxu0  ;;  %v2094_v40 = vpop.f32.mrb[111].mxu1  ;;  %2833 = vmatprep.subr.bf16.mxu0 %v4774_v24  ;;  %2962 = vmatprep.subr.bf16.mxu1 %v4774_v24 }
 0x42e   : > { %v1966_v45 = vadd.f32 %v1965_v39, %v5559_v16  ;;  %v2095_v46 = vadd.f32 %v2094_v40, %v5559_v16  ;;  %v4792_v39 = vld [vmem:[#allocation5 + $0x5b4] ss:$8 sps:$4 sm:$0xff]  }
 0x42f   : > { %v2143_v38 = vpack.c.bf16 %v1964_v34, %v1960_v29  ;;  %v2478_v47 = vpack.c.bf16 %v2093_v36, %v2089_v33  ;;  %v4787_v36 = vld [vmem:[#allocation5 + $0x5a0] ss:$8 sps:$4 sm:$0xff]  }
 0x430   : > { %v2144_v48 = vpack.c.bf16 %v1966_v45, %v1962_v43  ;;  %v2479_v49 = vpack.c.bf16 %v2095_v46, %v2091_v44  ;;  %2834 = vmatpush1.bf16.msra.mxu0 %v4772_v32  ;;  %2963 = vmatpush1.bf16.msra.mxu1 %v4772_v32 }
 0x431   : > { %2835 = vmatprep.subr.bf16.mxu0 %v4777_v42  ;;  %2964 = vmatprep.subr.bf16.mxu1 %v4777_v42 }
 0x432   : > { %v1969_v52 = vpop.f32.mrb[112].mxu0  ;;  %v2098_v53 = vpop.f32.mrb[112].mxu1  ;;  %2421 = vmatprep.mubr.bf16.mxu0 %v2144_v48  ;;  %2550 = vmatprep.mubr.bf16.mxu1 %v2479_v49 }
 0x433   : > { %v1971_v55 = vpop.f32.mrb[113].mxu0  ;;  %v2100_v56 = vpop.f32.mrb[113].mxu1  ;;  %2422 = vmatmul.mubr.bf16.gmra.mrb[140].mxu0 %v2143_v38  ;;  %2551 = vmatmul.mubr.bf16.gmra.mrb[140].mxu1 %v2478_v47  ;;  %v1970_v57 = vadd.f32 %v1969_v52, %v5556_v13  ;;  %v2099_v60 = vadd.f32 %v2098_v53, %v5556_v13  ;;  %v4790_v47 = vld [vmem:[#allocation5 + $0x5b0] ss:$8 sps:$4 sm:$0xff]   ;;  %v4795_v53 = vld [vmem:[#allocation5 + $0x5c4] ss:$8 sps:$4 sm:$0xff]  }
 0x434   : > { %v1973_v58 = vpop.f32.mrb[114].mxu0  ;;  %v2102_v59 = vpop.f32.mrb[114].mxu1  ;;  %2836 = vmatpush1.bf16.msra.mxu0 %v4775_v41  ;;  %2965 = vmatpush1.bf16.msra.mxu1 %v4775_v41  ;;  %v1972_v2 = vadd.f32 %v1971_v55, %v5559_v16  ;;  %v2101_v4 = vadd.f32 %v2100_v56, %v5559_v16 }
 0x435   : > { %v1974_v61 = vadd.f32 %v1973_v58, %v5556_v13  ;;  %v2103_v62 = vadd.f32 %v2102_v59, %v5556_v13  ;;  %v1975_v54 = vpop.f32.mrb[115].mxu0  ;;  %v2104_v63 = vpop.f32.mrb[115].mxu1  ;;  %2837 = vmatprep.subr.bf16.mxu0 %v4780_v50  ;;  %2966 = vmatprep.subr.bf16.mxu1 %v4780_v50 }
 0x436   : > { %v1976_v5 = vadd.f32 %v1975_v54, %v5559_v16  ;;  %v2105_v6 = vadd.f32 %v2104_v63, %v5559_v16  ;;  %v4798_v54 = vld [vmem:[#allocation5 + $0x5d4] ss:$8 sps:$4 sm:$0xff]  }
 0x437   : > { %v2145_v7 = vpack.c.bf16 %v1974_v61, %v1970_v57  ;;  %v2480_v8 = vpack.c.bf16 %v2103_v62, %v2099_v60  ;;  %v4793_v62 = vld [vmem:[#allocation5 + $0x5c0] ss:$8 sps:$4 sm:$0xff]  }
 0x438   : > { %v2146_v0 = vpack.c.bf16 %v1976_v5, %v1972_v2  ;;  %v2481_v9 = vpack.c.bf16 %v2105_v6, %v2101_v4  ;;  %2838 = vmatpush1.bf16.msra.mxu0 %v4778_v51  ;;  %2967 = vmatpush1.bf16.msra.mxu1 %v4778_v51 }
 0x439   : > { %2839 = vmatprep.subr.bf16.mxu0 %v4783_v1  ;;  %2968 = vmatprep.subr.bf16.mxu1 %v4783_v1 }
 0x43a   : > { %v1979_v3 = vpop.f32.mrb[116].mxu0  ;;  %v2108_v12 = vpop.f32.mrb[116].mxu1  ;;  %2431 = vmatprep.mubr.bf16.mxu0 %v2146_v0  ;;  %2560 = vmatprep.mubr.bf16.mxu1 %v2481_v9 }
 0x43b   : > { %v1981_v14 = vpop.f32.mrb[117].mxu0  ;;  %v2110_v15 = vpop.f32.mrb[117].mxu1  ;;  %2432 = vmatmul.mubr.bf16.gmra.mrb[144].mxu0 %v2145_v7  ;;  %2561 = vmatmul.mubr.bf16.gmra.mrb[144].mxu1 %v2480_v8  ;;  %v1980_v17 = vadd.f32 %v1979_v3, %v5556_v13  ;;  %v2109_v21 = vadd.f32 %v2108_v12, %v5556_v13  ;;  %v4796_v8 = vld [vmem:[#allocation5 + $0x5d0] ss:$8 sps:$4 sm:$0xff]  }
 0x43c   : > { %v1983_v18 = vpop.f32.mrb[118].mxu0  ;;  %v2112_v19 = vpop.f32.mrb[118].mxu1  ;;  %2840 = vmatpush1.bf16.msra.mxu0 %v4781_v10  ;;  %2969 = vmatpush1.bf16.msra.mxu1 %v4781_v10  ;;  %v1982_v27 = vadd.f32 %v1981_v14, %v5559_v16  ;;  %v2111_v28 = vadd.f32 %v2110_v15, %v5559_v16 }
 0x43d   : > { %v1984_v22 = vadd.f32 %v1983_v18, %v5556_v13  ;;  %v2113_v23 = vadd.f32 %v2112_v19, %v5556_v13  ;;  %v1985_v24 = vpop.f32.mrb[119].mxu0  ;;  %v2114_v25 = vpop.f32.mrb[119].mxu1  ;;  %2841 = vmatprep.subr.bf16.mxu0 %v4786_v11  ;;  %2970 = vmatprep.subr.bf16.mxu1 %v4786_v11 }
 0x43e   : > { %v1986_v29 = vadd.f32 %v1985_v24, %v5559_v16  ;;  %v2115_v30 = vadd.f32 %v2114_v25, %v5559_v16  ;;  %v4802_v24 = vld [vmem:[#allocation5 + $0x5f0] ss:$8 sps:$4 sm:$0xff]   ;;  %v2187_v25 = vld [vmem:[#allocation7 + $0x4] ss:$8 sm:$0x3] }
 0x43f   : > { %v2147_v31 = vpack.c.bf16 %v1984_v22, %v1980_v17  ;;  %v2482_v32 = vpack.c.bf16 %v2113_v23, %v2109_v21  ;;  %v4799_v22 = vld [vmem:[#allocation5 + $0x5e0] ss:$8 sps:$4 sm:$0xff]   ;;  %v4804_v23 = vld [vmem:[#allocation5 + $0x5f4] ss:$8 sps:$4 sm:$0xff]  }
 0x440   : > { %v2148_v33 = vpack.c.bf16 %v1986_v29, %v1982_v27  ;;  %v2483_v34 = vpack.c.bf16 %v2115_v30, %v2111_v28  ;;  %2842 = vmatpush1.bf16.msra.mxu0 %v4784_v20  ;;  %2971 = vmatpush1.bf16.msra.mxu1 %v4784_v20  ;;  %v5629_v29 = vrot.slane %v2187_v25, %v5343_v37 }
 0x441   : > { %2843 = vmatprep.subr.bf16.mxu0 %v4789_v26  ;;  %2972 = vmatprep.subr.bf16.mxu1 %v4789_v26  ;;  %v5626_v26 = vrot.slane %v2187_v25, %v5341_v35  ;;  %v4819_v25 = vld [vmem:[#allocation5 + $0x644] ss:$8 sps:$4 sm:$0xff]  }
 0x442   : > { %v1989_v40 = vpop.f32.mrb[120].mxu0  ;;  %v2118_v42 = vpop.f32.mrb[120].mxu1  ;;  %2441 = vmatprep.mubr.bf16.mxu0 %v2148_v33  ;;  %2570 = vmatprep.mubr.bf16.mxu1 %v2483_v34 }
 0x443   : > { %v1991_v43 = vpop.f32.mrb[121].mxu0  ;;  %v2120_v44 = vpop.f32.mrb[121].mxu1  ;;  %2442 = vmatmul.mubr.bf16.gmra.mrb[148].mxu0 %v2147_v31  ;;  %2571 = vmatmul.mubr.bf16.gmra.mrb[148].mxu1 %v2482_v32  ;;  %v1990_v45 = vadd.f32 %v1989_v40, %v5556_v13  ;;  %v2119_v48 = vadd.f32 %v2118_v42, %v5556_v13 }
 0x444   : > { %v1993_v46 = vpop.f32.mrb[122].mxu0  ;;  %v2122_v38 = vpop.f32.mrb[122].mxu1  ;;  %2844 = vmatpush1.bf16.msra.mxu0 %v4787_v36  ;;  %2973 = vmatpush1.bf16.msra.mxu1 %v4787_v36  ;;  %v1992_v55 = vadd.f32 %v1991_v43, %v5559_v16  ;;  %v2121_v56 = vadd.f32 %v2120_v44, %v5559_v16 }
 0x445   : > { %v1994_v49 = vadd.f32 %v1993_v46, %v5556_v13  ;;  %v2123_v41 = vadd.f32 %v2122_v38, %v5556_v13  ;;  %v1995_v50 = vpop.f32.mrb[123].mxu0  ;;  %v2124_v52 = vpop.f32.mrb[123].mxu1  ;;  %2845 = vmatprep.subr.bf16.mxu0 %v4792_v39  ;;  %2974 = vmatprep.subr.bf16.mxu1 %v4792_v39 }
 0x446   : > { %v1996_v57 = vadd.f32 %v1995_v50, %v5559_v16  ;;  %v2125_v58 = vadd.f32 %v2124_v52, %v5559_v16  ;;  %v4805_v50 = vld [vmem:[#allocation5 + $0x600] ss:$8 sps:$4 sm:$0xff]   ;;  %v4810_v52 = vld [vmem:[#allocation5 + $0x614] ss:$8 sps:$4 sm:$0xff]  }
 0x447   : > { %v2149_v59 = vpack.c.bf16 %v1994_v49, %v1990_v45  ;;  %v2484_v51 = vpack.c.bf16 %v2123_v41, %v2119_v48 }
 0x448   : > { %v2150_v60 = vpack.c.bf16 %v1996_v57, %v1992_v55  ;;  %v2485_v61 = vpack.c.bf16 %v2125_v58, %v2121_v56  ;;  %2846 = vmatpush1.bf16.msra.mxu0 %v4790_v47  ;;  %2975 = vmatpush1.bf16.msra.mxu1 %v4790_v47 }
 0x449   : > { %2847 = vmatprep.subr.bf16.mxu0 %v4795_v53  ;;  %2976 = vmatprep.subr.bf16.mxu1 %v4795_v53 }
 0x44a   : > { %v1999_v63 = vpop.f32.mrb[124].mxu0  ;;  %v2128_v1 = vpop.f32.mrb[124].mxu1  ;;  %2451 = vmatprep.mubr.bf16.mxu0 %v2150_v60  ;;  %2580 = vmatprep.mubr.bf16.mxu1 %v2485_v61  ;;  %v4808_v60 = vld [vmem:[#allocation5 + $0x610] ss:$8 sps:$4 sm:$0xff]  }
 0x44b   : > { %v2001_v2 = vpop.f32.mrb[125].mxu0  ;;  %v2130_v4 = vpop.f32.mrb[125].mxu1  ;;  %2452 = vmatmul.mubr.bf16.gmra.mrb[152].mxu0 %v2149_v59  ;;  %2581 = vmatmul.mubr.bf16.gmra.mrb[152].mxu1 %v2484_v51  ;;  %v2000_v5 = vadd.f32 %v1999_v63, %v5556_v13  ;;  %v2129_v0 = vadd.f32 %v2128_v1, %v5556_v13 }
 0x44c   : > { %v2003_v6 = vpop.f32.mrb[126].mxu0  ;;  %v2132_v7 = vpop.f32.mrb[126].mxu1  ;;  %2848 = vmatpush1.bf16.msra.mxu0 %v4793_v62  ;;  %2977 = vmatpush1.bf16.msra.mxu1 %v4793_v62  ;;  %v2002_v12 = vadd.f32 %v2001_v2, %v5559_v16  ;;  %v2131_v14 = vadd.f32 %v2130_v4, %v5559_v16  ;;  %v4813_v2 = vld [vmem:[#allocation5 + $0x624] ss:$8 sps:$4 sm:$0xff]  }
 0x44d   : > { %v2004_v9 = vadd.f32 %v2003_v6, %v5556_v13  ;;  %v2133_v10 = vadd.f32 %v2132_v7, %v5556_v13  ;;  %v2005_v11 = vpop.f32.mrb[127].mxu0  ;;  %v2134_v3 = vpop.f32.mrb[127].mxu1  ;;  %2849 = vmatprep.subr.bf16.mxu0 %v4798_v54  ;;  %2978 = vmatprep.subr.bf16.mxu1 %v4798_v54  ;;  %v4801_v13 = vld [vmem:[#allocation5 + $0x5e4] ss:$8 sps:$4 sm:$0xff]  }
 0x44e   : > { %v2006_v15 = vadd.f32 %v2005_v11, %v5559_v16  ;;  %v2135_v17 = vadd.f32 %v2134_v3, %v5559_v16  ;;  %v4807_v16 = vld [vmem:[#allocation5 + $0x604] ss:$8 sps:$4 sm:$0xff]   ;;  %v4811_v11 = vld [vmem:[#allocation5 + $0x620] ss:$8 sps:$4 sm:$0xff]   ;;  %v4816_v3 = vld [vmem:[#allocation5 + $0x634] ss:$8 sps:$4 sm:$0xff]  }
 0x44f   : > { %v2151_v18 = vpack.c.bf16 %v2004_v9, %v2000_v5  ;;  %v2486_v19 = vpack.c.bf16 %v2133_v10, %v2129_v0 }
 0x450   : > { %v2152_v20 = vpack.c.bf16 %v2006_v15, %v2002_v12  ;;  %v2487_v21 = vpack.c.bf16 %v2135_v17, %v2131_v14  ;;  %2850 = vmatpush1.bf16.msra.mxu0 %v4796_v8  ;;  %2979 = vmatpush1.bf16.msra.mxu1 %v4796_v8 }
 0x451   : > { %2851 = vmatprep.subr.bf16.mxu0 %v4801_v13  ;;  %2980 = vmatprep.subr.bf16.mxu1 %v4801_v13 }
 0x452   : > { %2461 = vmatprep.mubr.bf16.mxu0 %v2152_v20  ;;  %2590 = vmatprep.mubr.bf16.mxu1 %v2487_v21  ;;  %v4814_v21 = vld [vmem:[#allocation5 + $0x630] ss:$8 sps:$4 sm:$0xff]  }
 0x453   : > { %2462 = vmatmul.mubr.bf16.gmra.mrb[156].mxu0 %v2151_v18  ;;  %2591 = vmatmul.mubr.bf16.gmra.mrb[156].mxu1 %v2486_v19 }
 0x454   : > { %2852 = vmatpush1.bf16.msra.mxu0 %v4799_v22  ;;  %2981 = vmatpush1.bf16.msra.mxu1 %v4799_v22 }
 0x455   : > { %2853 = vmatprep.subr.bf16.mxu0 %v4804_v23  ;;  %2982 = vmatprep.subr.bf16.mxu1 %v4804_v23 }
 0x458   : > { %2854 = vmatpush1.bf16.msra.mxu0 %v4802_v24  ;;  %2983 = vmatpush1.bf16.msra.mxu1 %v4802_v24 }
 0x459   : > { %3287 = vmatprep.subr.bf16.mxu0 %v4807_v16  ;;  %3416 = vmatprep.subr.bf16.mxu1 %v4807_v16 }
 0x4ee   : > { %v2393_v27 = vpop.f32.mrb[128].mxu0  ;;  %v2522_v28 = vpop.f32.mrb[128].mxu1 }
 0x4ef   : > { %v2395_v30 = vpop.f32.mrb[129].mxu0  ;;  %v2524_v31 = vpop.f32.mrb[129].mxu1  ;;  %v2394_v34 = vadd.f32 %v2393_v27, %v5626_v26  ;;  %v2523_v36 = vadd.f32 %v2522_v28, %v5626_v26 }
 0x4f0   : > { %v2397_v32 = vpop.f32.mrb[130].mxu0  ;;  %v2526_v33 = vpop.f32.mrb[130].mxu1  ;;  %v2396_v44 = vadd.f32 %v2395_v30, %v5629_v29  ;;  %v2525_v45 = vadd.f32 %v2524_v31, %v5629_v29 }
 0x4f1   : > { %v2398_v39 = vadd.f32 %v2397_v32, %v5626_v26  ;;  %v2527_v40 = vadd.f32 %v2526_v33, %v5626_v26  ;;  %v2399_v42 = vpop.f32.mrb[131].mxu0  ;;  %v2528_v43 = vpop.f32.mrb[131].mxu1 }
 0x4f2   : > { %v2400_v46 = vadd.f32 %v2399_v42, %v5629_v29  ;;  %v2529_v38 = vadd.f32 %v2528_v43, %v5629_v29 }
 0x4f3   : > { %v2601_v47 = vpack.c.bf16 %v2398_v39, %v2394_v34  ;;  %v2936_v48 = vpack.c.bf16 %v2527_v40, %v2523_v36  ;;  %v4817_v39 = vld [vmem:[#allocation5 + $0x640] ss:$8 sps:$4 sm:$0xff]   ;;  %v4822_v40 = vld [vmem:[#allocation5 + $0x654] ss:$8 sps:$4 sm:$0xff]  }
 0x4f4   : > { %v2602_v49 = vpack.c.bf16 %v2400_v46, %v2396_v44  ;;  %v2937_v41 = vpack.c.bf16 %v2529_v38, %v2525_v45 }
 0x4f6   : > { %v2403_v53 = vpop.f32.mrb[132].mxu0  ;;  %v2532_v55 = vpop.f32.mrb[132].mxu1  ;;  %2855 = vmatprep.mubr.bf16.mxu0 %v2602_v49  ;;  %2984 = vmatprep.mubr.bf16.mxu1 %v2937_v41 }
 0x4f7   : > { %v2405_v56 = vpop.f32.mrb[133].mxu0  ;;  %v2534_v57 = vpop.f32.mrb[133].mxu1  ;;  %2856 = vmatmul.mubr.bf16.vlgmr.msra.gmra.mrb[160].mxu0 %v2601_v47  ;;  %2985 = vmatmul.mubr.bf16.vlgmr.msra.gmra.mrb[160].mxu1 %v2936_v48  ;;  %v2404_v58 = vadd.f32 %v2403_v53, %v5626_v26  ;;  %v2533_v61 = vadd.f32 %v2532_v55, %v5626_v26  ;;  %v4820_v48 = vld [vmem:[#allocation5 + $0x650] ss:$8 sps:$4 sm:$0xff]   ;;  %v4825_v55 = vld [vmem:[#allocation5 + $0x664] ss:$8 sps:$4 sm:$0xff]  }
 0x4f8   : > { %v2407_v59 = vpop.f32.mrb[134].mxu0  ;;  %v2536_v51 = vpop.f32.mrb[134].mxu1  ;;  %3288 = vmatpush1.bf16.msra.mxu0 %v4805_v50  ;;  %3417 = vmatpush1.bf16.msra.mxu1 %v4805_v50  ;;  %v2406_v4 = vadd.f32 %v2405_v56, %v5629_v29  ;;  %v2535_v5 = vadd.f32 %v2534_v57, %v5629_v29 }
 0x4f9   : > { %v2408_v62 = vadd.f32 %v2407_v59, %v5626_v26  ;;  %v2537_v54 = vadd.f32 %v2536_v51, %v5626_v26  ;;  %v2409_v63 = vpop.f32.mrb[135].mxu0  ;;  %v2538_v1 = vpop.f32.mrb[135].mxu1  ;;  %3289 = vmatprep.subr.bf16.mxu0 %v4810_v52  ;;  %3418 = vmatprep.subr.bf16.mxu1 %v4810_v52 }
 0x4fa   : > { %v2410_v6 = vadd.f32 %v2409_v63, %v5629_v29  ;;  %v2539_v7 = vadd.f32 %v2538_v1, %v5629_v29  ;;  %v4828_v63 = vld [vmem:[#allocation5 + $0x674] ss:$8 sps:$4 sm:$0xff]  }
 0x4fb   : > { %v2603_v8 = vpack.c.bf16 %v2408_v62, %v2404_v58  ;;  %v2938_v0 = vpack.c.bf16 %v2537_v54, %v2533_v61  ;;  %v4823_v54 = vld [vmem:[#allocation5 + $0x660] ss:$8 sps:$4 sm:$0xff]  }
 0x4fc   : > { %v2604_v9 = vpack.c.bf16 %v2410_v6, %v2406_v4  ;;  %v2939_v10 = vpack.c.bf16 %v2539_v7, %v2535_v5  ;;  %3290 = vmatpush1.bf16.msra.mxu0 %v4808_v60  ;;  %3419 = vmatpush1.bf16.msra.mxu1 %v4808_v60 }
 0x4fd   : > { %3291 = vmatprep.subr.bf16.mxu0 %v4813_v2  ;;  %3420 = vmatprep.subr.bf16.mxu1 %v4813_v2 }
 0x4fe   : > { %v2413_v12 = vpop.f32.mrb[136].mxu0  ;;  %v2542_v14 = vpop.f32.mrb[136].mxu1  ;;  %2865 = vmatprep.mubr.bf16.mxu0 %v2604_v9  ;;  %2994 = vmatprep.mubr.bf16.mxu1 %v2939_v10 }
 0x4ff   : > { %v2415_v15 = vpop.f32.mrb[137].mxu0  ;;  %v2544_v17 = vpop.f32.mrb[137].mxu1  ;;  %2866 = vmatmul.mubr.bf16.gmra.mrb[164].mxu0 %v2603_v8  ;;  %2995 = vmatmul.mubr.bf16.gmra.mrb[164].mxu1 %v2938_v0  ;;  %v2414_v18 = vadd.f32 %v2413_v12, %v5626_v26  ;;  %v2543_v13 = vadd.f32 %v2542_v14, %v5626_v26  ;;  %v4826_v0 = vld [vmem:[#allocation5 + $0x670] ss:$8 sps:$4 sm:$0xff]   ;;  %v4831_v14 = vld [vmem:[#allocation5 + $0x684] ss:$8 sps:$4 sm:$0xff]  }
 0x500   : > { %v2417_v19 = vpop.f32.mrb[138].mxu0  ;;  %v2546_v20 = vpop.f32.mrb[138].mxu1  ;;  %3292 = vmatpush1.bf16.msra.mxu0 %v4811_v11  ;;  %3421 = vmatpush1.bf16.msra.mxu1 %v4811_v11  ;;  %v2416_v27 = vadd.f32 %v2415_v15, %v5629_v29  ;;  %v2545_v28 = vadd.f32 %v2544_v17, %v5629_v29 }
 0x501   : > { %v2418_v22 = vadd.f32 %v2417_v19, %v5626_v26  ;;  %v2547_v23 = vadd.f32 %v2546_v20, %v5626_v26  ;;  %v2419_v24 = vpop.f32.mrb[139].mxu0  ;;  %v2548_v16 = vpop.f32.mrb[139].mxu1  ;;  %3293 = vmatprep.subr.bf16.mxu0 %v4816_v3  ;;  %3422 = vmatprep.subr.bf16.mxu1 %v4816_v3 }
 0x502   : > { %v2420_v30 = vadd.f32 %v2419_v24, %v5629_v29  ;;  %v2549_v31 = vadd.f32 %v2548_v16, %v5629_v29  ;;  %v4834_v24 = vld [vmem:[#allocation5 + $0x694] ss:$8 sps:$4 sm:$0xff]  }
 0x503   : > { %v2605_v32 = vpack.c.bf16 %v2418_v22, %v2414_v18  ;;  %v2940_v33 = vpack.c.bf16 %v2547_v23, %v2543_v13  ;;  %v4829_v23 = vld [vmem:[#allocation5 + $0x680] ss:$8 sps:$4 sm:$0xff]  }
 0x504   : > { %v2606_v34 = vpack.c.bf16 %v2420_v30, %v2416_v27  ;;  %v2941_v36 = vpack.c.bf16 %v2549_v31, %v2545_v28  ;;  %3294 = vmatpush1.bf16.msra.mxu0 %v4814_v21  ;;  %3423 = vmatpush1.bf16.msra.mxu1 %v4814_v21 }
 0x505   : > { %3295 = vmatprep.subr.bf16.mxu0 %v4819_v25  ;;  %3424 = vmatprep.subr.bf16.mxu1 %v4819_v25 }
 0x506   : > { %v2423_v42 = vpop.f32.mrb[140].mxu0  ;;  %v2552_v43 = vpop.f32.mrb[140].mxu1  ;;  %2875 = vmatprep.mubr.bf16.mxu0 %v2606_v34  ;;  %3004 = vmatprep.mubr.bf16.mxu1 %v2941_v36 }
 0x507   : > { %v2425_v44 = vpop.f32.mrb[141].mxu0  ;;  %v2554_v45 = vpop.f32.mrb[141].mxu1  ;;  %2876 = vmatmul.mubr.bf16.gmra.mrb[168].mxu0 %v2605_v32  ;;  %3005 = vmatmul.mubr.bf16.gmra.mrb[168].mxu1 %v2940_v33  ;;  %v2424_v46 = vadd.f32 %v2423_v42, %v5626_v26  ;;  %v2553_v49 = vadd.f32 %v2552_v43, %v5626_v26  ;;  %v4832_v33 = vld [vmem:[#allocation5 + $0x690] ss:$8 sps:$4 sm:$0xff]   ;;  %v4837_v43 = vld [vmem:[#allocation5 + $0x6a4] ss:$8 sps:$4 sm:$0xff]  }
 0x508   : > { %v2427_v38 = vpop.f32.mrb[142].mxu0  ;;  %v2556_v47 = vpop.f32.mrb[142].mxu1  ;;  %3296 = vmatpush1.bf16.msra.mxu0 %v4817_v39  ;;  %3425 = vmatpush1.bf16.msra.mxu1 %v4817_v39  ;;  %v2426_v56 = vadd.f32 %v2425_v44, %v5629_v29  ;;  %v2555_v57 = vadd.f32 %v2554_v45, %v5629_v29 }
 0x509   : > { %v2428_v41 = vadd.f32 %v2427_v38, %v5626_v26  ;;  %v2557_v50 = vadd.f32 %v2556_v47, %v5626_v26  ;;  %v2429_v52 = vpop.f32.mrb[143].mxu0  ;;  %v2558_v53 = vpop.f32.mrb[143].mxu1  ;;  %3297 = vmatprep.subr.bf16.mxu0 %v4822_v40  ;;  %3426 = vmatprep.subr.bf16.mxu1 %v4822_v40 }
 0x50a   : > { %v2430_v58 = vadd.f32 %v2429_v52, %v5629_v29  ;;  %v2559_v59 = vadd.f32 %v2558_v53, %v5629_v29  ;;  %v4840_v52 = vld [vmem:[#allocation5 + $0x6b4] ss:$8 sps:$4 sm:$0xff]  }
 0x50b   : > { %v2607_v51 = vpack.c.bf16 %v2428_v41, %v2424_v46  ;;  %v2942_v60 = vpack.c.bf16 %v2557_v50, %v2553_v49  ;;  %v4835_v50 = vld [vmem:[#allocation5 + $0x6a0] ss:$8 sps:$4 sm:$0xff]  }
 0x50c   : > { %v2608_v61 = vpack.c.bf16 %v2430_v58, %v2426_v56  ;;  %v2943_v62 = vpack.c.bf16 %v2559_v59, %v2555_v57  ;;  %3298 = vmatpush1.bf16.msra.mxu0 %v4820_v48  ;;  %3427 = vmatpush1.bf16.msra.mxu1 %v4820_v48 }
 0x50d   : > { %3299 = vmatprep.subr.bf16.mxu0 %v4825_v55  ;;  %3428 = vmatprep.subr.bf16.mxu1 %v4825_v55 }
 0x50e   : > { %v2433_v1 = vpop.f32.mrb[144].mxu0  ;;  %v2562_v2 = vpop.f32.mrb[144].mxu1  ;;  %2885 = vmatprep.mubr.bf16.mxu0 %v2608_v61  ;;  %3014 = vmatprep.mubr.bf16.mxu1 %v2943_v62 }
 0x50f   : > { %v2435_v4 = vpop.f32.mrb[145].mxu0  ;;  %v2564_v5 = vpop.f32.mrb[145].mxu1  ;;  %2886 = vmatmul.mubr.bf16.gmra.mrb[172].mxu0 %v2607_v51  ;;  %3015 = vmatmul.mubr.bf16.gmra.mrb[172].mxu1 %v2942_v60  ;;  %v2434_v6 = vadd.f32 %v2433_v1, %v5626_v26  ;;  %v2563_v9 = vadd.f32 %v2562_v2, %v5626_v26  ;;  %v4838_v60 = vld [vmem:[#allocation5 + $0x6b0] ss:$8 sps:$4 sm:$0xff]   ;;  %v4843_v2 = vld [vmem:[#allocation5 + $0x6c4] ss:$8 sps:$4 sm:$0xff]  }
 0x510   : > { %v2437_v7 = vpop.f32.mrb[146].mxu0  ;;  %v2566_v8 = vpop.f32.mrb[146].mxu1  ;;  %3300 = vmatpush1.bf16.msra.mxu0 %v4823_v54  ;;  %3429 = vmatpush1.bf16.msra.mxu1 %v4823_v54  ;;  %v2436_v15 = vadd.f32 %v2435_v4, %v5629_v29  ;;  %v2565_v17 = vadd.f32 %v2564_v5, %v5629_v29 }
 0x511   : > { %v2438_v10 = vadd.f32 %v2437_v7, %v5626_v26  ;;  %v2567_v11 = vadd.f32 %v2566_v8, %v5626_v26  ;;  %v2439_v3 = vpop.f32.mrb[147].mxu0  ;;  %v2568_v12 = vpop.f32.mrb[147].mxu1  ;;  %3301 = vmatprep.subr.bf16.mxu0 %v4828_v63  ;;  %3430 = vmatprep.subr.bf16.mxu1 %v4828_v63 }
 0x512   : > { %v2440_v18 = vadd.f32 %v2439_v3, %v5629_v29  ;;  %v2569_v19 = vadd.f32 %v2568_v12, %v5629_v29  ;;  %v4846_v3 = vld [vmem:[#allocation5 + $0x6d4] ss:$8 sps:$4 sm:$0xff]  }
 0x513   : > { %v2609_v20 = vpack.c.bf16 %v2438_v10, %v2434_v6  ;;  %v2944_v21 = vpack.c.bf16 %v2567_v11, %v2563_v9  ;;  %v4841_v11 = vld [vmem:[#allocation5 + $0x6c0] ss:$8 sps:$4 sm:$0xff]  }
 0x514   : > { %v2610_v13 = vpack.c.bf16 %v2440_v18, %v2436_v15  ;;  %v2945_v22 = vpack.c.bf16 %v2569_v19, %v2565_v17  ;;  %3302 = vmatpush1.bf16.msra.mxu0 %v4826_v0  ;;  %3431 = vmatpush1.bf16.msra.mxu1 %v4826_v0 }
 0x515   : > { %3303 = vmatprep.subr.bf16.mxu0 %v4831_v14  ;;  %3432 = vmatprep.subr.bf16.mxu1 %v4831_v14 }
 0x516   : > { %v2443_v16 = vpop.f32.mrb[148].mxu0  ;;  %v2572_v25 = vpop.f32.mrb[148].mxu1  ;;  %2895 = vmatprep.mubr.bf16.mxu0 %v2610_v13  ;;  %3024 = vmatprep.mubr.bf16.mxu1 %v2945_v22 }
 0x517   : > { %v2445_v27 = vpop.f32.mrb[149].mxu0  ;;  %v2574_v28 = vpop.f32.mrb[149].mxu1  ;;  %2896 = vmatmul.mubr.bf16.gmra.mrb[176].mxu0 %v2609_v20  ;;  %3025 = vmatmul.mubr.bf16.gmra.mrb[176].mxu1 %v2944_v21  ;;  %v2444_v30 = vadd.f32 %v2443_v16, %v5626_v26  ;;  %v2573_v34 = vadd.f32 %v2572_v25, %v5626_v26  ;;  %v4844_v21 = vld [vmem:[#allocation5 + $0x6d0] ss:$8 sps:$4 sm:$0xff]  }
 0x518   : > { %v2447_v31 = vpop.f32.mrb[150].mxu0  ;;  %v2576_v32 = vpop.f32.mrb[150].mxu1  ;;  %3304 = vmatpush1.bf16.msra.mxu0 %v4829_v23  ;;  %3433 = vmatpush1.bf16.msra.mxu1 %v4829_v23  ;;  %v2446_v44 = vadd.f32 %v2445_v27, %v5629_v29  ;;  %v2575_v45 = vadd.f32 %v2574_v28, %v5629_v29 }
 0x519   : > { %v2448_v36 = vadd.f32 %v2447_v31, %v5626_v26  ;;  %v2577_v39 = vadd.f32 %v2576_v32, %v5626_v26  ;;  %v2449_v40 = vpop.f32.mrb[151].mxu0  ;;  %v2578_v42 = vpop.f32.mrb[151].mxu1  ;;  %3305 = vmatprep.subr.bf16.mxu0 %v4834_v24  ;;  %3434 = vmatprep.subr.bf16.mxu1 %v4834_v24 }
 0x51a   : > { %v2450_v46 = vadd.f32 %v2449_v40, %v5629_v29  ;;  %v2579_v38 = vadd.f32 %v2578_v42, %v5629_v29  ;;  %v4850_v40 = vld [vmem:[#allocation5 + $0x6f0] ss:$8 sps:$4 sm:$0xff]   ;;  %v2651_v42 = vld [vmem:[#allocation7 + $0x5] ss:$8 sm:$0x3] }
 0x51b   : > { %v2611_v47 = vpack.c.bf16 %v2448_v36, %v2444_v30  ;;  %v2946_v48 = vpack.c.bf16 %v2577_v39, %v2573_v34  ;;  %v4847_v36 = vld [vmem:[#allocation5 + $0x6e0] ss:$8 sps:$4 sm:$0xff]   ;;  %v4852_v39 = vld [vmem:[#allocation5 + $0x6f4] ss:$8 sps:$4 sm:$0xff]  }
 0x51c   : > { %v2612_v49 = vpack.c.bf16 %v2450_v46, %v2446_v44  ;;  %v2947_v41 = vpack.c.bf16 %v2579_v38, %v2575_v45  ;;  %3306 = vmatpush1.bf16.msra.mxu0 %v4832_v33  ;;  %3435 = vmatpush1.bf16.msra.mxu1 %v4832_v33  ;;  %v5699_v46 = vrot.slane %v2651_v42, %v5343_v37 }
 0x51d   : > { %3307 = vmatprep.subr.bf16.mxu0 %v4837_v43  ;;  %3436 = vmatprep.subr.bf16.mxu1 %v4837_v43  ;;  %v5696_v43 = vrot.slane %v2651_v42, %v5341_v35  ;;  %v4867_v42 = vld [vmem:[#allocation5 + $0x744] ss:$8 sps:$4 sm:$0xff]  }
 0x51e   : > { %v2453_v53 = vpop.f32.mrb[152].mxu0  ;;  %v2582_v55 = vpop.f32.mrb[152].mxu1  ;;  %2905 = vmatprep.mubr.bf16.mxu0 %v2612_v49  ;;  %3034 = vmatprep.mubr.bf16.mxu1 %v2947_v41 }
 0x51f   : > { %v2455_v56 = vpop.f32.mrb[153].mxu0  ;;  %v2584_v57 = vpop.f32.mrb[153].mxu1  ;;  %2906 = vmatmul.mubr.bf16.gmra.mrb[180].mxu0 %v2611_v47  ;;  %3035 = vmatmul.mubr.bf16.gmra.mrb[180].mxu1 %v2946_v48  ;;  %v2454_v58 = vadd.f32 %v2453_v53, %v5626_v26  ;;  %v2583_v61 = vadd.f32 %v2582_v55, %v5626_v26 }
 0x520   : > { %v2457_v59 = vpop.f32.mrb[154].mxu0  ;;  %v2586_v51 = vpop.f32.mrb[154].mxu1  ;;  %3308 = vmatpush1.bf16.msra.mxu0 %v4835_v50  ;;  %3437 = vmatpush1.bf16.msra.mxu1 %v4835_v50  ;;  %v2456_v4 = vadd.f32 %v2455_v56, %v5629_v29  ;;  %v2585_v5 = vadd.f32 %v2584_v57, %v5629_v29 }
 0x521   : > { %v2458_v62 = vadd.f32 %v2457_v59, %v5626_v26  ;;  %v2587_v54 = vadd.f32 %v2586_v51, %v5626_v26  ;;  %v2459_v63 = vpop.f32.mrb[155].mxu0  ;;  %v2588_v1 = vpop.f32.mrb[155].mxu1  ;;  %3309 = vmatprep.subr.bf16.mxu0 %v4840_v52  ;;  %3438 = vmatprep.subr.bf16.mxu1 %v4840_v52 }
 0x522   : > { %v2460_v6 = vadd.f32 %v2459_v63, %v5629_v29  ;;  %v2589_v7 = vadd.f32 %v2588_v1, %v5629_v29  ;;  %v4853_v63 = vld [vmem:[#allocation5 + $0x700] ss:$8 sps:$4 sm:$0xff]   ;;  %v4858_v1 = vld [vmem:[#allocation5 + $0x714] ss:$8 sps:$4 sm:$0xff]  }
 0x523   : > { %v2613_v8 = vpack.c.bf16 %v2458_v62, %v2454_v58  ;;  %v2948_v0 = vpack.c.bf16 %v2587_v54, %v2583_v61 }
 0x524   : > { %v2614_v9 = vpack.c.bf16 %v2460_v6, %v2456_v4  ;;  %v2949_v10 = vpack.c.bf16 %v2589_v7, %v2585_v5  ;;  %3310 = vmatpush1.bf16.msra.mxu0 %v4838_v60  ;;  %3439 = vmatpush1.bf16.msra.mxu1 %v4838_v60 }
 0x525   : > { %3311 = vmatprep.subr.bf16.mxu0 %v4843_v2  ;;  %3440 = vmatprep.subr.bf16.mxu1 %v4843_v2 }
 0x526   : > { %v2463_v12 = vpop.f32.mrb[156].mxu0  ;;  %v2592_v14 = vpop.f32.mrb[156].mxu1  ;;  %2915 = vmatprep.mubr.bf16.mxu0 %v2614_v9  ;;  %3044 = vmatprep.mubr.bf16.mxu1 %v2949_v10  ;;  %v4856_v9 = vld [vmem:[#allocation5 + $0x710] ss:$8 sps:$4 sm:$0xff]  }
 0x527   : > { %v2465_v15 = vpop.f32.mrb[157].mxu0  ;;  %v2594_v17 = vpop.f32.mrb[157].mxu1  ;;  %2916 = vmatmul.mubr.bf16.gmra.mrb[184].mxu0 %v2613_v8  ;;  %3045 = vmatmul.mubr.bf16.gmra.mrb[184].mxu1 %v2948_v0  ;;  %v2464_v18 = vadd.f32 %v2463_v12, %v5626_v26  ;;  %v2593_v13 = vadd.f32 %v2592_v14, %v5626_v26 }
 0x528   : > { %v2467_v19 = vpop.f32.mrb[158].mxu0  ;;  %v2596_v20 = vpop.f32.mrb[158].mxu1  ;;  %3312 = vmatpush1.bf16.msra.mxu0 %v4841_v11  ;;  %3441 = vmatpush1.bf16.msra.mxu1 %v4841_v11  ;;  %v2466_v25 = vadd.f32 %v2465_v15, %v5629_v29  ;;  %v2595_v27 = vadd.f32 %v2594_v17, %v5629_v29  ;;  %v4861_v15 = vld [vmem:[#allocation5 + $0x724] ss:$8 sps:$4 sm:$0xff]  }
 0x529   : > { %v2468_v22 = vadd.f32 %v2467_v19, %v5626_v26  ;;  %v2597_v23 = vadd.f32 %v2596_v20, %v5626_v26  ;;  %v2469_v24 = vpop.f32.mrb[159].mxu0  ;;  %v2598_v16 = vpop.f32.mrb[159].mxu1  ;;  %3313 = vmatprep.subr.bf16.mxu0 %v4846_v3  ;;  %3442 = vmatprep.subr.bf16.mxu1 %v4846_v3  ;;  %v4849_v26 = vld [vmem:[#allocation5 + $0x6e4] ss:$8 sps:$4 sm:$0xff]  }
 0x52a   : > { %v2470_v28 = vadd.f32 %v2469_v24, %v5629_v29  ;;  %v2599_v30 = vadd.f32 %v2598_v16, %v5629_v29  ;;  %v4855_v29 = vld [vmem:[#allocation5 + $0x704] ss:$8 sps:$4 sm:$0xff]   ;;  %v4859_v24 = vld [vmem:[#allocation5 + $0x720] ss:$8 sps:$4 sm:$0xff]   ;;  %v4864_v16 = vld [vmem:[#allocation5 + $0x734] ss:$8 sps:$4 sm:$0xff]  }
 0x52b   : > { %v2615_v31 = vpack.c.bf16 %v2468_v22, %v2464_v18  ;;  %v2950_v32 = vpack.c.bf16 %v2597_v23, %v2593_v13 }
 0x52c   : > { %v2616_v33 = vpack.c.bf16 %v2470_v28, %v2466_v25  ;;  %v2951_v34 = vpack.c.bf16 %v2599_v30, %v2595_v27  ;;  %3314 = vmatpush1.bf16.msra.mxu0 %v4844_v21  ;;  %3443 = vmatpush1.bf16.msra.mxu1 %v4844_v21 }
 0x52d   : > { %3315 = vmatprep.subr.bf16.mxu0 %v4849_v26  ;;  %3444 = vmatprep.subr.bf16.mxu1 %v4849_v26 }
 0x52e   : > { %2925 = vmatprep.mubr.bf16.mxu0 %v2616_v33  ;;  %3054 = vmatprep.mubr.bf16.mxu1 %v2951_v34  ;;  %v4862_v34 = vld [vmem:[#allocation5 + $0x730] ss:$8 sps:$4 sm:$0xff]  }
 0x52f   : > { %2926 = vmatmul.mubr.bf16.gmra.mrb[188].mxu0 %v2615_v31  ;;  %3055 = vmatmul.mubr.bf16.gmra.mrb[188].mxu1 %v2950_v32 }
 0x530   : > { %3316 = vmatpush1.bf16.msra.mxu0 %v4847_v36  ;;  %3445 = vmatpush1.bf16.msra.mxu1 %v4847_v36 }
 0x531   : > { %3317 = vmatprep.subr.bf16.mxu0 %v4852_v39  ;;  %3446 = vmatprep.subr.bf16.mxu1 %v4852_v39 }
 0x534   : > { %3318 = vmatpush1.bf16.msra.mxu0 %v4850_v40  ;;  %3447 = vmatpush1.bf16.msra.mxu1 %v4850_v40 }
 0x535   : > { %3751 = vmatprep.subr.bf16.mxu0 %v4855_v29  ;;  %3880 = vmatprep.subr.bf16.mxu1 %v4855_v29 }
 0x5ca   : > { %v2857_v44 = vpop.f32.mrb[160].mxu0  ;;  %v2986_v45 = vpop.f32.mrb[160].mxu1 }
 0x5cb   : > { %v2859_v38 = vpop.f32.mrb[161].mxu0  ;;  %v2988_v47 = vpop.f32.mrb[161].mxu1  ;;  %v2858_v41 = vadd.f32 %v2857_v44, %v5696_v43  ;;  %v2987_v50 = vadd.f32 %v2986_v45, %v5696_v43 }
 0x5cc   : > { %v2861_v48 = vpop.f32.mrb[162].mxu0  ;;  %v2990_v49 = vpop.f32.mrb[162].mxu1  ;;  %v2860_v57 = vadd.f32 %v2859_v38, %v5699_v46  ;;  %v2989_v58 = vadd.f32 %v2988_v47, %v5699_v46 }
 0x5cd   : > { %v2862_v52 = vadd.f32 %v2861_v48, %v5696_v43  ;;  %v2991_v53 = vadd.f32 %v2990_v49, %v5696_v43  ;;  %v2863_v55 = vpop.f32.mrb[163].mxu0  ;;  %v2992_v56 = vpop.f32.mrb[163].mxu1 }
 0x5ce   : > { %v2864_v59 = vadd.f32 %v2863_v55, %v5699_v46  ;;  %v2993_v51 = vadd.f32 %v2992_v56, %v5699_v46 }
 0x5cf   : > { %v3065_v60 = vpack.c.bf16 %v2862_v52, %v2858_v41  ;;  %v3400_v61 = vpack.c.bf16 %v2991_v53, %v2987_v50  ;;  %v4865_v52 = vld [vmem:[#allocation5 + $0x740] ss:$8 sps:$4 sm:$0xff]   ;;  %v4870_v53 = vld [vmem:[#allocation5 + $0x754] ss:$8 sps:$4 sm:$0xff]  }
 0x5d0   : > { %v3066_v62 = vpack.c.bf16 %v2864_v59, %v2860_v57  ;;  %v3401_v54 = vpack.c.bf16 %v2993_v51, %v2989_v58 }
 0x5d2   : > { %v2867_v2 = vpop.f32.mrb[164].mxu0  ;;  %v2996_v4 = vpop.f32.mrb[164].mxu1  ;;  %3319 = vmatprep.mubr.bf16.mxu0 %v3066_v62  ;;  %3448 = vmatprep.mubr.bf16.mxu1 %v3401_v54 }
 0x5d3   : > { %v2869_v5 = vpop.f32.mrb[165].mxu0  ;;  %v2998_v6 = vpop.f32.mrb[165].mxu1  ;;  %3320 = vmatmul.mubr.bf16.vlgmr.msra.gmra.mrb[192].mxu0 %v3065_v60  ;;  %3449 = vmatmul.mubr.bf16.vlgmr.msra.gmra.mrb[192].mxu1 %v3400_v61  ;;  %v2868_v7 = vadd.f32 %v2867_v2, %v5696_v43  ;;  %v2997_v10 = vadd.f32 %v2996_v4, %v5696_v43  ;;  %v4868_v61 = vld [vmem:[#allocation5 + $0x750] ss:$8 sps:$4 sm:$0xff]   ;;  %v4873_v4 = vld [vmem:[#allocation5 + $0x764] ss:$8 sps:$4 sm:$0xff]  }
 0x5d4   : > { %v2871_v8 = vpop.f32.mrb[166].mxu0  ;;  %v3000_v0 = vpop.f32.mrb[166].mxu1  ;;  %3752 = vmatpush1.bf16.msra.mxu0 %v4853_v63  ;;  %3881 = vmatpush1.bf16.msra.mxu1 %v4853_v63  ;;  %v2870_v17 = vadd.f32 %v2869_v5, %v5699_v46  ;;  %v2999_v18 = vadd.f32 %v2998_v6, %v5699_v46 }
 0x5d5   : > { %v2872_v11 = vadd.f32 %v2871_v8, %v5696_v43  ;;  %v3001_v3 = vadd.f32 %v3000_v0, %v5696_v43  ;;  %v2873_v12 = vpop.f32.mrb[167].mxu0  ;;  %v3002_v14 = vpop.f32.mrb[167].mxu1  ;;  %3753 = vmatprep.subr.bf16.mxu0 %v4858_v1  ;;  %3882 = vmatprep.subr.bf16.mxu1 %v4858_v1 }
 0x5d6   : > { %v2874_v19 = vadd.f32 %v2873_v12, %v5699_v46  ;;  %v3003_v20 = vadd.f32 %v3002_v14, %v5699_v46  ;;  %v4876_v12 = vld [vmem:[#allocation5 + $0x774] ss:$8 sps:$4 sm:$0xff]  }
 0x5d7   : > { %v3067_v21 = vpack.c.bf16 %v2872_v11, %v2868_v7  ;;  %v3402_v13 = vpack.c.bf16 %v3001_v3, %v2997_v10  ;;  %v4871_v3 = vld [vmem:[#allocation5 + $0x760] ss:$8 sps:$4 sm:$0xff]  }
 0x5d8   : > { %v3068_v22 = vpack.c.bf16 %v2874_v19, %v2870_v17  ;;  %v3403_v23 = vpack.c.bf16 %v3003_v20, %v2999_v18  ;;  %3754 = vmatpush1.bf16.msra.mxu0 %v4856_v9  ;;  %3883 = vmatpush1.bf16.msra.mxu1 %v4856_v9 }
 0x5d9   : > { %3755 = vmatprep.subr.bf16.mxu0 %v4861_v15  ;;  %3884 = vmatprep.subr.bf16.mxu1 %v4861_v15 }
 0x5da   : > { %v2877_v25 = vpop.f32.mrb[168].mxu0  ;;  %v3006_v27 = vpop.f32.mrb[168].mxu1  ;;  %3329 = vmatprep.mubr.bf16.mxu0 %v3068_v22  ;;  %3458 = vmatprep.mubr.bf16.mxu1 %v3403_v23 }
 0x5db   : > { %v2879_v28 = vpop.f32.mrb[169].mxu0  ;;  %v3008_v30 = vpop.f32.mrb[169].mxu1  ;;  %3330 = vmatmul.mubr.bf16.gmra.mrb[196].mxu0 %v3067_v21  ;;  %3459 = vmatmul.mubr.bf16.gmra.mrb[196].mxu1 %v3402_v13  ;;  %v2878_v31 = vadd.f32 %v2877_v25, %v5696_v43  ;;  %v3007_v26 = vadd.f32 %v3006_v27, %v5696_v43  ;;  %v4874_v13 = vld [vmem:[#allocation5 + $0x770] ss:$8 sps:$4 sm:$0xff]   ;;  %v4879_v27 = vld [vmem:[#allocation5 + $0x784] ss:$8 sps:$4 sm:$0xff]  }
 0x5dc   : > { %v2881_v32 = vpop.f32.mrb[170].mxu0  ;;  %v3010_v33 = vpop.f32.mrb[170].mxu1  ;;  %3756 = vmatpush1.bf16.msra.mxu0 %v4859_v24  ;;  %3885 = vmatpush1.bf16.msra.mxu1 %v4859_v24  ;;  %v2880_v44 = vadd.f32 %v2879_v28, %v5699_v46  ;;  %v3009_v45 = vadd.f32 %v3008_v30, %v5699_v46 }
 0x5dd   : > { %v2882_v36 = vadd.f32 %v2881_v32, %v5696_v43  ;;  %v3011_v39 = vadd.f32 %v3010_v33, %v5696_v43  ;;  %v2883_v40 = vpop.f32.mrb[171].mxu0  ;;  %v3012_v29 = vpop.f32.mrb[171].mxu1  ;;  %3757 = vmatprep.subr.bf16.mxu0 %v4864_v16  ;;  %3886 = vmatprep.subr.bf16.mxu1 %v4864_v16 }
 0x5de   : > { %v2884_v38 = vadd.f32 %v2883_v40, %v5699_v46  ;;  %v3013_v47 = vadd.f32 %v3012_v29, %v5699_v46  ;;  %v4882_v40 = vld [vmem:[#allocation5 + $0x794] ss:$8 sps:$4 sm:$0xff]  }
 0x5df   : > { %v3069_v48 = vpack.c.bf16 %v2882_v36, %v2878_v31  ;;  %v3404_v49 = vpack.c.bf16 %v3011_v39, %v3007_v26  ;;  %v4877_v39 = vld [vmem:[#allocation5 + $0x780] ss:$8 sps:$4 sm:$0xff]  }
 0x5e0   : > { %v3070_v41 = vpack.c.bf16 %v2884_v38, %v2880_v44  ;;  %v3405_v50 = vpack.c.bf16 %v3013_v47, %v3009_v45  ;;  %3758 = vmatpush1.bf16.msra.mxu0 %v4862_v34  ;;  %3887 = vmatpush1.bf16.msra.mxu1 %v4862_v34 }
 0x5e1   : > { %3759 = vmatprep.subr.bf16.mxu0 %v4867_v42  ;;  %3888 = vmatprep.subr.bf16.mxu1 %v4867_v42 }
 0x5e2   : > { %v2887_v55 = vpop.f32.mrb[172].mxu0  ;;  %v3016_v56 = vpop.f32.mrb[172].mxu1  ;;  %3339 = vmatprep.mubr.bf16.mxu0 %v3070_v41  ;;  %3468 = vmatprep.mubr.bf16.mxu1 %v3405_v50 }
 0x5e3   : > { %v2889_v57 = vpop.f32.mrb[173].mxu0  ;;  %v3018_v58 = vpop.f32.mrb[173].mxu1  ;;  %3340 = vmatmul.mubr.bf16.gmra.mrb[200].mxu0 %v3069_v48  ;;  %3469 = vmatmul.mubr.bf16.gmra.mrb[200].mxu1 %v3404_v49  ;;  %v2888_v59 = vadd.f32 %v2887_v55, %v5696_v43  ;;  %v3017_v62 = vadd.f32 %v3016_v56, %v5696_v43  ;;  %v4880_v49 = vld [vmem:[#allocation5 + $0x790] ss:$8 sps:$4 sm:$0xff]   ;;  %v4885_v56 = vld [vmem:[#allocation5 + $0x7a4] ss:$8 sps:$4 sm:$0xff]  }
 0x5e4   : > { %v2891_v51 = vpop.f32.mrb[174].mxu0  ;;  %v3020_v60 = vpop.f32.mrb[174].mxu1  ;;  %3760 = vmatpush1.bf16.msra.mxu0 %v4865_v52  ;;  %3889 = vmatpush1.bf16.msra.mxu1 %v4865_v52  ;;  %v2890_v5 = vadd.f32 %v2889_v57, %v5699_v46  ;;  %v3019_v6 = vadd.f32 %v3018_v58, %v5699_v46 }
 0x5e5   : > { %v2892_v54 = vadd.f32 %v2891_v51, %v5696_v43  ;;  %v3021_v63 = vadd.f32 %v3020_v60, %v5696_v43  ;;  %v2893_v1 = vpop.f32.mrb[175].mxu0  ;;  %v3022_v2 = vpop.f32.mrb[175].mxu1  ;;  %3761 = vmatprep.subr.bf16.mxu0 %v4870_v53  ;;  %3890 = vmatprep.subr.bf16.mxu1 %v4870_v53 }
 0x5e6   : > { %v2894_v7 = vadd.f32 %v2893_v1, %v5699_v46  ;;  %v3023_v8 = vadd.f32 %v3022_v2, %v5699_v46  ;;  %v4888_v1 = vld [vmem:[#allocation5 + $0x7b4] ss:$8 sps:$4 sm:$0xff]  }
 0x5e7   : > { %v3071_v0 = vpack.c.bf16 %v2892_v54, %v2888_v59  ;;  %v3406_v9 = vpack.c.bf16 %v3021_v63, %v3017_v62  ;;  %v4883_v63 = vld [vmem:[#allocation5 + $0x7a0] ss:$8 sps:$4 sm:$0xff]  }
 0x5e8   : > { %v3072_v10 = vpack.c.bf16 %v2894_v7, %v2890_v5  ;;  %v3407_v11 = vpack.c.bf16 %v3023_v8, %v3019_v6  ;;  %3762 = vmatpush1.bf16.msra.mxu0 %v4868_v61  ;;  %3891 = vmatpush1.bf16.msra.mxu1 %v4868_v61 }
 0x5e9   : > { %3763 = vmatprep.subr.bf16.mxu0 %v4873_v4  ;;  %3892 = vmatprep.subr.bf16.mxu1 %v4873_v4 }
 0x5ea   : > { %v2897_v14 = vpop.f32.mrb[176].mxu0  ;;  %v3026_v15 = vpop.f32.mrb[176].mxu1  ;;  %3349 = vmatprep.mubr.bf16.mxu0 %v3072_v10  ;;  %3478 = vmatprep.mubr.bf16.mxu1 %v3407_v11 }
 0x5eb   : > { %v2899_v17 = vpop.f32.mrb[177].mxu0  ;;  %v3028_v18 = vpop.f32.mrb[177].mxu1  ;;  %3350 = vmatmul.mubr.bf16.gmra.mrb[204].mxu0 %v3071_v0  ;;  %3479 = vmatmul.mubr.bf16.gmra.mrb[204].mxu1 %v3406_v9  ;;  %v2898_v19 = vadd.f32 %v2897_v14, %v5696_v43  ;;  %v3027_v22 = vadd.f32 %v3026_v15, %v5696_v43  ;;  %v4886_v9 = vld [vmem:[#allocation5 + $0x7b0] ss:$8 sps:$4 sm:$0xff]   ;;  %v4891_v15 = vld [vmem:[#allocation5 + $0x7c4] ss:$8 sps:$4 sm:$0xff]  }
 0x5ec   : > { %v2901_v20 = vpop.f32.mrb[178].mxu0  ;;  %v3030_v21 = vpop.f32.mrb[178].mxu1  ;;  %3764 = vmatpush1.bf16.msra.mxu0 %v4871_v3  ;;  %3893 = vmatpush1.bf16.msra.mxu1 %v4871_v3  ;;  %v2900_v28 = vadd.f32 %v2899_v17, %v5699_v46  ;;  %v3029_v30 = vadd.f32 %v3028_v18, %v5699_v46 }
 0x5ed   : > { %v2902_v23 = vadd.f32 %v2901_v20, %v5696_v43  ;;  %v3031_v24 = vadd.f32 %v3030_v21, %v5696_v43  ;;  %v2903_v16 = vpop.f32.mrb[179].mxu0  ;;  %v3032_v25 = vpop.f32.mrb[179].mxu1  ;;  %3765 = vmatprep.subr.bf16.mxu0 %v4876_v12  ;;  %3894 = vmatprep.subr.bf16.mxu1 %v4876_v12 }
 0x5ee   : > { %v2904_v31 = vadd.f32 %v2903_v16, %v5699_v46  ;;  %v3033_v32 = vadd.f32 %v3032_v25, %v5699_v46  ;;  %v4894_v16 = vld [vmem:[#allocation5 + $0x7d4] ss:$8 sps:$4 sm:$0xff]  }
 0x5ef   : > { %v3073_v33 = vpack.c.bf16 %v2902_v23, %v2898_v19  ;;  %v3408_v34 = vpack.c.bf16 %v3031_v24, %v3027_v22  ;;  %v4889_v24 = vld [vmem:[#allocation5 + $0x7c0] ss:$8 sps:$4 sm:$0xff]  }
 0x5f0   : > { %v3074_v26 = vpack.c.bf16 %v2904_v31, %v2900_v28  ;;  %v3409_v36 = vpack.c.bf16 %v3033_v32, %v3029_v30  ;;  %3766 = vmatpush1.bf16.msra.mxu0 %v4874_v13  ;;  %3895 = vmatpush1.bf16.msra.mxu1 %v4874_v13 }
 0x5f1   : > { %3767 = vmatprep.subr.bf16.mxu0 %v4879_v27  ;;  %3896 = vmatprep.subr.bf16.mxu1 %v4879_v27 }
 0x5f2   : > { %v2907_v29 = vpop.f32.mrb[180].mxu0  ;;  %v3036_v42 = vpop.f32.mrb[180].mxu1  ;;  %3359 = vmatprep.mubr.bf16.mxu0 %v3074_v26  ;;  %3488 = vmatprep.mubr.bf16.mxu1 %v3409_v36 }
 0x5f3   : > { %v2909_v44 = vpop.f32.mrb[181].mxu0  ;;  %v3038_v45 = vpop.f32.mrb[181].mxu1  ;;  %3360 = vmatmul.mubr.bf16.gmra.mrb[208].mxu0 %v3073_v33  ;;  %3489 = vmatmul.mubr.bf16.gmra.mrb[208].mxu1 %v3408_v34  ;;  %v2908_v38 = vadd.f32 %v2907_v29, %v5696_v43  ;;  %v3037_v41 = vadd.f32 %v3036_v42, %v5696_v43  ;;  %v4892_v34 = vld [vmem:[#allocation5 + $0x7d0] ss:$8 sps:$4 sm:$0xff]  }
 0x5f4   : > { %v2911_v47 = vpop.f32.mrb[182].mxu0  ;;  %v3040_v48 = vpop.f32.mrb[182].mxu1  ;;  %3768 = vmatpush1.bf16.msra.mxu0 %v4877_v39  ;;  %3897 = vmatpush1.bf16.msra.mxu1 %v4877_v39  ;;  %v2910_v57 = vadd.f32 %v2909_v44, %v5699_v46  ;;  %v3039_v58 = vadd.f32 %v3038_v45, %v5699_v46 }
 0x5f5   : > { %v2912_v50 = vadd.f32 %v2911_v47, %v5696_v43  ;;  %v3041_v52 = vadd.f32 %v3040_v48, %v5696_v43  ;;  %v2913_v53 = vpop.f32.mrb[183].mxu0  ;;  %v3042_v55 = vpop.f32.mrb[183].mxu1  ;;  %3769 = vmatprep.subr.bf16.mxu0 %v4882_v40  ;;  %3898 = vmatprep.subr.bf16.mxu1 %v4882_v40 }
 0x5f6   : > { %v2914_v59 = vadd.f32 %v2913_v53, %v5699_v46  ;;  %v3043_v51 = vadd.f32 %v3042_v55, %v5699_v46  ;;  %v4898_v53 = vld [vmem:[#allocation5 + $0x7f0] ss:$8 sps:$4 sm:$0xff]  }
 0x5f7   : > { %v3075_v60 = vpack.c.bf16 %v2912_v50, %v2908_v38  ;;  %v3410_v61 = vpack.c.bf16 %v3041_v52, %v3037_v41  ;;  %v4895_v50 = vld [vmem:[#allocation5 + $0x7e0] ss:$8 sps:$4 sm:$0xff]   ;;  %v4900_v52 = vld [vmem:[#allocation5 + $0x7f4] ss:$8 sps:$4 sm:$0xff]  }
 0x5f8   : > { %v3076_v62 = vpack.c.bf16 %v2914_v59, %v2910_v57  ;;  %v3411_v54 = vpack.c.bf16 %v3043_v51, %v3039_v58  ;;  %3770 = vmatpush1.bf16.msra.mxu0 %v4880_v49  ;;  %3899 = vmatpush1.bf16.msra.mxu1 %v4880_v49 }
 0x5f9   : > { %3771 = vmatprep.subr.bf16.mxu0 %v4885_v56  ;;  %3900 = vmatprep.subr.bf16.mxu1 %v4885_v56 }
 0x5fa   : > { %v2917_v2 = vpop.f32.mrb[184].mxu0  ;;  %v3046_v4 = vpop.f32.mrb[184].mxu1  ;;  %3369 = vmatprep.mubr.bf16.mxu0 %v3076_v62  ;;  %3498 = vmatprep.mubr.bf16.mxu1 %v3411_v54 }
 0x5fb   : > { %v2919_v5 = vpop.f32.mrb[185].mxu0  ;;  %v3048_v6 = vpop.f32.mrb[185].mxu1  ;;  %3370 = vmatmul.mubr.bf16.gmra.mrb[212].mxu0 %v3075_v60  ;;  %3499 = vmatmul.mubr.bf16.gmra.mrb[212].mxu1 %v3410_v61  ;;  %v2918_v7 = vadd.f32 %v2917_v2, %v5696_v43  ;;  %v3047_v10 = vadd.f32 %v3046_v4, %v5696_v43 }
 0x5fc   : > { %v2921_v8 = vpop.f32.mrb[186].mxu0  ;;  %v3050_v0 = vpop.f32.mrb[186].mxu1  ;;  %3772 = vmatpush1.bf16.msra.mxu0 %v4883_v63  ;;  %3901 = vmatpush1.bf16.msra.mxu1 %v4883_v63  ;;  %v2920_v17 = vadd.f32 %v2919_v5, %v5699_v46  ;;  %v3049_v18 = vadd.f32 %v3048_v6, %v5699_v46 }
 0x5fd   : > { %v2922_v11 = vadd.f32 %v2921_v8, %v5696_v43  ;;  %v3051_v3 = vadd.f32 %v3050_v0, %v5696_v43  ;;  %v2923_v12 = vpop.f32.mrb[187].mxu0  ;;  %v3052_v14 = vpop.f32.mrb[187].mxu1  ;;  %3773 = vmatprep.subr.bf16.mxu0 %v4888_v1  ;;  %3902 = vmatprep.subr.bf16.mxu1 %v4888_v1 }
 0x5fe   : > { %v2924_v19 = vadd.f32 %v2923_v12, %v5699_v46  ;;  %v3053_v20 = vadd.f32 %v3052_v14, %v5699_v46 }
 0x5ff   : > { %v3077_v21 = vpack.c.bf16 %v2922_v11, %v2918_v7  ;;  %v3412_v13 = vpack.c.bf16 %v3051_v3, %v3047_v10 }
 0x600   : > { %v3078_v22 = vpack.c.bf16 %v2924_v19, %v2920_v17  ;;  %v3413_v23 = vpack.c.bf16 %v3053_v20, %v3049_v18  ;;  %3774 = vmatpush1.bf16.msra.mxu0 %v4886_v9  ;;  %3903 = vmatpush1.bf16.msra.mxu1 %v4886_v9 }
 0x601   : > { %3775 = vmatprep.subr.bf16.mxu0 %v4891_v15  ;;  %3904 = vmatprep.subr.bf16.mxu1 %v4891_v15 }
 0x602   : > { %v2927_v25 = vpop.f32.mrb[188].mxu0  ;;  %v3056_v27 = vpop.f32.mrb[188].mxu1  ;;  %3379 = vmatprep.mubr.bf16.mxu0 %v3078_v22  ;;  %3508 = vmatprep.mubr.bf16.mxu1 %v3413_v23 }
 0x603   : > { %v2929_v28 = vpop.f32.mrb[189].mxu0  ;;  %v3058_v30 = vpop.f32.mrb[189].mxu1  ;;  %3380 = vmatmul.mubr.bf16.gmra.mrb[216].mxu0 %v3077_v21  ;;  %3509 = vmatmul.mubr.bf16.gmra.mrb[216].mxu1 %v3412_v13  ;;  %v2928_v31 = vadd.f32 %v2927_v25, %v5696_v43  ;;  %v3057_v26 = vadd.f32 %v3056_v27, %v5696_v43 }
 0x604   : > { %v2931_v32 = vpop.f32.mrb[190].mxu0  ;;  %v3060_v33 = vpop.f32.mrb[190].mxu1  ;;  %3776 = vmatpush1.bf16.msra.mxu0 %v4889_v24  ;;  %3905 = vmatpush1.bf16.msra.mxu1 %v4889_v24  ;;  %v2930_v42 = vadd.f32 %v2929_v28, %v5699_v46  ;;  %v3059_v44 = vadd.f32 %v3058_v30, %v5699_v46 }
 0x605   : > { %v2932_v36 = vadd.f32 %v2931_v32, %v5696_v43  ;;  %v3061_v39 = vadd.f32 %v3060_v33, %v5696_v43  ;;  %v2933_v40 = vpop.f32.mrb[191].mxu0  ;;  %v3062_v29 = vpop.f32.mrb[191].mxu1  ;;  %3777 = vmatprep.subr.bf16.mxu0 %v4894_v16  ;;  %3906 = vmatprep.subr.bf16.mxu1 %v4894_v16  ;;  %v4897_v43 = vld [vmem:[#allocation5 + $0x7e4] ss:$8 sps:$4 sm:$0xff]  }
 0x606   : > { %v2934_v45 = vadd.f32 %v2933_v40, %v5699_v46  ;;  %v3063_v38 = vadd.f32 %v3062_v29, %v5699_v46  ;;  %v3115_v46 = vld [vmem:[#allocation7 + $0x6] ss:$8 sm:$0x3] }
 0x607   : > { %v3079_v47 = vpack.c.bf16 %v2932_v36, %v2928_v31  ;;  %v3414_v48 = vpack.c.bf16 %v3061_v39, %v3057_v26  ;;  %v5766_v55 = vrot.slane %v3115_v46, %v5341_v35  ;;  %v5769_v58 = vrot.slane %v3115_v46, %v5343_v37 }
 0x608   : > { %v3080_v49 = vpack.c.bf16 %v2934_v45, %v2930_v42  ;;  %v3415_v41 = vpack.c.bf16 %v3063_v38, %v3059_v44  ;;  %3778 = vmatpush1.bf16.msra.mxu0 %v4892_v34  ;;  %3907 = vmatpush1.bf16.msra.mxu1 %v4892_v34 }
 0x609   : > { %3779 = vmatprep.subr.bf16.mxu0 %v4897_v43  ;;  %3908 = vmatprep.subr.bf16.mxu1 %v4897_v43 }
 0x60a   : > { %3389 = vmatprep.mubr.bf16.mxu0 %v3080_v49  ;;  %3518 = vmatprep.mubr.bf16.mxu1 %v3415_v41 }
 0x60b   : > { %3390 = vmatmul.mubr.bf16.gmra.mrb[220].mxu0 %v3079_v47  ;;  %3519 = vmatmul.mubr.bf16.gmra.mrb[220].mxu1 %v3414_v48 }
 0x60c   : > { %3780 = vmatpush1.bf16.msra.mxu0 %v4895_v50  ;;  %3909 = vmatpush1.bf16.msra.mxu1 %v4895_v50 }
 0x60d   : > { %3781 = vmatprep.subr.bf16.mxu0 %v4900_v52  ;;  %3910 = vmatprep.subr.bf16.mxu1 %v4900_v52 }
 0x610   : > { %3782 = vmatpush1.bf16.msra.mxu0 %v4898_v53  ;;  %3911 = vmatpush1.bf16.msra.mxu1 %v4898_v53 }
 0x6a6   : > { %v3321_v56 = vpop.f32.mrb[192].mxu0  ;;  %v3450_v57 = vpop.f32.mrb[192].mxu1 }
 0x6a7   : > { %v3323_v59 = vpop.f32.mrb[193].mxu0  ;;  %v3452_v51 = vpop.f32.mrb[193].mxu1  ;;  %v3322_v62 = vadd.f32 %v3321_v56, %v5766_v55  ;;  %v3451_v54 = vadd.f32 %v3450_v57, %v5766_v55 }
 0x6a8   : > { %v3325_v60 = vpop.f32.mrb[194].mxu0  ;;  %v3454_v61 = vpop.f32.mrb[194].mxu1  ;;  %v3324_v5 = vadd.f32 %v3323_v59, %v5769_v58  ;;  %v3453_v6 = vadd.f32 %v3452_v51, %v5769_v58 }
 0x6a9   : > { %v3326_v63 = vadd.f32 %v3325_v60, %v5766_v55  ;;  %v3455_v1 = vadd.f32 %v3454_v61, %v5766_v55  ;;  %v3327_v2 = vpop.f32.mrb[195].mxu0  ;;  %v3456_v4 = vpop.f32.mrb[195].mxu1 }
 0x6aa   : > { %v3328_v7 = vadd.f32 %v3327_v2, %v5769_v58  ;;  %v3457_v8 = vadd.f32 %v3456_v4, %v5769_v58 }
 0x6ab   : > { %v3529_v0 = vpack.c.bf16 %v3326_v63, %v3322_v62  ;;  %v3864_v9 = vpack.c.bf16 %v3455_v1, %v3451_v54 }
 0x6ac   : > { %v3530_v10 = vpack.c.bf16 %v3328_v7, %v3324_v5  ;;  %v3865_v11 = vpack.c.bf16 %v3457_v8, %v3453_v6 }
 0x6ae   : > { %v3331_v3 = vpop.f32.mrb[196].mxu0  ;;  %v3460_v12 = vpop.f32.mrb[196].mxu1  ;;  %3783 = vmatprep.mubr.bf16.mxu0 %v3530_v10  ;;  %3912 = vmatprep.mubr.bf16.mxu1 %v3865_v11 }
 0x6af   : > { %v3333_v14 = vpop.f32.mrb[197].mxu0  ;;  %v3462_v15 = vpop.f32.mrb[197].mxu1  ;;  %3784 = vmatmul.mubr.bf16.vlgmr.msra.gmra.mrb[224].mxu0 %v3529_v0  ;;  %3913 = vmatmul.mubr.bf16.vlgmr.msra.gmra.mrb[224].mxu1 %v3864_v9  ;;  %v3332_v19 = vadd.f32 %v3331_v3, %v5766_v55  ;;  %v3461_v20 = vadd.f32 %v3460_v12, %v5766_v55 }
 0x6b0   : > { %v3335_v17 = vpop.f32.mrb[198].mxu0  ;;  %v3464_v18 = vpop.f32.mrb[198].mxu1  ;;  %v3334_v24 = vadd.f32 %v3333_v14, %v5769_v58  ;;  %v3463_v16 = vadd.f32 %v3462_v15, %v5769_v58 }
 0x6b1   : > { %v3336_v21 = vadd.f32 %v3335_v17, %v5766_v55  ;;  %v3465_v13 = vadd.f32 %v3464_v18, %v5766_v55  ;;  %v3337_v22 = vpop.f32.mrb[199].mxu0  ;;  %v3466_v23 = vpop.f32.mrb[199].mxu1 }
 0x6b2   : > { %v3338_v25 = vadd.f32 %v3337_v22, %v5769_v58  ;;  %v3467_v27 = vadd.f32 %v3466_v23, %v5769_v58 }
 0x6b3   : > { %v3531_v28 = vpack.c.bf16 %v3336_v21, %v3332_v19  ;;  %v3866_v30 = vpack.c.bf16 %v3465_v13, %v3461_v20 }
 0x6b4   : > { %v3532_v31 = vpack.c.bf16 %v3338_v25, %v3334_v24  ;;  %v3867_v32 = vpack.c.bf16 %v3467_v27, %v3463_v16 }
 0x6b6   : > { %v3341_v33 = vpop.f32.mrb[200].mxu0  ;;  %v3470_v34 = vpop.f32.mrb[200].mxu1  ;;  %3793 = vmatprep.mubr.bf16.mxu0 %v3532_v31  ;;  %3922 = vmatprep.mubr.bf16.mxu1 %v3867_v32 }
 0x6b7   : > { %v3343_v26 = vpop.f32.mrb[201].mxu0  ;;  %v3472_v36 = vpop.f32.mrb[201].mxu1  ;;  %3794 = vmatmul.mubr.bf16.gmra.mrb[228].mxu0 %v3531_v28  ;;  %3923 = vmatmul.mubr.bf16.gmra.mrb[228].mxu1 %v3866_v30  ;;  %v3342_v29 = vadd.f32 %v3341_v33, %v5766_v55  ;;  %v3471_v42 = vadd.f32 %v3470_v34, %v5766_v55 }
 0x6b8   : > { %v3345_v39 = vpop.f32.mrb[202].mxu0  ;;  %v3474_v40 = vpop.f32.mrb[202].mxu1  ;;  %v3344_v48 = vadd.f32 %v3343_v26, %v5769_v58  ;;  %v3473_v49 = vadd.f32 %v3472_v36, %v5769_v58 }
 0x6b9   : > { %v3346_v44 = vadd.f32 %v3345_v39, %v5766_v55  ;;  %v3475_v45 = vadd.f32 %v3474_v40, %v5766_v55  ;;  %v3347_v38 = vpop.f32.mrb[203].mxu0  ;;  %v3476_v47 = vpop.f32.mrb[203].mxu1 }
 0x6ba   : > { %v3348_v41 = vadd.f32 %v3347_v38, %v5769_v58  ;;  %v3477_v43 = vadd.f32 %v3476_v47, %v5769_v58 }
 0x6bb   : > { %v3533_v50 = vpack.c.bf16 %v3346_v44, %v3342_v29  ;;  %v3868_v52 = vpack.c.bf16 %v3475_v45, %v3471_v42 }
 0x6bc   : > { %v3534_v53 = vpack.c.bf16 %v3348_v41, %v3344_v48  ;;  %v3869_v46 = vpack.c.bf16 %v3477_v43, %v3473_v49 }
 0x6be   : > { %v3351_v56 = vpop.f32.mrb[204].mxu0  ;;  %v3480_v57 = vpop.f32.mrb[204].mxu1  ;;  %3803 = vmatprep.mubr.bf16.mxu0 %v3534_v53  ;;  %3932 = vmatprep.mubr.bf16.mxu1 %v3869_v46 }
 0x6bf   : > { %v3353_v59 = vpop.f32.mrb[205].mxu0  ;;  %v3482_v51 = vpop.f32.mrb[205].mxu1  ;;  %3804 = vmatmul.mubr.bf16.gmra.mrb[232].mxu0 %v3533_v50  ;;  %3933 = vmatmul.mubr.bf16.gmra.mrb[232].mxu1 %v3868_v52  ;;  %v3352_v62 = vadd.f32 %v3351_v56, %v5766_v55  ;;  %v3481_v54 = vadd.f32 %v3480_v57, %v5766_v55 }
 0x6c0   : > { %v3355_v60 = vpop.f32.mrb[206].mxu0  ;;  %v3484_v61 = vpop.f32.mrb[206].mxu1  ;;  %v3354_v5 = vadd.f32 %v3353_v59, %v5769_v58  ;;  %v3483_v6 = vadd.f32 %v3482_v51, %v5769_v58 }
 0x6c1   : > { %v3356_v63 = vadd.f32 %v3355_v60, %v5766_v55  ;;  %v3485_v1 = vadd.f32 %v3484_v61, %v5766_v55  ;;  %v3357_v2 = vpop.f32.mrb[207].mxu0  ;;  %v3486_v4 = vpop.f32.mrb[207].mxu1 }
 0x6c2   : > { %v3358_v7 = vadd.f32 %v3357_v2, %v5769_v58  ;;  %v3487_v8 = vadd.f32 %v3486_v4, %v5769_v58 }
 0x6c3   : > { %v3535_v0 = vpack.c.bf16 %v3356_v63, %v3352_v62  ;;  %v3870_v9 = vpack.c.bf16 %v3485_v1, %v3481_v54 }
 0x6c4   : > { %v3536_v10 = vpack.c.bf16 %v3358_v7, %v3354_v5  ;;  %v3871_v11 = vpack.c.bf16 %v3487_v8, %v3483_v6 }
 0x6c6   : > { %v3361_v3 = vpop.f32.mrb[208].mxu0  ;;  %v3490_v12 = vpop.f32.mrb[208].mxu1  ;;  %3813 = vmatprep.mubr.bf16.mxu0 %v3536_v10  ;;  %3942 = vmatprep.mubr.bf16.mxu1 %v3871_v11 }
 0x6c7   : > { %v3363_v14 = vpop.f32.mrb[209].mxu0  ;;  %v3492_v15 = vpop.f32.mrb[209].mxu1  ;;  %3814 = vmatmul.mubr.bf16.gmra.mrb[236].mxu0 %v3535_v0  ;;  %3943 = vmatmul.mubr.bf16.gmra.mrb[236].mxu1 %v3870_v9  ;;  %v3362_v19 = vadd.f32 %v3361_v3, %v5766_v55  ;;  %v3491_v20 = vadd.f32 %v3490_v12, %v5766_v55 }
 0x6c8   : > { %v3365_v17 = vpop.f32.mrb[210].mxu0  ;;  %v3494_v18 = vpop.f32.mrb[210].mxu1  ;;  %v3364_v24 = vadd.f32 %v3363_v14, %v5769_v58  ;;  %v3493_v16 = vadd.f32 %v3492_v15, %v5769_v58 }
 0x6c9   : > { %v3366_v21 = vadd.f32 %v3365_v17, %v5766_v55  ;;  %v3495_v13 = vadd.f32 %v3494_v18, %v5766_v55  ;;  %v3367_v22 = vpop.f32.mrb[211].mxu0  ;;  %v3496_v23 = vpop.f32.mrb[211].mxu1 }
 0x6ca   : > { %v3368_v25 = vadd.f32 %v3367_v22, %v5769_v58  ;;  %v3497_v27 = vadd.f32 %v3496_v23, %v5769_v58 }
 0x6cb   : > { %v3537_v28 = vpack.c.bf16 %v3366_v21, %v3362_v19  ;;  %v3872_v30 = vpack.c.bf16 %v3495_v13, %v3491_v20 }
 0x6cc   : > { %v3538_v31 = vpack.c.bf16 %v3368_v25, %v3364_v24  ;;  %v3873_v32 = vpack.c.bf16 %v3497_v27, %v3493_v16 }
 0x6ce   : > { %v3371_v33 = vpop.f32.mrb[212].mxu0  ;;  %v3500_v34 = vpop.f32.mrb[212].mxu1  ;;  %3823 = vmatprep.mubr.bf16.mxu0 %v3538_v31  ;;  %3952 = vmatprep.mubr.bf16.mxu1 %v3873_v32 }
 0x6cf   : > { %v3373_v26 = vpop.f32.mrb[213].mxu0  ;;  %v3502_v36 = vpop.f32.mrb[213].mxu1  ;;  %3824 = vmatmul.mubr.bf16.gmra.mrb[240].mxu0 %v3537_v28  ;;  %3953 = vmatmul.mubr.bf16.gmra.mrb[240].mxu1 %v3872_v30  ;;  %v3372_v29 = vadd.f32 %v3371_v33, %v5766_v55  ;;  %v3501_v42 = vadd.f32 %v3500_v34, %v5766_v55 }
 0x6d0   : > { %v3375_v39 = vpop.f32.mrb[214].mxu0  ;;  %v3504_v40 = vpop.f32.mrb[214].mxu1  ;;  %v3374_v48 = vadd.f32 %v3373_v26, %v5769_v58  ;;  %v3503_v49 = vadd.f32 %v3502_v36, %v5769_v58 }
 0x6d1   : > { %v3376_v44 = vadd.f32 %v3375_v39, %v5766_v55  ;;  %v3505_v45 = vadd.f32 %v3504_v40, %v5766_v55  ;;  %v3377_v38 = vpop.f32.mrb[215].mxu0  ;;  %v3506_v47 = vpop.f32.mrb[215].mxu1 }
 0x6d2   : > { %v3378_v41 = vadd.f32 %v3377_v38, %v5769_v58  ;;  %v3507_v43 = vadd.f32 %v3506_v47, %v5769_v58 }
 0x6d3   : > { %v3539_v50 = vpack.c.bf16 %v3376_v44, %v3372_v29  ;;  %v3874_v52 = vpack.c.bf16 %v3505_v45, %v3501_v42 }
 0x6d4   : > { %v3540_v53 = vpack.c.bf16 %v3378_v41, %v3374_v48  ;;  %v3875_v46 = vpack.c.bf16 %v3507_v43, %v3503_v49 }
 0x6d6   : > { %v3381_v56 = vpop.f32.mrb[216].mxu0  ;;  %v3510_v57 = vpop.f32.mrb[216].mxu1  ;;  %3833 = vmatprep.mubr.bf16.mxu0 %v3540_v53  ;;  %3962 = vmatprep.mubr.bf16.mxu1 %v3875_v46 }
 0x6d7   : > { %v3383_v59 = vpop.f32.mrb[217].mxu0  ;;  %v3512_v51 = vpop.f32.mrb[217].mxu1  ;;  %3834 = vmatmul.mubr.bf16.gmra.mrb[244].mxu0 %v3539_v50  ;;  %3963 = vmatmul.mubr.bf16.gmra.mrb[244].mxu1 %v3874_v52  ;;  %v3382_v62 = vadd.f32 %v3381_v56, %v5766_v55  ;;  %v3511_v54 = vadd.f32 %v3510_v57, %v5766_v55 }
 0x6d8   : > { %v3385_v60 = vpop.f32.mrb[218].mxu0  ;;  %v3514_v61 = vpop.f32.mrb[218].mxu1  ;;  %v3384_v5 = vadd.f32 %v3383_v59, %v5769_v58  ;;  %v3513_v6 = vadd.f32 %v3512_v51, %v5769_v58 }
 0x6d9   : > { %v3386_v63 = vadd.f32 %v3385_v60, %v5766_v55  ;;  %v3515_v1 = vadd.f32 %v3514_v61, %v5766_v55  ;;  %v3387_v2 = vpop.f32.mrb[219].mxu0  ;;  %v3516_v4 = vpop.f32.mrb[219].mxu1 }
 0x6da   : > { %v3388_v7 = vadd.f32 %v3387_v2, %v5769_v58  ;;  %v3517_v8 = vadd.f32 %v3516_v4, %v5769_v58 }
 0x6db   : > { %v3541_v0 = vpack.c.bf16 %v3386_v63, %v3382_v62  ;;  %v3876_v9 = vpack.c.bf16 %v3515_v1, %v3511_v54 }
 0x6dc   : > { %v3542_v10 = vpack.c.bf16 %v3388_v7, %v3384_v5  ;;  %v3877_v11 = vpack.c.bf16 %v3517_v8, %v3513_v6 }
 0x6de   : > { %v3391_v3 = vpop.f32.mrb[220].mxu0  ;;  %v3520_v12 = vpop.f32.mrb[220].mxu1  ;;  %3843 = vmatprep.mubr.bf16.mxu0 %v3542_v10  ;;  %3972 = vmatprep.mubr.bf16.mxu1 %v3877_v11 }
 0x6df   : > { %v3393_v14 = vpop.f32.mrb[221].mxu0  ;;  %v3522_v15 = vpop.f32.mrb[221].mxu1  ;;  %3844 = vmatmul.mubr.bf16.gmra.mrb[248].mxu0 %v3541_v0  ;;  %3973 = vmatmul.mubr.bf16.gmra.mrb[248].mxu1 %v3876_v9  ;;  %v3392_v19 = vadd.f32 %v3391_v3, %v5766_v55  ;;  %v3521_v20 = vadd.f32 %v3520_v12, %v5766_v55 }
 0x6e0   : > { %v3395_v17 = vpop.f32.mrb[222].mxu0  ;;  %v3524_v18 = vpop.f32.mrb[222].mxu1  ;;  %v3394_v24 = vadd.f32 %v3393_v14, %v5769_v58  ;;  %v3523_v16 = vadd.f32 %v3522_v15, %v5769_v58 }
 0x6e1   : > { %v3396_v21 = vadd.f32 %v3395_v17, %v5766_v55  ;;  %v3525_v13 = vadd.f32 %v3524_v18, %v5766_v55  ;;  %v3397_v22 = vpop.f32.mrb[223].mxu0  ;;  %v3526_v23 = vpop.f32.mrb[223].mxu1  ;;  %v3579_v55 = vld [vmem:[#allocation7 + $0x7] ss:$8 sm:$0x3] }
 0x6e2   : > { %v3398_v25 = vadd.f32 %v3397_v22, %v5769_v58  ;;  %v3527_v27 = vadd.f32 %v3526_v23, %v5769_v58  ;;  %v5836_v33 = vrot.slane %v3579_v55, %v5341_v35  ;;  %v5839_v34 = vrot.slane %v3579_v55, %v5343_v37 }
 0x6e3   : > { %v3543_v28 = vpack.c.bf16 %v3396_v21, %v3392_v19  ;;  %v3878_v30 = vpack.c.bf16 %v3525_v13, %v3521_v20 }
 0x6e4   : > { %v3544_v31 = vpack.c.bf16 %v3398_v25, %v3394_v24  ;;  %v3879_v32 = vpack.c.bf16 %v3527_v27, %v3523_v16 }
 0x6e6   : > { %3853 = vmatprep.mubr.bf16.mxu0 %v3544_v31  ;;  %3982 = vmatprep.mubr.bf16.mxu1 %v3879_v32 }
 0x6e7   : > { %3854 = vmatmul.mubr.bf16.gmra.mrb[252].mxu0 %v3543_v28  ;;  %3983 = vmatmul.mubr.bf16.gmra.mrb[252].mxu1 %v3878_v30 }
 0x782   : > { %v3785_v26 = vpop.f32.mrb[224].mxu0  ;;  %v3914_v36 = vpop.f32.mrb[224].mxu1 }
 0x783   : > { %v3786_v58 = vadd.f32 %v3785_v26, %v5836_v33  ;;  %v3915_v39 = vadd.f32 %v3914_v36, %v5836_v33  ;;  %v3787_v40 = vpop.f32.mrb[225].mxu0  ;;  %v3916_v29 = vpop.f32.mrb[225].mxu1 }
 0x784   : > { %v3788_v42 = vadd.f32 %v3787_v40, %v5839_v34  ;;  %v3917_v44 = vadd.f32 %v3916_v29, %v5839_v34  ;;  %v3789_v45 = vpop.f32.mrb[226].mxu0  ;;  %v3918_v38 = vpop.f32.mrb[226].mxu1 }
 0x785   : > { %3993 = vst [vmem:[%s5847_s18] sm:$0xff] %v3786_v58  ;;  %4025 = vst [vmem:[%s5847_s18 + $0x100] sm:$0xff] %v3915_v39  ;;  %v3790_v35 = vadd.f32 %v3789_v45, %v5836_v33  ;;  %v3919_v37 = vadd.f32 %v3918_v38, %v5836_v33  ;;  %v3791_v47 = vpop.f32.mrb[227].mxu0  ;;  %v3920_v48 = vpop.f32.mrb[227].mxu1 }
 0x786   : > { %3994 = vst [vmem:[%s5847_s18 + $0x8] sm:$0xff] %v3788_v42  ;;  %4026 = vst [vmem:[%s5847_s18 + $0x108] sm:$0xff] %v3917_v44  ;;  %v3792_v49 = vadd.f32 %v3791_v47, %v5839_v34  ;;  %v3921_v41 = vadd.f32 %v3920_v48, %v5839_v34 }
 0x787   : > { %3995 = vst [vmem:[%s5847_s18 + $0x10] sm:$0xff] %v3790_v35  ;;  %4027 = vst [vmem:[%s5847_s18 + $0x110] sm:$0xff] %v3919_v37 }
 0x788   : > { %3996 = vst [vmem:[%s5847_s18 + $0x18] sm:$0xff] %v3792_v49  ;;  %4028 = vst [vmem:[%s5847_s18 + $0x118] sm:$0xff] %v3921_v41 }
 0x78a   : > { %v3795_v43 = vpop.f32.mrb[228].mxu0  ;;  %v3924_v50 = vpop.f32.mrb[228].mxu1 }
 0x78b   : > { %v3796_v52 = vadd.f32 %v3795_v43, %v5836_v33  ;;  %v3925_v53 = vadd.f32 %v3924_v50, %v5836_v33  ;;  %v3797_v46 = vpop.f32.mrb[229].mxu0  ;;  %v3926_v56 = vpop.f32.mrb[229].mxu1 }
 0x78c   : > { %v3798_v57 = vadd.f32 %v3797_v46, %v5839_v34  ;;  %v3927_v59 = vadd.f32 %v3926_v56, %v5839_v34  ;;  %v3799_v51 = vpop.f32.mrb[230].mxu0  ;;  %v3928_v60 = vpop.f32.mrb[230].mxu1 }
 0x78d   : > { %3997 = vst [vmem:[%s5847_s18 + $0x20] sm:$0xff] %v3796_v52  ;;  %4029 = vst [vmem:[%s5847_s18 + $0x120] sm:$0xff] %v3925_v53  ;;  %v3800_v61 = vadd.f32 %v3799_v51, %v5836_v33  ;;  %v3929_v62 = vadd.f32 %v3928_v60, %v5836_v33  ;;  %v3801_v54 = vpop.f32.mrb[231].mxu0  ;;  %v3930_v63 = vpop.f32.mrb[231].mxu1 }
 0x78e   : > { %3998 = vst [vmem:[%s5847_s18 + $0x28] sm:$0xff] %v3798_v57  ;;  %4030 = vst [vmem:[%s5847_s18 + $0x128] sm:$0xff] %v3927_v59  ;;  %v3802_v1 = vadd.f32 %v3801_v54, %v5839_v34  ;;  %v3931_v2 = vadd.f32 %v3930_v63, %v5839_v34 }
 0x78f   : > { %3999 = vst [vmem:[%s5847_s18 + $0x30] sm:$0xff] %v3800_v61  ;;  %4031 = vst [vmem:[%s5847_s18 + $0x130] sm:$0xff] %v3929_v62 }
 0x790   : > { %4000 = vst [vmem:[%s5847_s18 + $0x38] sm:$0xff] %v3802_v1  ;;  %4032 = vst [vmem:[%s5847_s18 + $0x138] sm:$0xff] %v3931_v2 }
 0x792   : > { %v3805_v4 = vpop.f32.mrb[232].mxu0  ;;  %v3934_v5 = vpop.f32.mrb[232].mxu1 }
 0x793   : > { %v3806_v6 = vadd.f32 %v3805_v4, %v5836_v33  ;;  %v3935_v7 = vadd.f32 %v3934_v5, %v5836_v33  ;;  %v3807_v8 = vpop.f32.mrb[233].mxu0  ;;  %v3936_v0 = vpop.f32.mrb[233].mxu1 }
 0x794   : > { %v3808_v9 = vadd.f32 %v3807_v8, %v5839_v34  ;;  %v3937_v10 = vadd.f32 %v3936_v0, %v5839_v34  ;;  %v3809_v11 = vpop.f32.mrb[234].mxu0  ;;  %v3938_v3 = vpop.f32.mrb[234].mxu1 }
 0x795   : > { %4001 = vst [vmem:[%s5847_s18 + $0x40] sm:$0xff] %v3806_v6  ;;  %4033 = vst [vmem:[%s5847_s18 + $0x140] sm:$0xff] %v3935_v7  ;;  %v3810_v12 = vadd.f32 %v3809_v11, %v5836_v33  ;;  %v3939_v14 = vadd.f32 %v3938_v3, %v5836_v33  ;;  %v3811_v15 = vpop.f32.mrb[235].mxu0  ;;  %v3940_v17 = vpop.f32.mrb[235].mxu1 }
 0x796   : > { %4002 = vst [vmem:[%s5847_s18 + $0x48] sm:$0xff] %v3808_v9  ;;  %4034 = vst [vmem:[%s5847_s18 + $0x148] sm:$0xff] %v3937_v10  ;;  %v3812_v18 = vadd.f32 %v3811_v15, %v5839_v34  ;;  %v3941_v19 = vadd.f32 %v3940_v17, %v5839_v34 }
 0x797   : > { %4003 = vst [vmem:[%s5847_s18 + $0x50] sm:$0xff] %v3810_v12  ;;  %4035 = vst [vmem:[%s5847_s18 + $0x150] sm:$0xff] %v3939_v14 }
 0x798   : > { %4004 = vst [vmem:[%s5847_s18 + $0x58] sm:$0xff] %v3812_v18  ;;  %4036 = vst [vmem:[%s5847_s18 + $0x158] sm:$0xff] %v3941_v19 }
 0x79a   : > { %v3815_v20 = vpop.f32.mrb[236].mxu0  ;;  %v3944_v21 = vpop.f32.mrb[236].mxu1 }
 0x79b   : > { %v3816_v13 = vadd.f32 %v3815_v20, %v5836_v33  ;;  %v3945_v22 = vadd.f32 %v3944_v21, %v5836_v33  ;;  %v3817_v23 = vpop.f32.mrb[237].mxu0  ;;  %v3946_v24 = vpop.f32.mrb[237].mxu1 }
 0x79c   : > { %v3818_v16 = vadd.f32 %v3817_v23, %v5839_v34  ;;  %v3947_v25 = vadd.f32 %v3946_v24, %v5839_v34  ;;  %v3819_v27 = vpop.f32.mrb[238].mxu0  ;;  %v3948_v28 = vpop.f32.mrb[238].mxu1 }
 0x79d   : > { %4005 = vst [vmem:[%s5847_s18 + $0x60] sm:$0xff] %v3816_v13  ;;  %4037 = vst [vmem:[%s5847_s18 + $0x160] sm:$0xff] %v3945_v22  ;;  %v3820_v30 = vadd.f32 %v3819_v27, %v5836_v33  ;;  %v3949_v31 = vadd.f32 %v3948_v28, %v5836_v33  ;;  %v3821_v32 = vpop.f32.mrb[239].mxu0  ;;  %v3950_v55 = vpop.f32.mrb[239].mxu1 }
 0x79e   : > { %4006 = vst [vmem:[%s5847_s18 + $0x68] sm:$0xff] %v3818_v16  ;;  %4038 = vst [vmem:[%s5847_s18 + $0x168] sm:$0xff] %v3947_v25  ;;  %v3822_v26 = vadd.f32 %v3821_v32, %v5839_v34  ;;  %v3951_v36 = vadd.f32 %v3950_v55, %v5839_v34 }
 0x79f   : > { %4007 = vst [vmem:[%s5847_s18 + $0x70] sm:$0xff] %v3820_v30  ;;  %4039 = vst [vmem:[%s5847_s18 + $0x170] sm:$0xff] %v3949_v31 }
 0x7a0   : > { %4008 = vst [vmem:[%s5847_s18 + $0x78] sm:$0xff] %v3822_v26  ;;  %4040 = vst [vmem:[%s5847_s18 + $0x178] sm:$0xff] %v3951_v36 }
 0x7a2   : > { %v3825_v58 = vpop.f32.mrb[240].mxu0  ;;  %v3954_v39 = vpop.f32.mrb[240].mxu1 }
 0x7a3   : > { %v3826_v40 = vadd.f32 %v3825_v58, %v5836_v33  ;;  %v3955_v29 = vadd.f32 %v3954_v39, %v5836_v33  ;;  %v3827_v42 = vpop.f32.mrb[241].mxu0  ;;  %v3956_v44 = vpop.f32.mrb[241].mxu1 }
 0x7a4   : > { %v3828_v45 = vadd.f32 %v3827_v42, %v5839_v34  ;;  %v3957_v38 = vadd.f32 %v3956_v44, %v5839_v34  ;;  %v3829_v35 = vpop.f32.mrb[242].mxu0  ;;  %v3958_v37 = vpop.f32.mrb[242].mxu1 }
 0x7a5   : > { %4009 = vst [vmem:[%s5847_s18 + $0x80] sm:$0xff] %v3826_v40  ;;  %4041 = vst [vmem:[%s5847_s18 + $0x180] sm:$0xff] %v3955_v29  ;;  %v3830_v47 = vadd.f32 %v3829_v35, %v5836_v33  ;;  %v3959_v48 = vadd.f32 %v3958_v37, %v5836_v33  ;;  %v3831_v49 = vpop.f32.mrb[243].mxu0  ;;  %v3960_v41 = vpop.f32.mrb[243].mxu1 }
 0x7a6   : > { %4010 = vst [vmem:[%s5847_s18 + $0x88] sm:$0xff] %v3828_v45  ;;  %4042 = vst [vmem:[%s5847_s18 + $0x188] sm:$0xff] %v3957_v38  ;;  %v3832_v43 = vadd.f32 %v3831_v49, %v5839_v34  ;;  %v3961_v50 = vadd.f32 %v3960_v41, %v5839_v34 }
 0x7a7   : > { %4011 = vst [vmem:[%s5847_s18 + $0x90] sm:$0xff] %v3830_v47  ;;  %4043 = vst [vmem:[%s5847_s18 + $0x190] sm:$0xff] %v3959_v48 }
 0x7a8   : > { %4012 = vst [vmem:[%s5847_s18 + $0x98] sm:$0xff] %v3832_v43  ;;  %4044 = vst [vmem:[%s5847_s18 + $0x198] sm:$0xff] %v3961_v50 }
 0x7aa   : > { %v3835_v52 = vpop.f32.mrb[244].mxu0  ;;  %v3964_v53 = vpop.f32.mrb[244].mxu1 }
 0x7ab   : > { %v3836_v46 = vadd.f32 %v3835_v52, %v5836_v33  ;;  %v3965_v56 = vadd.f32 %v3964_v53, %v5836_v33  ;;  %v3837_v57 = vpop.f32.mrb[245].mxu0  ;;  %v3966_v59 = vpop.f32.mrb[245].mxu1 }
 0x7ac   : > { %v3838_v51 = vadd.f32 %v3837_v57, %v5839_v34  ;;  %v3967_v60 = vadd.f32 %v3966_v59, %v5839_v34  ;;  %v3839_v61 = vpop.f32.mrb[246].mxu0  ;;  %v3968_v62 = vpop.f32.mrb[246].mxu1 }
 0x7ad   : > { %4013 = vst [vmem:[%s5847_s18 + $0xa0] sm:$0xff] %v3836_v46  ;;  %4045 = vst [vmem:[%s5847_s18 + $0x1a0] sm:$0xff] %v3965_v56  ;;  %v3840_v54 = vadd.f32 %v3839_v61, %v5836_v33  ;;  %v3969_v63 = vadd.f32 %v3968_v62, %v5836_v33  ;;  %v3841_v1 = vpop.f32.mrb[247].mxu0  ;;  %v3970_v2 = vpop.f32.mrb[247].mxu1 }
 0x7ae   : > { %4014 = vst [vmem:[%s5847_s18 + $0xa8] sm:$0xff] %v3838_v51  ;;  %4046 = vst [vmem:[%s5847_s18 + $0x1a8] sm:$0xff] %v3967_v60  ;;  %v3842_v4 = vadd.f32 %v3841_v1, %v5839_v34  ;;  %v3971_v5 = vadd.f32 %v3970_v2, %v5839_v34 }
 0x7af   : > { %4015 = vst [vmem:[%s5847_s18 + $0xb0] sm:$0xff] %v3840_v54  ;;  %4047 = vst [vmem:[%s5847_s18 + $0x1b0] sm:$0xff] %v3969_v63 }
 0x7b0   : > { %4016 = vst [vmem:[%s5847_s18 + $0xb8] sm:$0xff] %v3842_v4  ;;  %4048 = vst [vmem:[%s5847_s18 + $0x1b8] sm:$0xff] %v3971_v5 }
 0x7b2   : > { %v3845_v6 = vpop.f32.mrb[248].mxu0  ;;  %v3974_v7 = vpop.f32.mrb[248].mxu1 }
 0x7b3   : > { %v3846_v8 = vadd.f32 %v3845_v6, %v5836_v33  ;;  %v3975_v0 = vadd.f32 %v3974_v7, %v5836_v33  ;;  %v3847_v9 = vpop.f32.mrb[249].mxu0  ;;  %v3976_v10 = vpop.f32.mrb[249].mxu1 }
 0x7b4   : > { %v3848_v11 = vadd.f32 %v3847_v9, %v5839_v34  ;;  %v3977_v3 = vadd.f32 %v3976_v10, %v5839_v34  ;;  %v3849_v12 = vpop.f32.mrb[250].mxu0  ;;  %v3978_v14 = vpop.f32.mrb[250].mxu1 }
 0x7b5   : > { %4017 = vst [vmem:[%s5847_s18 + $0xc0] sm:$0xff] %v3846_v8  ;;  %4049 = vst [vmem:[%s5847_s18 + $0x1c0] sm:$0xff] %v3975_v0  ;;  %v3850_v15 = vadd.f32 %v3849_v12, %v5836_v33  ;;  %v3979_v17 = vadd.f32 %v3978_v14, %v5836_v33  ;;  %v3851_v18 = vpop.f32.mrb[251].mxu0  ;;  %v3980_v19 = vpop.f32.mrb[251].mxu1 }
 0x7b6   : > { %4018 = vst [vmem:[%s5847_s18 + $0xc8] sm:$0xff] %v3848_v11  ;;  %4050 = vst [vmem:[%s5847_s18 + $0x1c8] sm:$0xff] %v3977_v3  ;;  %v3852_v20 = vadd.f32 %v3851_v18, %v5839_v34  ;;  %v3981_v21 = vadd.f32 %v3980_v19, %v5839_v34 }
 0x7b7   : > { %4019 = vst [vmem:[%s5847_s18 + $0xd0] sm:$0xff] %v3850_v15  ;;  %4051 = vst [vmem:[%s5847_s18 + $0x1d0] sm:$0xff] %v3979_v17 }
 0x7b8   : > { %4020 = vst [vmem:[%s5847_s18 + $0xd8] sm:$0xff] %v3852_v20  ;;  %4052 = vst [vmem:[%s5847_s18 + $0x1d8] sm:$0xff] %v3981_v21 }
 0x7ba   : > { %v3855_v13 = vpop.f32.mrb[252].mxu0  ;;  %v3984_v22 = vpop.f32.mrb[252].mxu1 }
 0x7bb   : > { %v3856_v23 = vadd.f32 %v3855_v13, %v5836_v33  ;;  %v3985_v24 = vadd.f32 %v3984_v22, %v5836_v33  ;;  %v3857_v16 = vpop.f32.mrb[253].mxu0  ;;  %v3986_v25 = vpop.f32.mrb[253].mxu1 }
 0x7bc   : > { %v3858_v27 = vadd.f32 %v3857_v16, %v5839_v34  ;;  %v3987_v28 = vadd.f32 %v3986_v25, %v5839_v34  ;;  %v3859_v30 = vpop.f32.mrb[254].mxu0  ;;  %v3988_v31 = vpop.f32.mrb[254].mxu1 }
 0x7bd   : > { %4021 = vst [vmem:[%s5847_s18 + $0xe0] sm:$0xff] %v3856_v23  ;;  %4053 = vst [vmem:[%s5847_s18 + $0x1e0] sm:$0xff] %v3985_v24  ;;  %v3860_v32 = vadd.f32 %v3859_v30, %v5836_v33  ;;  %v3989_v55 = vadd.f32 %v3988_v31, %v5836_v33  ;;  %v3861_v26 = vpop.f32.mrb[255].mxu0  ;;  %v3990_v36 = vpop.f32.mrb[255].mxu1 }
 0x7be   : > { %4022 = vst [vmem:[%s5847_s18 + $0xe8] sm:$0xff] %v3858_v27  ;;  %4054 = vst [vmem:[%s5847_s18 + $0x1e8] sm:$0xff] %v3987_v28  ;;  %v3862_v58 = vadd.f32 %v3861_v26, %v5839_v34  ;;  %v3991_v39 = vadd.f32 %v3990_v36, %v5839_v34 }
 0x7bf   : > { %4023 = vst [vmem:[%s5847_s18 + $0xf0] sm:$0xff] %v3860_v32  ;;  %4055 = vst [vmem:[%s5847_s18 + $0x1f0] sm:$0xff] %v3989_v55 }
 0x7c0   : > { %4024 = vst [vmem:[%s5847_s18 + $0xf8] sm:$0xff] %v3862_v58  ;;  %4056 = vst [vmem:[%s5847_s18 + $0x1f8] sm:$0xff] %v3991_v39 }
 0x7c1   : > { %5000 = shalt.err (!%p4997_p2)
}
 0x7c2   : > { %s5001_s25 = scalar_lea.hbm %s5970_s26, 8192  ;;  %s5005_s21 = scalar_lea.hbm %s6027_s3, 16384 }
 0x7c3   : > { %p5002_p13 = scmp.ne.s32.totalorder %s5970_s26, %s5001_s25  ;;  %p5006_p4 = scmp.lt.u32.totalorder %s5970_s26, %s6027_s3 }
 0x7c4   : > { %p5007_p5 = scmp.lt.u32.totalorder %s5005_s21, %s5001_s25  ;;  %p5009_p11 = scmp.lt.u32.totalorder %s5001_s25, %s5970_s26 }
 0x7c5   : > { %p5003_p6 = pnand %p5002_p13, %p6041_p0 }
 0x7c6   : > { %p5008_p8 = por %p5007_p5, %p5006_p4 }
 0x7c7   : > { %p5004_p10 = pneg %p5003_p6 }
 0x7c8   : > { %p5010_p1 = por %p5009_p11, %p5008_p8 }
 0x7ca   : > { %p5011_p3 = pnand %p5010_p1, %p5004_p10 }
 0x7cc   : > { %5014 = shalt.err (!%p5011_p3)
}
 0x7cd   : > { %s5067_s30 = smov 256   ;;  %s5068_s18 = smov 16  }
 0x7ce   : > { %4454 = dma.vmem_to_hbm [thread:$0]  (%p6041_p0), %s5972_s17, 8192, %s5970_s26, %s4058_s27, %s5067_s30, %s5067_s30, %s5068_s18  }
 0x7cf PF: > { %s4087_s20 = sand.u32 1, %s5045_s12   ;;  %p6042_p7 = scmp.ne.s32.totalorder %s6032_s19, 0 }
 0x7d0   : > { %p6043_p9 = scmp.ge.s32.totalorder %s5057_s15, 2  ;;  %s4088_s16 = scalar_lea.sflag [#allocation4], %s4087_s20 }
 0x7d2   : > { %p4468_p12 = pnand %p6043_p9, %p6042_p7 }
 0x7d4   : > { %5040 = dma.done.wait (!%p4468_p12), %s4088_s16, 8192  }
 0x7d5   : > { %5042 = vsyncadd (!%p4468_p12), %s4088_s16, 4294959104  ;;  %p17_p2 = scmp.ge.s32.totalorder %s5199_s4, 4   ;;  %s6044_s12 = smov %s5049_s13 }
 0x7d6   : > { %s6045_s13 = smov %s5053_s14  ;;  %s6046_s14 = smov %s5215_s7 }
 0x7d7   : > { %s6047_s15 = smov %s5199_s4  ;;  %19 = sbr.rel (!%p17_p2) target bundleno = 6 (0x6), region = 99 }
 0x7de   :  { %4093 = vsyncpa [#allocation3], 1 }
 0x7df   :  { %4095 = vsyncpa [#allocation3 + $0x1], 1 }
 0x7e0   :  { %4096 = vsyncpa [#allocation6], 1 }
 0x7e1   :  { %4097 = vsyncpa [#allocation4], 1 }
 0x7e2   :  { %4099 = vsyncpa [#allocation4 + $0x1], 1 }

</bundles_post_ra>
